<compile_context>
chip_gen: v5e
topology: v5e:2x2
jax: 0.10.0
libtpu: 0.0.40
codegen_flags: <defaults>
</compile_context>

<pallas_src>
import numpy as np

import jax
import jax.numpy as jnp
from jax import lax
from jax.experimental import pallas as pl
from jax.experimental.pallas import tpu as pltpu


# ---------------------------------------------------------------------------
# Fused kernel: conv1 + pool1 + conv2 + pool2 + fc1 + fc2 + fc3
# ---------------------------------------------------------------------------
def lenet_fused_kernel(x_ref, w1_ref, b1_ref, w2_ref, b2_ref,
                       w3_ref, b3_ref, w4_ref, b4_ref, w5_ref, b5_ref, o_ref):
    bt = x_ref.shape[0]
    m = bt * 32                        # full image height stays on the sublane axis

    def up(v, k):
        # Rows shifted up by k: out[i] = v[(i + k) % m].  pltpu.roll follows
        # np.roll semantics (shift toward higher indices), hence m - k.
        # Wrap-around only lands in rows that are never read downstream.
        return v if k == 0 else pltpu.roll(v, m - k, 0)

    x_bf = x_ref[...].reshape(m, 96)                      # free reshape (32 % 8 == 0)
    x = x_bf.astype(jnp.float32)                          # rolled copies stay f32

    # conv1 (5x5, 3->6, VALID): full-height banded matmuls, K=96, N=28*6=168.
    acc1 = jnp.dot(x_bf, w1_ref[0], preferred_element_type=jnp.float32)
    for kh in range(1, 5):
        acc1 = acc1 + jnp.dot(up(x, kh).astype(jnp.bfloat16), w1_ref[kh],
                              preferred_element_type=jnp.float32)
    a1 = jnp.maximum(acc1 + b1_ref[...], 0.0)             # (m, 168) f32

    # pool1 (2x2 / 2): W via 6-lane shifted max, H via 1-row shifted max.
    # Valid data at rows 2*r1 (r1 < 14), lanes 12*wp + c (wp < 14, c < 6).
    pw1 = jnp.maximum(a1[:, :162], a1[:, 6:])
    p1 = jnp.maximum(pw1, up(pw1, 1))                     # (m, 162) f32

    # conv2 (5x5, 6->16, VALID): pooled rows sit at stride 2 -> shift by 2*kh.
    acc2 = jnp.dot(p1.astype(jnp.bfloat16), w2_ref[0],
                   preferred_element_type=jnp.float32)
    for kh in range(1, 5):
        acc2 = acc2 + jnp.dot(up(p1, 2 * kh).astype(jnp.bfloat16), w2_ref[kh],
                              preferred_element_type=jnp.float32)
    a2 = jnp.maximum(acc2 + b2_ref[...], 0.0)             # (m, 160) f32

    # pool2: valid at rows 4*r2 (r2 < 5), lanes 32*wq + c (wq < 5, c < 16).
    pw2 = jnp.maximum(a2[:, :144], a2[:, 16:])
    p2 = jnp.maximum(pw2, up(pw2, 2)).reshape(bt, 32, 144)

    # fc1 (400->120): PyTorch (C,H,W) flatten folded into the w3 row layout;
    # five small M=bt matmuls (cheap once the batch tile is large).
    h = jnp.dot(p2[:, 0, :].astype(jnp.bfloat16), w3_ref[0],
                preferred_element_type=jnp.float32)
    for r in range(1, 5):
        h = h + jnp.dot(p2[:, 4 * r, :].astype(jnp.bfloat16), w3_ref[r],
                        preferred_element_type=jnp.float32)
    h = jnp.maximum(h + b3_ref[...], 0.0).astype(jnp.bfloat16)

    # fc2 (120->84) + fc3 (84->10, zero-padded to 128 lane-dense output columns).
    h = jnp.dot(h, w4_ref[...], preferred_element_type=jnp.float32)
    h = jnp.maximum(h + b4_ref[...], 0.0).astype(jnp.bfloat16)
    out = jnp.dot(h, w5_ref[...], preferred_element_type=jnp.float32) + b5_ref[...]
    o_ref[...] = out.astype(o_ref.dtype)


# ---------------------------------------------------------------------------
# Wrapper
# ---------------------------------------------------------------------------
def _const_spec(a):
    zeros = (0,) * a.ndim
    return pl.BlockSpec(a.shape, lambda i, _z=zeros: _z)


def _pick_batch_tile(batch, cap=128):
    """Largest multiple-of-8 divisor of `batch` up to `cap` (sweep via cap);
    keeps >= 2 grid steps for batch >= 16 so v7x can use both TensorCores."""
    cands = [d for d in range(8, min(cap, batch) + 1, 8) if batch % d == 0]
    if not cands:
        return batch                      # single full-batch block
    bt = max(cands)
    if batch // bt == 1 and batch >= 16:
        two_step = [d for d in cands if batch // d >= 2]
        if two_step:
            bt = max(two_step)
    return bt


def net_forward_pallas(x_nchw, kp):
    b, c, hh, ww = x_nchw.shape
    assert (c, hh, ww) == (3, 32, 32), "Net requires 3x32x32 inputs (fc1 is 16*5*5)."
    # NCHW -> lane-dense (B, H, W*C) bf16; the only XLA-side layout op.
    x = jnp.transpose(x_nchw, (0, 2, 3, 1)).reshape(b, 32, 96).astype(jnp.bfloat16)

    bt = _pick_batch_tile(b)
    assert b % bt == 0
    weights = (kp["w1b"], kp["b1r"], kp["w2b"], kp["b2r"], kp["w3m"], kp["b3r"],
               kp["w4"], kp["b4r"], kp["w5p"], kp["b5p"])

    # Advisory cost estimate (nominal FLOPs of the reference net).
    flops_per_img = 2 * (28 * 28 * 75 * 6 + 10 * 10 * 150 * 16
                         + 400 * 120 + 120 * 84 + 84 * 10)
    w_bytes = sum(int(np.prod(w.shape)) * w.dtype.itemsize for w in weights)
    cost = pl.CostEstimate(flops=b * flops_per_img, transcendentals=0,
                           bytes_accessed=b * (32 * 96 * 2 + 128 * 4) + w_bytes)

    grid_spec = pltpu.PrefetchScalarGridSpec(
        num_scalar_prefetch=0,
        grid=(b // bt,),
        in_specs=[pl.BlockSpec((bt, 32, 96), lambda i: (i, 0, 0))]
                + [_const_spec(p) for p in weights],
        out_specs=pl.BlockSpec((bt, 128), lambda i: (i, 0)),
    )
    out_pad = pl.pallas_call(
        lenet_fused_kernel,
        out_shape=jax.ShapeDtypeStruct((b, 128), jnp.float32),
        grid_spec=grid_spec,
        cost_estimate=cost,
        compiler_params=pltpu.CompilerParams(
            dimension_semantics=("parallel",),
            vmem_limit_bytes=48 * 1024 * 1024),   # <= 48 MiB: safe on v7x's 64 MiB
    )(x, *weights)
    return out_pad[:, :10]            # lane-dense (bt,128) store; slice on the host


net_forward = jax.jit(net_forward_pallas)


# ---------------------------------------------------------------------------
# One-time host-side weight preparation
# ---------------------------------------------------------------------------
def _band_conv_weight(w_hwio, lane_stride, n_in_lanes, width_out):
    """Banded matmul weight: row j = input lane (lane_stride*w_in + ci),
    column n = wo*Cout + co of the lane-dense output row; zero elsewhere."""
    kh_, kw_, cin, cout = w_hwio.shape
    out = np.zeros((kh_, n_in_lanes, width_out * cout), np.float32)
    for kh in range(kh_):
        for wo in range(width_out):
            for kw in range(kw_):
                w_in = wo + kw
                out[kh, lane_stride * w_in: lane_stride * w_in + cin,
                    wo * cout:(wo + 1) * cout] = w_hwio[kh, kw]
    return out


def prepare_params(params):
    """Banded conv weights, fc1 row permutation (PyTorch C,H,W flatten order ->
    kernel lane layout), bf16 matmul operands, f32 lane-dense bias rows,
    fc3 weight/bias zero-padded to 128 output lanes."""
    w1 = np.asarray(params["w1"], np.float32)     # (5,5,3,6)  HWIO
    w2 = np.asarray(params["w2"], np.float32)     # (5,5,6,16) HWIO
    w3 = np.asarray(params["w3"], np.float32)     # (400,120)  PyTorch flatten order
    w5 = np.asarray(params["w5"], np.float32)     # (84,10)

    w1b = _band_conv_weight(w1, lane_stride=3, n_in_lanes=96, width_out=28)
    w2b = _band_conv_weight(w2, lane_stride=12, n_in_lanes=162, width_out=10)

    # Kernel sees pooled2 as 5 rows (h) of 144 lanes, valid at lane 32*w + c;
    # PyTorch flatten index is c*25 + h*5 + w.
    w3m = np.zeros((5, 144, 120), np.float32)
    for hh in range(5):
        for ww in range(5):
            for cc in range(16):
                w3m[hh, 32 * ww + cc, :] = w3[cc * 25 + hh * 5 + ww, :]

    # fc3 padded to a lane-dense 128-column output block.
    w5p = np.zeros((84, 128), np.float32)
    w5p[:, :10] = w5
    b5p = np.zeros((1, 128), np.float32)
    b5p[0, :10] = np.asarray(params["b5"], np.float32)

    b1 = np.asarray(params["b1"], np.float32)
    b2 = np.asarray(params["b2"], np.float32)
    return {
        "w1b": jnp.asarray(w1b, jnp.bfloat16),
        "b1r": jnp.asarray(np.tile(b1, 28)[None, :]),
        "w2b": jnp.asarray(w2b, jnp.bfloat16),
        "b2r": jnp.asarray(np.tile(b2, 10)[None, :]),
        "w3m": jnp.asarray(w3m, jnp.bfloat16),
        "b3r": jnp.asarray(np.asarray(params["b3"], np.float32)[None, :]),
        "w4":  jnp.asarray(params["w4"], jnp.bfloat16),
        "b4r": jnp.asarray(np.asarray(params["b4"], np.float32)[None, :]),
        "w5p": jnp.asarray(w5p, jnp.bfloat16),
        "b5p": jnp.asarray(b5p),
    }


# ---------------------------------------------------------------------------
# Parameter init (PyTorch-default-like uniform(-1/sqrt(fan_in), +1/sqrt(fan_in)))
# ---------------------------------------------------------------------------
def _uniform(key, shape, fan_in):
    bound = 1.0 / float(np.sqrt(fan_in))
    return jax.random.uniform(key, shape, jnp.float32, -bound, bound)


def init_params(key):
    ks = jax.random.split(key, 10)
    return {
        "w1": _uniform(ks[0], (5, 5, 3, 6), 75),     # HWIO
        "b1": _uniform(ks[1], (6,), 75),
        "w2": _uniform(ks[2], (5, 5, 6, 16), 150),
        "b2": _uniform(ks[3], (16,), 150),
        "w3": _uniform(ks[4], (400, 120), 400),      # rows in PyTorch (C,H,W) order
        "b3": _uniform(ks[5], (120,), 400),
        "w4": _uniform(ks[6], (120, 84), 120),
        "b4": _uniform(ks[7], (84,), 120),
        "w5": _uniform(ks[8], (84, 10), 84),
        "b5": _uniform(ks[9], (10,), 84),
    }


# ---------------------------------------------------------------------------
# Pure-JAX reference (f32) for correctness check
# ---------------------------------------------------------------------------
def net_forward_ref(x_nchw, params):
    x = jnp.transpose(x_nchw, (0, 2, 3, 1)).astype(jnp.float32)

    def conv_block(x, w, b):
        y = lax.conv_general_dilated(
            x, w, window_strides=(1, 1), padding="VALID",
            dimension_numbers=("NHWC", "HWIO", "NHWC"))
        y = jnp.maximum(y + b.reshape(1, 1, 1, -1), 0.0)
        return lax.reduce_window(
            y, -jnp.inf, lax.max,
            window_dimensions=(1, 2, 2, 1), window_strides=(1, 2, 2, 1),
            padding="VALID")

    x = conv_block(x, params["w1"], params["b1"])
    x = conv_block(x, params["w2"], params["b2"])
    bsz = x.shape[0]
    x = jnp.transpose(x, (0, 3, 1, 2)).reshape(bsz, 400)   # PyTorch flatten order
    x = jnp.maximum(x @ params["w3"] + params["b3"], 0.0)
    x = jnp.maximum(x @ params["w4"] + params["b4"], 0.0)
    return x @ params["w5"] + params["b5"]


if __name__ == "__main__":
    batch = 16   # input must be 3x32x32 (fc1 is 16*5*5); bt=8 -> 2 grid steps
    x = jax.random.normal(jax.random.PRNGKey(0), (batch, 3, 32, 32), jnp.float32)
    params = init_params(jax.random.PRNGKey(1))
    kparams = prepare_params(params)

    out = jax.block_until_ready(net_forward(x, kparams))
    assert out.shape == (batch, 10), out.shape

    ref = net_forward_ref(x, params)
    max_err = float(jnp.max(jnp.abs(out - ref)))
    # bf16 matmul operands (f32 accumulation) => small deviation vs the f32 ref.
    assert max_err < 1e-1, f"mismatch vs reference: {max_err}"

    print("KERNEL_OK")
</pallas_src>

<mosaic_0001>
module attributes {stable_mosaic.version = 11 : i64} {
  func.func @lenet_fused_kernel(%arg0: i32, %arg1: memref<8x32x96xbf16, #tpu.memory_space<vmem>>, %arg2: memref<5x96x168xbf16, #tpu.memory_space<vmem>>, %arg3: memref<1x168xf32, #tpu.memory_space<vmem>>, %arg4: memref<5x162x160xbf16, #tpu.memory_space<vmem>>, %arg5: memref<1x160xf32, #tpu.memory_space<vmem>>, %arg6: memref<5x144x120xbf16, #tpu.memory_space<vmem>>, %arg7: memref<1x120xf32, #tpu.memory_space<vmem>>, %arg8: memref<120x84xbf16, #tpu.memory_space<vmem>>, %arg9: memref<1x84xf32, #tpu.memory_space<vmem>>, %arg10: memref<84x128xbf16, #tpu.memory_space<vmem>>, %arg11: memref<1x128xf32, #tpu.memory_space<vmem>>, %arg12: memref<8x128xf32, #tpu.memory_space<vmem>>) attributes {dimension_semantics = [#tpu.dimension_semantics<parallel>], iteration_bounds = array<i64: 2>, scalar_prefetch = 0 : i64, scratch_operands = 0 : i64, tpu.core_type = #tpu.core_type<tc>, window_params = [{transform_indices = @transform_0, window_bounds = array<i64: 8, 32, 96>}, {pipeline_mode = #tpu.pipeline_mode<synchronous>, transform_indices = @transform_1, window_bounds = array<i64: 5, 96, 168>}, {pipeline_mode = #tpu.pipeline_mode<synchronous>, transform_indices = @transform_2, window_bounds = array<i64: 1, 168>}, {pipeline_mode = #tpu.pipeline_mode<synchronous>, transform_indices = @transform_3, window_bounds = array<i64: 5, 162, 160>}, {pipeline_mode = #tpu.pipeline_mode<synchronous>, transform_indices = @transform_4, window_bounds = array<i64: 1, 160>}, {pipeline_mode = #tpu.pipeline_mode<synchronous>, transform_indices = @transform_5, window_bounds = array<i64: 5, 144, 120>}, {pipeline_mode = #tpu.pipeline_mode<synchronous>, transform_indices = @transform_6, window_bounds = array<i64: 1, 120>}, {pipeline_mode = #tpu.pipeline_mode<synchronous>, transform_indices = @transform_7, window_bounds = array<i64: 120, 84>}, {pipeline_mode = #tpu.pipeline_mode<synchronous>, transform_indices = @transform_8, window_bounds = array<i64: 1, 84>}, {pipeline_mode = #tpu.pipeline_mode<synchronous>, transform_indices = @transform_9, window_bounds = array<i64: 84, 128>}, {pipeline_mode = #tpu.pipeline_mode<synchronous>, transform_indices = @transform_10, window_bounds = array<i64: 1, 128>}, {transform_indices = @transform_11, window_bounds = array<i64: 8, 128>}]} {
    %c0 = arith.constant 0 : index
    %c0_0 = arith.constant 0 : index
    %c0_1 = arith.constant 0 : index
    %0 = vector.load %arg1[%c0, %c0_0, %c0_1] : memref<8x32x96xbf16, #tpu.memory_space<vmem>>, vector<8x32x96xbf16>
    %1 = vector.shape_cast %0 : vector<8x32x96xbf16> to vector<256x96xbf16>
    %2 = arith.extf %1 : vector<256x96xbf16> to vector<256x96xf32>
    %c0_2 = arith.constant 0 : index
    %c0_3 = arith.constant 0 : index
    %c0_4 = arith.constant 0 : index
    %3 = vector.load %arg2[%c0_2, %c0_3, %c0_4] : memref<5x96x168xbf16, #tpu.memory_space<vmem>>, vector<1x96x168xbf16>
    %4 = vector.shape_cast %3 : vector<1x96x168xbf16> to vector<96x168xbf16>
    %cst = arith.constant dense<0.000000e+00> : vector<256x168xf32>
    %5 = tpu.matmul %1, %4, %cst {dimension_numbers = #tpu.dot_dimension_numbers<[1], [0], [0], [1], [0, 0, 1, 1], [], []>} : vector<256x96xbf16>, vector<96x168xbf16>, vector<256x168xf32> -> vector<256x168xf32>
    %c255_i32 = arith.constant 255 : i32
    %6 = tpu.dynamic_rotate %2 by %c255_i32 dim 0 : vector<256x96xf32>, i32 -> vector<256x96xf32>
    %7 = arith.truncf %6 : vector<256x96xf32> to vector<256x96xbf16>
    %c1 = arith.constant 1 : index
    %c0_5 = arith.constant 0 : index
    %c0_6 = arith.constant 0 : index
    %8 = vector.load %arg2[%c1, %c0_5, %c0_6] : memref<5x96x168xbf16, #tpu.memory_space<vmem>>, vector<1x96x168xbf16>
    %9 = vector.shape_cast %8 : vector<1x96x168xbf16> to vector<96x168xbf16>
    %cst_7 = arith.constant dense<0.000000e+00> : vector<256x168xf32>
    %10 = tpu.matmul %7, %9, %cst_7 {dimension_numbers = #tpu.dot_dimension_numbers<[1], [0], [0], [1], [0, 0, 1, 1], [], []>} : vector<256x96xbf16>, vector<96x168xbf16>, vector<256x168xf32> -> vector<256x168xf32>
    %11 = arith.addf %5, %10 : vector<256x168xf32>
    %c254_i32 = arith.constant 254 : i32
    %12 = tpu.dynamic_rotate %2 by %c254_i32 dim 0 : vector<256x96xf32>, i32 -> vector<256x96xf32>
    %13 = arith.truncf %12 : vector<256x96xf32> to vector<256x96xbf16>
    %c2 = arith.constant 2 : index
    %c0_8 = arith.constant 0 : index
    %c0_9 = arith.constant 0 : index
    %14 = vector.load %arg2[%c2, %c0_8, %c0_9] : memref<5x96x168xbf16, #tpu.memory_space<vmem>>, vector<1x96x168xbf16>
    %15 = vector.shape_cast %14 : vector<1x96x168xbf16> to vector<96x168xbf16>
    %cst_10 = arith.constant dense<0.000000e+00> : vector<256x168xf32>
    %16 = tpu.matmul %13, %15, %cst_10 {dimension_numbers = #tpu.dot_dimension_numbers<[1], [0], [0], [1], [0, 0, 1, 1], [], []>} : vector<256x96xbf16>, vector<96x168xbf16>, vector<256x168xf32> -> vector<256x168xf32>
    %17 = arith.addf %11, %16 : vector<256x168xf32>
    %c253_i32 = arith.constant 253 : i32
    %18 = tpu.dynamic_rotate %2 by %c253_i32 dim 0 : vector<256x96xf32>, i32 -> vector<256x96xf32>
    %19 = arith.truncf %18 : vector<256x96xf32> to vector<256x96xbf16>
    %c3 = arith.constant 3 : index
    %c0_11 = arith.constant 0 : index
    %c0_12 = arith.constant 0 : index
    %20 = vector.load %arg2[%c3, %c0_11, %c0_12] : memref<5x96x168xbf16, #tpu.memory_space<vmem>>, vector<1x96x168xbf16>
    %21 = vector.shape_cast %20 : vector<1x96x168xbf16> to vector<96x168xbf16>
    %cst_13 = arith.constant dense<0.000000e+00> : vector<256x168xf32>
    %22 = tpu.matmul %19, %21, %cst_13 {dimension_numbers = #tpu.dot_dimension_numbers<[1], [0], [0], [1], [0, 0, 1, 1], [], []>} : vector<256x96xbf16>, vector<96x168xbf16>, vector<256x168xf32> -> vector<256x168xf32>
    %23 = arith.addf %17, %22 : vector<256x168xf32>
    %c252_i32 = arith.constant 252 : i32
    %24 = tpu.dynamic_rotate %2 by %c252_i32 dim 0 : vector<256x96xf32>, i32 -> vector<256x96xf32>
    %25 = arith.truncf %24 : vector<256x96xf32> to vector<256x96xbf16>
    %c4 = arith.constant 4 : index
    %c0_14 = arith.constant 0 : index
    %c0_15 = arith.constant 0 : index
    %26 = vector.load %arg2[%c4, %c0_14, %c0_15] : memref<5x96x168xbf16, #tpu.memory_space<vmem>>, vector<1x96x168xbf16>
    %27 = vector.shape_cast %26 : vector<1x96x168xbf16> to vector<96x168xbf16>
    %cst_16 = arith.constant dense<0.000000e+00> : vector<256x168xf32>
    %28 = tpu.matmul %25, %27, %cst_16 {dimension_numbers = #tpu.dot_dimension_numbers<[1], [0], [0], [1], [0, 0, 1, 1], [], []>} : vector<256x96xbf16>, vector<96x168xbf16>, vector<256x168xf32> -> vector<256x168xf32>
    %29 = arith.addf %23, %28 : vector<256x168xf32>
    %c0_17 = arith.constant 0 : index
    %c0_18 = arith.constant 0 : index
    %30 = vector.load %arg3[%c0_17, %c0_18] : memref<1x168xf32, #tpu.memory_space<vmem>>, vector<1x168xf32>
    %31 = vector.broadcast %30 : vector<1x168xf32> to vector<256x168xf32>
    %32 = arith.addf %29, %31 : vector<256x168xf32>
    %cst_19 = arith.constant 0.000000e+00 : f32
    %33 = vector.broadcast %cst_19 : f32 to vector<256x168xf32>
    %34 = arith.maximumf %32, %33 : vector<256x168xf32>
    %35 = vector.extract_strided_slice %34 {offsets = [0, 0], sizes = [256, 162], strides = [1, 1]} : vector<256x168xf32> to vector<256x162xf32>
    %36 = vector.extract_strided_slice %34 {offsets = [0, 6], sizes = [256, 162], strides = [1, 1]} : vector<256x168xf32> to vector<256x162xf32>
    %37 = arith.maximumf %35, %36 : vector<256x162xf32>
    %c255_i32_20 = arith.constant 255 : i32
    %38 = tpu.dynamic_rotate %37 by %c255_i32_20 dim 0 : vector<256x162xf32>, i32 -> vector<256x162xf32>
    %39 = arith.maximumf %37, %38 : vector<256x162xf32>
    %40 = arith.truncf %39 : vector<256x162xf32> to vector<256x162xbf16>
    %c0_21 = arith.constant 0 : index
    %c0_22 = arith.constant 0 : index
    %c0_23 = arith.constant 0 : index
    %41 = vector.load %arg4[%c0_21, %c0_22, %c0_23] : memref<5x162x160xbf16, #tpu.memory_space<vmem>>, vector<1x162x160xbf16>
    %42 = vector.shape_cast %41 : vector<1x162x160xbf16> to vector<162x160xbf16>
    %cst_24 = arith.constant dense<0.000000e+00> : vector<256x160xf32>
    %43 = tpu.matmul %40, %42, %cst_24 {dimension_numbers = #tpu.dot_dimension_numbers<[1], [0], [0], [1], [0, 0, 1, 1], [], []>} : vector<256x162xbf16>, vector<162x160xbf16>, vector<256x160xf32> -> vector<256x160xf32>
    %c254_i32_25 = arith.constant 254 : i32
    %44 = tpu.dynamic_rotate %39 by %c254_i32_25 dim 0 : vector<256x162xf32>, i32 -> vector<256x162xf32>
    %45 = arith.truncf %44 : vector<256x162xf32> to vector<256x162xbf16>
    %c1_26 = arith.constant 1 : index
    %c0_27 = arith.constant 0 : index
    %c0_28 = arith.constant 0 : index
    %46 = vector.load %arg4[%c1_26, %c0_27, %c0_28] : memref<5x162x160xbf16, #tpu.memory_space<vmem>>, vector<1x162x160xbf16>
    %47 = vector.shape_cast %46 : vector<1x162x160xbf16> to vector<162x160xbf16>
    %cst_29 = arith.constant dense<0.000000e+00> : vector<256x160xf32>
    %48 = tpu.matmul %45, %47, %cst_29 {dimension_numbers = #tpu.dot_dimension_numbers<[1], [0], [0], [1], [0, 0, 1, 1], [], []>} : vector<256x162xbf16>, vector<162x160xbf16>, vector<256x160xf32> -> vector<256x160xf32>
    %49 = arith.addf %43, %48 : vector<256x160xf32>
    %c252_i32_30 = arith.constant 252 : i32
    %50 = tpu.dynamic_rotate %39 by %c252_i32_30 dim 0 : vector<256x162xf32>, i32 -> vector<256x162xf32>
    %51 = arith.truncf %50 : vector<256x162xf32> to vector<256x162xbf16>
    %c2_31 = arith.constant 2 : index
    %c0_32 = arith.constant 0 : index
    %c0_33 = arith.constant 0 : index
    %52 = vector.load %arg4[%c2_31, %c0_32, %c0_33] : memref<5x162x160xbf16, #tpu.memory_space<vmem>>, vector<1x162x160xbf16>
    %53 = vector.shape_cast %52 : vector<1x162x160xbf16> to vector<162x160xbf16>
    %cst_34 = arith.constant dense<0.000000e+00> : vector<256x160xf32>
    %54 = tpu.matmul %51, %53, %cst_34 {dimension_numbers = #tpu.dot_dimension_numbers<[1], [0], [0], [1], [0, 0, 1, 1], [], []>} : vector<256x162xbf16>, vector<162x160xbf16>, vector<256x160xf32> -> vector<256x160xf32>
    %55 = arith.addf %49, %54 : vector<256x160xf32>
    %c250_i32 = arith.constant 250 : i32
    %56 = tpu.dynamic_rotate %39 by %c250_i32 dim 0 : vector<256x162xf32>, i32 -> vector<256x162xf32>
    %57 = arith.truncf %56 : vector<256x162xf32> to vector<256x162xbf16>
    %c3_35 = arith.constant 3 : index
    %c0_36 = arith.constant 0 : index
    %c0_37 = arith.constant 0 : index
    %58 = vector.load %arg4[%c3_35, %c0_36, %c0_37] : memref<5x162x160xbf16, #tpu.memory_space<vmem>>, vector<1x162x160xbf16>
    %59 = vector.shape_cast %58 : vector<1x162x160xbf16> to vector<162x160xbf16>
    %cst_38 = arith.constant dense<0.000000e+00> : vector<256x160xf32>
    %60 = tpu.matmul %57, %59, %cst_38 {dimension_numbers = #tpu.dot_dimension_numbers<[1], [0], [0], [1], [0, 0, 1, 1], [], []>} : vector<256x162xbf16>, vector<162x160xbf16>, vector<256x160xf32> -> vector<256x160xf32>
    %61 = arith.addf %55, %60 : vector<256x160xf32>
    %c248_i32 = arith.constant 248 : i32
    %62 = tpu.dynamic_rotate %39 by %c248_i32 dim 0 : vector<256x162xf32>, i32 -> vector<256x162xf32>
    %63 = arith.truncf %62 : vector<256x162xf32> to vector<256x162xbf16>
    %c4_39 = arith.constant 4 : index
    %c0_40 = arith.constant 0 : index
    %c0_41 = arith.constant 0 : index
    %64 = vector.load %arg4[%c4_39, %c0_40, %c0_41] : memref<5x162x160xbf16, #tpu.memory_space<vmem>>, vector<1x162x160xbf16>
    %65 = vector.shape_cast %64 : vector<1x162x160xbf16> to vector<162x160xbf16>
    %cst_42 = arith.constant dense<0.000000e+00> : vector<256x160xf32>
    %66 = tpu.matmul %63, %65, %cst_42 {dimension_numbers = #tpu.dot_dimension_numbers<[1], [0], [0], [1], [0, 0, 1, 1], [], []>} : vector<256x162xbf16>, vector<162x160xbf16>, vector<256x160xf32> -> vector<256x160xf32>
    %67 = arith.addf %61, %66 : vector<256x160xf32>
    %c0_43 = arith.constant 0 : index
    %c0_44 = arith.constant 0 : index
    %68 = vector.load %arg5[%c0_43, %c0_44] : memref<1x160xf32, #tpu.memory_space<vmem>>, vector<1x160xf32>
    %69 = vector.broadcast %68 : vector<1x160xf32> to vector<256x160xf32>
    %70 = arith.addf %67, %69 : vector<256x160xf32>
    %cst_45 = arith.constant 0.000000e+00 : f32
    %71 = vector.broadcast %cst_45 : f32 to vector<256x160xf32>
    %72 = arith.maximumf %70, %71 : vector<256x160xf32>
    %73 = vector.extract_strided_slice %72 {offsets = [0, 0], sizes = [256, 144], strides = [1, 1]} : vector<256x160xf32> to vector<256x144xf32>
    %74 = vector.extract_strided_slice %72 {offsets = [0, 16], sizes = [256, 144], strides = [1, 1]} : vector<256x160xf32> to vector<256x144xf32>
    %75 = arith.maximumf %73, %74 : vector<256x144xf32>
    %c254_i32_46 = arith.constant 254 : i32
    %76 = tpu.dynamic_rotate %75 by %c254_i32_46 dim 0 : vector<256x144xf32>, i32 -> vector<256x144xf32>
    %77 = arith.maximumf %75, %76 : vector<256x144xf32>
    %78 = vector.shape_cast %77 : vector<256x144xf32> to vector<8x32x144xf32>
    %79 = vector.extract_strided_slice %78 {offsets = [0, 0, 0], sizes = [8, 1, 144], strides = [1, 1, 1]} : vector<8x32x144xf32> to vector<8x1x144xf32>
    %80 = vector.shape_cast %79 : vector<8x1x144xf32> to vector<8x144xf32>
    %81 = arith.truncf %80 : vector<8x144xf32> to vector<8x144xbf16>
    %c0_47 = arith.constant 0 : index
    %c0_48 = arith.constant 0 : index
    %c0_49 = arith.constant 0 : index
    %82 = vector.load %arg6[%c0_47, %c0_48, %c0_49] : memref<5x144x120xbf16, #tpu.memory_space<vmem>>, vector<1x144x120xbf16>
    %83 = vector.shape_cast %82 : vector<1x144x120xbf16> to vector<144x120xbf16>
    %cst_50 = arith.constant dense<0.000000e+00> : vector<8x120xf32>
    %84 = tpu.matmul %81, %83, %cst_50 {dimension_numbers = #tpu.dot_dimension_numbers<[1], [0], [0], [1], [0, 0, 1, 1], [], []>} : vector<8x144xbf16>, vector<144x120xbf16>, vector<8x120xf32> -> vector<8x120xf32>
    %85 = vector.extract_strided_slice %78 {offsets = [0, 4, 0], sizes = [8, 1, 144], strides = [1, 1, 1]} : vector<8x32x144xf32> to vector<8x1x144xf32>
    %86 = vector.shape_cast %85 : vector<8x1x144xf32> to vector<8x144xf32>
    %87 = arith.truncf %86 : vector<8x144xf32> to vector<8x144xbf16>
    %c1_51 = arith.constant 1 : index
    %c0_52 = arith.constant 0 : index
    %c0_53 = arith.constant 0 : index
    %88 = vector.load %arg6[%c1_51, %c0_52, %c0_53] : memref<5x144x120xbf16, #tpu.memory_space<vmem>>, vector<1x144x120xbf16>
    %89 = vector.shape_cast %88 : vector<1x144x120xbf16> to vector<144x120xbf16>
    %cst_54 = arith.constant dense<0.000000e+00> : vector<8x120xf32>
    %90 = tpu.matmul %87, %89, %cst_54 {dimension_numbers = #tpu.dot_dimension_numbers<[1], [0], [0], [1], [0, 0, 1, 1], [], []>} : vector<8x144xbf16>, vector<144x120xbf16>, vector<8x120xf32> -> vector<8x120xf32>
    %91 = arith.addf %84, %90 : vector<8x120xf32>
    %92 = vector.extract_strided_slice %78 {offsets = [0, 8, 0], sizes = [8, 1, 144], strides = [1, 1, 1]} : vector<8x32x144xf32> to vector<8x1x144xf32>
    %93 = vector.shape_cast %92 : vector<8x1x144xf32> to vector<8x144xf32>
    %94 = arith.truncf %93 : vector<8x144xf32> to vector<8x144xbf16>
    %c2_55 = arith.constant 2 : index
    %c0_56 = arith.constant 0 : index
    %c0_57 = arith.constant 0 : index
    %95 = vector.load %arg6[%c2_55, %c0_56, %c0_57] : memref<5x144x120xbf16, #tpu.memory_space<vmem>>, vector<1x144x120xbf16>
    %96 = vector.shape_cast %95 : vector<1x144x120xbf16> to vector<144x120xbf16>
    %cst_58 = arith.constant dense<0.000000e+00> : vector<8x120xf32>
    %97 = tpu.matmul %94, %96, %cst_58 {dimension_numbers = #tpu.dot_dimension_numbers<[1], [0], [0], [1], [0, 0, 1, 1], [], []>} : vector<8x144xbf16>, vector<144x120xbf16>, vector<8x120xf32> -> vector<8x120xf32>
    %98 = arith.addf %91, %97 : vector<8x120xf32>
    %99 = vector.extract_strided_slice %78 {offsets = [0, 12, 0], sizes = [8, 1, 144], strides = [1, 1, 1]} : vector<8x32x144xf32> to vector<8x1x144xf32>
    %100 = vector.shape_cast %99 : vector<8x1x144xf32> to vector<8x144xf32>
    %101 = arith.truncf %100 : vector<8x144xf32> to vector<8x144xbf16>
    %c3_59 = arith.constant 3 : index
    %c0_60 = arith.constant 0 : index
    %c0_61 = arith.constant 0 : index
    %102 = vector.load %arg6[%c3_59, %c0_60, %c0_61] : memref<5x144x120xbf16, #tpu.memory_space<vmem>>, vector<1x144x120xbf16>
    %103 = vector.shape_cast %102 : vector<1x144x120xbf16> to vector<144x120xbf16>
    %cst_62 = arith.constant dense<0.000000e+00> : vector<8x120xf32>
    %104 = tpu.matmul %101, %103, %cst_62 {dimension_numbers = #tpu.dot_dimension_numbers<[1], [0], [0], [1], [0, 0, 1, 1], [], []>} : vector<8x144xbf16>, vector<144x120xbf16>, vector<8x120xf32> -> vector<8x120xf32>
    %105 = arith.addf %98, %104 : vector<8x120xf32>
    %106 = vector.extract_strided_slice %78 {offsets = [0, 16, 0], sizes = [8, 1, 144], strides = [1, 1, 1]} : vector<8x32x144xf32> to vector<8x1x144xf32>
    %107 = vector.shape_cast %106 : vector<8x1x144xf32> to vector<8x144xf32>
    %108 = arith.truncf %107 : vector<8x144xf32> to vector<8x144xbf16>
    %c4_63 = arith.constant 4 : index
    %c0_64 = arith.constant 0 : index
    %c0_65 = arith.constant 0 : index
    %109 = vector.load %arg6[%c4_63, %c0_64, %c0_65] : memref<5x144x120xbf16, #tpu.memory_space<vmem>>, vector<1x144x120xbf16>
    %110 = vector.shape_cast %109 : vector<1x144x120xbf16> to vector<144x120xbf16>
    %cst_66 = arith.constant dense<0.000000e+00> : vector<8x120xf32>
    %111 = tpu.matmul %108, %110, %cst_66 {dimension_numbers = #tpu.dot_dimension_numbers<[1], [0], [0], [1], [0, 0, 1, 1], [], []>} : vector<8x144xbf16>, vector<144x120xbf16>, vector<8x120xf32> -> vector<8x120xf32>
    %112 = arith.addf %105, %111 : vector<8x120xf32>
    %c0_67 = arith.constant 0 : index
    %c0_68 = arith.constant 0 : index
    %113 = vector.load %arg7[%c0_67, %c0_68] : memref<1x120xf32, #tpu.memory_space<vmem>>, vector<1x120xf32>
    %114 = vector.broadcast %113 : vector<1x120xf32> to vector<8x120xf32>
    %115 = arith.addf %112, %114 : vector<8x120xf32>
    %cst_69 = arith.constant 0.000000e+00 : f32
    %116 = vector.broadcast %cst_69 : f32 to vector<8x120xf32>
    %117 = arith.maximumf %115, %116 : vector<8x120xf32>
    %118 = arith.truncf %117 : vector<8x120xf32> to vector<8x120xbf16>
    %c0_70 = arith.constant 0 : index
    %c0_71 = arith.constant 0 : index
    %119 = vector.load %arg8[%c0_70, %c0_71] : memref<120x84xbf16, #tpu.memory_space<vmem>>, vector<120x84xbf16>
    %cst_72 = arith.constant dense<0.000000e+00> : vector<8x84xf32>
    %120 = tpu.matmul %118, %119, %cst_72 {dimension_numbers = #tpu.dot_dimension_numbers<[1], [0], [0], [1], [0, 0, 1, 1], [], []>} : vector<8x120xbf16>, vector<120x84xbf16>, vector<8x84xf32> -> vector<8x84xf32>
    %c0_73 = arith.constant 0 : index
    %c0_74 = arith.constant 0 : index
    %121 = vector.load %arg9[%c0_73, %c0_74] : memref<1x84xf32, #tpu.memory_space<vmem>>, vector<1x84xf32>
    %122 = vector.broadcast %121 : vector<1x84xf32> to vector<8x84xf32>
    %123 = arith.addf %120, %122 : vector<8x84xf32>
    %cst_75 = arith.constant 0.000000e+00 : f32
    %124 = vector.broadcast %cst_75 : f32 to vector<8x84xf32>
    %125 = arith.maximumf %123, %124 : vector<8x84xf32>
    %126 = arith.truncf %125 : vector<8x84xf32> to vector<8x84xbf16>
    %c0_76 = arith.constant 0 : index
    %c0_77 = arith.constant 0 : index
    %127 = vector.load %arg10[%c0_76, %c0_77] : memref<84x128xbf16, #tpu.memory_space<vmem>>, vector<84x128xbf16>
    %cst_78 = arith.constant dense<0.000000e+00> : vector<8x128xf32>
    %128 = tpu.matmul %126, %127, %cst_78 {dimension_numbers = #tpu.dot_dimension_numbers<[1], [0], [0], [1], [0, 0, 1, 1], [], []>} : vector<8x84xbf16>, vector<84x128xbf16>, vector<8x128xf32> -> vector<8x128xf32>
    %c0_79 = arith.constant 0 : index
    %c0_80 = arith.constant 0 : index
    %129 = vector.load %arg11[%c0_79, %c0_80] : memref<1x128xf32, #tpu.memory_space<vmem>>, vector<1x128xf32>
    %130 = vector.broadcast %129 : vector<1x128xf32> to vector<8x128xf32>
    %131 = arith.addf %128, %130 : vector<8x128xf32>
    %c0_81 = arith.constant 0 : index
    %c0_82 = arith.constant 0 : index
    %132 = vector.load %arg12[%c0_81, %c0_82] : memref<8x128xf32, #tpu.memory_space<vmem>>, vector<8x128xf32>
    tpu.vector_store %arg12[%c0_81, %c0_82], %131 {strides = array<i32>} : memref<8x128xf32, #tpu.memory_space<vmem>>, vector<8x128xf32>,
    return
  }
  func.func @transform_0(%arg0: i32) -> (i32, i32, i32) {
    %c0_i32 = arith.constant 0 : i32
    %c0_i32_0 = arith.constant 0 : i32
    %c0_i32_1 = arith.constant 0 : i32
    return %arg0, %c0_i32, %c0_i32_0 : i32, i32, i32
  }
  func.func @transform_1(%arg0: i32) -> (i32, i32, i32) {
    %c0_i32 = arith.constant 0 : i32
    %c0_i32_0 = arith.constant 0 : i32
    %c0_i32_1 = arith.constant 0 : i32
    %c0_i32_2 = arith.constant 0 : i32
    return %c0_i32, %c0_i32_0, %c0_i32_1 : i32, i32, i32
  }
  func.func @transform_2(%arg0: i32) -> (i32, i32) {
    %c0_i32 = arith.constant 0 : i32
    %c0_i32_0 = arith.constant 0 : i32
    %c0_i32_1 = arith.constant 0 : i32
    return %c0_i32, %c0_i32_0 : i32, i32
  }
  func.func @transform_3(%arg0: i32) -> (i32, i32, i32) {
    %c0_i32 = arith.constant 0 : i32
    %c0_i32_0 = arith.constant 0 : i32
    %c0_i32_1 = arith.constant 0 : i32
    %c0_i32_2 = arith.constant 0 : i32
    return %c0_i32, %c0_i32_0, %c0_i32_1 : i32, i32, i32
  }
  func.func @transform_4(%arg0: i32) -> (i32, i32) {
    %c0_i32 = arith.constant 0 : i32
    %c0_i32_0 = arith.constant 0 : i32
    %c0_i32_1 = arith.constant 0 : i32
    return %c0_i32, %c0_i32_0 : i32, i32
  }
  func.func @transform_5(%arg0: i32) -> (i32, i32, i32) {
    %c0_i32 = arith.constant 0 : i32
    %c0_i32_0 = arith.constant 0 : i32
    %c0_i32_1 = arith.constant 0 : i32
    %c0_i32_2 = arith.constant 0 : i32
    return %c0_i32, %c0_i32_0, %c0_i32_1 : i32, i32, i32
  }
  func.func @transform_6(%arg0: i32) -> (i32, i32) {
    %c0_i32 = arith.constant 0 : i32
    %c0_i32_0 = arith.constant 0 : i32
    %c0_i32_1 = arith.constant 0 : i32
    return %c0_i32, %c0_i32_0 : i32, i32
  }
  func.func @transform_7(%arg0: i32) -> (i32, i32) {
    %c0_i32 = arith.constant 0 : i32
    %c0_i32_0 = arith.constant 0 : i32
    %c0_i32_1 = arith.constant 0 : i32
    return %c0_i32, %c0_i32_0 : i32, i32
  }
  func.func @transform_8(%arg0: i32) -> (i32, i32) {
    %c0_i32 = arith.constant 0 : i32
    %c0_i32_0 = arith.constant 0 : i32
    %c0_i32_1 = arith.constant 0 : i32
    return %c0_i32, %c0_i32_0 : i32, i32
  }
  func.func @transform_9(%arg0: i32) -> (i32, i32) {
    %c0_i32 = arith.constant 0 : i32
    %c0_i32_0 = arith.constant 0 : i32
    %c0_i32_1 = arith.constant 0 : i32
    return %c0_i32, %c0_i32_0 : i32, i32
  }
  func.func @transform_10(%arg0: i32) -> (i32, i32) {
    %c0_i32 = arith.constant 0 : i32
    %c0_i32_0 = arith.constant 0 : i32
    %c0_i32_1 = arith.constant 0 : i32
    return %c0_i32, %c0_i32_0 : i32, i32
  }
  func.func @transform_11(%arg0: i32) -> (i32, i32) {
    %c0_i32 = arith.constant 0 : i32
    %c0_i32_0 = arith.constant 0 : i32
    return %arg0, %c0_i32 : i32, i32
  }
}

</mosaic_0001>

<bundles_post_ra>
// kernel: net_forward_pallas.1
= control target key start
LH: loop header
LB: loop body
LE: loop exit
PB: predicated region body
PF: predicated region fallthrough
CT: control target
= control target key end

     0   :  { %s17326_s0 = inlined_call_operand.vmem [shape: bf16[16,32,96], index: 0, kind: input, shape index: {}]   ;;  %s17327_s1 = inlined_call_operand.vmem [shape: bf16[5,96,168], index: 1, kind: input, shape index: {}]   ;;  %s17328_s2 = inlined_call_operand.vmem [shape: f32[1,168], index: 2, kind: input, shape index: {}]   ;;  %s17329_s3 = inlined_call_operand.vmem [shape: bf16[5,162,160], index: 3, kind: input, shape index: {}]   ;;  %s17330_s4 = inlined_call_operand.vmem [shape: f32[1,160], index: 4, kind: input, shape index: {}]   ;;  %s17331_s5 = inlined_call_operand.vmem [shape: bf16[5,144,120], index: 5, kind: input, shape index: {}]   ;;  %s17332_s6 = inlined_call_operand.vmem [shape: f32[1,120], index: 6, kind: input, shape index: {}]   ;;  %s17333_s7 = inlined_call_operand.vmem [shape: bf16[120,84], index: 7, kind: input, shape index: {}]   ;;  %s17334_s8 = inlined_call_operand.vmem [shape: f32[1,84], index: 8, kind: input, shape index: {}]   ;;  %s17335_s9 = inlined_call_operand.vmem [shape: bf16[84,128], index: 9, kind: input, shape index: {}]   ;;  %s17336_s10 = inlined_call_operand.vmem [shape: f32[1,128], index: 10, kind: input, shape index: {}]   ;;  %s17337_s11 = inlined_call_operand.hbm [shape: f32[16,128], index: 11, kind: output, shape index: {}]  }
   0x1   :  { %17746 = sst [smem:[#allocation117_spill]] %s17326_s0 }
   0x2   :  { %16 = vsyncpa [#allocation3], 0 }
   0x3   :  { %18 = vsyncpa [#allocation3 + $0x1], 0  ;;  %s10566_s17 = smov 0   ;;  %s10568_s18 = smov 0  }
   0x4   :  { %s10570_s19 = smov 0   ;;  %s10572_s20 = smov 0  }
   0x5 LB: > { %17747 = sst [smem:[#allocation5_spill]] %s10498_s19  ;;  %s17338_s21 = sadd.s32 4294967295, %s10502_s20   ;;  %s10502_s20 = sphi %s10572_s20, %s18857_s20   ;;  %s10498_s19 = sphi %s10570_s19, %s18854_s19   ;;  %s10494_s18 = sphi %s10568_s18, %s18856_s18   ;;  %s10490_s17 = sphi %s10566_s17, %s18855_s17  }
   0x6   : > { %s8355_s22 = sadd.s32 4294967294, %s10502_s20   ;;  %s10589_s23 = sadd.s32 1, %s10502_s20  }
   0x7   : > { %s267_s24 = sadd.s32 1, %s10498_s19  ;;  %s264_s25 = ssub.s32 %s10502_s20, %s10589_s23 }
   0x8   : > { %p277_p0 = scmp.ne.s32.totalorder %s10498_s19, %s10494_s18  ;;  %p265_p1 = scmp.eq.s32.totalorder %s264_s25, 0 }
   0x9   : > { %p278_p2 = scmp.eq.s32.totalorder %s17338_s21, 1  ;;  %p283_p3 = scmp.ne.s32.totalorder %s10494_s18, %s10490_s17 }
   0xa   : > { %p284_p4 = scmp.eq.s32.totalorder %s8355_s22, 1  ;;  %p8358_p7 = scmp.ge.s32.totalorder %s10502_s20, 1 }
   0xb   : > { %s10601_s26 = scalar_select %p265_p1, %s10498_s19, %s267_s24  }
   0xc   : > { %p10603_p5 = por %p278_p2, %p277_p0  ;;  %p10607_p6 = por %p284_p4, %p283_p3 }
   0xd   : > { %17748 = sst [smem:[#allocation6_spill]] %s10601_s26  ;;  %p342_p8 = scmp.lt.s32.totalorder %s10502_s20, 3 }
   0xf   : > { %p343_p9 = pnand %p8358_p7, %p342_p8 }
  0x11   : > { %346 = sbr.rel (%p343_p9) target bundleno = 2850 (0xb22), region = 64 }
  0x16   : > { %v8417_v0 = vld [vmem:[%s17327_s1 + $0xb0] sm:$0xf]  ;;  %v9870_v1 = vld [vmem:[%s17327_s1 + $0xb4] sm:$0xf0]  ;;  %v9869_v2 = vld [vmem:[%s17327_s1 + $0xb4] sm:$0xf]  ;;  %v499_v22 = vlaneseq }
  0x17   : > { %v8418_v3 = vor.u32 %v9870_v1, %v8417_v0  ;;  %v8419_v4 = vld [vmem:[%s17327_s1 + $0xb8] sm:$0xf0]  ;;  %v8409_v5 = vld [vmem:[%s17327_s1 + $0xa0] sm:$0xf]  ;;  %v9868_v6 = vld [vmem:[%s17327_s1 + $0xa4] sm:$0xf0] }
  0x18   : > { %v8422_v7 = vor.u32 %v9869_v2, %v8419_v4  ;;  %v9867_v8 = vld [vmem:[%s17327_s1 + $0xa4] sm:$0xf]  ;;  %v8411_v9 = vld [vmem:[%s17327_s1 + $0xa8] sm:$0xf0]  ;;  %v8410_v10 = vor.u32 %v9868_v6, %v8409_v5  ;;  %v8401_v12 = vld [vmem:[%s17327_s1 + $0x90] sm:$0xf] }
  0x19   : > { %674 = vmatpush.bf16.msra.mxu0 %v8418_v3  ;;  %10064 = vmatpush.bf16.msra.mxu3 %v8418_v3  ;;  %v8414_v11 = vor.u32 %v9867_v8, %v8411_v9  ;;  %v9866_v13 = vld [vmem:[%s17327_s1 + $0x94] sm:$0xf0]  ;;  %v9865_v14 = vld [vmem:[%s17327_s1 + $0x94] sm:$0xf]  ;;  %v8403_v15 = vld [vmem:[%s17327_s1 + $0x98] sm:$0xf0] }
  0x1a   : > { %763 = vmatpush.bf16.msra.mxu1 %v8422_v7  ;;  %10070 = vmatpush.bf16.msra.mxu2 %v8422_v7  ;;  %v8402_v16 = vor.u32 %v9866_v13, %v8401_v12  ;;  %v8406_v17 = vor.u32 %v9865_v14, %v8403_v15  ;;  %v8393_v18 = vld [vmem:[%s17327_s1 + $0x80] sm:$0xf]  ;;  %v9864_v19 = vld [vmem:[%s17327_s1 + $0x84] sm:$0xf0]  ;;  %s17751_s16 = sadd.s32 4294967295, %s10502_s20   ;;  %v10679_v29 = vshrl.u32 %v499_v22, 7 }
  0x1b   : > { %s10657_s21 = sshll.u32 %s17751_s16, 3  ;;  %v9863_v20 = vld [vmem:[%s17327_s1 + $0x84] sm:$0xf]  ;;  %v8395_v21 = vld [vmem:[%s17327_s1 + $0x88] sm:$0xf0]  ;;  %v8394_v23 = vor.u32 %v9864_v19, %v8393_v18  ;;  %s17753_s0 = sld [smem:[#allocation117_spill]] }
  0x1c   : > { %p384_p10 = scmp.lt.s32.totalorder %s10657_s21, 15  ;;  %v8385_v24 = vld [vmem:[%s17327_s1 + $0x70] sm:$0xf]  ;;  %v8398_v25 = vor.u32 %v9863_v20, %v8395_v21  ;;  %v9862_v26 = vld [vmem:[%s17327_s1 + $0x74] sm:$0xf0]  ;;  %17752 = vst [vmem:[#allocation7_spill] sm:$0xff] %v10679_v29  ;;  %s8291_s26 = scalar_lea.hbm %s17337_s11, %s10657_s21 }
  0x1d   : > { %675 = vmatpush.bf16.msra.mxu0 %v8410_v10  ;;  %10065 = vmatpush.bf16.msra.mxu3 %v8410_v10  ;;  %v9861_v27 = vld [vmem:[%s17327_s1 + $0x74] sm:$0xf]  ;;  %v8387_v28 = vld [vmem:[%s17327_s1 + $0x78] sm:$0xf0]  ;;  %v8377_v30 = vld [vmem:[%s17327_s1 + $0x60] sm:$0xf]  ;;  %v8386_v32 = vor.u32 %v9862_v26, %v8385_v24 }
  0x1e   : > { %764 = vmatpush.bf16.msra.mxu1 %v8414_v11  ;;  %10071 = vmatpush.bf16.msra.mxu2 %v8414_v11  ;;  %s385_s13 = scalar_select %p384_p10, %s10657_s21, 15  ;;  %v9860_v31 = vld [vmem:[%s17327_s1 + $0x64] sm:$0xf0]  ;;  %v8390_v33 = vor.u32 %v9861_v27, %v8387_v28  ;;  %v9859_v34 = vld [vmem:[%s17327_s1 + $0x64] sm:$0xf]  ;;  %vm501_vm0 = vcmp.lt.s32.totalorder %v10679_v29, 7 }
  0x1f   : > { %v8379_v38 = vld [vmem:[%s17327_s1 + $0x68] sm:$0xf0]  ;;  %v8653_v44 = vld [vmem:[%s17327_s1 + $0x110] sm:$0xf]  ;;  %v9882_v47 = vld [vmem:[%s17327_s1 + $0x114] sm:$0xf0]  ;;  %v8378_v54 = vor.u32 %v9860_v31, %v8377_v30 }
  0x20   : > { %s9830_s29 = sshll.u32 %s385_s13, 4  ;;  %v9881_v48 = vld [vmem:[%s17327_s1 + $0x114] sm:$0xf]  ;;  %v8655_v53 = vld [vmem:[%s17327_s1 + $0x118] sm:$0xf0]  ;;  %v8382_v57 = vor.u32 %v9859_v34, %v8379_v38  ;;  %v8654_v63 = vor.u32 %v9882_v47, %v8653_v44  ;;  %vm623_vm1 = vcmask 785408  }
  0x21   : > { %676 = vmatpush.bf16.msra.mxu0 %v8402_v16  ;;  %10066 = vmatpush.bf16.msra.mxu3 %v8402_v16  ;;  %s10690_s16 = scalar_lea.vmem %s17753_s0, %s9830_s29  ;;  %v8561_v60 = vld [vmem:[%s17327_s1 + $0x50] sm:$0xf]  ;;  %v8658_v0 = vor.u32 %v9881_v48, %v8655_v53  ;;  %v9858_v1 = vld [vmem:[%s17327_s1 + $0x54] sm:$0xf0]  ;;  %v9857_v2 = vld [vmem:[%s17327_s1 + $0x54] sm:$0xf] }
  0x22   : > { %765 = vmatpush.bf16.msra.mxu1 %v8406_v17  ;;  %10072 = vmatpush.bf16.msra.mxu2 %v8406_v17  ;;  %v391_v35 = vld [vmem:[%s10690_s16] sm:$0xff]   ;;  %v393_v36 = vld [vmem:[%s10690_s16 + $0x8] sm:$0xff]   ;;  %v419_v42 = vld [vmem:[%s10690_s16 + $0x70] sm:$0xff]   ;;  %v8562_v8 = vor.u32 %v9858_v1, %v8561_v60  ;;  %vm1248_vm2 = vcmp.lt.s32.totalorder %v10679_v29, 6  ;;  %vm1692_vm3 = vcmp.lt.s32.totalorder %v10679_v29, 5  ;;  %vm2136_vm4 = vcmp.lt.s32.totalorder %v10679_v29, 4 }
  0x23   : > { %v417_v37 = vld [vmem:[%s10690_s16 + $0x68] sm:$0xff]   ;;  %v10701_v39 = vunpack.c.l.bf16 %v391_v35  ;;  %v10703_v40 = vunpack.c.h.bf16 %v391_v35  ;;  %v10705_v41 = vunpack.c.l.bf16 %v393_v36  ;;  %v10716_v46 = vunpack.c.l.bf16 %v419_v42  ;;  %v8563_v3 = vld [vmem:[%s17327_s1 + $0x58] sm:$0xf0]  ;;  %v10762_v6 = vld [vmem:[%s10690_s16 + $0x10] sm:$0xff]   ;;  %s380_s13 = sand.u32 1, %s10494_s18   ;;  %s8295_s12 = sshll.u32 %s8291_s26, 4  ;;  %s8296_s12 = int_to_ptr.hbm [resolvable:$true] %s8295_s12 }
  0x24   : > { %v10708_v43 = vunpack.c.l.bf16 %v417_v37  ;;  %v10714_v45 = vunpack.c.h.bf16 %v417_v37  ;;  %v10765_v7 = vld [vmem:[%s10690_s16 + $0x78] sm:$0xff]   ;;  %v8566_v9 = vor.u32 %v9857_v2, %v8563_v3  ;;  %v8553_v10 = vld [vmem:[%s17327_s1 + $0x40] sm:$0xf]  ;;  %v9856_v11 = vld [vmem:[%s17327_s1 + $0x44] sm:$0xf0]  ;;  %v10783_v14 = vunpack.c.h.bf16 %v393_v36  ;;  %s8359_s22 = sshll.u32 %s380_s13, 3 }
  0x25   : > { %677 = vmatpush.bf16.msra.mxu0 %v8394_v23  ;;  %10067 = vmatpush.bf16.msra.mxu3 %v8394_v23  ;;  %17754 = vst [vmem:[#allocation8_spill] sm:$0xff] %v10703_v40  ;;  %v467_v49 = vrot.slane %v10701_v39, 1  ;;  %v468_v50 = vrot.slane %v10703_v40, 1  ;;  %v469_v51 = vrot.slane %v10705_v41, 1  ;;  %v495_v56 = vrot.slane %v10716_v46, 1  ;;  %s382_s29 = scalar_lea.vmem [#allocation2], %s8359_s22 }
  0x26   : > { %766 = vmatpush.bf16.msra.mxu1 %v8398_v25  ;;  %10073 = vmatpush.bf16.msra.mxu2 %v8398_v25  ;;  %17755 = vst [vmem:[#allocation9_spill] sm:$0xff] %v10705_v41  ;;  %v17340_v52 = vrot.slane %v10708_v43, 1  ;;  %v494_v55 = vrot.slane %v10714_v45, 1  ;;  %v9855_v12 = vld [vmem:[%s17327_s1 + $0x44] sm:$0xf]  ;;  %v10786_v15 = vunpack.c.l.bf16 %v10762_v6  ;;  %v10788_v16 = vunpack.c.h.bf16 %v419_v42  ;;  %s8293_s30 = sshll.u32 %s382_s29, 4  ;;  %s8294_s30 = int_to_ptr.vmem [resolvable:$true] %s8293_s30 }
  0x27   : > { %17756 = vst [vmem:[#allocation10_spill] sm:$0xff] %v10708_v43  ;;  %v531_v58 = vsel %vm501_vm0, %v468_v50, %v469_v51  ;;  %v532_v59 = vsel %vm501_vm0, %v467_v49, %v468_v50  ;;  %v8555_v13 = vld [vmem:[%s17327_s1 + $0x48] sm:$0xf0]  ;;  %v10791_v17 = vunpack.c.l.bf16 %v10765_v7  ;;  %v8645_v18 = vld [vmem:[%s17327_s1 + $0x100] sm:$0xf]  ;;  %v8554_v21 = vor.u32 %v9856_v11, %v8553_v10  ;;  %s8281_s14 = scalar_lea.sflag [#allocation3], %s380_s13 }
  0x28   : > { %17757 = vst [vmem:[#allocation11_spill] sm:$0xff] %v10714_v45  ;;  %v505_v61 = vsel %vm501_vm0, %v494_v55, %v495_v56  ;;  %v506_v62 = vsel %vm501_vm0, %v17340_v52, %v494_v55  ;;  %v534_v4 = vpack.c.bf16 %v531_v58, %v532_v59  ;;  %v9880_v19 = vld [vmem:[%s17327_s1 + $0x104] sm:$0xf0]  ;;  %v9879_v20 = vld [vmem:[%s17327_s1 + $0x104] sm:$0xf]  ;;  %v8558_v22 = vor.u32 %v9855_v12, %v8555_v13  ;;  %s10454_s15 = sshra.s32 %s8296_s12, 4  ;;  %s10455_s15 = int_to_ptr.hbm [resolvable:$true] %s10454_s15 }
  0x29   : > { %17758 = vst [vmem:[#allocation12_spill] sm:$0xff] %v10716_v46  ;;  %678 = vmatpush.bf16.msra.mxu0 %v8386_v32  ;;  %10068 = vmatpush.bf16.msra.mxu3 %v8386_v32  ;;  %v547_v5 = vpack.c.bf16 %v505_v61, %v506_v62  ;;  %v8545_v23 = vld [vmem:[%s17327_s1 + $0x30] sm:$0xf]  ;;  %v8647_v24 = vld [vmem:[%s17327_s1 + $0x108] sm:$0xf0]  ;;  %v8646_v28 = vor.u32 %v9880_v19, %v8645_v18  ;;  %v470_v31 = vrot.slane %v10783_v14, 1  ;;  %p10461_p0 = scmp.lt.s32.totalorder %s10455_s15, %s17337_s11 }
  0x2a   : > { %767 = vmatpush.bf16.msra.mxu1 %v8390_v33  ;;  %10074 = vmatpush.bf16.msra.mxu2 %v8390_v33  ;;  %17759 = vst [vmem:[#allocation13_spill] sm:$0xff] %v10783_v14  ;;  %v9854_v25 = vld [vmem:[%s17327_s1 + $0x34] sm:$0xf0]  ;;  %v9853_v26 = vld [vmem:[%s17327_s1 + $0x34] sm:$0xf]  ;;  %v8650_v30 = vor.u32 %v9879_v20, %v8647_v24  ;;  %v471_v32 = vrot.slane %v10786_v15, 1 }
  0x2b   : > { %17760 = vst [vmem:[#allocation14_spill] sm:$0xff] %v10786_v15  ;;  %v8547_v27 = vld [vmem:[%s17327_s1 + $0x38] sm:$0xf0]  ;;  %v496_v33 = vrot.slane %v10788_v16, 1  ;;  %v497_v34 = vrot.slane %v10791_v17, 1  ;;  %v8546_v35 = vor.u32 %v9854_v25, %v8545_v23  ;;  %v530_v48 = vsel %vm501_vm0, %v469_v51, %v470_v31  ;;  %s10456_s0 = scalar_lea.hbm %s10455_s15, 8 }
  0x2c   : > { %17761 = vst [vmem:[#allocation15_spill] sm:$0xff] %v10788_v16  ;;  %v8550_v36 = vor.u32 %v9853_v26, %v8547_v27  ;;  %v8537_v37 = vld [vmem:[%s17327_s1 + $0x20] sm:$0xf]  ;;  %v9852_v38 = vld [vmem:[%s17327_s1 + $0x24] sm:$0xf0]  ;;  %v529_v47 = vsel %vm501_vm0, %v470_v31, %v471_v32  ;;  %v397_v61 = vld [vmem:[%s10690_s16 + $0x18] sm:$0xff]   ;;  %p10457_p11 = scmp.ne.s32.totalorder %s10455_s15, %s10456_s0 }
  0x2d   : > { %679 = vmatpush.bf16.msra.mxu0 %v8378_v54  ;;  %10069 = vmatpush.bf16.msra.mxu3 %v8378_v54  ;;  %17762 = vst [vmem:[#allocation16_spill] sm:$0xff] %v10791_v17  ;;  %v9851_v42 = vld [vmem:[%s17327_s1 + $0x24] sm:$0xf]  ;;  %v8539_v44 = vld [vmem:[%s17327_s1 + $0x28] sm:$0xf0]  ;;  %v503_v50 = vsel %vm501_vm0, %v496_v33, %v497_v34  ;;  %v504_v53 = vsel %vm501_vm0, %v495_v56, %v496_v33  ;;  %v10900_v23 = vunpack.c.h.bf16 %v397_v61  ;;  %vm3616_vm5 = vcmask 1040384  }
  0x2e   : > { %768 = vmatpush.bf16.msra.mxu1 %v8382_v57  ;;  %10075 = vmatpush.bf16.msra.mxu2 %v8382_v57  ;;  %v8538_v54 = vor.u32 %v9852_v38, %v8537_v37  ;;  %v8542_v55 = vor.u32 %v9851_v42, %v8539_v44  ;;  %v8529_v57 = vld [vmem:[%s17327_s1 + $0x10] sm:$0xf]  ;;  %v9850_v51 = vld [vmem:[%s17327_s1 + $0x14] sm:$0xf0]  ;;  %v9849_v58 = vld [vmem:[%s17327_s1 + $0x14] sm:$0xf]  ;;  %v535_v59 = vpack.c.bf16 %v529_v47, %v530_v48  ;;  %p10458_p12 = pnand %p10457_p11, %p10603_p5 }
  0x2f   : > { %v8531_v56 = vld [vmem:[%s17327_s1 + $0x18] sm:$0xf0]  ;;  %v548_v60 = vpack.c.bf16 %v503_v50, %v504_v53  ;;  %v8530_v62 = vor.u32 %v9850_v51, %v8529_v57  ;;  %v9848_v1 = vld [vmem:[%s17327_s1 + $0x4] sm:$0xf0]  ;;  %v9847_v2 = vld [vmem:[%s17327_s1 + $0x4] sm:$0xf] }
  0x30   : > { %8423 = vmatmul.msk.bf16.vlgmr.msra.gmra.mxu0 %vm623_vm1, %v534_v4  ;;  %8436 = vmatmul.msk.bf16.vlgmr.msra.gmra.mxu3 %vm623_vm1, %v547_v5  ;;  %v8523_v3 = vld [vmem:[%s17327_s1 + $0x8] sm:$0xf0]  ;;  %v9878_v25 = vld [vmem:[%s17327_s1 + $0xf4] sm:$0xf0]  ;;  %v9877_v26 = vld [vmem:[%s17327_s1 + $0xf4] sm:$0xf]  ;;  %p10459_p13 = pneg %p10458_p12 }
  0x31   : > { %1420 = vmatpush.bf16.msrb.mxu0 %v8654_v63  ;;  %8439 = vmatmul.msk.bf16.vlgmr.msra.gmra.mxu1 %vm623_vm1, %v534_v4  ;;  %v8534_v63 = vor.u32 %v9849_v58, %v8531_v56  ;;  %v10875_v4 = vunpack.c.h.bf16 %v10762_v6  ;;  %v8526_v10 = vor.u32 %v9847_v2, %v8523_v3  ;;  %v474_v31 = vrot.slane %v10900_v23, 1  ;;  %v401_v37 = vld [vmem:[%s10690_s16 + $0x28] sm:$0xff]   ;;  %v8629_v58 = vld [vmem:[%s17327_s1 + $0xe0] sm:$0xf]  ;;  %s10460_s19 = scalar_lea.hbm %s17337_s11, 16 }
  0x32   : > { %1509 = vmatpush.bf16.msrb.mxu1 %v8658_v0  ;;  %8452 = vmatmul.msk.bf16.vlgmr.msra.gmra.mxu2 %vm623_vm1, %v547_v5  ;;  %v8521_v0 = vld [vmem:[%s17327_s1] sm:$0xf]  ;;  %v10877_v5 = vunpack.c.l.bf16 %v397_v61  ;;  %v10930_v42 = vunpack.c.l.bf16 %v401_v37  ;;  %v10944_v57 = vunpack.c.h.bf16 %v401_v37  ;;  %v9876_v56 = vld [vmem:[%s17327_s1 + $0xe4] sm:$0xf0]  ;;  %v8631_v61 = vld [vmem:[%s17327_s1 + $0xe8] sm:$0xf0]  ;;  %p10462_p1 = scmp.lt.s32.totalorder %s10460_s19, %s10456_s0 }
  0x33   : > { %1040 = vmatpush.bf16.msrb.mxu2 %v8562_v8  ;;  %1129 = vmatpush.bf16.msrb.mxu3 %v8566_v9  ;;  %17763 = vst [vmem:[#allocation17_spill] sm:$0xff] %v10875_v4  ;;  %v10880_v8 = vunpack.c.h.bf16 %v10765_v7  ;;  %v8522_v9 = vor.u32 %v9848_v1, %v8521_v0  ;;  %v472_v11 = vrot.slane %v10875_v4, 1  ;;  %v409_v37 = vld [vmem:[%s10690_s16 + $0x48] sm:$0xff]   ;;  %vm2874_vm6 = vcmask 998400  }
  0x34   : > { %17764 = vst [vmem:[#allocation18_spill] sm:$0xff] %v10877_v5  ;;  %v473_v12 = vrot.slane %v10877_v5, 1  ;;  %v477_v47 = vrot.slane %v10930_v42, 1  ;;  %vm3567_vm7 = vcmask 277504   ;;  %vm6976_vm9 = vcmask 916480   ;;  %p10463_p2 = por %p10462_p1, %p10461_p0 }
  0x35   : > { %1421 = vmatpush.bf16.msrb.mxu0 %v8646_v28  ;;  %17765 = vst [vmem:[#allocation19_spill] sm:$0xff] %v10880_v8  ;;  %v498_v13 = vrot.slane %v10880_v8, 1  ;;  %v528_v7 = vsel %vm501_vm0, %v471_v32, %v472_v11  ;;  %v8639_v28 = vld [vmem:[%s17327_s1 + $0xf8] sm:$0xf0]  ;;  %vm7384_vm10 = vcmask 1041409   ;;  %vm7387_vm11 = vcmask 1042434  }
  0x36   : > { %1510 = vmatpush.bf16.msrb.mxu1 %v8650_v30  ;;  %v527_v6 = vsel %vm501_vm0, %v472_v11, %v473_v12  ;;  %v8642_v30 = vor.u32 %v9877_v26, %v8639_v28  ;;  %17767 = vst [vmem:[#allocation21_spill] sm:$0xff] %v10930_v42  ;;  %vm7390_vm12 = vcmask 1043459   ;;  %vm7392_vm13 = vcmask 1044484   ;;  %p10464_p3 = pnand %p10463_p2, %p10459_p13 }
  0x37   : > { %1041 = vmatpush.bf16.msrb.mxu2 %v8554_v21  ;;  %1130 = vmatpush.bf16.msrb.mxu3 %v8558_v22  ;;  %v502_v18 = vsel %vm501_vm0, %v497_v34, %v498_v13  ;;  %v533_v19 = vsel %vm501_vm0, %v498_v13, %v467_v49  ;;  %v536_v20 = vpack.c.bf16 %v527_v6, %v528_v7  ;;  %v399_v22 = vld [vmem:[%s10690_s16 + $0x20] sm:$0xff]   ;;  %v8637_v49 = vld [vmem:[%s17327_s1 + $0xf0] sm:$0xf]  ;;  %vm7395_vm14 = vcmask 1045509  }
  0x38   : > { %v549_v21 = vpack.c.bf16 %v533_v19, %v502_v18  ;;  %v10902_v24 = vunpack.c.l.bf16 %v399_v22  ;;  %v8638_v27 = vor.u32 %v9878_v25, %v8637_v49  ;;  %v526_v34 = vsel %vm501_vm0, %v473_v12, %v474_v31  ;;  %17768 = vst [vmem:[#allocation22_spill] sm:$0xff] %v10944_v57 }
  0x39   : > { %v10928_v38 = vunpack.c.h.bf16 %v399_v22  ;;  %vm7398_vm15 = vcmask 1046534  }
  0x3a   : > { %1422 = vmatpush.bf16.msrb.mxu0 %v8638_v27  ;;  %v475_v32 = vrot.slane %v10902_v24, 1  ;;  %1511 = vmatpush.bf16.msrb.mxu1 %v8642_v30  ;;  %v9835_v30 = vld [vmem:[%s10690_s16 + $0x20] sm:$0xff] }
  0x3b   : > { %1042 = vmatpush.bf16.msrb.mxu2 %v8546_v35  ;;  %1131 = vmatpush.bf16.msrb.mxu3 %v8550_v36  ;;  %v9831_v36 = vld [vmem:[%s10690_s16] sm:$0xff]  ;;  %17766 = vst [vmem:[#allocation20_spill] sm:$0xff] %v10928_v38  ;;  %v476_v44 = vrot.slane %v10928_v38, 1 }
  0x3c   : > { %v525_v33 = vsel %vm501_vm0, %v474_v31, %v475_v32 }
  0x3d   : > { %v537_v35 = vpack.c.bf16 %v525_v33, %v526_v34  ;;  %v523_v48 = vsel %vm501_vm0, %v476_v44, %v477_v47  ;;  %v524_v50 = vsel %vm501_vm0, %v475_v32, %v476_v44  ;;  %v8621_v32 = vld [vmem:[%s17327_s1 + $0xd0] sm:$0xf]  ;;  %v9874_v33 = vld [vmem:[%s17327_s1 + $0xd4] sm:$0xf0]  ;;  %v9873_v34 = vld [vmem:[%s17327_s1 + $0xd4] sm:$0xf] }
  0x3e   : > { %v538_v53 = vpack.c.bf16 %v523_v48, %v524_v50  ;;  %v11018_v48 = vunpack.c.l.bf16 %v409_v37 }
  0x3f   : > { %1043 = vmatpush.bf16.msrb.mxu2 %v8538_v54  ;;  %1132 = vmatpush.bf16.msrb.mxu3 %v8542_v55  ;;  %v9832_v54 = vld [vmem:[%s10690_s16 + $0x8] sm:$0xff]  ;;  %v403_v55 = vld [vmem:[%s10690_s16 + $0x30] sm:$0xff]  }
  0x40   : > { %8424 = vmatmul.msk.bf16.gmra.mxu0 %vm623_vm1, %v535_v59  ;;  %8437 = vmatmul.msk.bf16.gmra.mxu3 %vm623_vm1, %v548_v60  ;;  %v10946_v51 = vunpack.c.l.bf16 %v403_v55  ;;  %v10972_v11 = vunpack.c.h.bf16 %v403_v55  ;;  %17775 = vst [vmem:[#allocation29_spill] sm:$0xff] %v11018_v48 }
  0x41   : > { %8440 = vmatmul.msk.bf16.gmra.mxu1 %vm623_vm1, %v535_v59  ;;  %v9875_v59 = vld [vmem:[%s17327_s1 + $0xe4] sm:$0xf] }
  0x42   : > { %8453 = vmatmul.msk.bf16.gmra.mxu2 %vm623_vm1, %v548_v60  ;;  %17769 = vst [vmem:[#allocation23_spill] sm:$0xff] %v10946_v51  ;;  %v8630_v60 = vor.u32 %v9876_v56, %v8629_v58  ;;  %v479_v0 = vrot.slane %v10946_v51, 1  ;;  %v480_v13 = vrot.slane %v10972_v11, 1  ;;  %v9836_v56 = vld [vmem:[%s10690_s16 + $0x28] sm:$0xff] }
  0x43   : > { %1044 = vmatpush.bf16.msrb.mxu2 %v8530_v62  ;;  %1133 = vmatpush.bf16.msrb.mxu3 %v8534_v63  ;;  %v8634_v62 = vor.u32 %v9875_v59, %v8631_v61  ;;  %v478_v63 = vrot.slane %v10944_v57, 1  ;;  %17770 = vst [vmem:[#allocation24_spill] sm:$0xff] %v10972_v11  ;;  %v411_v61 = vld [vmem:[%s10690_s16 + $0x50] sm:$0xff]  }
  0x44   : > { %1423 = vmatpush.bf16.msrb.mxu0 %v8630_v60  ;;  %v520_v18 = vsel %vm501_vm0, %v479_v0, %v480_v13 }
  0x45   : > { %1512 = vmatpush.bf16.msrb.mxu1 %v8634_v62  ;;  %v521_v1 = vsel %vm501_vm0, %v478_v63, %v479_v0  ;;  %v522_v2 = vsel %vm501_vm0, %v477_v47, %v478_v63  ;;  %v11036_v62 = vunpack.c.h.bf16 %v409_v37  ;;  %v11038_v63 = vunpack.c.l.bf16 %v411_v61 }
  0x46   : > { %v539_v3 = vpack.c.bf16 %v521_v1, %v522_v2 }
  0x47   : > { %1045 = vmatpush.bf16.msrb.mxu2 %v8522_v9  ;;  %1134 = vmatpush.bf16.msrb.mxu3 %v8526_v10  ;;  %v9833_v9 = vld [vmem:[%s10690_s16 + $0x10] sm:$0xff]  ;;  %v405_v10 = vld [vmem:[%s10690_s16 + $0x38] sm:$0xff]   ;;  %17776 = vst [vmem:[#allocation30_spill] sm:$0xff] %v11036_v62 }
  0x48   : > { %v10974_v12 = vunpack.c.l.bf16 %v405_v10  ;;  %v10988_v22 = vunpack.c.h.bf16 %v405_v10  ;;  %17777 = vst [vmem:[#allocation31_spill] sm:$0xff] %v11038_v63 }
  0x4a   : > { %17771 = vst [vmem:[#allocation25_spill] sm:$0xff] %v10974_v12  ;;  %v481_v6 = vrot.slane %v10974_v12, 1  ;;  %v482_v25 = vrot.slane %v10988_v22, 1 }
  0x4b   : > { %17772 = vst [vmem:[#allocation26_spill] sm:$0xff] %v10988_v22 }
  0x4c   : > { %v519_v7 = vsel %vm501_vm0, %v480_v13, %v481_v6  ;;  %v518_v28 = vsel %vm501_vm0, %v481_v6, %v482_v25 }
  0x4d   : > { %v540_v19 = vpack.c.bf16 %v519_v7, %v520_v18 }
  0x50   : > { %8425 = vmatmul.msk.bf16.gmra.mxu0 %vm623_vm1, %v536_v20  ;;  %8438 = vmatmul.msk.bf16.gmra.mxu3 %vm623_vm1, %v549_v21 }
  0x51   : > { %8441 = vmatmul.msk.bf16.gmra.mxu1 %vm623_vm1, %v536_v20  ;;  %v9834_v20 = vld [vmem:[%s10690_s16 + $0x18] sm:$0xff] }
  0x52   : > { %8454 = vmatmul.msk.bf16.gmra.mxu2 %vm623_vm1, %v549_v21  ;;  %v407_v21 = vld [vmem:[%s10690_s16 + $0x40] sm:$0xff]  }
  0x53   : > { %v10990_v49 = vunpack.c.l.bf16 %v407_v21  ;;  %v11016_v47 = vunpack.c.h.bf16 %v407_v21 }
  0x55   : > { %17773 = vst [vmem:[#allocation27_spill] sm:$0xff] %v10990_v49  ;;  %v483_v26 = vrot.slane %v10990_v49, 1  ;;  %v484_v50 = vrot.slane %v11016_v47, 1 }
  0x56   : > { %17774 = vst [vmem:[#allocation28_spill] sm:$0xff] %v11016_v47 }
  0x57   : > { %v517_v27 = vsel %vm501_vm0, %v482_v25, %v483_v26  ;;  %v516_v55 = vsel %vm501_vm0, %v483_v26, %v484_v50  ;;  %v413_v25 = vld [vmem:[%s10690_s16 + $0x58] sm:$0xff]  }
  0x58   : > { %v541_v31 = vpack.c.bf16 %v517_v27, %v518_v28  ;;  %v8613_v27 = vld [vmem:[%s17327_s1 + $0xc0] sm:$0xf]  ;;  %v9872_v28 = vld [vmem:[%s17327_s1 + $0xc4] sm:$0xf0] }
  0x60   : > { %8426 = vmatmul.msk.bf16.gmra.mxu0 %vm623_vm1, %v537_v35  ;;  %8583 = vmatmul.msk.bf16.vlgmr.msrb.gmra.mxu3 %vm623_vm1, %v9831_v36 }
  0x61   : > { %8442 = vmatmul.msk.bf16.gmra.mxu1 %vm623_vm1, %v537_v35  ;;  %v8622_v35 = vor.u32 %v9874_v33, %v8621_v32  ;;  %v8615_v32 = vld [vmem:[%s17327_s1 + $0xc8] sm:$0xf0] }
  0x62   : > { %8567 = vmatmul.msk.bf16.vlgmr.msrb.gmra.mxu2 %vm623_vm1, %v9831_v36  ;;  %v8623_v36 = vld [vmem:[%s17327_s1 + $0xd8] sm:$0xf0] }
  0x63   : > { %v8626_v44 = vor.u32 %v9873_v34, %v8623_v36  ;;  %1424 = vmatpush.bf16.msrb.mxu0 %v8622_v35  ;;  %v11080_v34 = vunpack.c.h.bf16 %v411_v61  ;;  %v11082_v35 = vunpack.c.l.bf16 %v413_v25 }
  0x65   : > { %1513 = vmatpush.bf16.msrb.mxu1 %v8626_v44 }
  0x70   : > { %8427 = vmatmul.msk.bf16.gmra.mxu0 %vm623_vm1, %v538_v53  ;;  %8584 = vmatmul.msk.bf16.gmra.mxu3 %vm623_vm1, %v9832_v54 }
  0x71   : > { %8443 = vmatmul.msk.bf16.gmra.mxu1 %vm623_vm1, %v538_v53  ;;  %v485_v53 = vrot.slane %v11018_v48, 1 }
  0x72   : > { %8568 = vmatmul.msk.bf16.gmra.mxu2 %vm623_vm1, %v9832_v54 }
  0x73   : > { %v515_v54 = vsel %vm501_vm0, %v484_v50, %v485_v53  ;;  %v488_v50 = vrot.slane %v11080_v34, 1 }
  0x74   : > { %v542_v58 = vpack.c.bf16 %v515_v54, %v516_v55 }
  0x80   : > { %8428 = vmatmul.msk.bf16.gmra.mxu0 %vm623_vm1, %v539_v3  ;;  %8585 = vmatmul.msk.bf16.gmra.mxu3 %vm623_vm1, %v9833_v9 }
  0x81   : > { %8444 = vmatmul.msk.bf16.gmra.mxu1 %vm623_vm1, %v539_v3  ;;  %v486_v3 = vrot.slane %v11036_v62, 1 }
  0x82   : > { %8569 = vmatmul.msk.bf16.gmra.mxu2 %vm623_vm1, %v9833_v9  ;;  %v487_v9 = vrot.slane %v11038_v63, 1 }
  0x83   : > { %v514_v6 = vsel %vm501_vm0, %v485_v53, %v486_v3  ;;  %v489_v53 = vrot.slane %v11082_v35, 1 }
  0x84   : > { %v513_v13 = vsel %vm501_vm0, %v486_v3, %v487_v9 }
  0x85   : > { %v511_v55 = vsel %vm501_vm0, %v488_v50, %v489_v53 }
  0x90   : > { %8429 = vmatmul.msk.bf16.gmra.mxu0 %vm623_vm1, %v540_v19  ;;  %8586 = vmatmul.msk.bf16.gmra.mxu3 %vm623_vm1, %v9834_v20 }
  0x91   : > { %8445 = vmatmul.msk.bf16.gmra.mxu1 %vm623_vm1, %v540_v19  ;;  %v543_v19 = vpack.c.bf16 %v513_v13, %v514_v6  ;;  %v9838_v13 = vld [vmem:[%s10690_s16 + $0x38] sm:$0xff] }
  0x92   : > { %8570 = vmatmul.msk.bf16.gmra.mxu2 %vm623_vm1, %v9834_v20  ;;  %v9837_v20 = vld [vmem:[%s10690_s16 + $0x30] sm:$0xff] }
  0xa0   : > { %8430 = vmatmul.msk.bf16.gmra.mxu0 %vm623_vm1, %v541_v31  ;;  %8587 = vmatmul.msk.bf16.gmra.mxu3 %vm623_vm1, %v9835_v30 }
  0xa1   : > { %8446 = vmatmul.msk.bf16.gmra.mxu1 %vm623_vm1, %v541_v31  ;;  %v8614_v31 = vor.u32 %v9872_v28, %v8613_v27 }
  0xa2   : > { %8571 = vmatmul.msk.bf16.gmra.mxu2 %vm623_vm1, %v9835_v30  ;;  %v9871_v30 = vld [vmem:[%s17327_s1 + $0xc4] sm:$0xf] }
  0xa3   : > { %v8618_v33 = vor.u32 %v9871_v30, %v8615_v32  ;;  %1425 = vmatpush.bf16.msrb.mxu0 %v8614_v31 }
  0xa5   : > { %1514 = vmatpush.bf16.msrb.mxu1 %v8618_v33 }
  0xad   : > { %v11027_v59 = vpop.f32.mrf.mxu0 }
  0xae   : > { %v11029_v60 = vpop.f32.mrf.mxu1 }
  0xb0   : > { %8431 = vmatmul.msk.bf16.gmra.mxu0 %vm623_vm1, %v542_v58  ;;  %8588 = vmatmul.msk.bf16.gmra.mxu3 %vm623_vm1, %v9836_v56 }
  0xb1   : > { %8447 = vmatmul.msk.bf16.gmra.mxu1 %vm623_vm1, %v542_v58  ;;  %v512_v58 = vsel %vm501_vm0, %v487_v9, %v488_v50  ;;  %v11112_v9 = vunpack.c.h.bf16 %v413_v25  ;;  %v8745_v25 = vld [vmem:[%s17327_s1 + $0x170] sm:$0xf] }
  0xb2   : > { %8572 = vmatmul.msk.bf16.gmra.mxu2 %vm623_vm1, %v9836_v56  ;;  %v544_v3 = vpack.c.bf16 %v511_v55, %v512_v58  ;;  %v9894_v55 = vld [vmem:[%s17327_s1 + $0x174] sm:$0xf0]  ;;  %v9893_v58 = vld [vmem:[%s17327_s1 + $0x174] sm:$0xf] }
  0xb3   : > { %v11040_v0 = vpop.f32.mrf.mxu3  ;;  %17786 = vst [vmem:[#allocation40_spill] sm:$0xff] %v11112_v9  ;;  %v490_v32 = vrot.slane %v11112_v9, 1 }
  0xb4   : > { %17778 = vst [vmem:[#allocation32_spill] sm:$0xff] %v11040_v0 }
  0xb5   : > { %v11042_v1 = vpop.f32.mrf.mxu2  ;;  %v11044_v2 = vpop.f32.mrf.mxu0 }
  0xb6   : > { %17779 = vst [vmem:[#allocation33_spill] sm:$0xff] %v11042_v1  ;;  %v11048_v10 = vpop.f32.mrf.mxu1 }
  0xbb   : > { %v11054_v7 = vpop.f32.mrf.mxu3 }
  0xbc   : > { %17780 = vst [vmem:[#allocation34_spill] sm:$0xff] %v11054_v7 }
  0xbd   : > { %v11056_v18 = vpop.f32.mrf.mxu2  ;;  %v11059_v21 = vpop.f32.mrf.mxu0 }
  0xbe   : > { %17781 = vst [vmem:[#allocation35_spill] sm:$0xff] %v11056_v18  ;;  %v11062_v26 = vpop.f32.mrf.mxu1 }
  0xc0   : > { %8432 = vmatmul.msk.bf16.gmra.mxu0 %vm623_vm1, %v543_v19  ;;  %8589 = vmatmul.msk.bf16.gmra.mxu3 %vm623_vm1, %v9837_v20 }
  0xc1   : > { %8448 = vmatmul.msk.bf16.gmra.mxu1 %vm623_vm1, %v543_v19 }
  0xc2   : > { %8573 = vmatmul.msk.bf16.gmra.mxu2 %vm623_vm1, %v9837_v20  ;;  %v415_v20 = vld [vmem:[%s10690_s16 + $0x60] sm:$0xff]  }
  0xc3   : > { %v11084_v36 = vpop.f32.mrf.mxu3  ;;  %v11114_v27 = vunpack.c.l.bf16 %v415_v20 }
  0xc4   : > { %17782 = vst [vmem:[#allocation36_spill] sm:$0xff] %v11084_v36  ;;  %v9839_v36 = vld [vmem:[%s10690_s16 + $0x40] sm:$0xff] }
  0xc5   : > { %v11086_v37 = vpop.f32.mrf.mxu2  ;;  %v11088_v44 = vpop.f32.mrf.mxu0  ;;  %17787 = vst [vmem:[#allocation41_spill] sm:$0xff] %v11114_v27  ;;  %v491_v33 = vrot.slane %v11114_v27, 1  ;;  %v9842_v27 = vld [vmem:[%s10690_s16 + $0x58] sm:$0xff] }
  0xc6   : > { %17783 = vst [vmem:[#allocation37_spill] sm:$0xff] %v11086_v37  ;;  %v11092_v54 = vpop.f32.mrf.mxu1 }
  0xcb   : > { %v11098_v56 = vpop.f32.mrf.mxu3 }
  0xcc   : > { %17784 = vst [vmem:[#allocation38_spill] sm:$0xff] %v11098_v56 }
  0xcd   : > { %v11100_v61 = vpop.f32.mrf.mxu2  ;;  %v11103_v6 = vpop.f32.mrf.mxu0 }
  0xce   : > { %17785 = vst [vmem:[#allocation39_spill] sm:$0xff] %v11100_v61  ;;  %v11105_v19 = vpop.f32.mrf.mxu1 }
  0xd0   : > { %8433 = vmatmul.msk.bf16.gmra.mxu0 %vm623_vm1, %v544_v3  ;;  %8590 = vmatmul.msk.bf16.gmra.mxu3 %vm623_vm1, %v9838_v13 }
  0xd1   : > { %8449 = vmatmul.msk.bf16.gmra.mxu1 %vm623_vm1, %v544_v3  ;;  %v8746_v3 = vor.u32 %v9894_v55, %v8745_v25 }
  0xd2   : > { %8574 = vmatmul.msk.bf16.gmra.mxu2 %vm623_vm1, %v9838_v13  ;;  %v8747_v13 = vld [vmem:[%s17327_s1 + $0x178] sm:$0xf0] }
  0xd3   : > { %v11116_v28 = vpop.f32.mrf.mxu3  ;;  %v8750_v52 = vor.u32 %v9893_v58, %v8747_v13  ;;  %1864 = vmatpush.bf16.msra.mxu2 %v8746_v3 }
  0xd4   : > { %17788 = vst [vmem:[#allocation42_spill] sm:$0xff] %v11116_v28  ;;  %v510_v28 = vsel %vm501_vm0, %v489_v53, %v490_v32  ;;  %v11155_v53 = vunpack.c.h.bf16 %v415_v20 }
  0xd5   : > { %v11118_v30 = vpop.f32.mrf.mxu2  ;;  %v11120_v31 = vpop.f32.mrf.mxu0  ;;  %1953 = vmatpush.bf16.msra.mxu3 %v8750_v52  ;;  %v8837_v52 = vld [vmem:[%s17327_s1 + $0x1d0] sm:$0xf] }
  0xd6   : > { %17789 = vst [vmem:[#allocation43_spill] sm:$0xff] %v11118_v30  ;;  %v11124_v50 = vpop.f32.mrf.mxu1  ;;  %v509_v30 = vsel %vm501_vm0, %v490_v32, %v491_v33 }
  0xd7   : > { %v545_v37 = vpack.c.bf16 %v509_v30, %v510_v28  ;;  %17792 = vst [vmem:[#allocation46_spill] sm:$0xff] %v11155_v53  ;;  %v9906_v28 = vld [vmem:[%s17327_s1 + $0x1d4] sm:$0xf0]  ;;  %v9905_v30 = vld [vmem:[%s17327_s1 + $0x1d4] sm:$0xf] }
  0xd8   : > { %v8838_v32 = vor.u32 %v9906_v28, %v8837_v52  ;;  %v17793_v28 = vrot.slane %v10708_v43, 1 }
  0xda   : > { %2308 = vmatpush.bf16.msra.mxu0 %v8838_v32 }
  0xdb   : > { %v11142_v61 = vpop.f32.mrf.mxu3 }
  0xdc   : > { %17790 = vst [vmem:[#allocation44_spill] sm:$0xff] %v11142_v61  ;;  %v492_v61 = vrot.slane %v11155_v53, 1 }
  0xdd   : > { %v11144_v56 = vpop.f32.mrf.mxu2  ;;  %v11147_v25 = vpop.f32.mrf.mxu0 }
  0xde   : > { %17791 = vst [vmem:[#allocation45_spill] sm:$0xff] %v11144_v56  ;;  %v11149_v55 = vpop.f32.mrf.mxu1 }
  0xe0   : > { %8434 = vmatmul.msk.bf16.gmra.mxu0 %vm623_vm1, %v545_v37  ;;  %8591 = vmatmul.msk.bf16.gmra.mxu3 %vm623_vm1, %v9839_v36 }
  0xe1   : > { %8450 = vmatmul.msk.bf16.gmra.mxu1 %vm623_vm1, %v545_v37  ;;  %v8839_v37 = vld [vmem:[%s17327_s1 + $0x1d8] sm:$0xf0] }
  0xe2   : > { %8575 = vmatmul.msk.bf16.gmra.mxu2 %vm623_vm1, %v9839_v36  ;;  %v8842_v20 = vor.u32 %v9905_v30, %v8839_v37  ;;  %v507_v30 = vsel %vm501_vm0, %v492_v61, %v17793_v28 }
  0xe3   : > { %v1136_v36 = vpop.f32.mrf.mxu3 }
  0xe4   : > { %v11170_v3 = vadd.f32 %v1136_v36, %v11029_v60  ;;  %2397 = vmatpush.bf16.msra.mxu1 %v8842_v20  ;;  %v508_v60 = vsel %vm501_vm0, %v491_v33, %v492_v61 }
  0xe5   : > { %v1047_v58 = vpop.f32.mrf.mxu2  ;;  %v11175_v56 = vpop.f32.mrf.mxu0  ;;  %v546_v36 = vpack.c.bf16 %v507_v30, %v508_v60  ;;  %v17345_v30 = vrot.slane %v10701_v39, 2  ;;  %v1217_v60 = vrot.slane %v10703_v40, 2 }
  0xe6   : > { %v11173_v13 = vadd.f32 %v1047_v58, %v11027_v59  ;;  %v11178_v52 = vpop.f32.mrf.mxu1  ;;  %v9840_v58 = vld [vmem:[%s10690_s16 + $0x48] sm:$0xff] }
  0xeb   : > { %v1138_v37 = vpop.f32.mrf.mxu3 }
  0xec   : > { %v11187_v59 = vadd.f32 %v1138_v37, %v11048_v10  ;;  %v1218_v37 = vrot.slane %v10705_v41, 2 }
  0xed   : > { %v1049_v32 = vpop.f32.mrf.mxu2  ;;  %v11193_v20 = vpop.f32.mrf.mxu0 }
  0xee   : > { %v11191_v18 = vadd.f32 %v1049_v32, %v11044_v2  ;;  %v11195_v7 = vpop.f32.mrf.mxu1 }
  0xf0   : > { %8435 = vmatmul.msk.bf16.gmra.mxu0 %vm623_vm1, %v546_v36  ;;  %8592 = vmatmul.msk.bf16.gmra.mxu3 %vm623_vm1, %v9840_v58 }
  0xf1   : > { %8451 = vmatmul.msk.bf16.gmra.mxu1 %vm623_vm1, %v546_v36  ;;  %v1278_v36 = vsel %vm1248_vm2, %v1217_v60, %v1218_v37 }
  0xf2   : > { %8576 = vmatmul.msk.bf16.gmra.mxu2 %vm623_vm1, %v9840_v58 }
  0xf3   : > { %v1141_v10 = vpop.f32.mrf.mxu3 }
  0xf4   : > { %v11202_v33 = vadd.f32 %v1141_v10, %v11062_v26 }
  0xf5   : > { %v1052_v61 = vpop.f32.mrf.mxu2  ;;  %v11207_v28 = vpop.f32.mrf.mxu0 }
  0xf6   : > { %v11205_v2 = vadd.f32 %v1052_v61, %v11059_v21  ;;  %v11213_v32 = vpop.f32.mrf.mxu1  ;;  %v1279_v21 = vsel %vm1248_vm2, %v17345_v30, %v1217_v60  ;;  %v9841_v61 = vld [vmem:[%s10690_s16 + $0x50] sm:$0xff] }
  0xf7   : > { %v1281_v1 = vpack.c.bf16 %v1278_v36, %v1279_v21  ;;  %v1220_v36 = vrot.slane %v10786_v15, 2 }
  0xfb   : > { %v1143_v26 = vpop.f32.mrf.mxu3 }
  0xfc   : > { %v11222_v10 = vadd.f32 %v1143_v26, %v11092_v54 }
  0xfd   : > { %v1054_v58 = vpop.f32.mrf.mxu2  ;;  %v11228_v8 = vpop.f32.mrf.mxu0 }
  0xfe   : > { %v11226_v0 = vadd.f32 %v1054_v58, %v11088_v44  ;;  %v11230_v17 = vpop.f32.mrf.mxu1  ;;  %v1219_v44 = vrot.slane %v10783_v14, 2 }
 0x100   : > { %8593 = vmatmul.msk.bf16.gmra.mxu3 %vm623_vm1, %v9841_v61  ;;  %8659 = vmatmul.msk.bf16.vlgmr.msrb.gmra.mxu0 %vm623_vm1, %v1281_v1  ;;  %v1276_v16 = vsel %vm1248_vm2, %v1219_v44, %v1220_v36  ;;  %v1277_v46 = vsel %vm1248_vm2, %v1218_v37, %v1219_v44  ;;  %v9904_v37 = vld [vmem:[%s17327_s1 + $0x1c4] sm:$0xf0] }
 0x101   : > { %8675 = vmatmul.msk.bf16.vlgmr.msrb.gmra.mxu1 %vm623_vm1, %v1281_v1  ;;  %v9892_v1 = vld [vmem:[%s17327_s1 + $0x164] sm:$0xf0] }
 0x102   : > { %8577 = vmatmul.msk.bf16.gmra.mxu2 %vm623_vm1, %v9841_v61  ;;  %v8737_v61 = vld [vmem:[%s17327_s1 + $0x160] sm:$0xf] }
 0x103   : > { %v1146_v60 = vpop.f32.mrf.mxu3  ;;  %v8738_v30 = vor.u32 %v9892_v1, %v8737_v61  ;;  %v1282_v61 = vpack.c.bf16 %v1276_v16, %v1277_v46 }
 0x104   : > { %v11237_v26 = vadd.f32 %v1146_v60, %v11105_v19  ;;  %v9891_v19 = vld [vmem:[%s17327_s1 + $0x164] sm:$0xf] }
 0x105   : > { %v1057_v54 = vpop.f32.mrf.mxu2  ;;  %v11244_v58 = vpop.f32.mrf.mxu0  ;;  %1865 = vmatpush.bf16.msra.mxu2 %v8738_v30  ;;  %v8829_v30 = vld [vmem:[%s17327_s1 + $0x1c0] sm:$0xf] }
 0x106   : > { %17794 = vst [vmem:[#allocation47_spill] sm:$0xff] %v11237_v26  ;;  %v11242_v21 = vadd.f32 %v1057_v54, %v11103_v6  ;;  %v11255_v60 = vpop.f32.mrf.mxu1  ;;  %v8739_v6 = vld [vmem:[%s17327_s1 + $0x168] sm:$0xf0]  ;;  %v8830_v46 = vor.u32 %v9904_v37, %v8829_v30  ;;  %v1221_v30 = vrot.slane %v10875_v4, 2  ;;  %v1222_v37 = vrot.slane %v10877_v5, 2 }
 0x107   : > { %v8742_v54 = vor.u32 %v9891_v19, %v8739_v6 }
 0x108   : > { %2309 = vmatpush.bf16.msra.mxu0 %v8830_v46 }
 0x109   : > { %1954 = vmatpush.bf16.msra.mxu3 %v8742_v54 }
 0x10b   : > { %v1148_v45 = vpop.f32.mrf.mxu3 }
 0x10c   : > { %v11265_v53 = vadd.f32 %v1148_v45, %v11124_v50  ;;  %v9903_v45 = vld [vmem:[%s17327_s1 + $0x1c4] sm:$0xf] }
 0x10d   : > { %v1059_v43 = vpop.f32.mrf.mxu2  ;;  %v11271_v9 = vpop.f32.mrf.mxu0 }
 0x10e   : > { %17795 = vst [vmem:[#allocation48_spill] sm:$0xff] %v11265_v53  ;;  %v11269_v1 = vadd.f32 %v1059_v43, %v11120_v31  ;;  %v11282_v50 = vpop.f32.mrf.mxu1  ;;  %v8831_v43 = vld [vmem:[%s17327_s1 + $0x1c8] sm:$0xf0] }
 0x10f   : > { %v8834_v16 = vor.u32 %v9903_v45, %v8831_v43  ;;  %v1275_v45 = vsel %vm1248_vm2, %v1220_v36, %v1221_v30 }
 0x110   : > { %17796 = vst [vmem:[#allocation49_spill] sm:$0xff] %v11269_v1  ;;  %8594 = vmatmul.msk.bf16.gmra.mxu3 %vm623_vm1, %v9842_v27  ;;  %8660 = vmatmul.msk.bf16.gmra.mxu0 %vm623_vm1, %v1282_v61 }
 0x111   : > { %8676 = vmatmul.msk.bf16.gmra.mxu1 %vm623_vm1, %v1282_v61  ;;  %v1274_v61 = vsel %vm1248_vm2, %v1221_v30, %v1222_v37 }
 0x112   : > { %8578 = vmatmul.msk.bf16.gmra.mxu2 %vm623_vm1, %v9842_v27  ;;  %2398 = vmatpush.bf16.msra.mxu1 %v8834_v16  ;;  %v1283_v16 = vpack.c.bf16 %v1274_v61, %v1275_v45  ;;  %v1223_v45 = vrot.slane %v10900_v23, 2 }
 0x113   : > { %v1151_v31 = vpop.f32.mrf.mxu3 }
 0x114   : > { %v11292_v19 = vadd.f32 %v1151_v31, %v11149_v55 }
 0x115   : > { %v1062_v44 = vpop.f32.mrf.mxu2  ;;  %v11297_v54 = vpop.f32.mrf.mxu0 }
 0x116   : > { %17797 = vst [vmem:[#allocation50_spill] sm:$0xff] %v11292_v19  ;;  %v11295_v6 = vadd.f32 %v1062_v44, %v11147_v25  ;;  %v11301_v27 = vpop.f32.mrf.mxu1  ;;  %v9843_v25 = vld [vmem:[%s10690_s16 + $0x60] sm:$0xff] }
 0x118   : > { %17798 = vst [vmem:[#allocation51_spill] sm:$0xff] %v11295_v6  ;;  %v8729_v6 = vld [vmem:[%s17327_s1 + $0x150] sm:$0xf] }
 0x11b   : > { %v1153_v46 = vpop.f32.mrf.mxu3 }
 0x11c   : > { %v11308_v43 = vadd.f32 %v1153_v46, %v11178_v52  ;;  %v1224_v46 = vrot.slane %v10902_v24, 2 }
 0x11d   : > { %v1064_v55 = vpop.f32.mrf.mxu2  ;;  %v11314_v44 = vpop.f32.mrf.mxu0 }
 0x11e   : > { %17799 = vst [vmem:[#allocation52_spill] sm:$0xff] %v11308_v43  ;;  %v11312_v31 = vadd.f32 %v1064_v55, %v11175_v56  ;;  %v11316_v19 = vpop.f32.mrf.mxu1 }
 0x120   : > { %17800 = vst [vmem:[#allocation53_spill] sm:$0xff] %v11312_v31  ;;  %8595 = vmatmul.msk.bf16.gmra.mxu3 %vm623_vm1, %v9843_v25  ;;  %8661 = vmatmul.msk.bf16.gmra.mxu0 %vm623_vm1, %v1283_v16 }
 0x121   : > { %8677 = vmatmul.msk.bf16.gmra.mxu1 %vm623_vm1, %v1283_v16  ;;  %v1273_v16 = vsel %vm1248_vm2, %v1222_v37, %v1223_v45  ;;  %v9890_v37 = vld [vmem:[%s17327_s1 + $0x154] sm:$0xf0] }
 0x122   : > { %8579 = vmatmul.msk.bf16.gmra.mxu2 %vm623_vm1, %v9843_v25  ;;  %v1272_v25 = vsel %vm1248_vm2, %v1223_v45, %v1224_v46 }
 0x123   : > { %v1156_v52 = vpop.f32.mrf.mxu3 }
 0x124   : > { %v11323_v30 = vadd.f32 %v1156_v52, %v11195_v7 }
 0x125   : > { %v1067_v36 = vpop.f32.mrf.mxu2  ;;  %v11328_v61 = vpop.f32.mrf.mxu0 }
 0x126   : > { %17801 = vst [vmem:[#allocation54_spill] sm:$0xff] %v11323_v30  ;;  %v11326_v56 = vadd.f32 %v1067_v36, %v11193_v20  ;;  %v11332_v55 = vpop.f32.mrf.mxu1  ;;  %v9844_v20 = vld [vmem:[%s10690_s16 + $0x68] sm:$0xff]  ;;  %v1284_v36 = vpack.c.bf16 %v1272_v25, %v1273_v16 }
 0x127   : > { %v9888_v16 = vld [vmem:[%s17327_s1 + $0x144] sm:$0xf0] }
 0x128   : > { %17802 = vst [vmem:[#allocation55_spill] sm:$0xff] %v11326_v56 }
 0x12b   : > { %v1158_v43 = vpop.f32.mrf.mxu3 }
 0x12c   : > { %v11339_v52 = vadd.f32 %v1158_v43, %v11213_v32  ;;  %v9889_v32 = vld [vmem:[%s17327_s1 + $0x154] sm:$0xf]  ;;  %v8730_v43 = vor.u32 %v9890_v37, %v8729_v6  ;;  %v8721_v6 = vld [vmem:[%s17327_s1 + $0x140] sm:$0xf] }
 0x12d   : > { %v1069_v7 = vpop.f32.mrf.mxu2  ;;  %v11345_v56 = vpop.f32.mrf.mxu0 }
 0x12e   : > { %17803 = vst [vmem:[#allocation56_spill] sm:$0xff] %v11339_v52  ;;  %v11343_v30 = vadd.f32 %v1069_v7, %v11207_v28  ;;  %v11347_v31 = vpop.f32.mrf.mxu1  ;;  %v8731_v28 = vld [vmem:[%s17327_s1 + $0x158] sm:$0xf0]  ;;  %1866 = vmatpush.bf16.msra.mxu2 %v8730_v43  ;;  %v9887_v7 = vld [vmem:[%s17327_s1 + $0x144] sm:$0xf]  ;;  %v1226_v52 = vrot.slane %v10930_v42, 2 }
 0x12f   : > { %v8734_v45 = vor.u32 %v9889_v32, %v8731_v28  ;;  %v8723_v32 = vld [vmem:[%s17327_s1 + $0x148] sm:$0xf0] }
 0x130   : > { %17804 = vst [vmem:[#allocation57_spill] sm:$0xff] %v11343_v30  ;;  %8596 = vmatmul.msk.bf16.gmra.mxu3 %vm623_vm1, %v9844_v20  ;;  %8662 = vmatmul.msk.bf16.gmra.mxu0 %vm623_vm1, %v1284_v36  ;;  %v8726_v30 = vor.u32 %v9887_v7, %v8723_v32  ;;  %v8713_v7 = vld [vmem:[%s17327_s1 + $0x130] sm:$0xf] }
 0x131   : > { %8678 = vmatmul.msk.bf16.gmra.mxu1 %vm623_vm1, %v1284_v36  ;;  %1955 = vmatpush.bf16.msra.mxu3 %v8734_v45  ;;  %v8722_v36 = vor.u32 %v9888_v16, %v8721_v6  ;;  %v1225_v45 = vrot.slane %v10928_v38, 2  ;;  %v8823_v16 = vld [vmem:[%s17327_s1 + $0x1b8] sm:$0xf0] }
 0x132   : > { %8580 = vmatmul.msk.bf16.gmra.mxu2 %vm623_vm1, %v9844_v20 }
 0x133   : > { %v1161_v25 = vpop.f32.mrf.mxu3  ;;  %1867 = vmatpush.bf16.msra.mxu2 %v8722_v36 }
 0x134   : > { %v11375_v20 = vadd.f32 %v1161_v25, %v11230_v17  ;;  %v8821_v17 = vld [vmem:[%s17327_s1 + $0x1b0] sm:$0xf]  ;;  %v9902_v25 = vld [vmem:[%s17327_s1 + $0x1b4] sm:$0xf0] }
 0x135   : > { %v1072_v37 = vpop.f32.mrf.mxu2  ;;  %v11383_v28 = vpop.f32.mrf.mxu0  ;;  %1956 = vmatpush.bf16.msra.mxu3 %v8726_v30  ;;  %v8822_v6 = vor.u32 %v9902_v25, %v8821_v17  ;;  %v9885_v30 = vld [vmem:[%s17327_s1 + $0x134] sm:$0xf]  ;;  %v8715_v17 = vld [vmem:[%s17327_s1 + $0x138] sm:$0xf0]  ;;  %v1270_v25 = vsel %vm1248_vm2, %v1225_v45, %v1226_v52 }
 0x136   : > { %17805 = vst [vmem:[#allocation58_spill] sm:$0xff] %v11375_v20  ;;  %v11381_v43 = vadd.f32 %v1072_v37, %v11228_v8  ;;  %v11387_v53 = vpop.f32.mrf.mxu1  ;;  %v9901_v8 = vld [vmem:[%s17327_s1 + $0x1b4] sm:$0xf]  ;;  %v9886_v37 = vld [vmem:[%s17327_s1 + $0x134] sm:$0xf0]  ;;  %v1271_v20 = vsel %vm1248_vm2, %v1224_v46, %v1225_v45 }
 0x137   : > { %v8826_v36 = vor.u32 %v9901_v8, %v8823_v16  ;;  %v8714_v32 = vor.u32 %v9886_v37, %v8713_v7  ;;  %2310 = vmatpush.bf16.msra.mxu0 %v8822_v6  ;;  %v8705_v16 = vld [vmem:[%s17327_s1 + $0x120] sm:$0xf]  ;;  %v9884_v7 = vld [vmem:[%s17327_s1 + $0x124] sm:$0xf0]  ;;  %v9883_v37 = vld [vmem:[%s17327_s1 + $0x124] sm:$0xf]  ;;  %v1285_v6 = vpack.c.bf16 %v1270_v25, %v1271_v20 }
 0x138   : > { %17806 = vst [vmem:[#allocation59_spill] sm:$0xff] %v11381_v43  ;;  %v8718_v43 = vor.u32 %v9885_v30, %v8715_v17  ;;  %v9845_v45 = vld [vmem:[%s10690_s16 + $0x70] sm:$0xff] }
 0x139   : > { %2399 = vmatpush.bf16.msra.mxu1 %v8826_v36  ;;  %1868 = vmatpush.bf16.msra.mxu2 %v8714_v32  ;;  %v8706_v36 = vor.u32 %v9884_v7, %v8705_v16  ;;  %v1228_v16 = vrot.slane %v10946_v51, 2 }
 0x13a   : > { %1957 = vmatpush.bf16.msra.mxu3 %v8718_v43  ;;  %v8707_v43 = vld [vmem:[%s17327_s1 + $0x128] sm:$0xf0] }
 0x13b   : > { %v1163_v8 = vpop.f32.mrf.mxu3  ;;  %v8710_v17 = vor.u32 %v9883_v37, %v8707_v43 }
 0x13c   : > { %v11427_v46 = vadd.f32 %v1163_v8, %v11255_v60  ;;  %v1227_v8 = vrot.slane %v10944_v57, 2 }
 0x13d   : > { %v1074_v1 = vpop.f32.mrf.mxu2  ;;  %v11436_v30 = vpop.f32.mrf.mxu0  ;;  %1869 = vmatpush.bf16.msra.mxu2 %v8706_v36 }
 0x13e   : > { %v11434_v32 = vadd.f32 %v1074_v1, %v11244_v58  ;;  %v11438_v26 = vpop.f32.mrf.mxu1  ;;  %1958 = vmatpush.bf16.msra.mxu3 %v8710_v17  ;;  %v1268_v37 = vsel %vm1248_vm2, %v1227_v8, %v1228_v16 }
 0x140   : > { %8597 = vmatmul.msk.bf16.gmra.mxu3 %vm623_vm1, %v9845_v45  ;;  %8663 = vmatmul.msk.bf16.gmra.mxu0 %vm623_vm1, %v1285_v6 }
 0x141   : > { %8679 = vmatmul.msk.bf16.gmra.mxu1 %vm623_vm1, %v1285_v6 }
 0x142   : > { %8581 = vmatmul.msk.bf16.gmra.mxu2 %vm623_vm1, %v9845_v45  ;;  %v1269_v45 = vsel %vm1248_vm2, %v1226_v52, %v1227_v8 }
 0x143   : > { %v1166_v60 = vpop.f32.mrf.mxu3  ;;  %v1286_v43 = vpack.c.bf16 %v1268_v37, %v1269_v45  ;;  %v1230_v37 = vrot.slane %v10974_v12, 2 }
 0x144   : > { %v11445_v58 = vadd.f32 %v1166_v60, %v11282_v50 }
 0x145   : > { %v1077_v20 = vpop.f32.mrf.mxu2  ;;  %v11450_v25 = vpop.f32.mrf.mxu0 }
 0x146   : > { %17807 = vst [vmem:[#allocation60_spill] sm:$0xff] %v11445_v58  ;;  %v11448_v1 = vadd.f32 %v1077_v20, %v11271_v9  ;;  %v11454_v7 = vpop.f32.mrf.mxu1  ;;  %v9846_v9 = vld [vmem:[%s10690_s16 + $0x78] sm:$0xff]  ;;  %s10504_s16 = smov 122  }
 0x148   : > { %17808 = vst [vmem:[#allocation61_spill] sm:$0xff] %v11448_v1 }
 0x14b   : > { %v1168_v6 = vpop.f32.mrf.mxu3 }
 0x14c   : > { %v11461_v36 = vadd.f32 %v1168_v6, %v11301_v27 }
 0x14d   : > { %v1079_v50 = vpop.f32.mrf.mxu2  ;;  %v11467_v60 = vpop.f32.mrf.mxu0 }
 0x14e   : > { %17809 = vst [vmem:[#allocation62_spill] sm:$0xff] %v11461_v36  ;;  %v11465_v17 = vadd.f32 %v1079_v50, %v11297_v54  ;;  %v11469_v20 = vpop.f32.mrf.mxu1  ;;  %v1229_v54 = vrot.slane %v10972_v11, 2  ;;  %v17362_v50 = vrot.slane %v10701_v39, 3 }
 0x150   : > { %17810 = vst [vmem:[#allocation63_spill] sm:$0xff] %v11465_v17  ;;  %8598 = vmatmul.msk.bf16.gmra.mxu3 %vm623_vm1, %v9846_v9  ;;  %8664 = vmatmul.msk.bf16.gmra.mxu0 %vm623_vm1, %v1286_v43 }
 0x151   : > { %8680 = vmatmul.msk.bf16.gmra.mxu1 %vm623_vm1, %v1286_v43  ;;  %v1662_v43 = vrot.slane %v10705_v41, 3 }
 0x152   : > { %8582 = vmatmul.msk.bf16.gmra.mxu2 %vm623_vm1, %v9846_v9  ;;  %v1661_v9 = vrot.slane %v10703_v40, 3 }
 0x153   : > { %v1171_v52 = vpop.f32.mrf.mxu3 }
 0x154   : > { %v11476_v8 = vadd.f32 %v1171_v52, %v11316_v19  ;;  %v1266_v19 = vsel %vm1248_vm2, %v1229_v54, %v1230_v37  ;;  %v1267_v52 = vsel %vm1248_vm2, %v1228_v16, %v1229_v54  ;;  %v8815_v54 = vld [vmem:[%s17327_s1 + $0x1a8] sm:$0xf0] }
 0x155   : > { %v1082_v27 = vpop.f32.mrf.mxu2  ;;  %v11483_v6 = vpop.f32.mrf.mxu0 }
 0x156   : > { %17811 = vst [vmem:[#allocation64_spill] sm:$0xff] %v11476_v8  ;;  %v11481_v45 = vadd.f32 %v1082_v27, %v11314_v44  ;;  %v11488_v36 = vpop.f32.mrf.mxu1  ;;  %v1722_v44 = vsel %vm1692_vm3, %v1661_v9, %v1662_v43  ;;  %v1723_v27 = vsel %vm1692_vm3, %v17362_v50, %v1661_v9  ;;  %v1664_v50 = vrot.slane %v10786_v15, 3 }
 0x157   : > { %v1725_v17 = vpack.c.bf16 %v1722_v44, %v1723_v27 }
 0x158   : > { %17812 = vst [vmem:[#allocation65_spill] sm:$0xff] %v11481_v45  ;;  %v1287_v45 = vpack.c.bf16 %v1266_v19, %v1267_v52  ;;  %v1231_v52 = vrot.slane %v10988_v22, 2 }
 0x15b   : > { %v1173_v40 = vpop.f32.mrf.mxu3 }
 0x15c   : > { %v11502_v8 = vadd.f32 %v1173_v40, %v11332_v55  ;;  %v8813_v40 = vld [vmem:[%s17327_s1 + $0x1a0] sm:$0xf] }
 0x15d   : > { %v1084_v41 = vpop.f32.mrf.mxu2  ;;  %v11507_v1 = vpop.f32.mrf.mxu0 }
 0x15e   : > { %17813 = vst [vmem:[#allocation66_spill] sm:$0xff] %v11502_v8  ;;  %v11505_v58 = vadd.f32 %v1084_v41, %v11328_v61  ;;  %v11509_v16 = vpop.f32.mrf.mxu1  ;;  %v9900_v41 = vld [vmem:[%s17327_s1 + $0x1a4] sm:$0xf0]  ;;  %v9899_v61 = vld [vmem:[%s17327_s1 + $0x1a4] sm:$0xf] }
 0x15f   : > { %v8814_v55 = vor.u32 %v9900_v41, %v8813_v40  ;;  %v8818_v9 = vor.u32 %v9899_v61, %v8815_v54  ;;  %v1232_v40 = vrot.slane %v10990_v49, 2  ;;  %v1663_v41 = vrot.slane %v10783_v14, 3 }
 0x160   : > { %8665 = vmatmul.msk.bf16.gmra.mxu0 %vm623_vm1, %v1287_v45  ;;  %8767 = vmatmul.msk.bf16.vlgmr.msra.gmra.mxu3 %vm623_vm1, %v1725_v17 }
 0x161   : > { %8681 = vmatmul.msk.bf16.gmra.mxu1 %vm623_vm1, %v1287_v45  ;;  %2311 = vmatpush.bf16.msra.mxu0 %v8814_v55  ;;  %v1265_v55 = vsel %vm1248_vm2, %v1230_v37, %v1231_v52  ;;  %v1721_v54 = vsel %vm1692_vm3, %v1662_v43, %v1663_v41 }
 0x162   : > { %8751 = vmatmul.msk.bf16.vlgmr.msra.gmra.mxu2 %vm623_vm1, %v1725_v17  ;;  %2400 = vmatpush.bf16.msra.mxu1 %v8818_v9 }
 0x163   : > { %v1176_v45 = vpop.f32.mrf.mxu3 }
 0x164   : > { %v11528_v19 = vadd.f32 %v1176_v45, %v11347_v31  ;;  %v1264_v31 = vsel %vm1248_vm2, %v1231_v52, %v1232_v40 }
 0x165   : > { %v1087_v17 = vpop.f32.mrf.mxu2  ;;  %v11534_v27 = vpop.f32.mrf.mxu0  ;;  %v1288_v9 = vpack.c.bf16 %v1264_v31, %v1265_v55  ;;  %v1234_v31 = vrot.slane %v11018_v48, 2  ;;  %v1665_v55 = vrot.slane %v10875_v4, 3 }
 0x166   : > { %17814 = vst [vmem:[#allocation67_spill] sm:$0xff] %v11528_v19  ;;  %v11532_v44 = vadd.f32 %v1087_v17, %v11345_v56  ;;  %v11539_v61 = vpop.f32.mrf.mxu1  ;;  %v1720_v56 = vsel %vm1692_vm3, %v1663_v41, %v1664_v50 }
 0x167   : > { %v1726_v15 = vpack.c.bf16 %v1720_v56, %v1721_v54  ;;  %v1666_v56 = vrot.slane %v10877_v5, 3 }
 0x168   : > { %17815 = vst [vmem:[#allocation68_spill] sm:$0xff] %v11532_v44 }
 0x16b   : > { %v1178_v45 = vpop.f32.mrf.mxu3 }
 0x16c   : > { %v11550_v14 = vadd.f32 %v1178_v45, %v11387_v53  ;;  %v1719_v45 = vsel %vm1692_vm3, %v1664_v50, %v1665_v55 }
 0x16d   : > { %v1089_v17 = vpop.f32.mrf.mxu2  ;;  %v11555_v44 = vpop.f32.mrf.mxu0 }
 0x16e   : > { %v11553_v19 = vadd.f32 %v1089_v17, %v11383_v28  ;;  %v11557_v8 = vpop.f32.mrf.mxu1  ;;  %v1233_v28 = vrot.slane %v11016_v47, 2 }
 0x170   : > { %8666 = vmatmul.msk.bf16.gmra.mxu0 %vm623_vm1, %v1288_v9  ;;  %8768 = vmatmul.msk.bf16.gmra.mxu3 %vm623_vm1, %v1726_v15 }
 0x171   : > { %8682 = vmatmul.msk.bf16.gmra.mxu1 %vm623_vm1, %v1288_v9 }
 0x172   : > { %8752 = vmatmul.msk.bf16.gmra.mxu2 %vm623_vm1, %v1726_v15  ;;  %v1262_v15 = vsel %vm1248_vm2, %v1233_v28, %v1234_v31 }
 0x173   : > { %v1181_v37 = vpop.f32.mrf.mxu3 }
 0x174   : > { %v11564_v43 = vadd.f32 %v1181_v37, %v11438_v26  ;;  %v1263_v26 = vsel %vm1248_vm2, %v1232_v40, %v1233_v28 }
 0x175   : > { %v1092_v53 = vpop.f32.mrf.mxu2  ;;  %v11570_v41 = vpop.f32.mrf.mxu0 }
 0x176   : > { %17816 = vst [vmem:[#allocation69_spill] sm:$0xff] %v11564_v43  ;;  %v11568_v52 = vadd.f32 %v1092_v53, %v11436_v30  ;;  %v11575_v54 = vpop.f32.mrf.mxu1  ;;  %v1718_v30 = vsel %vm1692_vm3, %v1665_v55, %v1666_v56  ;;  %v1289_v53 = vpack.c.bf16 %v1262_v15, %v1263_v26  ;;  %v1236_v55 = vrot.slane %v11038_v63, 2 }
 0x177   : > { %v1727_v5 = vpack.c.bf16 %v1718_v30, %v1719_v45  ;;  %v1667_v15 = vrot.slane %v10900_v23, 3  ;;  %v1668_v26 = vrot.slane %v10902_v24, 3 }
 0x178   : > { %17817 = vst [vmem:[#allocation70_spill] sm:$0xff] %v11568_v52 }
 0x17b   : > { %v1183_v17 = vpop.f32.mrf.mxu3 }
 0x17c   : > { %v11586_v37 = vadd.f32 %v1183_v17, %v11454_v7  ;;  %v1716_v17 = vsel %vm1692_vm3, %v1667_v15, %v1668_v26 }
 0x17d   : > { %v1094_v9 = vpop.f32.mrf.mxu2  ;;  %v1427_v43 = vpop.f32.mrf.mxu0 }
 0x17e   : > { %v11589_v4 = vadd.f32 %v1094_v9, %v11450_v25  ;;  %v11592_v52 = vadd.f32 %v1427_v43, %v11173_v13  ;;  %v1516_v40 = vpop.f32.mrf.mxu1  ;;  %v1235_v13 = vrot.slane %v11036_v62, 2  ;;  %v1717_v9 = vsel %vm1692_vm3, %v1666_v56, %v1667_v15  ;;  %v9897_v56 = vld [vmem:[%s17327_s1 + $0x194] sm:$0xf] }
 0x17f   : > { %v11595_v28 = vadd.f32 %v1516_v40, %v11170_v3 }
 0x180   : > { %8667 = vmatmul.msk.bf16.gmra.mxu0 %vm623_vm1, %v1289_v53  ;;  %8769 = vmatmul.msk.bf16.gmra.mxu3 %vm623_vm1, %v1727_v5 }
 0x181   : > { %8683 = vmatmul.msk.bf16.gmra.mxu1 %vm623_vm1, %v1289_v53 }
 0x182   : > { %8753 = vmatmul.msk.bf16.gmra.mxu2 %vm623_vm1, %v1727_v5 }
 0x183   : > { %v1186_v7 = vpop.f32.mrf.mxu3 }
 0x184   : > { %v11602_v25 = vadd.f32 %v1186_v7, %v11469_v20  ;;  %v1260_v20 = vsel %vm1248_vm2, %v1235_v13, %v1236_v55 }
 0x185   : > { %v1097_v50 = vpop.f32.mrf.mxu2  ;;  %v1429_v3 = vpop.f32.mrf.mxu0 }
 0x186   : > { %v11606_v43 = vadd.f32 %v1097_v50, %v11467_v60  ;;  %v11612_v30 = vadd.f32 %v1429_v3, %v11191_v18  ;;  %v1518_v5 = vpop.f32.mrf.mxu1  ;;  %v1261_v60 = vsel %vm1248_vm2, %v1234_v31, %v1235_v13  ;;  %v8805_v31 = vld [vmem:[%s17327_s1 + $0x190] sm:$0xf]  ;;  %v9898_v13 = vld [vmem:[%s17327_s1 + $0x194] sm:$0xf0] }
 0x187   : > { %v11615_v45 = vadd.f32 %v1518_v5, %v11187_v59  ;;  %v1290_v7 = vpack.c.bf16 %v1260_v20, %v1261_v60  ;;  %v1728_v59 = vpack.c.bf16 %v1716_v17, %v1717_v9  ;;  %v8806_v5 = vor.u32 %v9898_v13, %v8805_v31 }
 0x188   : > { %v1669_v31 = vrot.slane %v10928_v38, 3 }
 0x189   : > { %2312 = vmatpush.bf16.msra.mxu0 %v8806_v5 }
 0x18a   : > { %v1715_v5 = vsel %vm1692_vm3, %v1668_v26, %v1669_v31 }
 0x18b   : > { %v1188_v53 = vpop.f32.mrf.mxu3 }
 0x18c   : > { %v11626_v18 = vadd.f32 %v1188_v53, %v11488_v36  ;;  %v1237_v53 = vrot.slane %v11080_v34, 2 }
 0x18d   : > { %v1099_v40 = vpop.f32.mrf.mxu2  ;;  %v1432_v3 = vpop.f32.mrf.mxu0 }
 0x18e   : > { %17818 = vst [vmem:[#allocation71_spill] sm:$0xff] %v11626_v18  ;;  %v11629_v50 = vadd.f32 %v1099_v40, %v11483_v6  ;;  %v11641_v36 = vadd.f32 %v1432_v3, %v11205_v2  ;;  %v1521_v15 = vpop.f32.mrf.mxu1  ;;  %v8807_v6 = vld [vmem:[%s17327_s1 + $0x198] sm:$0xf0]  ;;  %v1238_v3 = vrot.slane %v11082_v35, 2 }
 0x18f   : > { %v11647_v20 = vadd.f32 %v1521_v15, %v11202_v33  ;;  %v8810_v60 = vor.u32 %v9897_v56, %v8807_v6 }
 0x190   : > { %8668 = vmatmul.msk.bf16.gmra.mxu0 %vm623_vm1, %v1290_v7  ;;  %8770 = vmatmul.msk.bf16.gmra.mxu3 %vm623_vm1, %v1728_v59 }
 0x191   : > { %8684 = vmatmul.msk.bf16.gmra.mxu1 %vm623_vm1, %v1290_v7  ;;  %v1670_v7 = vrot.slane %v10930_v42, 3 }
 0x192   : > { %8754 = vmatmul.msk.bf16.gmra.mxu2 %vm623_vm1, %v1728_v59  ;;  %2401 = vmatpush.bf16.msra.mxu1 %v8810_v60 }
 0x193   : > { %v1191_v2 = vpop.f32.mrf.mxu3  ;;  %v1714_v15 = vsel %vm1692_vm3, %v1669_v31, %v1670_v7  ;;  %v17825_v31 = vld [vmem:[#allocation40_spill] sm:$0xff] }
 0x194   : > { %v11654_v9 = vadd.f32 %v1191_v2, %v11509_v16  ;;  %v1258_v16 = vsel %vm1248_vm2, %v1237_v53, %v1238_v3 }
 0x195   : > { %v1102_v17 = vpop.f32.mrf.mxu2  ;;  %v1434_v40 = vpop.f32.mrf.mxu0 }
 0x196   : > { %17819 = vst [vmem:[#allocation72_spill] sm:$0xff] %v11654_v9  ;;  %v11658_v33 = vadd.f32 %v1102_v17, %v11507_v1  ;;  %v11664_v59 = vadd.f32 %v1434_v40, %v11226_v0  ;;  %v1523_v13 = vpop.f32.mrf.mxu1  ;;  %v1259_v1 = vsel %vm1248_vm2, %v1236_v55, %v1237_v53  ;;  %v17823_v53 = vld [vmem:[#allocation47_spill] sm:$0xff] }
 0x197   : > { %v11667_v56 = vadd.f32 %v1523_v13, %v11222_v10  ;;  %v1291_v2 = vpack.c.bf16 %v1258_v16, %v1259_v1  ;;  %v1729_v10 = vpack.c.bf16 %v1714_v15, %v1715_v5  ;;  %v17827_v15 = vld [vmem:[#allocation41_spill] sm:$0xff]  ;;  %v17840_v9 = vld [vmem:[#allocation55_spill] sm:$0xff] }
 0x198   : > { %17820 = vst [vmem:[#allocation73_spill] sm:$0xff] %v11658_v33  ;;  %v1240_v5 = vrot.slane %v17827_v15, 2 }
 0x19b   : > { %v1193_v6 = vpop.f32.mrf.mxu3 }
 0x19c   : > { %v11678_v0 = vadd.f32 %v1193_v6, %v11539_v61  ;;  %v1671_v6 = vrot.slane %v10944_v57, 3 }
 0x19d   : > { %v1104_v60 = vpop.f32.mrf.mxu2  ;;  %v1437_v40 = vpop.f32.mrf.mxu0 }
 0x19e   : > { %17821 = vst [vmem:[#allocation74_spill] sm:$0xff] %v11678_v0  ;;  %v11681_v17 = vadd.f32 %v1104_v60, %v11534_v27  ;;  %v11684_v13 = vadd.f32 %v1437_v40, %v11242_v21  ;;  %v1526_v55 = vpop.f32.mrf.mxu1  ;;  %v1239_v21 = vrot.slane %v17825_v31, 2  ;;  %v1672_v60 = vrot.slane %v10946_v51, 3 }
 0x19f   : > { %v11687_v42 = vadd.f32 %v1526_v55, %v17823_v53  ;;  %v17829_v55 = vld [vmem:[#allocation48_spill] sm:$0xff] }
 0x1a0   : > { %17822 = vst [vmem:[#allocation75_spill] sm:$0xff] %v11681_v17  ;;  %8669 = vmatmul.msk.bf16.gmra.mxu0 %vm623_vm1, %v1291_v2  ;;  %8771 = vmatmul.msk.bf16.gmra.mxu3 %vm623_vm1, %v1729_v10 }
 0x1a1   : > { %8685 = vmatmul.msk.bf16.gmra.mxu1 %vm623_vm1, %v1291_v2  ;;  %v17828_v2 = vld [vmem:[#allocation49_spill] sm:$0xff] }
 0x1a2   : > { %8755 = vmatmul.msk.bf16.gmra.mxu2 %vm623_vm1, %v1729_v10 }
 0x1a3   : > { %v1196_v61 = vpop.f32.mrf.mxu3 }
 0x1a4   : > { %v11694_v27 = vadd.f32 %v1196_v61, %v11557_v8  ;;  %v1256_v8 = vsel %vm1248_vm2, %v1239_v21, %v1240_v5  ;;  %v1712_v61 = vsel %vm1692_vm3, %v1671_v6, %v1672_v60 }
 0x1a5   : > { %v1107_v26 = vpop.f32.mrf.mxu2  ;;  %v1439_v1 = vpop.f32.mrf.mxu0 }
 0x1a6   : > { %17824 = vst [vmem:[#allocation47_spill] sm:$0xff] %v11694_v27  ;;  %v11698_v16 = vadd.f32 %v1107_v26, %v11555_v44  ;;  %v11704_v40 = vadd.f32 %v1439_v1, %v17828_v2  ;;  %v1528_v10 = vpop.f32.mrf.mxu1  ;;  %v1257_v44 = vsel %vm1248_vm2, %v1238_v3, %v1239_v21  ;;  %v1713_v26 = vsel %vm1692_vm3, %v1670_v7, %v1671_v6  ;;  %v17833_v21 = vld [vmem:[#allocation50_spill] sm:$0xff] }
 0x1a7   : > { %v11707_v53 = vadd.f32 %v1528_v10, %v17829_v55  ;;  %v1292_v2 = vpack.c.bf16 %v1256_v8, %v1257_v44  ;;  %v1730_v10 = vpack.c.bf16 %v1712_v61, %v1713_v26  ;;  %v17837_v7 = vld [vmem:[#allocation10_spill] sm:$0xff]  ;;  %v1673_v6 = vrot.slane %v10972_v11, 3  ;;  %v17838_v44 = vld [vmem:[#allocation53_spill] sm:$0xff] }
 0x1a8   : > { %17826 = vst [vmem:[#allocation40_spill] sm:$0xff] %v11698_v16  ;;  %v17832_v16 = vld [vmem:[#allocation51_spill] sm:$0xff]  ;;  %v1674_v8 = vrot.slane %v10974_v12, 3  ;;  %v9895_v11 = vld [vmem:[%s17327_s1 + $0x184] sm:$0xf] }
 0x1aa   : > { %v1710_v12 = vsel %vm1692_vm3, %v1673_v6, %v1674_v8 }
 0x1ab   : > { %v1198_v51 = vpop.f32.mrf.mxu3 }
 0x1ac   : > { %v11718_v1 = vadd.f32 %v1198_v51, %v11575_v54 }
 0x1ad   : > { %v1109_v57 = vpop.f32.mrf.mxu2  ;;  %v1442_v27 = vpop.f32.mrf.mxu0 }
 0x1ae   : > { %17830 = vst [vmem:[#allocation41_spill] sm:$0xff] %v11718_v1  ;;  %v11721_v55 = vadd.f32 %v1109_v57, %v11570_v41  ;;  %v11724_v0 = vadd.f32 %v1442_v27, %v17832_v16  ;;  %v1531_v3 = vpop.f32.mrf.mxu1  ;;  %v17836_v41 = vld [vmem:[#allocation46_spill] sm:$0xff]  ;;  %v1242_v27 = vrot.slane %v17837_v7, 2 }
 0x1af   : > { %v11727_v17 = vadd.f32 %v1531_v3, %v17833_v21  ;;  %v1241_v54 = vrot.slane %v17836_v41, 2  ;;  %v9896_v21 = vld [vmem:[%s17327_s1 + $0x184] sm:$0xf0] }
 0x1b0   : > { %17831 = vst [vmem:[#allocation49_spill] sm:$0xff] %v11721_v55  ;;  %8670 = vmatmul.msk.bf16.gmra.mxu0 %vm623_vm1, %v1292_v2  ;;  %8772 = vmatmul.msk.bf16.gmra.mxu3 %vm623_vm1, %v1730_v10 }
 0x1b1   : > { %8686 = vmatmul.msk.bf16.gmra.mxu1 %vm623_vm1, %v1292_v2  ;;  %v17839_v2 = vld [vmem:[#allocation52_spill] sm:$0xff] }
 0x1b2   : > { %8756 = vmatmul.msk.bf16.gmra.mxu2 %vm623_vm1, %v1730_v10  ;;  %v8797_v10 = vld [vmem:[%s17327_s1 + $0x180] sm:$0xf] }
 0x1b3   : > { %v11733_v51 = vpop.f32.mrf.mxu3 }
 0x1b4   : > { %17834 = vst [vmem:[#allocation48_spill] sm:$0xff] %v11733_v51  ;;  %v1711_v51 = vsel %vm1692_vm3, %v1672_v60, %v1673_v6  ;;  %v1675_v6 = vrot.slane %v10988_v22, 3 }
 0x1b5   : > { %v11735_v57 = vpop.f32.mrf.mxu2  ;;  %v1444_v16 = vpop.f32.mrf.mxu0 }
 0x1b6   : > { %17835 = vst [vmem:[#allocation51_spill] sm:$0xff] %v11735_v57  ;;  %v11742_v61 = vadd.f32 %v1444_v16, %v17838_v44  ;;  %v1533_v26 = vpop.f32.mrf.mxu1  ;;  %v1254_v16 = vsel %vm1248_vm2, %v1241_v54, %v1242_v27  ;;  %v8798_v44 = vor.u32 %v9896_v21, %v8797_v10  ;;  %v1731_v21 = vpack.c.bf16 %v1710_v12, %v1711_v51  ;;  %v17846_v51 = vld [vmem:[#allocation11_spill] sm:$0xff] }
 0x1b7   : > { %v11745_v3 = vadd.f32 %v1533_v26, %v17839_v2  ;;  %v8799_v26 = vld [vmem:[%s17327_s1 + $0x188] sm:$0xf0]  ;;  %v1255_v2 = vsel %vm1248_vm2, %v1240_v5, %v1241_v54 }
 0x1b8   : > { %v8802_v57 = vor.u32 %v9895_v11, %v8799_v26  ;;  %2313 = vmatpush.bf16.msra.mxu0 %v8798_v44  ;;  %v1293_v10 = vpack.c.bf16 %v1254_v16, %v1255_v2  ;;  %v17842_v54 = vld [vmem:[#allocation54_spill] sm:$0xff]  ;;  %v1676_v16 = vrot.slane %v10990_v49, 3  ;;  %v17848_v44 = vld [vmem:[#allocation57_spill] sm:$0xff] }
 0x1ba   : > { %2402 = vmatpush.bf16.msra.mxu1 %v8802_v57 }
 0x1bb   : > { %v11767_v1 = vpop.f32.mrf.mxu3 }
 0x1bd   : > { %v11769_v55 = vpop.f32.mrf.mxu2  ;;  %v1447_v38 = vpop.f32.mrf.mxu0 }
 0x1be   : > { %v11772_v33 = vadd.f32 %v1447_v38, %v17840_v9  ;;  %v1536_v5 = vpop.f32.mrf.mxu1  ;;  %v1243_v38 = vrot.slane %v17846_v51, 2  ;;  %v17847_v9 = vld [vmem:[#allocation12_spill] sm:$0xff] }
 0x1bf   : > { %v11775_v18 = vadd.f32 %v1536_v5, %v17842_v54  ;;  %v1244_v57 = vrot.slane %v17847_v9, 2 }
 0x1c0   : > { %17841 = vst [vmem:[#allocation50_spill] sm:$0xff] %v11772_v33  ;;  %8671 = vmatmul.msk.bf16.gmra.mxu0 %vm623_vm1, %v1293_v10  ;;  %8773 = vmatmul.msk.bf16.gmra.mxu3 %vm623_vm1, %v1731_v21  ;;  %v1253_v54 = vsel %vm1248_vm2, %v1242_v27, %v1243_v38  ;;  %v1709_v33 = vsel %vm1692_vm3, %v1674_v8, %v1675_v6 }
 0x1c1   : > { %17843 = vst [vmem:[#allocation46_spill] sm:$0xff] %v11775_v18  ;;  %8687 = vmatmul.msk.bf16.gmra.mxu1 %vm623_vm1, %v1293_v10  ;;  %v17850_v10 = vld [vmem:[#allocation56_spill] sm:$0xff]  ;;  %v1708_v18 = vsel %vm1692_vm3, %v1675_v6, %v1676_v16 }
 0x1c2   : > { %8757 = vmatmul.msk.bf16.gmra.mxu2 %vm623_vm1, %v1731_v21  ;;  %v1252_v21 = vsel %vm1248_vm2, %v1243_v38, %v1244_v57  ;;  %v17859_v6 = vld [vmem:[#allocation16_spill] sm:$0xff] }
 0x1c3   : > { %v11781_v11 = vpop.f32.mrf.mxu3 }
 0x1c4   : > { %17844 = vst [vmem:[#allocation10_spill] sm:$0xff] %v11781_v11  ;;  %v17854_v11 = vld [vmem:[#allocation58_spill] sm:$0xff] }
 0x1c5   : > { %v11783_v60 = vpop.f32.mrf.mxu2  ;;  %v1449_v12 = vpop.f32.mrf.mxu0 }
 0x1c6   : > { %17845 = vst [vmem:[#allocation53_spill] sm:$0xff] %v11783_v60  ;;  %v11790_v26 = vadd.f32 %v1449_v12, %v17848_v44  ;;  %v1538_v2 = vpop.f32.mrf.mxu1  ;;  %v1294_v44 = vpack.c.bf16 %v1252_v21, %v1253_v54  ;;  %v1246_v21 = vrot.slane %v17859_v6, 2 }
 0x1c7   : > { %v11793_v5 = vadd.f32 %v1538_v2, %v17850_v10  ;;  %v17852_v10 = vld [vmem:[#allocation59_spill] sm:$0xff] }
 0x1c8   : > { %17849 = vst [vmem:[#allocation52_spill] sm:$0xff] %v11790_v26  ;;  %v1732_v26 = vpack.c.bf16 %v1708_v18, %v1709_v33  ;;  %v17858_v33 = vld [vmem:[#allocation15_spill] sm:$0xff] }
 0x1c9   : > { %17851 = vst [vmem:[#allocation55_spill] sm:$0xff] %v11793_v5  ;;  %v1245_v38 = vrot.slane %v17858_v33, 2 }
 0x1cb   : > { %v11803_v49 = vpop.f32.mrf.mxu3 }
 0x1cd   : > { %v11805_v12 = vpop.f32.mrf.mxu2  ;;  %v1452_v2 = vpop.f32.mrf.mxu0 }
 0x1ce   : > { %v11808_v5 = vadd.f32 %v1452_v2, %v17852_v10  ;;  %v1541_v22 = vpop.f32.mrf.mxu1  ;;  %v1251_v10 = vsel %vm1248_vm2, %v1244_v57, %v1245_v38 }
 0x1cf   : > { %v11811_v60 = vadd.f32 %v1541_v22, %v17854_v11  ;;  %v1677_v22 = vrot.slane %v11016_v47, 3  ;;  %v1678_v11 = vrot.slane %v11018_v48, 3 }
 0x1d0   : > { %17853 = vst [vmem:[#allocation54_spill] sm:$0xff] %v11808_v5  ;;  %8672 = vmatmul.msk.bf16.gmra.mxu0 %vm623_vm1, %v1294_v44  ;;  %8774 = vmatmul.msk.bf16.gmra.mxu3 %vm623_vm1, %v1732_v26 }
 0x1d1   : > { %17855 = vst [vmem:[#allocation11_spill] sm:$0xff] %v11811_v60  ;;  %8688 = vmatmul.msk.bf16.gmra.mxu1 %vm623_vm1, %v1294_v44  ;;  %v1706_v60 = vsel %vm1692_vm3, %v1677_v22, %v1678_v11  ;;  %v1707_v5 = vsel %vm1692_vm3, %v1676_v16, %v1677_v22  ;;  %v17866_v22 = vld [vmem:[#allocation19_spill] sm:$0xff] }
 0x1d2   : > { %8758 = vmatmul.msk.bf16.gmra.mxu2 %vm623_vm1, %v1732_v26  ;;  %v1250_v26 = vsel %vm1248_vm2, %v1245_v38, %v1246_v21 }
 0x1d3   : > { %v11817_v27 = vpop.f32.mrf.mxu3 }
 0x1d4   : > { %17856 = vst [vmem:[#allocation12_spill] sm:$0xff] %v11817_v27  ;;  %v17864_v27 = vld [vmem:[#allocation60_spill] sm:$0xff] }
 0x1d5   : > { %v11819_v8 = vpop.f32.mrf.mxu2  ;;  %v1454_v18 = vpop.f32.mrf.mxu0 }
 0x1d6   : > { %17857 = vst [vmem:[#allocation57_spill] sm:$0xff] %v11819_v8  ;;  %v11826_v54 = vadd.f32 %v1454_v18, %v11434_v32  ;;  %v1543_v2 = vpop.f32.mrf.mxu1  ;;  %v1295_v18 = vpack.c.bf16 %v1250_v26, %v1251_v10  ;;  %v1680_v26 = vrot.slane %v11038_v63, 3  ;;  %v17867_v10 = vld [vmem:[#allocation63_spill] sm:$0xff] }
 0x1d7   : > { %v11829_v44 = vadd.f32 %v1543_v2, %v11427_v46  ;;  %v17862_v2 = vld [vmem:[#allocation61_spill] sm:$0xff] }
 0x1d8   : > { %17860 = vst [vmem:[#allocation56_spill] sm:$0xff] %v11826_v54  ;;  %v1733_v54 = vpack.c.bf16 %v1706_v60, %v1707_v5 }
 0x1d9   : > { %17861 = vst [vmem:[#allocation59_spill] sm:$0xff] %v11829_v44 }
 0x1db   : > { %v11839_v48 = vpop.f32.mrf.mxu3 }
 0x1dd   : > { %v11841_v32 = vpop.f32.mrf.mxu2  ;;  %v1457_v46 = vpop.f32.mrf.mxu0 }
 0x1de   : > { %v11844_v44 = vadd.f32 %v1457_v46, %v17862_v2  ;;  %v1546_v47 = vpop.f32.mrf.mxu1 }
 0x1df   : > { %v11847_v8 = vadd.f32 %v1546_v47, %v17864_v27  ;;  %v1247_v47 = vrot.slane %v17866_v22, 2  ;;  %v1679_v27 = vrot.slane %v11036_v62, 3 }
 0x1e0   : > { %17863 = vst [vmem:[#allocation58_spill] sm:$0xff] %v11844_v44  ;;  %8673 = vmatmul.msk.bf16.gmra.mxu0 %vm623_vm1, %v1295_v18  ;;  %8775 = vmatmul.msk.bf16.gmra.mxu3 %vm623_vm1, %v1733_v54  ;;  %v17872_v44 = vld [vmem:[#allocation65_spill] sm:$0xff] }
 0x1e1   : > { %17865 = vst [vmem:[#allocation15_spill] sm:$0xff] %v11847_v8  ;;  %8689 = vmatmul.msk.bf16.gmra.mxu1 %vm623_vm1, %v1295_v18  ;;  %v1705_v8 = vsel %vm1692_vm3, %v1678_v11, %v1679_v27  ;;  %v1681_v11 = vrot.slane %v11080_v34, 3 }
 0x1e2   : > { %8759 = vmatmul.msk.bf16.gmra.mxu2 %vm623_vm1, %v1733_v54  ;;  %v17869_v54 = vld [vmem:[#allocation62_spill] sm:$0xff] }
 0x1e3   : > { %v1960_v57 = vpop.f32.mrf.mxu3 }
 0x1e4   : > { %v11854_v60 = vadd.f32 %v1960_v57, %v11595_v28  ;;  %v1249_v28 = vsel %vm1248_vm2, %v1246_v21, %v1247_v47 }
 0x1e5   : > { %v1871_v16 = vpop.f32.mrf.mxu2  ;;  %v1459_v38 = vpop.f32.mrf.mxu0 }
 0x1e6   : > { %v11857_v5 = vadd.f32 %v1871_v16, %v11592_v52  ;;  %v11863_v46 = vadd.f32 %v1459_v38, %v17867_v10  ;;  %v1548_v18 = vpop.f32.mrf.mxu1  ;;  %v17871_v52 = vrot.slane %v10701_v39, 2  ;;  %v1704_v16 = vsel %vm1692_vm3, %v1679_v27, %v1680_v26 }
 0x1e7   : > { %v11866_v2 = vadd.f32 %v1548_v18, %v17869_v54  ;;  %v1734_v54 = vpack.c.bf16 %v1704_v16, %v1705_v8 }
 0x1e8   : > { %17868 = vst [vmem:[#allocation16_spill] sm:$0xff] %v11863_v46  ;;  %v1280_v57 = vsel %vm1248_vm2, %v1247_v47, %v17871_v52  ;;  %v17874_v52 = vld [vmem:[#allocation64_spill] sm:$0xff] }
 0x1e9   : > { %17870 = vst [vmem:[#allocation61_spill] sm:$0xff] %v11866_v2  ;;  %v1296_v18 = vpack.c.bf16 %v1280_v57, %v1249_v28  ;;  %v17379_v28 = vrot.slane %v10701_v39, 4  ;;  %v17876_v57 = vld [vmem:[#allocation8_spill] sm:$0xff] }
 0x1ea   : > { %v2105_v16 = vrot.slane %v17876_v57, 4 }
 0x1eb   : > { %v1962_v38 = vpop.f32.mrf.mxu3 }
 0x1ec   : > { %v11879_v46 = vadd.f32 %v1962_v38, %v11615_v45  ;;  %v17877_v38 = vld [vmem:[#allocation9_spill] sm:$0xff] }
 0x1ed   : > { %v1873_v10 = vpop.f32.mrf.mxu2  ;;  %v1462_v2 = vpop.f32.mrf.mxu0 }
 0x1ee   : > { %v11882_v21 = vadd.f32 %v1873_v10, %v11612_v30  ;;  %v11885_v63 = vadd.f32 %v1462_v2, %v17872_v44  ;;  %v1551_v47 = vpop.f32.mrf.mxu1  ;;  %v1682_v44 = vrot.slane %v11082_v35, 3  ;;  %v2106_v10 = vrot.slane %v17877_v38, 4 }
 0x1ef   : > { %v11888_v62 = vadd.f32 %v1551_v47, %v17874_v52  ;;  %v1703_v52 = vsel %vm1692_vm3, %v1680_v26, %v1681_v11  ;;  %v17881_v26 = vld [vmem:[#allocation68_spill] sm:$0xff] }
 0x1f0   : > { %17873 = vst [vmem:[#allocation60_spill] sm:$0xff] %v11885_v63  ;;  %8674 = vmatmul.msk.bf16.gmra.mxu0 %vm623_vm1, %v1296_v18  ;;  %8776 = vmatmul.msk.bf16.gmra.mxu3 %vm623_vm1, %v1734_v54 }
 0x1f1   : > { %17875 = vst [vmem:[#allocation19_spill] sm:$0xff] %v11888_v62  ;;  %8690 = vmatmul.msk.bf16.gmra.mxu1 %vm623_vm1, %v1296_v18  ;;  %v17882_v62 = vld [vmem:[#allocation67_spill] sm:$0xff] }
 0x1f2   : > { %8760 = vmatmul.msk.bf16.gmra.mxu2 %vm623_vm1, %v1734_v54 }
 0x1f3   : > { %v1965_v45 = vpop.f32.mrf.mxu3 }
 0x1f4   : > { %v11895_v30 = vadd.f32 %v1965_v45, %v11647_v20  ;;  %v17879_v20 = vld [vmem:[#allocation66_spill] sm:$0xff]  ;;  %v2166_v45 = vsel %vm2136_vm4, %v2105_v16, %v2106_v10 }
 0x1f5   : > { %v1876_v8 = vpop.f32.mrf.mxu2  ;;  %v1464_v2 = vpop.f32.mrf.mxu0 }
 0x1f6   : > { %v11900_v27 = vadd.f32 %v1876_v8, %v11641_v36  ;;  %v11906_v18 = vadd.f32 %v1464_v2, %v11505_v58  ;;  %v1553_v54 = vpop.f32.mrf.mxu1  ;;  %v1702_v36 = vsel %vm1692_vm3, %v1681_v11, %v1682_v44  ;;  %v2167_v58 = vsel %vm2136_vm4, %v17379_v28, %v2105_v16 }
 0x1f7   : > { %v11910_v47 = vadd.f32 %v1553_v54, %v17879_v20  ;;  %v1735_v38 = vpack.c.bf16 %v1702_v36, %v1703_v52  ;;  %v2169_v54 = vpack.c.bf16 %v2166_v45, %v2167_v58  ;;  %v1683_v45 = vrot.slane %v17825_v31, 3 }
 0x1f8   : > { %17878 = vst [vmem:[#allocation63_spill] sm:$0xff] %v11906_v18  ;;  %v1684_v58 = vrot.slane %v17827_v15, 3 }
 0x1f9   : > { %17880 = vst [vmem:[#allocation62_spill] sm:$0xff] %v11910_v47 }
 0x1fb   : > { %v1967_v8 = vpop.f32.mrf.mxu3 }
 0x1fc   : > { %v11923_v57 = vadd.f32 %v1967_v8, %v11667_v56  ;;  %v9942_v56 = vld [vmem:[%s17329_s3 + $0x11c] sm:$0xf0] }
 0x1fd   : > { %v1878_v2 = vpop.f32.mrf.mxu2  ;;  %v1467_v47 = vpop.f32.mrf.mxu0 }
 0x1fe   : > { %v11926_v20 = vadd.f32 %v1878_v2, %v11664_v59  ;;  %v11929_v11 = vadd.f32 %v1467_v47, %v17881_v26  ;;  %v1556_v18 = vpop.f32.mrf.mxu1  ;;  %v8954_v59 = vld [vmem:[%s17329_s3 + $0x118] sm:$0xf] }
 0x1ff   : > { %v11932_v63 = vadd.f32 %v1556_v18, %v17882_v62  ;;  %v8895_v62 = vld [vmem:[%s17329_s3 + $0x148] sm:$0x11]  ;;  %v8955_v16 = vor.u32 %v9942_v56, %v8954_v59 }
 0x200   : > { %8777 = vmatmul.msk.bf16.gmra.mxu3 %vm623_vm1, %v1735_v38  ;;  %8843 = vmatmul.msk.bf16.vlgmr.msra.gmra.mxu0 %vm623_vm1, %v2169_v54  ;;  %v3523_v18 = vunpack.c.l.b16 %v8895_v62  ;;  %v17885_v59 = vld [vmem:[#allocation14_spill] sm:$0xff] }
 0x201   : > { %17883 = vst [vmem:[#allocation65_spill] sm:$0xff] %v11932_v63  ;;  %8859 = vmatmul.msk.bf16.vlgmr.msra.gmra.mxu1 %vm623_vm1, %v2169_v54  ;;  %3623 = vmatpush.bf16.msrb.mxu2 %v8955_v16  ;;  %v17884_v54 = vld [vmem:[#allocation13_spill] sm:$0xff]  ;;  %v2108_v56 = vrot.slane %v17885_v59, 4 }
 0x202   : > { %8761 = vmatmul.msk.bf16.gmra.mxu2 %vm623_vm1, %v1735_v38  ;;  %v3545_v8 = vpack.c.b16 %v3523_v18, %v3523_v18  ;;  %v2107_v26 = vrot.slane %v17884_v54, 4  ;;  %v8956_v16 = vld [vmem:[%s17329_s3 + $0x120] sm:$0xf0]  ;;  %v3524_v18 = vunpack.c.h.b16 %v8895_v62 }
 0x203   : > { %v1970_v47 = vpop.f32.mrf.mxu3 }
 0x204   : > { %v11948_v52 = vadd.f32 %v1970_v47, %v11687_v42  ;;  %v3618_v42 = vsel %vm3616_vm5, %v3545_v8, 0  ;;  %v1701_v8 = vsel %vm1692_vm3, %v1682_v44, %v1683_v45 }
 0x205   : > { %v1881_v36 = vpop.f32.mrf.mxu2  ;;  %v1469_v38 = vpop.f32.mrf.mxu0  ;;  %3717 = vmatpush.bf16.msrb.mxu3 %v3618_v42 }
 0x206   : > { %v11953_v2 = vadd.f32 %v1881_v36, %v11684_v13  ;;  %v11958_v28 = vadd.f32 %v1469_v38, %v11553_v19  ;;  %v1558_v63 = vpop.f32.mrf.mxu1  ;;  %v9941_v13 = vld [vmem:[%s17329_s3 + $0x11c] sm:$0xf]  ;;  %v1700_v19 = vsel %vm1692_vm3, %v1683_v45, %v1684_v58  ;;  %v3546_v38 = vpack.c.b16 %v3524_v18, %v3524_v18 }
 0x207   : > { %v11962_v47 = vadd.f32 %v1558_v63, %v11550_v14  ;;  %v8959_v36 = vor.u32 %v9941_v13, %v8956_v16  ;;  %v2164_v14 = vsel %vm2136_vm4, %v2107_v26, %v2108_v56  ;;  %v2165_v63 = vsel %vm2136_vm4, %v2106_v10, %v2107_v26  ;;  %v17888_v16 = vld [vmem:[#allocation70_spill] sm:$0xff]  ;;  %v17889_v26 = vld [vmem:[#allocation69_spill] sm:$0xff] }
 0x208   : > { %17886 = vst [vmem:[#allocation64_spill] sm:$0xff] %v11958_v28  ;;  %v3621_v59 = vsel %vm3616_vm5, %v3546_v38, 0  ;;  %v2170_v13 = vpack.c.bf16 %v2164_v14, %v2165_v63  ;;  %v1686_v63 = vrot.slane %v17837_v7, 3  ;;  %v17890_v38 = vld [vmem:[#allocation17_spill] sm:$0xff] }
 0x209   : > { %17887 = vst [vmem:[#allocation8_spill] sm:$0xff] %v11962_v47  ;;  %3801 = vmatpush.bf16.msrb.mxu0 %v8959_v36  ;;  %v1736_v47 = vpack.c.bf16 %v1700_v19, %v1701_v8  ;;  %3895 = vmatpush.bf16.msrb.mxu1 %v3621_v59  ;;  %v1685_v36 = vrot.slane %v17836_v41, 3  ;;  %v17891_v59 = vld [vmem:[#allocation18_spill] sm:$0xff] }
 0x20b   : > { %v1972_v54 = vpop.f32.mrf.mxu3 }
 0x20c   : > { %v11980_v62 = vadd.f32 %v1972_v54, %v11707_v53  ;;  %v2109_v54 = vrot.slane %v17890_v38, 4 }
 0x20d   : > { %v1883_v42 = vpop.f32.mrf.mxu2  ;;  %v1472_v45 = vpop.f32.mrf.mxu0 }
 0x20e   : > { %v11983_v44 = vadd.f32 %v1883_v42, %v11704_v40  ;;  %v11986_v28 = vadd.f32 %v1472_v45, %v17888_v16  ;;  %v1561_v10 = vpop.f32.mrf.mxu1  ;;  %v2110_v42 = vrot.slane %v17891_v59, 4 }
 0x20f   : > { %v11989_v18 = vadd.f32 %v1561_v10, %v17889_v26  ;;  %v2163_v10 = vsel %vm2136_vm4, %v2108_v56, %v2109_v54  ;;  %v1687_v56 = vrot.slane %v17846_v51, 3 }
 0x210   : > { %8778 = vmatmul.msk.bf16.gmra.mxu3 %vm623_vm1, %v1736_v47  ;;  %8844 = vmatmul.msk.bf16.gmra.mxu0 %vm623_vm1, %v2170_v13  ;;  %v2162_v16 = vsel %vm2136_vm4, %v2109_v54, %v2110_v42  ;;  %v1688_v54 = vrot.slane %v17847_v9, 3 }
 0x211   : > { %8860 = vmatmul.msk.bf16.gmra.mxu1 %vm623_vm1, %v2170_v13 }
 0x212   : > { %8762 = vmatmul.msk.bf16.gmra.mxu2 %vm623_vm1, %v1736_v47 }
 0x213   : > { %v1975_v53 = vpop.f32.mrf.mxu3 }
 0x214   : > { %v11996_v40 = vadd.f32 %v1975_v53, %v11727_v17  ;;  %v1698_v17 = vsel %vm1692_vm3, %v1685_v36, %v1686_v63 }
 0x215   : > { %v1886_v19 = vpop.f32.mrf.mxu2  ;;  %v1474_v14 = vpop.f32.mrf.mxu0 }
 0x216   : > { %v12000_v8 = vadd.f32 %v1886_v19, %v11724_v0  ;;  %v12006_v47 = vadd.f32 %v1474_v14, %v11589_v4  ;;  %v1563_v13 = vpop.f32.mrf.mxu1  ;;  %v1699_v0 = vsel %vm1692_vm3, %v1684_v58, %v1685_v36 }
 0x217   : > { %v12009_v45 = vadd.f32 %v1563_v13, %v11586_v37  ;;  %v1737_v19 = vpack.c.bf16 %v1698_v17, %v1699_v0  ;;  %v2171_v37 = vpack.c.bf16 %v2162_v16, %v2163_v10  ;;  %v2111_v13 = vrot.slane %v10900_v23, 4  ;;  %v17892_v10 = vld [vmem:[#allocation71_spill] sm:$0xff] }
 0x218   : > { %v2112_v17 = vrot.slane %v10902_v24, 4  ;;  %v1696_v23 = vsel %vm1692_vm3, %v1687_v56, %v1688_v54  ;;  %v1697_v24 = vsel %vm1692_vm3, %v1686_v63, %v1687_v56  ;;  %v1690_v56 = vrot.slane %v17859_v6, 3 }
 0x21b   : > { %v1977_v26 = vpop.f32.mrf.mxu3 }
 0x21c   : > { %v12020_v4 = vadd.f32 %v1977_v26, %v11745_v3 }
 0x21d   : > { %v1888_v53 = vpop.f32.mrf.mxu2  ;;  %v1477_v38 = vpop.f32.mrf.mxu0 }
 0x21e   : > { %v12023_v14 = vadd.f32 %v1888_v53, %v11742_v61  ;;  %v12026_v59 = vadd.f32 %v1477_v38, %v11606_v43  ;;  %v1566_v58 = vpop.f32.mrf.mxu1  ;;  %v8946_v61 = vld [vmem:[%s17329_s3 + $0x108] sm:$0xf]  ;;  %v9940_v43 = vld [vmem:[%s17329_s3 + $0x10c] sm:$0xf0]  ;;  %v9939_v53 = vld [vmem:[%s17329_s3 + $0x10c] sm:$0xf]  ;;  %v2161_v38 = vsel %vm2136_vm4, %v2110_v42, %v2111_v13 }
 0x21f   : > { %v12029_v36 = vadd.f32 %v1566_v58, %v11602_v25  ;;  %v8947_v3 = vor.u32 %v9940_v43, %v8946_v61  ;;  %v1738_v58 = vpack.c.bf16 %v1696_v23, %v1697_v24  ;;  %v1689_v42 = vrot.slane %v17858_v33, 3  ;;  %v17900_v24 = vld [vmem:[#allocation75_spill] sm:$0xff] }
 0x220   : > { %8779 = vmatmul.msk.bf16.gmra.mxu3 %vm623_vm1, %v1737_v19  ;;  %8845 = vmatmul.msk.bf16.gmra.mxu0 %vm623_vm1, %v2171_v37 }
 0x221   : > { %8861 = vmatmul.msk.bf16.gmra.mxu1 %vm623_vm1, %v2171_v37  ;;  %3624 = vmatpush.bf16.msrb.mxu2 %v8947_v3  ;;  %v17894_v3 = vld [vmem:[#allocation73_spill] sm:$0xff] }
 0x222   : > { %8763 = vmatmul.msk.bf16.gmra.mxu2 %vm623_vm1, %v1737_v19  ;;  %v8948_v19 = vld [vmem:[%s17329_s3 + $0x110] sm:$0xf0] }
 0x223   : > { %v8951_v37 = vor.u32 %v9939_v53, %v8948_v19 }
 0x225   : > { %v1479_v25 = vpop.f32.mrf.mxu0  ;;  %3802 = vmatpush.bf16.msrb.mxu0 %v8951_v37  ;;  %v17899_v37 = vld [vmem:[#allocation21_spill] sm:$0xff] }
 0x226   : > { %v12046_v0 = vadd.f32 %v1479_v25, %v11629_v50  ;;  %v1568_v16 = vpop.f32.mrf.mxu1  ;;  %v2160_v50 = vsel %vm2136_vm4, %v2111_v13, %v2112_v17  ;;  %v17898_v13 = vld [vmem:[#allocation20_spill] sm:$0xff]  ;;  %v2114_v23 = vrot.slane %v17899_v37, 4 }
 0x227   : > { %v12049_v26 = vadd.f32 %v1568_v16, %v17892_v10  ;;  %v2172_v61 = vpack.c.bf16 %v2160_v50, %v2161_v38  ;;  %v17896_v10 = vld [vmem:[#allocation72_spill] sm:$0xff]  ;;  %v2113_v19 = vrot.slane %v17898_v13, 4 }
 0x229   : > { %17893 = vst [vmem:[#allocation9_spill] sm:$0xff] %v12049_v26 }
 0x22d   : > { %v1482_v43 = vpop.f32.mrf.mxu0 }
 0x22e   : > { %v12066_v25 = vadd.f32 %v1482_v43, %v17894_v3  ;;  %v1571_v16 = vpop.f32.mrf.mxu1  ;;  %v17902_v43 = vld [vmem:[#allocation74_spill] sm:$0xff] }
 0x22f   : > { %v12069_v53 = vadd.f32 %v1571_v16, %v17896_v10  ;;  %v2158_v16 = vsel %vm2136_vm4, %v2113_v19, %v2114_v23  ;;  %v2159_v10 = vsel %vm2136_vm4, %v2112_v17, %v2113_v19  ;;  %v9938_v17 = vld [vmem:[%s17329_s3 + $0xfc] sm:$0xf0] }
 0x230   : > { %17895 = vst [vmem:[#allocation66_spill] sm:$0xff] %v12066_v25  ;;  %8780 = vmatmul.msk.bf16.gmra.mxu3 %vm623_vm1, %v1738_v58  ;;  %8846 = vmatmul.msk.bf16.gmra.mxu0 %vm623_vm1, %v2172_v61  ;;  %v2173_v37 = vpack.c.bf16 %v2158_v16, %v2159_v10  ;;  %v17909_v10 = vld [vmem:[#allocation23_spill] sm:$0xff] }
 0x231   : > { %17897 = vst [vmem:[#allocation68_spill] sm:$0xff] %v12069_v53  ;;  %8862 = vmatmul.msk.bf16.gmra.mxu1 %vm623_vm1, %v2172_v61  ;;  %v1695_v61 = vsel %vm1692_vm3, %v1688_v54, %v1689_v42  ;;  %v8938_v54 = vld [vmem:[%s17329_s3 + $0xf8] sm:$0xf] }
 0x232   : > { %8764 = vmatmul.msk.bf16.gmra.mxu2 %vm623_vm1, %v1738_v58  ;;  %v1694_v58 = vsel %vm1692_vm3, %v1689_v42, %v1690_v56  ;;  %v8939_v42 = vor.u32 %v9938_v17, %v8938_v54  ;;  %v8940_v54 = vld [vmem:[%s17329_s3 + $0x100] sm:$0xf0] }
 0x233   : > { %v1739_v13 = vpack.c.bf16 %v1694_v58, %v1695_v61  ;;  %v1691_v58 = vrot.slane %v17866_v22, 3  ;;  %v17908_v61 = vld [vmem:[#allocation22_spill] sm:$0xff] }
 0x234   : > { %3625 = vmatpush.bf16.msrb.mxu2 %v8939_v42  ;;  %v2115_v16 = vrot.slane %v17908_v61, 4  ;;  %v17914_v61 = vrot.slane %v10701_v39, 3 }
 0x235   : > { %v1484_v63 = vpop.f32.mrf.mxu0  ;;  %v1693_v42 = vsel %vm1692_vm3, %v1690_v56, %v1691_v58 }
 0x236   : > { %v12080_v50 = vadd.f32 %v1484_v63, %v17900_v24  ;;  %v1573_v38 = vpop.f32.mrf.mxu1  ;;  %v17904_v24 = vld [vmem:[#allocation40_spill] sm:$0xff] }
 0x237   : > { %v12083_v3 = vadd.f32 %v1573_v38, %v17902_v43  ;;  %v17906_v43 = vld [vmem:[#allocation47_spill] sm:$0xff] }
 0x238   : > { %17901 = vst [vmem:[#allocation67_spill] sm:$0xff] %v12080_v50 }
 0x239   : > { %17903 = vst [vmem:[#allocation13_spill] sm:$0xff] %v12083_v3 }
 0x23d   : > { %v1487_v63 = vpop.f32.mrf.mxu0 }
 0x23e   : > { %v12094_v50 = vadd.f32 %v1487_v63, %v17904_v24  ;;  %v1576_v38 = vpop.f32.mrf.mxu1  ;;  %v2116_v63 = vrot.slane %v17909_v10, 4 }
 0x23f   : > { %v12097_v3 = vadd.f32 %v1576_v38, %v17906_v43  ;;  %v17912_v38 = vld [vmem:[#allocation41_spill] sm:$0xff] }
 0x240   : > { %17905 = vst [vmem:[#allocation14_spill] sm:$0xff] %v12094_v50  ;;  %8781 = vmatmul.msk.bf16.gmra.mxu3 %vm623_vm1, %v1739_v13  ;;  %8847 = vmatmul.msk.bf16.gmra.mxu0 %vm623_vm1, %v2173_v37  ;;  %v2156_v10 = vsel %vm2136_vm4, %v2115_v16, %v2116_v63  ;;  %v17918_v50 = vld [vmem:[#allocation48_spill] sm:$0xff] }
 0x241   : > { %17907 = vst [vmem:[#allocation70_spill] sm:$0xff] %v12097_v3  ;;  %8863 = vmatmul.msk.bf16.gmra.mxu1 %vm623_vm1, %v2173_v37  ;;  %v9937_v3 = vld [vmem:[%s17329_s3 + $0xfc] sm:$0xf] }
 0x242   : > { %8765 = vmatmul.msk.bf16.gmra.mxu2 %vm623_vm1, %v1739_v13  ;;  %v17910_v13 = vld [vmem:[#allocation49_spill] sm:$0xff]  ;;  %v8943_v17 = vor.u32 %v9937_v3, %v8940_v54 }
 0x243   : > { %v17917_v54 = vld [vmem:[#allocation33_spill] sm:$0xff] }
 0x244   : > { %3803 = vmatpush.bf16.msrb.mxu0 %v8943_v17  ;;  %v1202_v56 = vadd.f32 %v17918_v50, %v17917_v54  ;;  %v17922_v17 = vld [vmem:[#allocation35_spill] sm:$0xff]  ;;  %v17928_v54 = vld [vmem:[#allocation53_spill] sm:$0xff] }
 0x245   : > { %v1489_v19 = vpop.f32.mrf.mxu0  ;;  %v1204_v50 = vadd.f32 %v11767_v1, %v17922_v17  ;;  %v17930_v17 = vld [vmem:[#allocation10_spill] sm:$0xff] }
 0x246   : > { %v12113_v24 = vadd.f32 %v1489_v19, %v17910_v13  ;;  %v1578_v37 = vpop.f32.mrf.mxu1  ;;  %v1724_v19 = vsel %vm1692_vm3, %v1691_v58, %v17914_v61  ;;  %v2157_v13 = vsel %vm2136_vm4, %v2114_v23, %v2115_v16  ;;  %v17921_v23 = vld [vmem:[#allocation34_spill] sm:$0xff]  ;;  %v17924_v61 = vld [vmem:[#allocation25_spill] sm:$0xff]  ;;  %vm8262_vm3 = vcmask 1041408  }
 0x247   : > { %v12116_v43 = vadd.f32 %v1578_v37, %v17912_v38  ;;  %v17915_v37 = vld [vmem:[#allocation32_spill] sm:$0xff]  ;;  %v17916_v38 = vld [vmem:[#allocation51_spill] sm:$0xff]  ;;  %v2174_v3 = vpack.c.bf16 %v2156_v10, %v2157_v13  ;;  %v1115_v16 = vadd.f32 %v11769_v55, %v17921_v23  ;;  %v9946_v55 = vld [vmem:[%s17329_s3 + $0x13c] sm:$0xf0] }
 0x248   : > { %17911 = vst [vmem:[#allocation69_spill] sm:$0xff] %v12113_v24  ;;  %v1740_v24 = vpack.c.bf16 %v1724_v19, %v1693_v42 }
 0x249   : > { %17913 = vst [vmem:[#allocation17_spill] sm:$0xff] %v12116_v43  ;;  %v1113_v43 = vadd.f32 %v17916_v38, %v17915_v37 }
 0x24d   : > { %v1492_v25 = vpop.f32.mrf.mxu0 }
 0x24e   : > { %v12138_v53 = vadd.f32 %v1492_v25, %v1113_v43  ;;  %v1581_v26 = vpop.f32.mrf.mxu1  ;;  %v17923_v25 = vld [vmem:[#allocation24_spill] sm:$0xff] }
 0x24f   : > { %v12140_v58 = vadd.f32 %v1581_v26, %v1202_v56  ;;  %v2117_v43 = vrot.slane %v17923_v25, 4  ;;  %v2118_v26 = vrot.slane %v17924_v61, 4  ;;  %v9945_v25 = vld [vmem:[%s17329_s3 + $0x13c] sm:$0xf]  ;;  %v8972_v61 = vld [vmem:[%s17329_s3 + $0x140] sm:$0xf0] }
 0x250   : > { %17919 = vst [vmem:[#allocation18_spill] sm:$0xff] %v12138_v53  ;;  %8782 = vmatmul.msk.bf16.gmra.mxu3 %vm623_vm1, %v1740_v24  ;;  %8848 = vmatmul.msk.bf16.gmra.mxu0 %vm623_vm1, %v2174_v3 }
 0x251   : > { %17920 = vst [vmem:[#allocation71_spill] sm:$0xff] %v12140_v58  ;;  %8864 = vmatmul.msk.bf16.gmra.mxu1 %vm623_vm1, %v2174_v3  ;;  %v2154_v1 = vsel %vm2136_vm4, %v2117_v43, %v2118_v26  ;;  %v2155_v38 = vsel %vm2136_vm4, %v2116_v63, %v2117_v43  ;;  %v17927_v3 = vld [vmem:[#allocation36_spill] sm:$0xff]  ;;  %v8975_v43 = vor.u32 %v9945_v25, %v8972_v61 }
 0x252   : > { %8766 = vmatmul.msk.bf16.gmra.mxu2 %vm623_vm1, %v1740_v24  ;;  %v8970_v24 = vld [vmem:[%s17329_s3 + $0x138] sm:$0xf]  ;;  %v1118_v56 = vadd.f32 %v17928_v54, %v17927_v3  ;;  %v2175_v23 = vpack.c.bf16 %v2154_v1, %v2155_v38  ;;  %v17933_v1 = vld [vmem:[#allocation38_spill] sm:$0xff]  ;;  %v17934_v54 = vld [vmem:[#allocation39_spill] sm:$0xff] }
 0x253   : > { %v8971_v37 = vor.u32 %v9946_v55, %v8970_v24  ;;  %3896 = vmatpush.bf16.msrb.mxu1 %v8975_v43  ;;  %v8930_v55 = vld [vmem:[%s17329_s3 + $0xe8] sm:$0xf]  ;;  %v1120_v38 = vadd.f32 %v11805_v12, %v17933_v1  ;;  %v17940_v1 = vld [vmem:[#allocation57_spill] sm:$0xff] }
 0x255   : > { %v1494_v42 = vpop.f32.mrf.mxu0  ;;  %3718 = vmatpush.bf16.msrb.mxu3 %v8971_v37  ;;  %v9936_v37 = vld [vmem:[%s17329_s3 + $0xec] sm:$0xf0] }
 0x256   : > { %v12152_v19 = vadd.f32 %v1494_v42, %v1115_v16  ;;  %v1583_v10 = vpop.f32.mrf.mxu1  ;;  %v17929_v16 = vld [vmem:[#allocation37_spill] sm:$0xff]  ;;  %v8931_v3 = vor.u32 %v9936_v37, %v8930_v55  ;;  %v8932_v55 = vld [vmem:[%s17329_s3 + $0xf0] sm:$0xf0]  ;;  %v17939_v37 = vld [vmem:[#allocation42_spill] sm:$0xff] }
 0x257   : > { %v12154_v13 = vadd.f32 %v1583_v10, %v1204_v50  ;;  %v1207_v50 = vadd.f32 %v17930_v17, %v17929_v16  ;;  %v17935_v17 = vld [vmem:[#allocation26_spill] sm:$0xff] }
 0x258   : > { %17925 = vst [vmem:[#allocation73_spill] sm:$0xff] %v12152_v19  ;;  %3626 = vmatpush.bf16.msrb.mxu2 %v8931_v3 }
 0x259   : > { %17926 = vst [vmem:[#allocation72_spill] sm:$0xff] %v12154_v13 }
 0x25d   : > { %v1497_v42 = vpop.f32.mrf.mxu0 }
 0x25e   : > { %v12176_v10 = vadd.f32 %v1497_v42, %v1118_v56  ;;  %v1586_v63 = vpop.f32.mrf.mxu1  ;;  %v1209_v56 = vadd.f32 %v11803_v49, %v17934_v54  ;;  %v17936_v42 = vld [vmem:[#allocation27_spill] sm:$0xff]  ;;  %v9935_v49 = vld [vmem:[%s17329_s3 + $0xec] sm:$0xf] }
 0x25f   : > { %v12178_v24 = vadd.f32 %v1586_v63, %v1207_v50  ;;  %v2119_v50 = vrot.slane %v17935_v17, 4  ;;  %v8935_v54 = vor.u32 %v9935_v49, %v8932_v55  ;;  %v17947_v49 = vld [vmem:[#allocation28_spill] sm:$0xff] }
 0x260   : > { %17931 = vst [vmem:[#allocation20_spill] sm:$0xff] %v12176_v10  ;;  %8849 = vmatmul.msk.bf16.gmra.mxu0 %vm623_vm1, %v2175_v23  ;;  %v2121_v55 = vrot.slane %v17947_v49, 4 }
 0x261   : > { %17932 = vst [vmem:[#allocation21_spill] sm:$0xff] %v12178_v24  ;;  %8865 = vmatmul.msk.bf16.gmra.mxu1 %vm623_vm1, %v2175_v23  ;;  %v2120_v23 = vrot.slane %v17936_v42, 4  ;;  %v2153_v12 = vsel %vm2136_vm4, %v2118_v26, %v2119_v50  ;;  %3804 = vmatpush.bf16.msrb.mxu0 %v8935_v54 }
 0x263   : > { %v2152_v43 = vsel %vm2136_vm4, %v2119_v50, %v2120_v23 }
 0x264   : > { %v2176_v3 = vpack.c.bf16 %v2152_v43, %v2153_v12 }
 0x265   : > { %v1499_v16 = vpop.f32.mrf.mxu0 }
 0x266   : > { %v12194_v25 = vadd.f32 %v1499_v16, %v1120_v38  ;;  %v1588_v61 = vpop.f32.mrf.mxu1  ;;  %v1123_v38 = vadd.f32 %v17940_v1, %v17939_v37  ;;  %v17942_v16 = vld [vmem:[#allocation12_spill] sm:$0xff]  ;;  %v17946_v37 = vld [vmem:[#allocation45_spill] sm:$0xff] }
 0x267   : > { %v12196_v63 = vadd.f32 %v1588_v61, %v1209_v56  ;;  %v17941_v56 = vld [vmem:[#allocation43_spill] sm:$0xff]  ;;  %v1214_v43 = vadd.f32 %v11839_v48, %v17946_v37  ;;  %v17948_v1 = vld [vmem:[#allocation29_spill] sm:$0xff]  ;;  %v2151_v48 = vsel %vm2136_vm4, %v2120_v23, %v2121_v55 }
 0x268   : > { %17937 = vst [vmem:[#allocation75_spill] sm:$0xff] %v12194_v25  ;;  %v1212_v17 = vadd.f32 %v17942_v16, %v17941_v56 }
 0x269   : > { %17938 = vst [vmem:[#allocation74_spill] sm:$0xff] %v12196_v63  ;;  %v17945_v63 = vld [vmem:[#allocation44_spill] sm:$0xff] }
 0x26a   : > { %v1125_v25 = vadd.f32 %v11841_v32, %v17945_v63 }
 0x26d   : > { %v1502_v42 = vpop.f32.mrf.mxu0 }
 0x26e   : > { %v12212_v61 = vadd.f32 %v1502_v42, %v1123_v38  ;;  %v1591_v26 = vpop.f32.mrf.mxu1  ;;  %v2122_v38 = vrot.slane %v17948_v1, 4 }
 0x26f   : > { %v12214_v50 = vadd.f32 %v1591_v26, %v1212_v17 }
 0x270   : > { %17943 = vst [vmem:[#allocation40_spill] sm:$0xff] %v12212_v61  ;;  %8850 = vmatmul.msk.bf16.gmra.mxu0 %vm623_vm1, %v2176_v3  ;;  %v2150_v32 = vsel %vm2136_vm4, %v2121_v55, %v2122_v38 }
 0x271   : > { %17944 = vst [vmem:[#allocation47_spill] sm:$0xff] %v12214_v50  ;;  %8866 = vmatmul.msk.bf16.gmra.mxu1 %vm623_vm1, %v2176_v3  ;;  %v2548_v3 = vld [vmem:[%s17328_s2] sm:$0x3]  ;;  %v2177_v17 = vpack.c.bf16 %v2150_v32, %v2151_v48  ;;  %v17951_v32 = vld [vmem:[#allocation30_spill] sm:$0xff] }
 0x272   : > { %v12235_v63 = vperm.slane %v2548_v3, 0  ;;  %v12237_v26 = vperm.slane %v2548_v3, 1  ;;  %v2123_v48 = vrot.slane %v17951_v32, 4 }
 0x275   : > { %v1504_v12 = vpop.f32.mrf.mxu0 }
 0x276   : > { %v12224_v56 = vadd.f32 %v1504_v12, %v1125_v25  ;;  %v1593_v54 = vpop.f32.mrf.mxu1 }
 0x277   : > { %v12226_v16 = vadd.f32 %v1593_v54, %v1214_v43 }
 0x278   : > { %17949 = vst [vmem:[#allocation22_spill] sm:$0xff] %v12224_v56 }
 0x279   : > { %17950 = vst [vmem:[#allocation23_spill] sm:$0xff] %v12226_v16 }
 0x27d   : > { %v2315_v42 = vpop.f32.mrf.mxu0 }
 0x27e   : > { %v2484_v25 = vadd.f32 %v2315_v42, %v11857_v5  ;;  %v2404_v37 = vpop.f32.mrf.mxu1  ;;  %v8922_v5 = vld [vmem:[%s17329_s3 + $0xd8] sm:$0xf] }
 0x27f   : > { %v2485_v43 = vadd.f32 %v2404_v37, %v11854_v60  ;;  %v9934_v60 = vld [vmem:[%s17329_s3 + $0xdc] sm:$0xf0] }
 0x280   : > { %v12242_v12 = vadd.f32 %v12235_v63, %v2484_v25  ;;  %8851 = vmatmul.msk.bf16.gmra.mxu0 %vm623_vm1, %v2177_v17  ;;  %v8923_v1 = vor.u32 %v9934_v60, %v8922_v5  ;;  %v12269_v60 = vpop.f32.mrf.mxu3 }
 0x281   : > { %v12246_v49 = vadd.f32 %v12237_v26, %v2485_v43  ;;  %8867 = vmatmul.msk.bf16.gmra.mxu1 %vm623_vm1, %v2177_v17  ;;  %v17952_v17 = vld [vmem:[#allocation31_spill] sm:$0xff] }
 0x282   : > { %v17380_v23 = vmax.f32 %v12242_v12, 0.0  ;;  %v2124_v42 = vrot.slane %v17952_v17, 4  ;;  %3627 = vmatpush.bf16.msrb.mxu2 %v8923_v1  ;;  %v12278_v1 = vpop.f32.mrf.mxu2  ;;  %v8924_v17 = vld [vmem:[%s17329_s3 + $0xe0] sm:$0xf0] }
 0x283   : > { %v17381_v55 = vmax.f32 %v12246_v49, 0.0 }
 0x284   : > { %v2148_v32 = vsel %vm2136_vm4, %v2123_v48, %v2124_v42 }
 0x285   : > { %v2317_v54 = vpop.f32.mrf.mxu0  ;;  %v10117_v3 = vpack.i.bf16 %v17381_v55, %v17380_v23 }
 0x286   : > { %v2486_v25 = vadd.f32 %v2317_v54, %v11882_v21  ;;  %v2406_v37 = vpop.f32.mrf.mxu1  ;;  %v2149_v21 = vsel %vm2136_vm4, %v2122_v38, %v2123_v48 }
 0x287   : > { %v2487_v43 = vadd.f32 %v2406_v37, %v11879_v46  ;;  %10118 = vrot.lane.b32.xlu0 %v10117_v3, %s10504_s16  ;;  %v9933_v3 = vld [vmem:[%s17329_s3 + $0xdc] sm:$0xf] }
 0x288   : > { %v12267_v5 = vadd.f32 %v12235_v63, %v2486_v25  ;;  %v2178_v25 = vpack.c.bf16 %v2148_v32, %v2149_v21  ;;  %v8927_v37 = vor.u32 %v9933_v3, %v8924_v17  ;;  %v12304_v3 = vpop.f32.mrf.mxu3 }
 0x289   : > { %v12272_v23 = vadd.f32 %v12237_v26, %v2487_v43 }
 0x28a   : > { %v17382_v46 = vmax.f32 %v12267_v5, 0.0  ;;  %3805 = vmatpush.bf16.msrb.mxu0 %v8927_v37  ;;  %v12307_v17 = vpop.f32.mrf.mxu2  ;;  %v2125_v37 = vrot.slane %v11080_v34, 4 }
 0x28b   : > { %v17387_v54 = vmax.f32 %v12272_v23, 0.0 }
 0x28c   : > { %v2147_v34 = vsel %vm2136_vm4, %v2124_v42, %v2125_v37 }
 0x28d   : > { %v2320_v43 = vpop.f32.mrf.mxu0  ;;  %v10122_v38 = vpack.i.bf16 %v17387_v54, %v17382_v46 }
 0x28e   : > { %v2488_v48 = vadd.f32 %v2320_v43, %v11900_v27  ;;  %v2409_v55 = vpop.f32.mrf.mxu1 }
 0x28f   : > { %v2489_v16 = vadd.f32 %v2409_v55, %v11895_v30  ;;  %10123 = vrot.lane.b32.xlu0 %v10122_v38, %s10504_s16 }
 0x290   : > { %v12296_v56 = vadd.f32 %v12235_v63, %v2488_v48  ;;  %8852 = vmatmul.msk.bf16.gmra.mxu0 %vm623_vm1, %v2178_v25 }
 0x291   : > { %v12300_v32 = vadd.f32 %v12237_v26, %v2489_v16  ;;  %8868 = vmatmul.msk.bf16.gmra.mxu1 %vm623_vm1, %v2178_v25  ;;  %v2126_v16 = vrot.slane %v11082_v35, 4 }
 0x292   : > { %v17383_v21 = vmax.f32 %v12296_v56, 0.0 }
 0x293   : > { %v17384_v27 = vmax.f32 %v12300_v32, 0.0 }
 0x295   : > { %v2322_v30 = vpop.f32.mrf.mxu0  ;;  %v10127_v55 = vpack.i.bf16 %v17384_v27, %v17383_v21  ;;  %v2146_v21 = vsel %vm2136_vm4, %v2125_v37, %v2126_v16 }
 0x296   : > { %v2490_v25 = vadd.f32 %v2322_v30, %v11926_v20  ;;  %v2411_v43 = vpop.f32.mrf.mxu1  ;;  %v2179_v30 = vpack.c.bf16 %v2146_v21, %v2147_v34 }
 0x297   : > { %v2491_v38 = vadd.f32 %v2411_v43, %v11923_v57  ;;  %10128 = vrot.lane.b32.xlu1 %v10127_v55, %s10504_s16  ;;  %v12330_v57 = vpop.f32.mrf.mxu3  ;;  %v12336_v43 = vpop.f32.mrf.mxu2 }
 0x298   : > { %v12319_v48 = vadd.f32 %v12235_v63, %v2490_v25 }
 0x299   : > { %v12322_v46 = vadd.f32 %v12237_v26, %v2491_v38 }
 0x29a   : > { %v17385_v35 = vmax.f32 %v12319_v48, 0.0 }
 0x29b   : > { %v17386_v20 = vmax.f32 %v12322_v46, 0.0 }
 0x29d   : > { %v2325_v55 = vpop.f32.mrf.mxu0  ;;  %v10132_v25 = vpack.i.bf16 %v17386_v20, %v17385_v35 }
 0x29e   : > { %v2492_v38 = vadd.f32 %v2325_v55, %v11953_v2  ;;  %v2414_v27 = vpop.f32.mrf.mxu1  ;;  %v9932_v2 = vld [vmem:[%s17329_s3 + $0xcc] sm:$0xf0] }
 0x29f   : > { %v2493_v42 = vadd.f32 %v2414_v27, %v11948_v52  ;;  %10133 = vrot.lane.b32.xlu1 %v10132_v25, %s10504_s16  ;;  %v8914_v52 = vld [vmem:[%s17329_s3 + $0xc8] sm:$0xf]  ;;  %v12364_v54 = vpop.f32.mrf.mxu3 }
 0x2a0   : > { %v12342_v37 = vadd.f32 %v12235_v63, %v2492_v38  ;;  %8853 = vmatmul.msk.bf16.gmra.mxu0 %vm623_vm1, %v2179_v30  ;;  %v8915_v27 = vor.u32 %v9932_v2, %v8914_v52  ;;  %v2128_v38 = vrot.slane %v17827_v15, 4  ;;  %v12368_v52 = vpop.f32.mrf.mxu2 }
 0x2a1   : > { %v12346_v21 = vadd.f32 %v12237_v26, %v2493_v42  ;;  %8869 = vmatmul.msk.bf16.gmra.mxu1 %vm623_vm1, %v2179_v30  ;;  %v2127_v30 = vrot.slane %v17825_v31, 4 }
 0x2a2   : > { %v17388_v34 = vmax.f32 %v12342_v37, 0.0  ;;  %3628 = vmatpush.bf16.msrb.mxu2 %v8915_v27  ;;  %v8916_v27 = vld [vmem:[%s17329_s3 + $0xd0] sm:$0xf0] }
 0x2a3   : > { %v17389_v35 = vmax.f32 %v12346_v21, 0.0  ;;  %v2144_v31 = vsel %vm2136_vm4, %v2127_v30, %v2128_v38  ;;  %v2145_v15 = vsel %vm2136_vm4, %v2126_v16, %v2127_v30  ;;  %v8962_v30 = vld [vmem:[%s17329_s3 + $0x128] sm:$0xf] }
 0x2a5   : > { %v2327_v55 = vpop.f32.mrf.mxu0  ;;  %v10137_v25 = vpack.i.bf16 %v17389_v35, %v17388_v34 }
 0x2a6   : > { %v2494_v42 = vadd.f32 %v2327_v55, %v11983_v44  ;;  %v2416_v20 = vpop.f32.mrf.mxu1 }
 0x2a7   : > { %v2495_v50 = vadd.f32 %v2416_v20, %v11980_v62  ;;  %10138 = vrot.lane.b32.xlu2 %v10137_v25, %s10504_s16  ;;  %v9931_v20 = vld [vmem:[%s17329_s3 + $0xcc] sm:$0xf] }
 0x2a8   : > { %v12371_v2 = vadd.f32 %v12235_v63, %v2494_v42  ;;  %v8919_v55 = vor.u32 %v9931_v20, %v8916_v27  ;;  %v9944_v42 = vld [vmem:[%s17329_s3 + $0x12c] sm:$0xf0]  ;;  %v12405_v27 = vpop.f32.mrf.mxu3 }
 0x2a9   : > { %v12374_v34 = vadd.f32 %v12237_v26, %v2495_v50  ;;  %v2180_v50 = vpack.c.bf16 %v2144_v31, %v2145_v15  ;;  %v8963_v31 = vor.u32 %v9944_v42, %v8962_v30  ;;  %v2129_v30 = vrot.slane %v17836_v41, 4 }
 0x2aa   : > { %v17390_v44 = vmax.f32 %v12371_v2, 0.0  ;;  %3806 = vmatpush.bf16.msrb.mxu0 %v8919_v55  ;;  %v2130_v42 = vrot.slane %v17837_v7, 4 }
 0x2ab   : > { %v17391_v62 = vmax.f32 %v12374_v34, 0.0  ;;  %3719 = vmatpush.bf16.msrb.mxu3 %v8963_v31  ;;  %v2143_v41 = vsel %vm2136_vm4, %v2128_v38, %v2129_v30 }
 0x2ad   : > { %v2330_v25 = vpop.f32.mrf.mxu0  ;;  %v10142_v16 = vpack.i.bf16 %v17391_v62, %v17390_v44 }
 0x2ae   : > { %v2496_v35 = vadd.f32 %v2330_v25, %v12000_v8  ;;  %v2419_v61 = vpop.f32.mrf.mxu1  ;;  %v12411_v8 = vpop.f32.mrf.mxu2 }
 0x2af   : > { %v2497_v15 = vadd.f32 %v2419_v61, %v11996_v40  ;;  %10143 = vrot.lane.b32.xlu2 %v10142_v16, %s10504_s16  ;;  %v9943_v61 = vld [vmem:[%s17329_s3 + $0x12c] sm:$0xf] }
 0x2b0   : > { %v12402_v20 = vadd.f32 %v12235_v63, %v2496_v35  ;;  %8854 = vmatmul.msk.bf16.gmra.mxu0 %vm623_vm1, %v2180_v50  ;;  %v8964_v35 = vld [vmem:[%s17329_s3 + $0x130] sm:$0xf0] }
 0x2b1   : > { %v12408_v44 = vadd.f32 %v12237_v26, %v2497_v15  ;;  %8870 = vmatmul.msk.bf16.gmra.mxu1 %vm623_vm1, %v2180_v50  ;;  %v8967_v25 = vor.u32 %v9943_v61, %v8964_v35 }
 0x2b2   : > { %v17392_v55 = vmax.f32 %v12402_v20, 0.0 }
 0x2b3   : > { %v17393_v40 = vmax.f32 %v12408_v44, 0.0  ;;  %3897 = vmatpush.bf16.msrb.mxu1 %v8967_v25  ;;  %v17953_v25 = vld [vmem:[#allocation50_spill] sm:$0xff] }
 0x2b5   : > { %v2332_v16 = vpop.f32.mrf.mxu0  ;;  %v10147_v50 = vpack.i.bf16 %v17393_v40, %v17392_v55  ;;  %v2142_v55 = vsel %vm2136_vm4, %v2129_v30, %v2130_v42 }
 0x2b6   : > { %v2498_v31 = vadd.f32 %v2332_v16, %v12023_v14  ;;  %v2421_v15 = vpop.f32.mrf.mxu1  ;;  %v12441_v14 = vpop.f32.mrf.mxu3  ;;  %v2056_v16 = vadd.f32 %v12278_v1, %v17953_v25 }
 0x2b7   : > { %v2499_v62 = vadd.f32 %v2421_v15, %v12020_v4  ;;  %10148 = vrot.lane.b32.xlu0 %v10147_v50, %s10504_s16  ;;  %v12446_v50 = vpop.f32.mrf.mxu2 }
 0x2b8   : > { %v12431_v61 = vadd.f32 %v12235_v63, %v2498_v31  ;;  %v2181_v31 = vpack.c.bf16 %v2142_v55, %v2143_v41  ;;  %v17955_v41 = vld [vmem:[#allocation52_spill] sm:$0xff] }
 0x2b9   : > { %v12434_v35 = vadd.f32 %v12237_v26, %v2499_v62  ;;  %v17954_v62 = vld [vmem:[#allocation46_spill] sm:$0xff]  ;;  %v2058_v25 = vadd.f32 %v12307_v17, %v17955_v41 }
 0x2ba   : > { %v17394_v7 = vmax.f32 %v12431_v61, 0.0  ;;  %v2057_v15 = vadd.f32 %v12269_v60, %v17954_v62 }
 0x2bb   : > { %v17395_v4 = vmax.f32 %v12434_v35, 0.0 }
 0x2bd   : > { %v2335_v40 = vpop.f32.mrf.mxu0  ;;  %v10152_v38 = vpack.i.bf16 %v17395_v4, %v17394_v7  ;;  %v2132_v7 = vrot.slane %v17847_v9, 4 }
 0x2be   : > { %v2500_v30 = vadd.f32 %v2335_v40, %v2056_v16  ;;  %v2424_v24 = vpop.f32.mrf.mxu1  ;;  %v9930_v40 = vld [vmem:[%s17329_s3 + $0xbc] sm:$0xf0] }
 0x2bf   : > { %v2501_v10 = vadd.f32 %v2424_v24, %v2057_v15  ;;  %10153 = vrot.lane.b32.xlu1 %v10152_v38, %s10504_s16  ;;  %v8906_v24 = vld [vmem:[%s17329_s3 + $0xb8] sm:$0xf]  ;;  %v12483_v4 = vpop.f32.mrf.mxu2 }
 0x2c0   : > { %v12456_v13 = vadd.f32 %v12235_v63, %v2500_v30  ;;  %8855 = vmatmul.msk.bf16.gmra.mxu0 %vm623_vm1, %v2181_v31  ;;  %v8907_v16 = vor.u32 %v9930_v40, %v8906_v24  ;;  %v2131_v30 = vrot.slane %v17846_v51, 4 }
 0x2c1   : > { %v12460_v1 = vadd.f32 %v12237_v26, %v2501_v10  ;;  %8871 = vmatmul.msk.bf16.gmra.mxu1 %vm623_vm1, %v2181_v31  ;;  %v17956_v10 = vld [vmem:[#allocation55_spill] sm:$0xff]  ;;  %v12475_v31 = vpop.f32.mrf.mxu3 }
 0x2c2   : > { %v17396_v60 = vmax.f32 %v12456_v13, 0.0  ;;  %v2059_v62 = vadd.f32 %v12304_v3, %v17956_v10  ;;  %3629 = vmatpush.bf16.msrb.mxu2 %v8907_v16  ;;  %v2140_v41 = vsel %vm2136_vm4, %v2131_v30, %v2132_v7  ;;  %v2141_v51 = vsel %vm2136_vm4, %v2130_v42, %v2131_v30  ;;  %v9929_v16 = vld [vmem:[%s17329_s3 + $0xbc] sm:$0xf]  ;;  %v17957_v10 = vld [vmem:[#allocation54_spill] sm:$0xff] }
 0x2c3   : > { %v17397_v55 = vmax.f32 %v12460_v1, 0.0 }
 0x2c5   : > { %v2337_v15 = vpop.f32.mrf.mxu0  ;;  %v10157_v38 = vpack.i.bf16 %v17397_v55, %v17396_v60 }
 0x2c6   : > { %v2502_v19 = vadd.f32 %v2337_v15, %v2058_v25  ;;  %v2426_v17 = vpop.f32.mrf.mxu1  ;;  %v2182_v15 = vpack.c.bf16 %v2140_v41, %v2141_v51 }
 0x2c7   : > { %v2503_v24 = vadd.f32 %v2426_v17, %v2059_v62  ;;  %10158 = vrot.lane.b32.xlu2 %v10157_v38, %s10504_s16  ;;  %v2060_v62 = vadd.f32 %v12336_v43, %v17957_v10  ;;  %v17958_v17 = vld [vmem:[#allocation11_spill] sm:$0xff]  ;;  %v12515_v43 = vpop.f32.mrf.mxu2 }
 0x2c8   : > { %v12487_v3 = vadd.f32 %v12235_v63, %v2502_v19  ;;  %v8908_v19 = vld [vmem:[%s17329_s3 + $0xc0] sm:$0xf0]  ;;  %v2061_v42 = vadd.f32 %v12330_v57, %v17958_v17  ;;  %v17961_v10 = vld [vmem:[#allocation59_spill] sm:$0xff] }
 0x2c9   : > { %v12490_v40 = vadd.f32 %v12237_v26, %v2503_v24  ;;  %v8911_v38 = vor.u32 %v9929_v16, %v8908_v19  ;;  %v12512_v53 = vpop.f32.mrf.mxu3  ;;  %v17960_v19 = vld [vmem:[#allocation56_spill] sm:$0xff] }
 0x2ca   : > { %v17400_v9 = vmax.f32 %v12487_v3, 0.0 }
 0x2cb   : > { %v17403_v25 = vmax.f32 %v12490_v40, 0.0  ;;  %3807 = vmatpush.bf16.msrb.mxu0 %v8911_v38 }
 0x2cd   : > { %v2340_v30 = vpop.f32.mrf.mxu0  ;;  %v10162_v24 = vpack.i.bf16 %v17403_v25, %v17400_v9 }
 0x2ce   : > { %v2504_v60 = vadd.f32 %v2340_v30, %v2060_v62  ;;  %v2429_v55 = vpop.f32.mrf.mxu1  ;;  %v2063_v62 = vadd.f32 %v12364_v54, %v17961_v10 }
 0x2cf   : > { %v2505_v58 = vadd.f32 %v2429_v55, %v2061_v42  ;;  %10163 = vrot.lane.b32.xlu0 %v10162_v24, %s10504_s16  ;;  %v2062_v55 = vadd.f32 %v12368_v52, %v17960_v19 }
 0x2d0   : > { %v12518_v41 = vadd.f32 %v12235_v63, %v2504_v60  ;;  %8856 = vmatmul.msk.bf16.gmra.mxu0 %vm623_vm1, %v2182_v15 }
 0x2d1   : > { %v12522_v57 = vadd.f32 %v12237_v26, %v2505_v58  ;;  %8872 = vmatmul.msk.bf16.gmra.mxu1 %vm623_vm1, %v2182_v15  ;;  %v2133_v58 = vrot.slane %v17858_v33, 4  ;;  %v2134_v15 = vrot.slane %v17859_v6, 4  ;;  %v12541_v24 = vpop.f32.mrf.mxu3  ;;  %v12550_v6 = vpop.f32.mrf.mxu2 }
 0x2d2   : > { %17959 = vst [vmem:[#allocation49_spill] sm:$0xff] %v12518_v41  ;;  %v17398_v51 = vmax.f32 %v12518_v41, 0.0 }
 0x2d3   : > { %v17399_v16 = vmax.f32 %v12522_v57, 0.0  ;;  %v2138_v19 = vsel %vm2136_vm4, %v2133_v58, %v2134_v15  ;;  %v2139_v33 = vsel %vm2136_vm4, %v2132_v7, %v2133_v58 }
 0x2d5   : > { %v2342_v38 = vpop.f32.mrf.mxu0  ;;  %v10167_v60 = vpack.i.bf16 %v17399_v16, %v17398_v51 }
 0x2d6   : > { %v2506_v17 = vadd.f32 %v2342_v38, %v2062_v55  ;;  %v2431_v42 = vpop.f32.mrf.mxu1 }
 0x2d7   : > { %v2507_v30 = vadd.f32 %v2431_v42, %v2063_v62  ;;  %10168 = vrot.lane.b32.xlu1 %v10167_v60, %s10504_s16  ;;  %v17962_v62 = vld [vmem:[#allocation58_spill] sm:$0xff]  ;;  %v2183_v60 = vpack.c.bf16 %v2138_v19, %v2139_v33 }
 0x2d8   : > { %v12539_v52 = vadd.f32 %v12235_v63, %v2506_v17  ;;  %v2064_v38 = vadd.f32 %v12411_v8, %v17962_v62  ;;  %v17963_v17 = vld [vmem:[#allocation15_spill] sm:$0xff] }
 0x2d9   : > { %v12544_v54 = vadd.f32 %v12237_v26, %v2507_v30  ;;  %v2065_v42 = vadd.f32 %v12405_v27, %v17963_v17  ;;  %v12572_v19 = vpop.f32.mrf.mxu3  ;;  %v9928_v62 = vld [vmem:[%s17329_s3 + $0xac] sm:$0xf0]  ;;  %v12583_v17 = vpop.f32.mrf.mxu2 }
 0x2da   : > { %v17401_v55 = vmax.f32 %v12539_v52, 0.0 }
 0x2db   : > { %v17402_v10 = vmax.f32 %v12544_v54, 0.0 }
 0x2dd   : > { %v2345_v30 = vpop.f32.mrf.mxu0  ;;  %v10172_v51 = vpack.i.bf16 %v17402_v10, %v17401_v55  ;;  %v2135_v55 = vrot.slane %v17866_v22, 4 }
 0x2de   : > { %v2508_v7 = vadd.f32 %v2345_v30, %v2064_v38  ;;  %v2434_v58 = vpop.f32.mrf.mxu1  ;;  %v17965_v38 = vld [vmem:[#allocation16_spill] sm:$0xff] }
 0x2df   : > { %v2509_v16 = vadd.f32 %v2434_v58, %v2065_v42  ;;  %10173 = vrot.lane.b32.xlu2 %v10172_v51, %s10504_s16  ;;  %v8898_v51 = vld [vmem:[%s17329_s3 + $0xa8] sm:$0xf]  ;;  %v17966_v42 = vld [vmem:[#allocation61_spill] sm:$0xff] }
 0x2e0   : > { %v12564_v9 = vadd.f32 %v12235_v63, %v2508_v7  ;;  %8857 = vmatmul.msk.bf16.gmra.mxu0 %vm623_vm1, %v2183_v60  ;;  %v2067_v30 = vadd.f32 %v12441_v14, %v17966_v42  ;;  %v2137_v14 = vsel %vm2136_vm4, %v2134_v15, %v2135_v55  ;;  %v17970_v42 = vld [vmem:[#allocation19_spill] sm:$0xff] }
 0x2e1   : > { %v12568_v8 = vadd.f32 %v12237_v26, %v2509_v16  ;;  %8873 = vmatmul.msk.bf16.gmra.mxu1 %vm623_vm1, %v2183_v60  ;;  %v2066_v16 = vadd.f32 %v12446_v50, %v17965_v38  ;;  %v8899_v60 = vor.u32 %v9928_v62, %v8898_v51  ;;  %v17968_v62 = vrot.slane %v10701_v39, 4 }
 0x2e2   : > { %17964 = vst [vmem:[#allocation41_spill] sm:$0xff] %v12564_v9  ;;  %v17405_v27 = vmax.f32 %v12564_v9, 0.0 }
 0x2e3   : > { %v17406_v33 = vmax.f32 %v12568_v8, 0.0  ;;  %3630 = vmatpush.bf16.msrb.mxu2 %v8899_v60  ;;  %v2168_v22 = vsel %vm2136_vm4, %v2135_v55, %v17968_v62  ;;  %v2069_v55 = vadd.f32 %v12475_v31, %v17970_v42  ;;  %v12623_v62 = vpop.f32.mrf.mxu2 }
 0x2e4   : > { %v2184_v60 = vpack.c.bf16 %v2168_v22, %v2137_v14 }
 0x2e5   : > { %v2347_v7 = vpop.f32.mrf.mxu0  ;;  %v10177_v58 = vpack.i.bf16 %v17406_v33, %v17405_v27 }
 0x2e6   : > { %v2510_v10 = vadd.f32 %v2347_v7, %v2066_v16  ;;  %v2436_v25 = vpop.f32.mrf.mxu1  ;;  %v17969_v16 = vld [vmem:[#allocation60_spill] sm:$0xff] }
 0x2e7   : > { %v2511_v41 = vadd.f32 %v2436_v25, %v2067_v30  ;;  %10178 = vrot.lane.b32.xlu0 %v10177_v58, %s10504_s16  ;;  %v2068_v15 = vadd.f32 %v12483_v4, %v17969_v16  ;;  %v12617_v30 = vpop.f32.mrf.mxu3 }
 0x2e8   : > { %v12594_v50 = vadd.f32 %v12235_v63, %v2510_v10  ;;  %v9927_v10 = vld [vmem:[%s17329_s3 + $0xac] sm:$0xf] }
 0x2e9   : > { %v12597_v51 = vadd.f32 %v12237_v26, %v2511_v41  ;;  %v8900_v41 = vld [vmem:[%s17329_s3 + $0xb0] sm:$0xf0] }
 0x2ea   : > { %17967 = vst [vmem:[#allocation32_spill] sm:$0xff] %v12594_v50  ;;  %v17412_v38 = vmax.f32 %v12594_v50, 0.0  ;;  %v8903_v39 = vor.u32 %v9927_v10, %v8900_v41  ;;  %v17973_v10 = vld [vmem:[#allocation63_spill] sm:$0xff] }
 0x2eb   : > { %v17413_v25 = vmax.f32 %v12597_v51, 0.0  ;;  %v2070_v41 = vadd.f32 %v12515_v43, %v17973_v10 }
 0x2ec   : > { %3808 = vmatpush.bf16.msrb.mxu0 %v8903_v39 }
 0x2ed   : > { %v2350_v7 = vpop.f32.mrf.mxu0  ;;  %v10182_v58 = vpack.i.bf16 %v17413_v25, %v17412_v38 }
 0x2ee   : > { %v2512_v27 = vadd.f32 %v2350_v7, %v2068_v15  ;;  %v2439_v33 = vpop.f32.mrf.mxu1 }
 0x2ef   : > { %v2513_v9 = vadd.f32 %v2439_v33, %v2069_v55  ;;  %10183 = vrot.lane.b32.xlu1 %v10182_v58, %s10504_s16  ;;  %v17974_v33 = vld [vmem:[#allocation62_spill] sm:$0xff]  ;;  %v12644_v42 = vpop.f32.mrf.mxu3  ;;  %v12647_v55 = vpop.f32.mrf.mxu2 }
 0x2f0   : > { %v12627_v4 = vadd.f32 %v12235_v63, %v2512_v27  ;;  %8858 = vmatmul.msk.bf16.gmra.mxu0 %vm623_vm1, %v2184_v60  ;;  %v2071_v16 = vadd.f32 %v12512_v53, %v17974_v33  ;;  %v17977_v33 = vld [vmem:[#allocation65_spill] sm:$0xff] }
 0x2f1   : > { %v12631_v31 = vadd.f32 %v12237_v26, %v2513_v9  ;;  %8874 = vmatmul.msk.bf16.gmra.mxu1 %vm623_vm1, %v2184_v60  ;;  %vm7474_vm1 = vcmask 130048  }
 0x2f2   : > { %17971 = vst [vmem:[#allocation51_spill] sm:$0xff] %v12627_v4  ;;  %v17408_v14 = vmax.f32 %v12627_v4, 0.0 }
 0x2f3   : > { %17972 = vst [vmem:[#allocation33_spill] sm:$0xff] %v12631_v31  ;;  %v17409_v22 = vmax.f32 %v12631_v31, 0.0 }
 0x2f5   : > { %v2352_v15 = vpop.f32.mrf.mxu0  ;;  %v10187_v27 = vpack.i.bf16 %v17409_v22, %v17408_v14 }
 0x2f6   : > { %v2514_v9 = vadd.f32 %v2352_v15, %v2070_v41  ;;  %v2441_v39 = vpop.f32.mrf.mxu1  ;;  %v2072_v41 = vadd.f32 %v12550_v6, %v11929_v11 }
 0x2f7   : > { %v2515_v60 = vadd.f32 %v2441_v39, %v2071_v16  ;;  %10188 = vrot.lane.b32.xlu2 %v10187_v27, %s10504_s16  ;;  %v2073_v16 = vadd.f32 %v12541_v24, %v17977_v33  ;;  %v12669_v22 = vpop.f32.mrf.mxu3  ;;  %v12674_v24 = vpop.f32.mrf.mxu2 }
 0x2f8   : > { %v12650_v43 = vadd.f32 %v12235_v63, %v2514_v9 }
 0x2f9   : > { %v12653_v53 = vadd.f32 %v12237_v26, %v2515_v60  ;;  %v10119_v58 = vpop.permute.xlu0 %10118 }
 0x2fa   : > { %17975 = vst [vmem:[#allocation48_spill] sm:$0xff] %v12650_v43  ;;  %v17410_v7 = vmax.f32 %v12650_v43, 0.0  ;;  %v10120_v4 = vunpack.i.l.bf16 %v10119_v58 }
 0x2fb   : > { %17976 = vst [vmem:[#allocation34_spill] sm:$0xff] %v12653_v53  ;;  %v17411_v10 = vmax.f32 %v12653_v53, 0.0  ;;  %v10121_v53 = vunpack.i.h.bf16 %v10119_v58 }
 0x2fd   : > { %v2355_v15 = vpop.f32.mrf.mxu0  ;;  %v10192_v27 = vpack.i.bf16 %v17411_v10, %v17410_v7  ;;  %v17981_v7 = vld [vmem:[#allocation8_spill] sm:$0xff] }
 0x2fe   : > { %v2516_v9 = vadd.f32 %v2355_v15, %v2072_v41  ;;  %v2444_v39 = vpop.f32.mrf.mxu1  ;;  %v9066_v41 = vld [vmem:[%s17329_s3 + $0x70] sm:$0xf]  ;;  %v17980_v15 = vld [vmem:[#allocation64_spill] sm:$0xff]  ;;  %v2075_v10 = vadd.f32 %v12572_v19, %v17981_v7 }
 0x2ff   : > { %v2517_v60 = vadd.f32 %v2444_v39, %v2073_v16  ;;  %10193 = vrot.lane.b32.xlu0 %v10192_v27, %s10504_s16  ;;  %v9922_v16 = vld [vmem:[%s17329_s3 + $0x74] sm:$0xf0]  ;;  %v2074_v27 = vadd.f32 %v12583_v17, %v17980_v15 }
 0x300   : > { %v12667_v14 = vadd.f32 %v12235_v63, %v2516_v9  ;;  %v9067_v39 = vor.u32 %v9922_v16, %v9066_v41 }
 0x301   : > { %v12672_v11 = vadd.f32 %v12237_v26, %v2517_v60  ;;  %v10124_v9 = vpop.permute.xlu0 %10123  ;;  %v3279_v60 = vld [vmem:[%s17329_s3 + $0xa0] sm:$0x11]  ;;  %v12695_v31 = vpop.permute.xlu2 %10138 }
 0x302   : > { %17978 = vst [vmem:[#allocation35_spill] sm:$0xff] %v12667_v14  ;;  %v17419_v6 = vmax.f32 %v12667_v14, 0.0  ;;  %v4040_v43 = vunpack.c.l.b16 %v3279_v60  ;;  %4138 = vmatpush.bf16.msra.mxu2 %v9067_v39  ;;  %v10126_v41 = vunpack.i.h.bf16 %v10124_v9  ;;  %v10125_v16 = vunpack.i.l.bf16 %v10124_v9 }
 0x303   : > { %17979 = vst [vmem:[#allocation24_spill] sm:$0xff] %v12672_v11  ;;  %v17420_v33 = vmax.f32 %v12672_v11, 0.0  ;;  %v17986_v9 = vmax.f32 %v12296_v56, 0.0  ;;  %v2078_v56 = vadd.f32 %v12647_v55, %v12006_v47  ;;  %v12766_v47 = vadd.f32 %v12669_v22, %v12029_v36 }
 0x304   : > { %v4062_v19 = vpack.c.b16 %v4040_v43, %v4040_v43  ;;  %v12711_v43 = vpop.f32.mrf.mxu3 }
 0x305   : > { %v2357_v38 = vpop.f32.mrf.mxu0  ;;  %v10197_v25 = vpack.i.bf16 %v17420_v33, %v17419_v6  ;;  %v2077_v6 = vadd.f32 %v12617_v30, %v11989_v18  ;;  %v17982_v18 = vmax.f32 %v12246_v49, 0.0  ;;  %v17984_v49 = vmax.f32 %v12300_v32, 0.0 }
 0x306   : > { %v2518_v17 = vadd.f32 %v2357_v38, %v2074_v27  ;;  %v2446_v15 = vpop.f32.mrf.mxu1  ;;  %v4133_v58 = vsel %vm3616_vm5, %v4062_v19, 0  ;;  %v2875_v27 = vsel %vm2874_vm6, %v10120_v4, %v10121_v53  ;;  %v9921_v4 = vld [vmem:[%s17329_s3 + $0x74] sm:$0xf]  ;;  %v12725_v19 = vpop.f32.mrf.mxu2 }
 0x307   : > { %v2519_v50 = vadd.f32 %v2446_v15, %v2075_v10  ;;  %10198 = vrot.lane.b32.xlu1 %v10197_v25, %s10504_s16  ;;  %4232 = vmatpush.bf16.msra.mxu3 %v4133_v58  ;;  %v2076_v25 = vadd.f32 %v12623_v62, %v11986_v28  ;;  %v12715_v30 = vmax.f32 %v17982_v18, %v10121_v53  ;;  %v9068_v15 = vld [vmem:[%s17329_s3 + $0x78] sm:$0xf0]  ;;  %v17983_v28 = vmax.f32 %v12272_v23, 0.0 }
 0x308   : > { %v12699_v7 = vadd.f32 %v12235_v63, %v2518_v17  ;;  %v17985_v58 = vmax.f32 %v12242_v12, 0.0  ;;  %v10141_v17 = vunpack.i.h.bf16 %v12695_v31 }
 0x309   : > { %v12704_v33 = vadd.f32 %v12237_v26, %v2519_v50  ;;  %v10129_v38 = vpop.permute.xlu1 %10128  ;;  %v2876_v50 = vsel %vm2874_vm6, %v10125_v16, %v10126_v41  ;;  %v2974_v62 = vmax.f32 %v17983_v28, %v10126_v41  ;;  %v17989_v28 = vmax.f32 %v12267_v5, 0.0 }
 0x30a   : > { %v10131_v10 = vunpack.i.h.bf16 %v10129_v38  ;;  %v10130_v39 = vunpack.i.l.bf16 %v10129_v38  ;;  %v9071_v38 = vor.u32 %v9921_v4, %v9068_v15  ;;  %v12736_v18 = vmax.f32 %v17985_v58, %v2875_v27 }
 0x30b   : > { %v17987_v23 = vmax.f32 %v12699_v7, 0.0  ;;  %v17988_v32 = vmax.f32 %v12704_v33, 0.0  ;;  %v4041_v4 = vunpack.c.h.b16 %v3279_v60  ;;  %v12762_v60 = vadd.f32 %v12674_v24, %v12026_v59 }
 0x30c   : > { %v12731_v53 = vmax.f32 %v17984_v49, %v10131_v10  ;;  %v2877_v16 = vsel %vm2874_vm6, %v10130_v39, %v10131_v10  ;;  %v2973_v10 = vmax.f32 %v17989_v28, %v2876_v50  ;;  %v10140_v39 = vunpack.i.l.bf16 %v12695_v31  ;;  %4316 = vmatpush.bf16.msra.mxu0 %v9071_v38 }
 0x30d   : > { %v12741_v14 = vmax.f32 %v17986_v9, %v2877_v16  ;;  %v2360_v11 = vpop.f32.mrf.mxu0  ;;  %v10202_v41 = vpack.i.bf16 %v17988_v32, %v17987_v23  ;;  %v2079_v9 = vadd.f32 %v12644_v42, %v12009_v45  ;;  %v3038_v16 = vrot.slane %v2974_v62, 1  ;;  %v10144_v42 = vpop.permute.xlu2 %10143 }
 0x30e   : > { %v2520_v12 = vadd.f32 %v2360_v11, %v2076_v25  ;;  %v2449_v27 = vpop.f32.mrf.mxu1  ;;  %v3040_v15 = vrot.slane %v12731_v53, 1  ;;  %v4063_v11 = vpack.c.b16 %v4041_v4, %v4041_v4  ;;  %v17423_v45 = vrot.slane %v12715_v30, 1 }
 0x30f   : > { %v2521_v49 = vadd.f32 %v2449_v27, %v2077_v6  ;;  %10203 = vrot.lane.b32.xlu2 %v10202_v41, %s10504_s16  ;;  %v3039_v5 = vrot.slane %v12741_v14, 1  ;;  %v17428_v25 = vrot.slane %v12736_v18, 1  ;;  %v3037_v50 = vrot.slane %v2973_v10, 1 }
 0x310   : > { %v12758_v31 = vadd.f32 %v12235_v63, %v2520_v12  ;;  %v2879_v38 = vsel %vm2874_vm6, %v10140_v39, %v10141_v17  ;;  %v3158_v59 = vsel %vm501_vm0, %v3038_v16, %v3040_v15  ;;  %v3160_v23 = vsel %vm501_vm0, %v17423_v45, %v3038_v16  ;;  %v12785_v39 = vpop.f32.mrf.mxu3  ;;  %v12796_v45 = vpop.f32.mrf.mxu2 }
 0x311   : > { %v12770_v55 = vadd.f32 %v12237_v26, %v2521_v49  ;;  %v10134_v6 = vpop.permute.xlu1 %10133  ;;  %v3157_v32 = vsel %vm501_vm0, %v3037_v50, %v3039_v5  ;;  %v10146_v41 = vunpack.i.h.bf16 %v10144_v42  ;;  %v4136_v28 = vsel %vm3616_vm5, %v4063_v11, 0 }
 0x312   : > { %17990 = vst [vmem:[#allocation25_spill] sm:$0xff] %v12758_v31  ;;  %v17425_v58 = vmax.f32 %v12758_v31, 0.0  ;;  %v10136_v22 = vunpack.i.h.bf16 %v10134_v6  ;;  %v10135_v24 = vunpack.i.l.bf16 %v10134_v6  ;;  %v10145_v12 = vunpack.i.l.bf16 %v10144_v42  ;;  %4410 = vmatpush.bf16.msra.mxu1 %v4136_v28 }
 0x313   : > { %17991 = vst [vmem:[#allocation36_spill] sm:$0xff] %v12770_v55  ;;  %v17426_v36 = vmax.f32 %v12770_v55, 0.0  ;;  %v17992_v27 = vmax.f32 %v12322_v46, 0.0  ;;  %v3159_v11 = vsel %vm501_vm0, %v17428_v25, %v3037_v50  ;;  %v12802_v42 = vmax.f32 %v2974_v62, %v3158_v59 }
 0x314   : > { %v2878_v49 = vsel %vm2874_vm6, %v10135_v24, %v10136_v22  ;;  %v17994_v46 = vmax.f32 %v12319_v48, 0.0  ;;  %v17995_v31 = vmax.f32 %v12346_v21, 0.0  ;;  %v12810_v28 = vmax.f32 %v2973_v10, %v3157_v32 }
 0x315   : > { %v12789_v4 = vmax.f32 %v17992_v27, %v10136_v22  ;;  %v2362_v6 = vpop.f32.mrf.mxu0  ;;  %v10207_v16 = vpack.i.bf16 %v17426_v36, %v17425_v58  ;;  %17993 = vst [vmem:[#allocation53_spill] sm:$0xff] %v12802_v42  ;;  %v12815_v62 = vmax.f32 %v12715_v30, %v3160_v23  ;;  %v17998_v48 = vmax.f32 %v12342_v37, 0.0 }
 0x316   : > { %v12806_v27 = vmax.f32 %v17994_v46, %v2878_v49  ;;  %v2522_v22 = vadd.f32 %v2362_v6, %v2078_v56  ;;  %v2451_v24 = vpop.f32.mrf.mxu1  ;;  %v2980_v58 = vmax.f32 %v17995_v31, %v10141_v17  ;;  %17996 = vst [vmem:[#allocation37_spill] sm:$0xff] %v12810_v28  ;;  %v12826_v21 = vmax.f32 %v12736_v18, %v3159_v11 }
 0x317   : > { %v3042_v36 = vrot.slane %v12789_v4, 1  ;;  %v2523_v55 = vadd.f32 %v2451_v24, %v2079_v9  ;;  %10208 = vrot.lane.b32.xlu0 %v10207_v16, %s10504_s16  ;;  %17997 = vst [vmem:[#allocation10_spill] sm:$0xff] %v12815_v62  ;;  %v12819_v50 = vmax.f32 %v17998_v48, %v2879_v38  ;;  %v2880_v17 = vsel %vm2874_vm6, %v10145_v12, %v10146_v41 }
 0x318   : > { %v3041_v56 = vrot.slane %v12806_v27, 1  ;;  %v12823_v59 = vadd.f32 %v12235_v63, %v2522_v22  ;;  %17999 = vst [vmem:[#allocation38_spill] sm:$0xff] %v12826_v21  ;;  %v18000_v37 = vmax.f32 %v12374_v34, 0.0  ;;  %v3283_v32 = vrot.slane %v12802_v42, 2  ;;  %v12885_v25 = vpop.f32.mrf.mxu2 }
 0x319   : > { %v3156_v10 = vsel %vm501_vm0, %v3040_v15, %v3042_v36  ;;  %v12832_v9 = vadd.f32 %v12237_v26, %v2523_v55  ;;  %v3282_v49 = vrot.slane %v12810_v28, 2  ;;  %v3044_v34 = vrot.slane %v2980_v58, 1 }
 0x31a   : > { %v12836_v31 = vmax.f32 %v18000_v37, %v10146_v41  ;;  %v12839_v38 = vmax.f32 %v12731_v53, %v3156_v10  ;;  %v3155_v23 = vsel %vm501_vm0, %v3039_v5, %v3041_v56  ;;  %v17431_v15 = vmax.f32 %v12823_v59, 0.0  ;;  %v12873_v37 = vpop.f32.mrf.mxu3 }
 0x31b   : > { %v12845_v12 = vmax.f32 %v12741_v14, %v3155_v23  ;;  %v17434_v55 = vmax.f32 %v12832_v9, 0.0  ;;  %v18003_v41 = vmax.f32 %v12371_v2, 0.0  ;;  %v17430_v53 = vrot.slane %v12815_v62, 2 }
 0x31c   : > { %18001 = vst [vmem:[#allocation39_spill] sm:$0xff] %v12839_v38  ;;  %v3285_v5 = vrot.slane %v12839_v38, 2  ;;  %v3043_v16 = vrot.slane %v12819_v50, 1  ;;  %v17429_v46 = vrot.slane %v12826_v21, 2  ;;  %v17437_v2 = vrot.slane %v12836_v31, 1 }
 0x31d   : > { %18002 = vst [vmem:[#allocation26_spill] sm:$0xff] %v12845_v12  ;;  %v12852_v6 = vmax.f32 %v18003_v41, %v2880_v17  ;;  %v2365_v11 = vpop.f32.mrf.mxu0  ;;  %v10212_v14 = vpack.i.bf16 %v17434_v55, %v17431_v15  ;;  %v17438_v22 = vrot.slane %v12845_v12, 2  ;;  %v3405_v10 = vsel %vm1248_vm2, %v17430_v53, %v3283_v32 }
 0x31e   : > { %v2524_v24 = vadd.f32 %v2365_v11, %v12762_v60  ;;  %v2454_v48 = vpop.f32.mrf.mxu1  ;;  %v3403_v17 = vsel %vm1248_vm2, %v3283_v32, %v3285_v5  ;;  %v3404_v11 = vsel %vm1248_vm2, %v17429_v46, %v3282_v49 }
 0x31f   : > { %v2525_v23 = vadd.f32 %v2454_v48, %v12766_v47  ;;  %10213 = vrot.lane.b32.xlu1 %v10212_v14, %s10504_s16  ;;  %v3409_v41 = vpack.c.bf16 %v3403_v17, %v3405_v10  ;;  %v3402_v60 = vsel %vm1248_vm2, %v3282_v49, %v17438_v22  ;;  %v17436_v32 = vrot.slane %v12852_v6, 1 }
 0x320   : > { %v3154_v47 = vsel %vm501_vm0, %v3042_v36, %v3044_v34  ;;  %v12891_v14 = vadd.f32 %v12235_v63, %v2524_v24  ;;  %v3408_v48 = vpack.c.bf16 %v3402_v60, %v3404_v11  ;;  %v3152_v49 = vsel %vm501_vm0, %v3044_v34, %v17437_v2  ;;  %v9920_v34 = vld [vmem:[%s17329_s3 + $0x64] sm:$0xf0]  ;;  %v18005_v11 = vld [vmem:[#allocation9_spill] sm:$0xff] }
 0x321   : > { %v12894_v17 = vadd.f32 %v12237_v26, %v2525_v23  ;;  %8976 = vmatmul.msk.bf16.vlgmr.msrb.gmra.mxu3 %vm3567_vm7, %v3409_v41  ;;  %8992 = vmatmul.msk.bf16.vlgmr.msrb.gmra.mxu1 %vm3567_vm7, %v3409_v41  ;;  %v3153_v10 = vsel %vm501_vm0, %v3041_v56, %v3043_v16  ;;  %v12906_v24 = vmax.f32 %v12789_v4, %v3154_v47  ;;  %v9058_v41 = vld [vmem:[%s17329_s3 + $0x60] sm:$0xf] }
 0x322   : > { %v17432_v36 = vmax.f32 %v12891_v14, 0.0  ;;  %3631 = vmatmul.bf16.vlgmr.msrb.gmra.mxu2 %v3408_v48  ;;  %3809 = vmatmul.bf16.vlgmr.msrb.gmra.mxu0 %v3408_v48  ;;  %v2082_v56 = vadd.f32 %v12725_v19, %v12046_v0  ;;  %v3151_v60 = vsel %vm501_vm0, %v3043_v16, %v17436_v32  ;;  %v9059_v4 = vor.u32 %v9920_v34, %v9058_v41 }
 0x323   : > { %18004 = vst [vmem:[#allocation27_spill] sm:$0xff] %v12906_v24  ;;  %v17433_v23 = vmax.f32 %v12894_v17, 0.0  ;;  %v2083_v47 = vadd.f32 %v12711_v43, %v18005_v11  ;;  %v12923_v48 = vmax.f32 %v2980_v58, %v3152_v49  ;;  %v12926_v46 = vmax.f32 %v12806_v27, %v3153_v10  ;;  %v12940_v27 = vpop.f32.mrf.mxu3 }
 0x324   : > { %4139 = vmatpush.bf16.msra.mxu2 %v9059_v4  ;;  %v12933_v16 = vmax.f32 %v12819_v50, %v3151_v60  ;;  %v3287_v43 = vrot.slane %v12906_v24, 2  ;;  %v18009_v50 = vld [vmem:[#allocation68_spill] sm:$0xff] }
 0x325   : > { %18006 = vst [vmem:[#allocation42_spill] sm:$0xff] %v12923_v48  ;;  %v2367_v53 = vpop.f32.mrf.mxu0  ;;  %v10217_v0 = vpack.i.bf16 %v17433_v23, %v17432_v36  ;;  %v3286_v34 = vrot.slane %v12926_v46, 2 }
 0x326   : > { %18007 = vst [vmem:[#allocation57_spill] sm:$0xff] %v12926_v46  ;;  %v2526_v19 = vadd.f32 %v2367_v53, %v2082_v56  ;;  %v2456_v15 = vpop.f32.mrf.mxu1  ;;  %v17435_v53 = vrot.slane %v12923_v48, 2  ;;  %v12949_v56 = vpop.f32.mrf.mxu2  ;;  %v17441_v36 = vrot.slane %v12933_v16, 2  ;;  %v3401_v23 = vsel %vm1248_vm2, %v3285_v5, %v3287_v43 }
 0x327   : > { %18008 = vst [vmem:[#allocation43_spill] sm:$0xff] %v12933_v16  ;;  %v2527_v41 = vadd.f32 %v2456_v15, %v2083_v47  ;;  %10218 = vrot.lane.b32.xlu2 %v10217_v0, %s10504_s16  ;;  %v2085_v15 = vadd.f32 %v12785_v39, %v18009_v50  ;;  %v18010_v47 = vld [vmem:[#allocation66_spill] sm:$0xff]  ;;  %v9919_v39 = vld [vmem:[%s17329_s3 + $0x64] sm:$0xf]  ;;  %v18011_v50 = vmax.f32 %v12408_v44, 0.0 }
 0x328   : > { %v12938_v58 = vadd.f32 %v12235_v63, %v2526_v19  ;;  %v2084_v0 = vadd.f32 %v12796_v45, %v18010_v47  ;;  %v3398_v44 = vsel %vm1248_vm2, %v3286_v34, %v17441_v36 }
 0x329   : > { %v12943_v49 = vadd.f32 %v12237_v26, %v2527_v41  ;;  %v10149_v10 = vpop.permute.xlu0 %10148  ;;  %v3399_v41 = vsel %vm1248_vm2, %v3287_v43, %v17435_v53  ;;  %v18012_v53 = vmax.f32 %v12402_v20, 0.0  ;;  %v10159_v43 = vpop.permute.xlu2 %10158 }
 0x32a   : > { %v17439_v60 = vmax.f32 %v12938_v58, 0.0  ;;  %v10151_v4 = vunpack.i.h.bf16 %v10149_v10  ;;  %v10150_v11 = vunpack.i.l.bf16 %v10149_v10  ;;  %v9060_v10 = vld [vmem:[%s17329_s3 + $0x68] sm:$0xf0]  ;;  %v10160_v36 = vunpack.i.l.bf16 %v10159_v43 }
 0x32b   : > { %v17440_v19 = vmax.f32 %v12943_v49, 0.0  ;;  %v9063_v55 = vor.u32 %v9919_v39, %v9060_v10  ;;  %v3411_v10 = vpack.c.bf16 %v3399_v41, %v3401_v23 }
 0x32c   : > { %v2984_v45 = vmax.f32 %v18011_v50, %v10151_v4  ;;  %v2881_v47 = vsel %vm2874_vm6, %v10150_v11, %v10151_v4  ;;  %v18013_v4 = vrot.slane %v12845_v12, 2 }
 0x32d   : > { %v2983_v32 = vmax.f32 %v18012_v53, %v2881_v47  ;;  %v2370_v2 = vpop.f32.mrf.mxu0  ;;  %v10222_v22 = vpack.i.bf16 %v17440_v19, %v17439_v60  ;;  %4317 = vmatpush.bf16.msra.mxu0 %v9063_v55  ;;  %v10161_v19 = vunpack.i.h.bf16 %v10159_v43  ;;  %v18014_v55 = vrot.slane %v12836_v31, 1 }
 0x32e   : > { %v3400_v5 = vsel %vm1248_vm2, %v18013_v4, %v3286_v34  ;;  %v3048_v11 = vrot.slane %v2984_v45, 1  ;;  %v2528_v20 = vadd.f32 %v2370_v2, %v2084_v0  ;;  %v2459_v53 = vpop.f32.mrf.mxu1  ;;  %v13001_v0 = vpop.f32.mrf.mxu3  ;;  %v18016_v43 = vrot.slane %v12852_v6, 1 }
 0x32f   : > { %v2529_v39 = vadd.f32 %v2459_v53, %v2085_v15  ;;  %10223 = vrot.lane.b32.xlu0 %v10222_v22, %s10504_s16  ;;  %v3047_v50 = vrot.slane %v2983_v32, 1  ;;  %v3410_v60 = vpack.c.bf16 %v3398_v44, %v3400_v5  ;;  %v18015_v44 = vld [vmem:[#allocation67_spill] sm:$0xff]  ;;  %v13006_v5 = vpop.f32.mrf.mxu2  ;;  %v18017_v53 = vmax.f32 %v12434_v35, 0.0 }
 0x330   : > { %v12989_v47 = vadd.f32 %v12235_v63, %v2528_v20  ;;  %v3150_v22 = vsel %vm501_vm0, %v18014_v55, %v3048_v11  ;;  %v2086_v4 = vadd.f32 %v12885_v25, %v18015_v44  ;;  %v18020_v25 = vmax.f32 %v12431_v61, 0.0 }
 0x331   : > { %v12992_v46 = vadd.f32 %v12237_v26, %v2529_v39  ;;  %8977 = vmatmul.msk.bf16.gmra.mxu3 %vm3567_vm7, %v3411_v10  ;;  %8993 = vmatmul.msk.bf16.gmra.mxu1 %vm3567_vm7, %v3411_v10  ;;  %v10154_v2 = vpop.permute.xlu1 %10153  ;;  %v3149_v20 = vsel %vm501_vm0, %v18016_v43, %v3047_v50  ;;  %v13018_v55 = vmax.f32 %v12836_v31, %v3150_v22  ;;  %v18023_v61 = vmax.f32 %v12460_v1, 0.0 }
 0x332   : > { %v17448_v23 = vmax.f32 %v12989_v47, 0.0  ;;  %3636 = vmatmul.bf16.gmra.mxu2 %v3410_v60  ;;  %v10156_v34 = vunpack.i.h.bf16 %v10154_v2  ;;  %v10155_v15 = vunpack.i.l.bf16 %v10154_v2  ;;  %3814 = vmatmul.bf16.gmra.mxu0 %v3410_v60  ;;  %v18018_v60 = vld [vmem:[#allocation13_spill] sm:$0xff]  ;;  %v2883_v35 = vsel %vm2874_vm6, %v10160_v36, %v10161_v19 }
 0x333   : > { %v2087_v2 = vadd.f32 %v12873_v37, %v18018_v60  ;;  %18019 = vst [vmem:[#allocation12_spill] sm:$0xff] %v13018_v55  ;;  %v18021_v12 = vmax.f32 %v12992_v46, 0.0  ;;  %v13033_v22 = vmax.f32 %v18023_v61, %v10161_v19  ;;  %v18024_v36 = vmax.f32 %v12456_v13, 0.0  ;;  %v18027_v60 = vld [vmem:[#allocation14_spill] sm:$0xff] }
 0x334   : > { %v2986_v39 = vmax.f32 %v18017_v53, %v10156_v34  ;;  %v2882_v10 = vsel %vm2874_vm6, %v10155_v15, %v10156_v34  ;;  %v13028_v15 = vmax.f32 %v12852_v6, %v3149_v20  ;;  %v3291_v20 = vrot.slane %v13018_v55, 2 }
 0x335   : > { %v2985_v44 = vmax.f32 %v18020_v25, %v2882_v10  ;;  %v2372_v41 = vpop.f32.mrf.mxu0  ;;  %v10227_v43 = vpack.i.bf16 %v18021_v12, %v17448_v23 }
 0x336   : > { %v3050_v53 = vrot.slane %v2986_v39, 1  ;;  %v2530_v24 = vadd.f32 %v2372_v41, %v2086_v4  ;;  %v2461_v34 = vpop.f32.mrf.mxu1  ;;  %18022 = vst [vmem:[#allocation44_spill] sm:$0xff] %v13028_v15  ;;  %v13042_v41 = vmax.f32 %v18024_v36, %v2883_v35  ;;  %v3290_v13 = vrot.slane %v13028_v15, 2  ;;  %v2025_v35 = vpop.f32.mrf.mxu3 }
 0x337   : > { %v3049_v37 = vrot.slane %v2985_v44, 1  ;;  %v2531_v31 = vadd.f32 %v2461_v34, %v2087_v2  ;;  %10228 = vrot.lane.b32.xlu1 %v10227_v43, %s10504_s16  ;;  %v3052_v2 = vrot.slane %v13033_v22, 1  ;;  %v1936_v36 = vpop.f32.mrf.mxu2 }
 0x338   : > { %v3148_v10 = vsel %vm501_vm0, %v3048_v11, %v3050_v53  ;;  %v13038_v12 = vadd.f32 %v12235_v63, %v2530_v24  ;;  %v3051_v34 = vrot.slane %v13042_v41, 1 }
 0x339   : > { %v13044_v6 = vmax.f32 %v2984_v45, %v3148_v10  ;;  %v3147_v4 = vsel %vm501_vm0, %v3047_v50, %v3049_v37  ;;  %v13053_v11 = vadd.f32 %v12237_v26, %v2531_v31  ;;  %v2088_v45 = vadd.f32 %v12949_v56, %v18027_v60 }
 0x33a   : > { %v13049_v1 = vmax.f32 %v2983_v32, %v3147_v4  ;;  %v17452_v19 = vmax.f32 %v13038_v12, 0.0  ;;  %v18028_v32 = vld [vmem:[#allocation70_spill] sm:$0xff]  ;;  %v18029_v56 = vrot.slane %v12923_v48, 2  ;;  %v3146_v4 = vsel %vm501_vm0, %v3050_v53, %v3052_v2 }
 0x33b   : > { %18025 = vst [vmem:[#allocation45_spill] sm:$0xff] %v13044_v6  ;;  %v17449_v24 = vrot.slane %v13044_v6, 2  ;;  %v17453_v50 = vmax.f32 %v13053_v11, 0.0  ;;  %v2089_v43 = vadd.f32 %v12940_v27, %v18028_v32  ;;  %v3145_v53 = vsel %vm501_vm0, %v3049_v37, %v3051_v34 }
 0x33c   : > { %18026 = vst [vmem:[#allocation28_spill] sm:$0xff] %v13049_v1  ;;  %v3397_v10 = vsel %vm1248_vm2, %v18029_v56, %v3291_v20 }
 0x33d   : > { %v2375_v31 = vpop.f32.mrf.mxu0  ;;  %v3395_v61 = vsel %vm1248_vm2, %v3291_v20, %v17449_v24  ;;  %v10232_v32 = vpack.i.bf16 %v17453_v50, %v17452_v19  ;;  %v18030_v24 = vrot.slane %v13049_v1, 2  ;;  %v18031_v20 = vrot.slane %v12933_v16, 2 }
 0x33e   : > { %v2532_v60 = vadd.f32 %v2375_v31, %v2088_v45  ;;  %v2464_v27 = vpop.f32.mrf.mxu1  ;;  %v3413_v23 = vpack.c.bf16 %v3395_v61, %v3397_v10  ;;  %v10174_v45 = vpop.permute.xlu2 %10173  ;;  %v13093_v61 = vmax.f32 %v2986_v39, %v3146_v4  ;;  %v9050_v4 = vld [vmem:[%s17329_s3 + $0x50] sm:$0xf] }
 0x33f   : > { %v2533_v25 = vadd.f32 %v2464_v27, %v2089_v43  ;;  %v3394_v15 = vsel %vm1248_vm2, %v3290_v13, %v18030_v24  ;;  %v3396_v56 = vsel %vm1248_vm2, %v18031_v20, %v3290_v13  ;;  %10233 = vrot.lane.b32.xlu2 %v10232_v32, %s10504_s16  ;;  %v10176_v39 = vunpack.i.h.bf16 %v10174_v45 }
 0x340   : > { %v13090_v31 = vadd.f32 %v12235_v63, %v2532_v60  ;;  %v3412_v43 = vpack.c.bf16 %v3394_v15, %v3396_v56  ;;  %18032 = vst [vmem:[#allocation29_spill] sm:$0xff] %v13093_v61  ;;  %v18033_v60 = vld [vmem:[#allocation69_spill] sm:$0xff]  ;;  %v13103_v15 = vmax.f32 %v2985_v44, %v3145_v53  ;;  %v10175_v20 = vunpack.i.l.bf16 %v10174_v45 }
 0x341   : > { %v13096_v10 = vadd.f32 %v12237_v26, %v2533_v25  ;;  %8978 = vmatmul.msk.bf16.gmra.mxu3 %vm3567_vm7, %v3413_v23  ;;  %8994 = vmatmul.msk.bf16.gmra.mxu1 %vm3567_vm7, %v3413_v23  ;;  %v10164_v24 = vpop.permute.xlu0 %10163  ;;  %v2090_v32 = vadd.f32 %v13006_v5, %v18033_v60  ;;  %v9918_v23 = vld [vmem:[%s17329_s3 + $0x54] sm:$0xf0]  ;;  %v18035_v56 = vmax.f32 %v12490_v40, 0.0  ;;  %v18036_v53 = vld [vmem:[#allocation17_spill] sm:$0xff]  ;;  %v18037_v60 = vmax.f32 %v12487_v3, 0.0  ;;  %v2027_v3 = vpop.f32.mrf.mxu3 }
 0x342   : > { %v17458_v13 = vmax.f32 %v13090_v31, 0.0  ;;  %3641 = vmatmul.bf16.gmra.mxu2 %v3412_v43  ;;  %v10166_v37 = vunpack.i.h.bf16 %v10164_v24  ;;  %v10165_v27 = vunpack.i.l.bf16 %v10164_v24  ;;  %3819 = vmatmul.bf16.gmra.mxu0 %v3412_v43  ;;  %18034 = vst [vmem:[#allocation30_spill] sm:$0xff] %v13103_v15  ;;  %v9051_v44 = vor.u32 %v9918_v23, %v9050_v4 }
 0x343   : > { %v17459_v25 = vmax.f32 %v13096_v10, 0.0  ;;  %v2091_v24 = vadd.f32 %v13001_v0, %v18036_v53  ;;  %v3295_v40 = vrot.slane %v13093_v61, 2  ;;  %v18039_v0 = vld [vmem:[#allocation18_spill] sm:$0xff] }
 0x344   : > { %v13114_v43 = vmax.f32 %v18035_v56, %v10166_v37  ;;  %v2884_v5 = vsel %vm2874_vm6, %v10165_v27, %v10166_v37  ;;  %v18038_v56 = vld [vmem:[#allocation71_spill] sm:$0xff]  ;;  %4140 = vmatpush.bf16.msra.mxu2 %v9051_v44  ;;  %v2092_v23 = vadd.f32 %v1936_v36, %v18039_v0  ;;  %v3294_v36 = vrot.slane %v13103_v15, 2 }
 0x345   : > { %v13121_v19 = vmax.f32 %v18037_v60, %v2884_v5  ;;  %v2377_v50 = vpop.f32.mrf.mxu0  ;;  %v10237_v45 = vpack.i.bf16 %v17459_v25, %v17458_v13  ;;  %v2093_v16 = vadd.f32 %v2025_v35, %v18038_v56  ;;  %v18040_v5 = vmax.f32 %v12544_v54, 0.0  ;;  %v1938_v13 = vpop.f32.mrf.mxu2 }
 0x346   : > { %v3054_v37 = vrot.slane %v13114_v43, 1  ;;  %v2534_v27 = vadd.f32 %v2377_v50, %v2090_v32  ;;  %v2466_v4 = vpop.f32.mrf.mxu1  ;;  %v2886_v35 = vsel %vm2874_vm6, %v10175_v20, %v10176_v39  ;;  %v18046_v25 = vrot.slane %v13049_v1, 2 }
 0x347   : > { %v13133_v53 = vmax.f32 %v18040_v5, %v10176_v39  ;;  %v3053_v60 = vrot.slane %v13121_v19, 1  ;;  %v2535_v55 = vadd.f32 %v2466_v4, %v2091_v24  ;;  %10238 = vrot.lane.b32.xlu0 %v10237_v45, %s10504_s16  ;;  %v18042_v39 = vrot.slane %v13044_v6, 2 }
 0x348   : > { %v3144_v50 = vsel %vm501_vm0, %v3052_v2, %v3054_v37  ;;  %v13141_v32 = vadd.f32 %v12235_v63, %v2534_v27 }
 0x349   : > { %v13145_v54 = vmax.f32 %v13033_v22, %v3144_v50  ;;  %v3143_v44 = vsel %vm501_vm0, %v3051_v34, %v3053_v60  ;;  %v13150_v24 = vadd.f32 %v12237_v26, %v2535_v55  ;;  %v10169_v45 = vpop.permute.xlu1 %10168  ;;  %v3393_v2 = vsel %vm1248_vm2, %v18042_v39, %v3295_v40 }
 0x34a   : > { %v13157_v20 = vmax.f32 %v13042_v41, %v3143_v44  ;;  %v17468_v56 = vmax.f32 %v13141_v32, 0.0  ;;  %v10171_v27 = vunpack.i.h.bf16 %v10169_v45  ;;  %v10170_v22 = vunpack.i.l.bf16 %v10169_v45 }
 0x34b   : > { %18041 = vst [vmem:[#allocation31_spill] sm:$0xff] %v13145_v54  ;;  %v18044_v34 = vmax.f32 %v12539_v52, 0.0  ;;  %v17469_v55 = vmax.f32 %v13150_v24, 0.0  ;;  %v3297_v5 = vrot.slane %v13145_v54, 2  ;;  %v18045_v50 = vmax.f32 %v12522_v57, 0.0 }
 0x34c   : > { %18043 = vst [vmem:[#allocation50_spill] sm:$0xff] %v13157_v20  ;;  %v2885_v41 = vsel %vm2874_vm6, %v10170_v22, %v10171_v27  ;;  %v3392_v45 = vsel %vm1248_vm2, %v18046_v25, %v3294_v36  ;;  %v9917_v52 = vld [vmem:[%s17329_s3 + $0x54] sm:$0xf]  ;;  %v18049_v6 = vrot.slane %v13157_v20, 2 }
 0x34d   : > { %v13163_v0 = vmax.f32 %v18044_v34, %v2886_v35  ;;  %v2992_v39 = vmax.f32 %v18045_v50, %v10171_v27  ;;  %v9052_v35 = vld [vmem:[%s17329_s3 + $0x58] sm:$0xf0]  ;;  %v18047_v34 = vld [vmem:[#allocation49_spill] sm:$0xff]  ;;  %v2380_v4 = vpop.f32.mrf.mxu0  ;;  %v10242_v27 = vpack.i.bf16 %v17469_v55, %v17468_v56  ;;  %v3391_v25 = vsel %vm1248_vm2, %v3295_v40, %v3297_v5 }
 0x34e   : > { %v18048_v57 = vmax.f32 %v18047_v34, 0.0  ;;  %v9055_v22 = vor.u32 %v9917_v52, %v9052_v35  ;;  %v2536_v15 = vadd.f32 %v2380_v4, %v2092_v23  ;;  %v2469_v1 = vpop.f32.mrf.mxu1  ;;  %v3415_v61 = vpack.c.bf16 %v3391_v25, %v3393_v2  ;;  %v18053_v52 = vld [vmem:[#allocation73_spill] sm:$0xff]  ;;  %v18054_v25 = vld [vmem:[#allocation72_spill] sm:$0xff] }
 0x34f   : > { %v3056_v44 = vrot.slane %v2992_v39, 1  ;;  %10243 = vrot.lane.b32.xlu1 %v10242_v27, %s10504_s16  ;;  %v17473_v55 = vrot.slane %v13163_v0, 1  ;;  %v18050_v23 = vrot.slane %v13133_v53, 1  ;;  %v2094_v35 = vadd.f32 %v1938_v13, %v18053_v52  ;;  %v18057_v52 = vld [vmem:[#allocation20_spill] sm:$0xff] }
 0x350   : > { %v2991_v50 = vmax.f32 %v18048_v57, %v2885_v41  ;;  %v3390_v41 = vsel %vm1248_vm2, %v3294_v36, %v18049_v6  ;;  %v2537_v57 = vadd.f32 %v2469_v1, %v2093_v16  ;;  %4318 = vmatpush.bf16.msra.mxu0 %v9055_v22  ;;  %v13204_v4 = vadd.f32 %v12235_v63, %v2536_v15  ;;  %v2030_v6 = vpop.f32.mrf.mxu3  ;;  %v1941_v16 = vpop.f32.mrf.mxu2 }
 0x351   : > { %v3414_v56 = vpack.c.bf16 %v3390_v41, %v3392_v45  ;;  %v3142_v40 = vsel %vm501_vm0, %v3054_v37, %v3056_v44  ;;  %v3140_v2 = vsel %vm501_vm0, %v3056_v44, %v18050_v23  ;;  %8979 = vmatmul.msk.bf16.gmra.mxu3 %vm3567_vm7, %v3415_v61  ;;  %8995 = vmatmul.msk.bf16.gmra.mxu1 %vm3567_vm7, %v3415_v61 }
 0x352   : > { %v3055_v34 = vrot.slane %v2991_v50, 1  ;;  %v17470_v36 = vmax.f32 %v13204_v4, 0.0  ;;  %v13215_v45 = vadd.f32 %v12237_v26, %v2537_v57  ;;  %v13219_v15 = vmax.f32 %v13114_v43, %v3142_v40 }
 0x353   : > { %3646 = vmatmul.bf16.gmra.mxu2 %v3414_v56  ;;  %v13221_v44 = vmax.f32 %v2992_v39, %v3140_v2  ;;  %3824 = vmatmul.bf16.gmra.mxu0 %v3414_v56 }
 0x354   : > { %v3139_v1 = vsel %vm501_vm0, %v3055_v34, %v17473_v55  ;;  %v3141_v37 = vsel %vm501_vm0, %v3053_v60, %v3055_v34  ;;  %18051 = vst [vmem:[#allocation46_spill] sm:$0xff] %v13219_v15  ;;  %v17471_v27 = vmax.f32 %v13215_v45, 0.0  ;;  %v2095_v60 = vadd.f32 %v2027_v3, %v18054_v25  ;;  %v18058_v25 = vld [vmem:[#allocation21_spill] sm:$0xff] }
 0x355   : > { %18052 = vst [vmem:[#allocation52_spill] sm:$0xff] %v13221_v44  ;;  %v13227_v22 = vmax.f32 %v13121_v19, %v3141_v37  ;;  %v13229_v41 = vmax.f32 %v2991_v50, %v3139_v1  ;;  %v2382_v34 = vpop.f32.mrf.mxu0  ;;  %v3299_v13 = vrot.slane %v13219_v15, 2  ;;  %v17472_v39 = vrot.slane %v13221_v44, 2  ;;  %v18070_v15 = vld [vmem:[#allocation32_spill] sm:$0xff] }
 0x356   : > { %v2538_v61 = vadd.f32 %v2382_v34, %v2094_v35  ;;  %v2471_v57 = vpop.f32.mrf.mxu1  ;;  %v10247_v43 = vpack.i.bf16 %v17471_v27, %v17470_v36  ;;  %v2096_v35 = vadd.f32 %v1941_v16, %v18057_v52  ;;  %v18059_v16 = vmax.f32 %v12568_v8, 0.0  ;;  %v18060_v27 = vld [vmem:[#allocation41_spill] sm:$0xff] }
 0x357   : > { %18055 = vst [vmem:[#allocation55_spill] sm:$0xff] %v13227_v22  ;;  %v2539_v56 = vadd.f32 %v2471_v57, %v2095_v60  ;;  %v3298_v40 = vrot.slane %v13227_v22, 2  ;;  %v2097_v60 = vadd.f32 %v2030_v6, %v18058_v25  ;;  %v3387_v57 = vsel %vm1248_vm2, %v3299_v13, %v17472_v39  ;;  %v18064_v22 = vld [vmem:[#allocation75_spill] sm:$0xff] }
 0x358   : > { %18056 = vst [vmem:[#allocation54_spill] sm:$0xff] %v13229_v41  ;;  %v13238_v3 = vadd.f32 %v12235_v63, %v2538_v61  ;;  %10248 = vrot.lane.b32.xlu2 %v10247_v43, %s10504_s16  ;;  %v2032_v34 = vpop.f32.mrf.mxu3  ;;  %v9082_v43 = vld [vmem:[%s17329_s3 + $0x90] sm:$0xf]  ;;  %v3389_v25 = vsel %vm1248_vm2, %v3297_v5, %v3299_v13  ;;  %v18061_v39 = vmax.f32 %v18060_v27, 0.0  ;;  %v18071_v54 = vmax.f32 %v18070_v15, 0.0 }
 0x359   : > { %v13242_v19 = vadd.f32 %v12237_v26, %v2539_v56  ;;  %v10179_v50 = vpop.permute.xlu0 %10178  ;;  %v9926_v56 = vld [vmem:[%s17329_s3 + $0x94] sm:$0xf0] }
 0x35a   : > { %v17474_v2 = vmax.f32 %v13238_v3, 0.0  ;;  %v10181_v1 = vunpack.i.h.bf16 %v10179_v50  ;;  %v10180_v37 = vunpack.i.l.bf16 %v10179_v50  ;;  %v1943_v50 = vpop.f32.mrf.mxu2  ;;  %v9083_v36 = vor.u32 %v9926_v56, %v9082_v43 }
 0x35b   : > { %v17475_v61 = vmax.f32 %v13242_v19, 0.0  ;;  %v3417_v56 = vpack.c.bf16 %v3387_v57, %v3389_v25 }
 0x35c   : > { %v13262_v6 = vmax.f32 %v18059_v16, %v10181_v1  ;;  %v2887_v52 = vsel %vm2874_vm6, %v10180_v37, %v10181_v1  ;;  %v18062_v16 = vrot.slane %v13229_v41, 2  ;;  %v18063_v37 = vrot.slane %v13157_v20, 2  ;;  %4233 = vmatpush.bf16.msra.mxu3 %v9083_v36 }
 0x35d   : > { %v13271_v55 = vmax.f32 %v18061_v39, %v2887_v52  ;;  %v2385_v23 = vpop.f32.mrf.mxu0  ;;  %v10252_v8 = vpack.i.bf16 %v17475_v61, %v17474_v2  ;;  %v10189_v52 = vpop.permute.xlu2 %10188  ;;  %v2098_v20 = vadd.f32 %v1943_v50, %v18064_v22  ;;  %v18065_v36 = vrot.slane %v13133_v53, 1  ;;  %v9925_v22 = vld [vmem:[%s17329_s3 + $0x94] sm:$0xf]  ;;  %v9084_v50 = vld [vmem:[%s17329_s3 + $0x98] sm:$0xf0] }
 0x35e   : > { %v3386_v1 = vsel %vm1248_vm2, %v3298_v40, %v18062_v16  ;;  %v3388_v5 = vsel %vm1248_vm2, %v18063_v37, %v3298_v40  ;;  %v3060_v27 = vrot.slane %v13262_v6, 1  ;;  %v2540_v13 = vadd.f32 %v2385_v23, %v2096_v35  ;;  %v2474_v39 = vpop.f32.mrf.mxu1 }
 0x35f   : > { %v2541_v43 = vadd.f32 %v2474_v39, %v2097_v60  ;;  %10253 = vrot.lane.b32.xlu0 %v10252_v8, %s10504_s16  ;;  %v3059_v2 = vrot.slane %v13271_v55, 1  ;;  %v3416_v16 = vpack.c.bf16 %v3386_v1, %v3388_v5  ;;  %v10191_v8 = vunpack.i.h.bf16 %v10189_v52  ;;  %v9916_v39 = vld [vmem:[%s17329_s3 + $0x44] sm:$0xf0] }
 0x360   : > { %v13289_v61 = vadd.f32 %v12235_v63, %v2540_v13  ;;  %v3138_v35 = vsel %vm501_vm0, %v18065_v36, %v3060_v27  ;;  %v10190_v1 = vunpack.i.l.bf16 %v10189_v52  ;;  %v9087_v5 = vor.u32 %v9925_v22, %v9084_v50  ;;  %v9042_v13 = vld [vmem:[%s17329_s3 + $0x40] sm:$0xf]  ;;  %v18068_v22 = vld [vmem:[#allocation74_spill] sm:$0xff]  ;;  %v2035_v37 = vpop.f32.mrf.mxu3 }
 0x361   : > { %v13293_v40 = vadd.f32 %v12237_v26, %v2541_v43  ;;  %8980 = vmatmul.msk.bf16.gmra.mxu3 %vm3567_vm7, %v3417_v56  ;;  %v10184_v23 = vpop.permute.xlu1 %10183  ;;  %8996 = vmatmul.msk.bf16.gmra.mxu1 %vm3567_vm7, %v3417_v56  ;;  %v18066_v43 = vrot.slane %v13163_v0, 1  ;;  %v9043_v36 = vor.u32 %v9916_v39, %v9042_v13  ;;  %v2099_v50 = vadd.f32 %v2032_v34, %v18068_v22 }
 0x362   : > { %v10186_v57 = vunpack.i.h.bf16 %v10184_v23  ;;  %v10185_v25 = vunpack.i.l.bf16 %v10184_v23  ;;  %v18067_v23 = vmax.f32 %v12597_v51, 0.0  ;;  %v13326_v60 = vmax.f32 %v13133_v53, %v3138_v35  ;;  %4411 = vmatpush.bf16.msra.mxu1 %v9087_v5  ;;  %v1946_v28 = vpop.f32.mrf.mxu2  ;;  %v9915_v35 = vld [vmem:[%s17329_s3 + $0x44] sm:$0xf]  ;;  %v9044_v5 = vld [vmem:[%s17329_s3 + $0x48] sm:$0xf0] }
 0x363   : > { %3651 = vmatmul.bf16.gmra.mxu2 %v3416_v16  ;;  %3829 = vmatmul.bf16.gmra.mxu0 %v3416_v16  ;;  %v3137_v56 = vsel %vm501_vm0, %v18066_v43, %v3059_v2  ;;  %v18072_v43 = vmax.f32 %v13289_v61, 0.0  ;;  %v18073_v51 = vmax.f32 %v13293_v40, 0.0  ;;  %v9047_v13 = vor.u32 %v9915_v35, %v9044_v5  ;;  %v18082_v5 = vld [vmem:[#allocation47_spill] sm:$0xff] }
 0x364   : > { %v13321_v52 = vmax.f32 %v18067_v23, %v10186_v57  ;;  %v2888_v16 = vsel %vm2874_vm6, %v10185_v25, %v10186_v57  ;;  %18069 = vst [vmem:[#allocation11_spill] sm:$0xff] %v13326_v60  ;;  %4141 = vmatpush.bf16.msra.mxu2 %v9043_v36  ;;  %v13338_v53 = vmax.f32 %v13163_v0, %v3137_v56  ;;  %v18076_v36 = vld [vmem:[#allocation33_spill] sm:$0xff] }
 0x365   : > { %v13330_v48 = vmax.f32 %v18071_v54, %v2888_v16  ;;  %v2387_v38 = vpop.f32.mrf.mxu0  ;;  %v10257_v23 = vpack.i.bf16 %v18073_v51, %v18072_v43  ;;  %v3303_v16 = vrot.slane %v13326_v60, 2  ;;  %v18077_v22 = vmax.f32 %v18076_v36, 0.0  ;;  %4319 = vmatpush.bf16.msra.mxu0 %v9047_v13 }
 0x366   : > { %v3062_v57 = vrot.slane %v13321_v52, 1  ;;  %v2542_v25 = vadd.f32 %v2387_v38, %v2098_v20  ;;  %v2476_v34 = vpop.f32.mrf.mxu1  ;;  %18074 = vst [vmem:[#allocation56_spill] sm:$0xff] %v13338_v53  ;;  %v2889_v38 = vsel %vm2874_vm6, %v10190_v1, %v10191_v8 }
 0x367   : > { %v3061_v15 = vrot.slane %v13330_v48, 1  ;;  %v2543_v54 = vadd.f32 %v2476_v34, %v2099_v50  ;;  %10258 = vrot.lane.b32.xlu1 %v10257_v23, %s10504_s16  ;;  %v13362_v50 = vmax.f32 %v18077_v22, %v10191_v8  ;;  %v18081_v34 = vld [vmem:[#allocation40_spill] sm:$0xff] }
 0x368   : > { %v3136_v20 = vsel %vm501_vm0, %v3060_v27, %v3062_v57  ;;  %v13352_v0 = vadd.f32 %v12235_v63, %v2542_v25  ;;  %v3302_v25 = vrot.slane %v13338_v53, 2  ;;  %v2100_v8 = vadd.f32 %v1946_v28, %v18081_v34  ;;  %v18089_v53 = vld [vmem:[#allocation34_spill] sm:$0xff] }
 0x369   : > { %v13355_v39 = vmax.f32 %v13262_v6, %v3136_v20  ;;  %v3135_v56 = vsel %vm501_vm0, %v3059_v2, %v3061_v15  ;;  %v13369_v43 = vadd.f32 %v12237_v26, %v2543_v54  ;;  %v18079_v6 = vld [vmem:[#allocation51_spill] sm:$0xff]  ;;  %v2101_v20 = vadd.f32 %v2035_v37, %v18082_v5 }
 0x36a   : > { %v13365_v1 = vmax.f32 %v13271_v55, %v3135_v56  ;;  %v17491_v27 = vmax.f32 %v13352_v0, 0.0  ;;  %v18080_v51 = vmax.f32 %v18079_v6, 0.0  ;;  %v3064_v36 = vrot.slane %v13362_v50, 1 }
 0x36b   : > { %18075 = vst [vmem:[#allocation59_spill] sm:$0xff] %v13355_v39  ;;  %v17490_v2 = vrot.slane %v13355_v39, 2  ;;  %v17492_v35 = vmax.f32 %v13369_v43, 0.0 }
 0x36c   : > { %18078 = vst [vmem:[#allocation58_spill] sm:$0xff] %v13365_v1  ;;  %v13373_v23 = vmax.f32 %v18080_v51, %v2889_v38  ;;  %v17493_v55 = vrot.slane %v13365_v1, 2  ;;  %v18083_v38 = vrot.slane %v13221_v44, 2  ;;  %v18091_v44 = vld [vmem:[#allocation48_spill] sm:$0xff] }
 0x36d   : > { %v2390_v56 = vpop.f32.mrf.mxu0  ;;  %v3383_v54 = vsel %vm1248_vm2, %v3303_v16, %v17490_v2  ;;  %v10262_v37 = vpack.i.bf16 %v17492_v35, %v17491_v27  ;;  %v18090_v27 = vmax.f32 %v18089_v53, 0.0 }
 0x36e   : > { %v3385_v13 = vsel %vm1248_vm2, %v18083_v38, %v3303_v16  ;;  %v2544_v28 = vadd.f32 %v2390_v56, %v2100_v8  ;;  %v2479_v22 = vpop.f32.mrf.mxu1  ;;  %v3063_v51 = vrot.slane %v13373_v23, 1  ;;  %v3382_v5 = vsel %vm1248_vm2, %v3302_v25, %v17493_v55  ;;  %v1948_v56 = vpop.f32.mrf.mxu2 }
 0x36f   : > { %v3419_v6 = vpack.c.bf16 %v3383_v54, %v3385_v13  ;;  %v2545_v34 = vadd.f32 %v2479_v22, %v2101_v20  ;;  %v18084_v16 = vrot.slane %v13229_v41, 2  ;;  %v2037_v38 = vpop.f32.mrf.mxu3  ;;  %10263 = vrot.lane.b32.xlu2 %v10262_v37, %s10504_s16  ;;  %v3134_v13 = vsel %vm501_vm0, %v3062_v57, %v3064_v36 }
 0x370   : > { %v13404_v2 = vadd.f32 %v12235_v63, %v2544_v28  ;;  %v3133_v20 = vsel %vm501_vm0, %v3061_v15, %v3063_v51  ;;  %v18086_v15 = vld [vmem:[#allocation23_spill] sm:$0xff]  ;;  %v13424_v55 = vmax.f32 %v13321_v52, %v3134_v13 }
 0x371   : > { %v3384_v8 = vsel %vm1248_vm2, %v18084_v16, %v3302_v25  ;;  %v13412_v22 = vadd.f32 %v12237_v26, %v2545_v34  ;;  %8981 = vmatmul.msk.bf16.gmra.mxu3 %vm3567_vm7, %v3419_v6  ;;  %v10194_v25 = vpop.permute.xlu0 %10193  ;;  %v10204_v16 = vpop.permute.xlu2 %10203  ;;  %8997 = vmatmul.msk.bf16.gmra.mxu1 %vm3567_vm7, %v3419_v6  ;;  %v2103_v35 = vadd.f32 %v2037_v38, %v18086_v15 }
 0x372   : > { %v3418_v54 = vpack.c.bf16 %v3382_v5, %v3384_v8  ;;  %v10196_v28 = vunpack.i.h.bf16 %v10194_v25  ;;  %v10195_v37 = vunpack.i.l.bf16 %v10194_v25  ;;  %v18085_v5 = vld [vmem:[#allocation22_spill] sm:$0xff]  ;;  %v13421_v34 = vmax.f32 %v13330_v48, %v3133_v20  ;;  %18088 = vst [vmem:[#allocation16_spill] sm:$0xff] %v13424_v55 }
 0x373   : > { %v2102_v8 = vadd.f32 %v1948_v56, %v18085_v5  ;;  %v17506_v57 = vmax.f32 %v13412_v22, 0.0  ;;  %v10206_v60 = vunpack.i.h.bf16 %v10204_v16  ;;  %v10205_v25 = vunpack.i.l.bf16 %v10204_v16 }
 0x374   : > { %3656 = vmatmul.bf16.gmra.mxu2 %v3418_v54  ;;  %3834 = vmatmul.bf16.gmra.mxu0 %v3418_v54  ;;  %18087 = vst [vmem:[#allocation15_spill] sm:$0xff] %v13421_v34  ;;  %v3002_v41 = vmax.f32 %v18090_v27, %v10196_v28  ;;  %v2890_v6 = vsel %vm2874_vm6, %v10195_v37, %v10196_v28  ;;  %v18092_v56 = vmax.f32 %v18091_v44, 0.0  ;;  %v18093_v15 = vmax.f32 %v13404_v2, 0.0 }
 0x375   : > { %v2392_v38 = vpop.f32.mrf.mxu0  ;;  %v3307_v44 = vrot.slane %v13424_v55, 2  ;;  %v3306_v16 = vrot.slane %v13421_v34, 2  ;;  %v2892_v28 = vsel %vm2874_vm6, %v10205_v25, %v10206_v60 }
 0x376   : > { %v3001_v5 = vmax.f32 %v18092_v56, %v2890_v6  ;;  %v10267_v48 = vpack.i.bf16 %v17506_v57, %v18093_v15  ;;  %v3066_v54 = vrot.slane %v3002_v41, 1  ;;  %v2546_v20 = vadd.f32 %v2392_v38, %v2102_v8  ;;  %v2481_v52 = vpop.f32.mrf.mxu1 }
 0x377   : > { %v2547_v42 = vadd.f32 %v2481_v52, %v2103_v35  ;;  %v18096_v15 = vmax.f32 %v12704_v33, 0.0 }
 0x378   : > { %v3065_v13 = vrot.slane %v3001_v5, 1  ;;  %10268 = vrot.lane.b32.xlu0 %v10267_v48, %s10504_s16  ;;  %v3132_v53 = vsel %vm501_vm0, %v3064_v36, %v3066_v54  ;;  %v13439_v27 = vadd.f32 %v12235_v63, %v2546_v20 }
 0x379   : > { %v13445_v37 = vmax.f32 %v13362_v50, %v3132_v53  ;;  %v13450_v8 = vadd.f32 %v12237_v26, %v2547_v42  ;;  %v10199_v6 = vpop.permute.xlu1 %10198  ;;  %v13458_v25 = vmax.f32 %v18096_v15, %v10206_v60  ;;  %v18098_v42 = vld [vmem:[#allocation24_spill] sm:$0xff] }
 0x37a   : > { %v3131_v35 = vsel %vm501_vm0, %v3063_v51, %v3065_v13  ;;  %v17504_v63 = vmax.f32 %v13439_v27, 0.0  ;;  %v10201_v56 = vunpack.i.h.bf16 %v10199_v6  ;;  %v10200_v38 = vunpack.i.l.bf16 %v10199_v6 }
 0x37b   : > { %18094 = vst [vmem:[#allocation61_spill] sm:$0xff] %v13445_v37  ;;  %v13453_v36 = vmax.f32 %v13373_v23, %v3131_v35  ;;  %v17505_v50 = vmax.f32 %v13450_v8, 0.0  ;;  %v3309_v48 = vrot.slane %v13445_v37, 2  ;;  %v18097_v51 = vmax.f32 %v12699_v7, 0.0  ;;  %v18100_v35 = vld [vmem:[#allocation35_spill] sm:$0xff] }
 0x37c   : > { %v18099_v20 = vmax.f32 %v18098_v42, 0.0  ;;  %v2891_v52 = vsel %vm2874_vm6, %v10200_v38, %v10201_v56  ;;  %v18101_v6 = vmax.f32 %v18100_v35, 0.0  ;;  %v18103_v42 = vrot.slane %v13365_v1, 2 }
 0x37d   : > { %18095 = vst [vmem:[#allocation60_spill] sm:$0xff] %v13453_v36  ;;  %v13464_v26 = vmax.f32 %v18097_v51, %v2892_v28  ;;  %v3308_v53 = vrot.slane %v13453_v36, 2  ;;  %v10272_v60 = vpack.i.bf16 %v17505_v50, %v17504_v63  ;;  %v3379_v7 = vsel %vm1248_vm2, %v3307_v44, %v3309_v48 }
 0x37e   : > { %v3004_v23 = vmax.f32 %v18099_v20, %v10201_v56  ;;  %v3003_v33 = vmax.f32 %v18101_v6, %v2891_v52  ;;  %v18102_v28 = vrot.slane %v13355_v39, 2  ;;  %v3380_v20 = vsel %vm1248_vm2, %v18103_v42, %v3306_v16 }
 0x37f   : > { %v3378_v38 = vsel %vm1248_vm2, %v3306_v16, %v3308_v53  ;;  %v3070_v52 = vrot.slane %v13458_v25, 1  ;;  %10273 = vrot.lane.b32.xlu1 %v10272_v60, %s10504_s16  ;;  %v3069_v63 = vrot.slane %v13464_v26, 1  ;;  %v9034_v60 = vld [vmem:[%s17329_s3 + $0x30] sm:$0xf]  ;;  %s10505_s16 = smov 112  }
 0x380   : > { %v3381_v15 = vsel %vm1248_vm2, %v18102_v28, %v3307_v44  ;;  %v3068_v51 = vrot.slane %v3004_v23, 1  ;;  %v3067_v35 = vrot.slane %v3003_v33, 1  ;;  %v3420_v6 = vpack.c.bf16 %v3378_v38, %v3380_v20 }
 0x381   : > { %v3421_v56 = vpack.c.bf16 %v3379_v7, %v3381_v15 }
 0x382   : > { %v3130_v44 = vsel %vm501_vm0, %v3066_v54, %v3068_v51  ;;  %v3128_v7 = vsel %vm501_vm0, %v3068_v51, %v3070_v52  ;;  %v3127_v28 = vsel %vm501_vm0, %v3067_v35, %v3069_v63  ;;  %v3129_v16 = vsel %vm501_vm0, %v3065_v13, %v3067_v35  ;;  %v9914_v54 = vld [vmem:[%s17329_s3 + $0x34] sm:$0xf0] }
 0x383   : > { %8982 = vmatmul.msk.bf16.gmra.mxu3 %vm3567_vm7, %v3421_v56  ;;  %8998 = vmatmul.msk.bf16.gmra.mxu1 %vm3567_vm7, %v3421_v56  ;;  %v9035_v15 = vor.u32 %v9914_v54, %v9034_v60  ;;  %v13507_v51 = vmax.f32 %v3002_v41, %v3130_v44  ;;  %v13509_v38 = vmax.f32 %v3004_v23, %v3128_v7  ;;  %v9913_v41 = vld [vmem:[%s17329_s3 + $0x34] sm:$0xf] }
 0x384   : > { %3661 = vmatmul.bf16.gmra.mxu2 %v3420_v6  ;;  %3839 = vmatmul.bf16.gmra.mxu0 %v3420_v6  ;;  %v13511_v42 = vmax.f32 %v3001_v5, %v3129_v16  ;;  %v13513_v13 = vmax.f32 %v3003_v33, %v3127_v28  ;;  %v9036_v5 = vld [vmem:[%s17329_s3 + $0x38] sm:$0xf0] }
 0x385   : > { %18104 = vst [vmem:[#allocation19_spill] sm:$0xff] %v13507_v51  ;;  %4142 = vmatpush.bf16.msra.mxu2 %v9035_v15  ;;  %v3311_v56 = vrot.slane %v13507_v51, 2  ;;  %v3313_v20 = vrot.slane %v13509_v38, 2  ;;  %v9039_v23 = vor.u32 %v9913_v41, %v9036_v5  ;;  %v18108_v33 = vld [vmem:[#allocation36_spill] sm:$0xff]  ;;  %v18110_v15 = vld [vmem:[#allocation25_spill] sm:$0xff] }
 0x386   : > { %18105 = vst [vmem:[#allocation63_spill] sm:$0xff] %v13509_v38  ;;  %v3310_v50 = vrot.slane %v13511_v42, 2  ;;  %v3312_v57 = vrot.slane %v13513_v13, 2  ;;  %v18109_v44 = vmax.f32 %v18108_v33, 0.0 }
 0x387   : > { %18106 = vst [vmem:[#allocation62_spill] sm:$0xff] %v13511_v42  ;;  %v3375_v16 = vsel %vm1248_vm2, %v3311_v56, %v3313_v20  ;;  %v3377_v54 = vsel %vm1248_vm2, %v3309_v48, %v3311_v56  ;;  %4320 = vmatpush.bf16.msra.mxu0 %v9039_v23  ;;  %v10219_v42 = vpop.permute.xlu2 %10218 }
 0x388   : > { %18107 = vst [vmem:[#allocation65_spill] sm:$0xff] %v13513_v13  ;;  %v3374_v38 = vsel %vm1248_vm2, %v3310_v50, %v3312_v57  ;;  %v3376_v41 = vsel %vm1248_vm2, %v3308_v53, %v3310_v50  ;;  %v18112_v53 = vmax.f32 %v12832_v9, 0.0 }
 0x389   : > { %v10209_v35 = vpop.permute.xlu0 %10208 }
 0x38a   : > { %v10211_v6 = vunpack.i.h.bf16 %v10209_v35  ;;  %v10210_v60 = vunpack.i.l.bf16 %v10209_v35  ;;  %v18111_v35 = vmax.f32 %v18110_v15, 0.0 }
 0x38c   : > { %v3008_v7 = vmax.f32 %v18109_v44, %v10211_v6  ;;  %v2893_v28 = vsel %vm2874_vm6, %v10210_v60, %v10211_v6  ;;  %v3423_v44 = vpack.c.bf16 %v3375_v16, %v3377_v54  ;;  %v3422_v6 = vpack.c.bf16 %v3374_v38, %v3376_v41 }
 0x38d   : > { %v3007_v13 = vmax.f32 %v18111_v35, %v2893_v28  ;;  %v10221_v16 = vunpack.i.h.bf16 %v10219_v42  ;;  %v10220_v54 = vunpack.i.l.bf16 %v10219_v42 }
 0x38e   : > { %v3072_v5 = vrot.slane %v3008_v7, 1 }
 0x38f   : > { %v3071_v33 = vrot.slane %v3007_v13, 1  ;;  %v2895_v9 = vsel %vm2874_vm6, %v10220_v54, %v10221_v16 }
 0x390   : > { %v3126_v48 = vsel %vm501_vm0, %v3070_v52, %v3072_v5  ;;  %v18114_v52 = vmax.f32 %v12823_v59, 0.0 }
 0x391   : > { %v10214_v60 = vpop.permute.xlu1 %10213  ;;  %v3125_v50 = vsel %vm501_vm0, %v3069_v63, %v3071_v33  ;;  %v13548_v15 = vmax.f32 %v13458_v25, %v3126_v48 }
 0x392   : > { %v10216_v56 = vunpack.i.h.bf16 %v10214_v60  ;;  %v10215_v28 = vunpack.i.l.bf16 %v10214_v60  ;;  %v13553_v41 = vmax.f32 %v13464_v26, %v3125_v50  ;;  %v18117_v26 = vmax.f32 %v12894_v17, 0.0 }
 0x393   : > { %8983 = vmatmul.msk.bf16.gmra.mxu3 %vm3567_vm7, %v3423_v44  ;;  %8999 = vmatmul.msk.bf16.gmra.mxu1 %vm3567_vm7, %v3423_v44  ;;  %18113 = vst [vmem:[#allocation64_spill] sm:$0xff] %v13548_v15  ;;  %v3315_v25 = vrot.slane %v13548_v15, 2 }
 0x394   : > { %3666 = vmatmul.bf16.gmra.mxu2 %v3422_v6  ;;  %3844 = vmatmul.bf16.gmra.mxu0 %v3422_v6  ;;  %v3010_v23 = vmax.f32 %v18112_v53, %v10216_v56  ;;  %v2894_v38 = vsel %vm2874_vm6, %v10215_v28, %v10216_v56  ;;  %18115 = vst [vmem:[#allocation8_spill] sm:$0xff] %v13553_v41  ;;  %v3314_v59 = vrot.slane %v13553_v41, 2 }
 0x395   : > { %v3009_v35 = vmax.f32 %v18114_v52, %v2894_v38  ;;  %v3012_v56 = vmax.f32 %v18117_v26, %v10221_v16 }
 0x396   : > { %v3074_v44 = vrot.slane %v3010_v23, 1 }
 0x397   : > { %v3073_v60 = vrot.slane %v3009_v35, 1  ;;  %v3076_v16 = vrot.slane %v3012_v56, 1 }
 0x398   : > { %v3124_v63 = vsel %vm501_vm0, %v3072_v5, %v3074_v44  ;;  %v18118_v5 = vmax.f32 %v12891_v14, 0.0  ;;  %v3372_v14 = vsel %vm1248_vm2, %v3312_v57, %v3314_v59 }
 0x399   : > { %v13558_v6 = vmax.f32 %v3008_v7, %v3124_v63  ;;  %v3123_v42 = vsel %vm501_vm0, %v3071_v33, %v3073_v60  ;;  %v10234_v26 = vpop.permute.xlu2 %10233 }
 0x39a   : > { %v13563_v48 = vmax.f32 %v3007_v13, %v3123_v42  ;;  %v3011_v50 = vmax.f32 %v18118_v5, %v2895_v9  ;;  %v3373_v13 = vsel %vm1248_vm2, %v3313_v20, %v3315_v25  ;;  %v3122_v42 = vsel %vm501_vm0, %v3074_v44, %v3076_v16  ;;  %v9026_v5 = vld [vmem:[%s17329_s3 + $0x20] sm:$0xf]  ;;  %v9912_v44 = vld [vmem:[%s17329_s3 + $0x24] sm:$0xf0] }
 0x39b   : > { %v17514_v28 = vrot.slane %v13558_v6, 2 }
 0x39c   : > { %18116 = vst [vmem:[#allocation9_spill] sm:$0xff] %v13563_v48  ;;  %v17513_v7 = vrot.slane %v13563_v48, 2  ;;  %v3075_v63 = vrot.slane %v3011_v50, 1 }
 0x39d   : > { %v3371_v33 = vsel %vm1248_vm2, %v3315_v25, %v17514_v28 }
 0x39e   : > { %v3899_v53 = vpop.f32.mrf.mxu1  ;;  %v3425_v38 = vpack.c.bf16 %v3371_v33, %v3373_v13  ;;  %v3370_v17 = vsel %vm1248_vm2, %v3314_v59, %v17513_v7  ;;  %v3121_v25 = vsel %vm501_vm0, %v3073_v60, %v3075_v63  ;;  %v13598_v33 = vmax.f32 %v3010_v23, %v3122_v42 }
 0x39f   : > { %v3810_v54 = vpop.f32.mrf.mxu0  ;;  %v3424_v52 = vpack.c.bf16 %v3370_v17, %v3372_v14  ;;  %v18121_v13 = vmax.f32 %v12943_v49, 0.0  ;;  %v9027_v17 = vor.u32 %v9912_v44, %v9026_v5  ;;  %v13605_v14 = vmax.f32 %v3009_v35, %v3121_v25 }
 0x3a0   : > { %v13584_v9 = vadd.f32 %v3899_v53, %v3810_v54  ;;  %18120 = vst [vmem:[#allocation66_spill] sm:$0xff] %v13598_v33  ;;  %v10236_v54 = vunpack.i.h.bf16 %v10234_v26  ;;  %v3319_v35 = vrot.slane %v13598_v33, 2  ;;  %v18129_v33 = vmax.f32 %v12989_v47, 0.0 }
 0x3a1   : > { %v10224_v20 = vpop.permute.xlu0 %10223  ;;  %18122 = vst [vmem:[#allocation67_spill] sm:$0xff] %v13605_v14  ;;  %4143 = vmatpush.bf16.msra.mxu2 %v9027_v17  ;;  %v3318_v5 = vrot.slane %v13605_v14, 2  ;;  %v9028_v17 = vld [vmem:[%s17329_s3 + $0x28] sm:$0xf0] }
 0x3a2   : > { %18119 = vst [vmem:[#allocation68_spill] sm:$0xff] %v13584_v9  ;;  %v10226_v57 = vunpack.i.h.bf16 %v10224_v20  ;;  %v10225_v59 = vunpack.i.l.bf16 %v10224_v20  ;;  %v18123_v20 = vmax.f32 %v12938_v58, 0.0 }
 0x3a3   : > { %8984 = vmatmul.msk.bf16.gmra.mxu3 %vm3567_vm7, %v3425_v38  ;;  %9000 = vmatmul.msk.bf16.gmra.mxu1 %vm3567_vm7, %v3425_v38 }
 0x3a4   : > { %3671 = vmatmul.bf16.gmra.mxu2 %v3424_v52  ;;  %3849 = vmatmul.bf16.gmra.mxu0 %v3424_v52  ;;  %v13602_v60 = vmax.f32 %v18121_v13, %v10226_v57  ;;  %v2896_v53 = vsel %vm2874_vm6, %v10225_v59, %v10226_v57  ;;  %v3721_v38 = vpop.f32.mrf.mxu3  ;;  %v10235_v52 = vunpack.i.l.bf16 %v10234_v26 }
 0x3a5   : > { %v3013_v7 = vmax.f32 %v18123_v20, %v2896_v53  ;;  %v3632_v28 = vpop.f32.mrf.mxu2 }
 0x3a6   : > { %v3078_v9 = vrot.slane %v13602_v60, 1  ;;  %v13610_v23 = vadd.f32 %v3721_v38, %v3632_v28  ;;  %v3901_v42 = vpop.f32.mrf.mxu1  ;;  %v2898_v25 = vsel %vm2874_vm6, %v10235_v52, %v10236_v54 }
 0x3a7   : > { %v3077_v49 = vrot.slane %v3013_v7, 1  ;;  %v3812_v13 = vpop.f32.mrf.mxu0 }
 0x3a8   : > { %v3120_v57 = vsel %vm501_vm0, %v3076_v16, %v3078_v9  ;;  %v13614_v59 = vadd.f32 %v3901_v42, %v3812_v13  ;;  %v9911_v16 = vld [vmem:[%s17329_s3 + $0x24] sm:$0xf]  ;;  %v18128_v13 = vmax.f32 %v12992_v46, 0.0  ;;  %v18131_v46 = vrot.slane %v13563_v48, 2 }
 0x3a9   : > { %v13618_v58 = vmax.f32 %v3012_v56, %v3120_v57  ;;  %v3119_v26 = vsel %vm501_vm0, %v3075_v63, %v3077_v49  ;;  %v10229_v28 = vpop.permute.xlu1 %10228  ;;  %v18126_v56 = vmax.f32 %v13053_v11, 0.0  ;;  %v9031_v20 = vor.u32 %v9911_v16, %v9028_v17 }
 0x3aa   : > { %v13623_v44 = vmax.f32 %v3011_v50, %v3119_v26  ;;  %v10231_v53 = vunpack.i.h.bf16 %v10229_v28  ;;  %v10230_v38 = vunpack.i.l.bf16 %v10229_v28  ;;  %v18127_v50 = vmax.f32 %v13038_v12, 0.0 }
 0x3ab   : > { %18124 = vst [vmem:[#allocation13_spill] sm:$0xff] %v13618_v58  ;;  %v13633_v52 = vmax.f32 %v18126_v56, %v10236_v54  ;;  %v3321_v63 = vrot.slane %v13618_v58, 2  ;;  %v18130_v16 = vrot.slane %v13558_v6, 2  ;;  %4321 = vmatpush.bf16.msra.mxu0 %v9031_v20  ;;  %v9074_v20 = vld [vmem:[%s17329_s3 + $0x80] sm:$0xf] }
 0x3ac   : > { %18125 = vst [vmem:[#allocation14_spill] sm:$0xff] %v13623_v44  ;;  %v13638_v42 = vmax.f32 %v18127_v50, %v2898_v25  ;;  %v3016_v57 = vmax.f32 %v18128_v13, %v10231_v53  ;;  %v2897_v26 = vsel %vm2874_vm6, %v10230_v38, %v10231_v53  ;;  %v3723_v28 = vpop.f32.mrf.mxu3  ;;  %v3320_v14 = vrot.slane %v13623_v44, 2 }
 0x3ad   : > { %v3015_v11 = vmax.f32 %v18129_v33, %v2897_v26  ;;  %v3634_v54 = vpop.f32.mrf.mxu2  ;;  %v3367_v56 = vsel %vm1248_vm2, %v3319_v35, %v3321_v63  ;;  %v3369_v12 = vsel %vm1248_vm2, %v18130_v16, %v3319_v35  ;;  %v3368_v25 = vsel %vm1248_vm2, %v18131_v46, %v3318_v5 }
 0x3ae   : > { %v3080_v53 = vrot.slane %v3016_v57, 1  ;;  %v13656_v38 = vadd.f32 %v3723_v28, %v3634_v54  ;;  %v3904_v47 = vpop.f32.mrf.mxu1  ;;  %v3427_v33 = vpack.c.bf16 %v3367_v56, %v3369_v12  ;;  %v3366_v17 = vsel %vm1248_vm2, %v3318_v5, %v3320_v14  ;;  %v9924_v28 = vld [vmem:[%s17329_s3 + $0x84] sm:$0xf0] }
 0x3af   : > { %v3082_v50 = vrot.slane %v13633_v52, 1  ;;  %v3079_v13 = vrot.slane %v3015_v11, 1  ;;  %v3815_v26 = vpop.f32.mrf.mxu0  ;;  %v3426_v44 = vpack.c.bf16 %v3366_v17, %v3368_v25  ;;  %v3081_v35 = vrot.slane %v13638_v42, 1 }
 0x3b0   : > { %v13662_v16 = vadd.f32 %v3904_v47, %v3815_v26  ;;  %v3118_v5 = vsel %vm501_vm0, %v3078_v9, %v3080_v53  ;;  %v9075_v46 = vor.u32 %v9924_v28, %v9074_v20 }
 0x3b1   : > { %v3116_v54 = vsel %vm501_vm0, %v3080_v53, %v3082_v50  ;;  %v3115_v56 = vsel %vm501_vm0, %v3079_v13, %v3081_v35  ;;  %v3117_v12 = vsel %vm501_vm0, %v3077_v49, %v3079_v13  ;;  %v13681_v25 = vmax.f32 %v13602_v60, %v3118_v5 }
 0x3b2   : > { %v13683_v9 = vmax.f32 %v3016_v57, %v3116_v54  ;;  %4234 = vmatpush.bf16.msra.mxu3 %v9075_v46  ;;  %v13685_v53 = vmax.f32 %v3013_v7, %v3117_v12  ;;  %v13687_v17 = vmax.f32 %v3015_v11, %v3115_v56  ;;  %v9923_v11 = vld [vmem:[%s17329_s3 + $0x84] sm:$0xf]  ;;  %v9076_v54 = vld [vmem:[%s17329_s3 + $0x88] sm:$0xf0]  ;;  %v18135_v12 = vmax.f32 %v13096_v10, 0.0 }
 0x3b3   : > { %8985 = vmatmul.msk.bf16.gmra.mxu3 %vm3567_vm7, %v3427_v33  ;;  %9001 = vmatmul.msk.bf16.gmra.mxu1 %vm3567_vm7, %v3427_v33  ;;  %18132 = vst [vmem:[#allocation70_spill] sm:$0xff] %v13681_v25  ;;  %v9079_v56 = vor.u32 %v9923_v11, %v9076_v54 }
 0x3b4   : > { %3676 = vmatmul.bf16.gmra.mxu2 %v3426_v44  ;;  %3854 = vmatmul.bf16.gmra.mxu0 %v3426_v44  ;;  %v3726_v47 = vpop.f32.mrf.mxu3  ;;  %18133 = vst [vmem:[#allocation69_spill] sm:$0xff] %v13685_v53  ;;  %v3323_v44 = vrot.slane %v13681_v25, 2  ;;  %v17525_v60 = vrot.slane %v13683_v9, 2  ;;  %v3322_v57 = vrot.slane %v13685_v53, 2  ;;  %v18137_v11 = vrot.slane %v13687_v17, 2 }
 0x3b5   : > { %v3637_v26 = vpop.f32.mrf.mxu2  ;;  %4412 = vmatpush.bf16.msra.mxu1 %v9079_v56 }
 0x3b6   : > { %v13689_v58 = vadd.f32 %v3726_v47, %v3637_v26  ;;  %v3906_v49 = vpop.f32.mrf.mxu1  ;;  %v3362_v10 = vsel %vm1248_vm2, %v3322_v57, %v18137_v11 }
 0x3b7   : > { %v3817_v13 = vpop.f32.mrf.mxu0 }
 0x3b8   : > { %v13691_v33 = vadd.f32 %v3906_v49, %v3817_v13  ;;  %v3363_v49 = vsel %vm1248_vm2, %v3323_v44, %v17525_v60  ;;  %v3365_v13 = vsel %vm1248_vm2, %v3321_v63, %v3323_v44  ;;  %v10249_v44 = vpop.permute.xlu2 %10248 }
 0x3b9   : > { %v10239_v20 = vpop.permute.xlu0 %10238  ;;  %v3429_v63 = vpack.c.bf16 %v3363_v49, %v3365_v13  ;;  %v10250_v49 = vunpack.i.l.bf16 %v10249_v44 }
 0x3ba   : > { %18134 = vst [vmem:[#allocation17_spill] sm:$0xff] %v13691_v33  ;;  %v10241_v7 = vunpack.i.h.bf16 %v10239_v20  ;;  %v10240_v5 = vunpack.i.l.bf16 %v10239_v20  ;;  %v18136_v20 = vmax.f32 %v13090_v31, 0.0 }
 0x3bc   : > { %v3020_v46 = vmax.f32 %v18135_v12, %v10241_v7  ;;  %v2899_v47 = vsel %vm2874_vm6, %v10240_v5, %v10241_v7  ;;  %v3728_v26 = vpop.f32.mrf.mxu3  ;;  %v3364_v7 = vsel %vm1248_vm2, %v3320_v14, %v3322_v57  ;;  %v10251_v57 = vunpack.i.h.bf16 %v10249_v44 }
 0x3bd   : > { %v3019_v28 = vmax.f32 %v18136_v20, %v2899_v47  ;;  %v3639_v53 = vpop.f32.mrf.mxu2  ;;  %v3428_v47 = vpack.c.bf16 %v3362_v10, %v3364_v7 }
 0x3be   : > { %v3084_v5 = vrot.slane %v3020_v46, 1  ;;  %v13720_v54 = vadd.f32 %v3728_v26, %v3639_v53  ;;  %v3909_v12 = vpop.f32.mrf.mxu1  ;;  %v9910_v26 = vld [vmem:[%s17329_s3 + $0x14] sm:$0xf0] }
 0x3bf   : > { %v3083_v60 = vrot.slane %v3019_v28, 1  ;;  %v3820_v25 = vpop.f32.mrf.mxu0 }
 0x3c0   : > { %18138 = vst [vmem:[#allocation71_spill] sm:$0xff] %v13720_v54  ;;  %v13722_v31 = vadd.f32 %v3909_v12, %v3820_v25  ;;  %v3114_v11 = vsel %vm501_vm0, %v3082_v50, %v3084_v5  ;;  %v9018_v25 = vld [vmem:[%s17329_s3 + $0x10] sm:$0xf]  ;;  %v18140_v50 = vmax.f32 %v13150_v24, 0.0 }
 0x3c1   : > { %v10244_v20 = vpop.permute.xlu1 %10243  ;;  %v3113_v56 = vsel %vm501_vm0, %v3081_v35, %v3083_v60  ;;  %v9019_v12 = vor.u32 %v9910_v26, %v9018_v25  ;;  %v18142_v35 = vmax.f32 %v13141_v32, 0.0  ;;  %v9020_v25 = vld [vmem:[%s17329_s3 + $0x18] sm:$0xf0] }
 0x3c2   : > { %18139 = vst [vmem:[#allocation18_spill] sm:$0xff] %v13722_v31  ;;  %v10246_v14 = vunpack.i.h.bf16 %v10244_v20  ;;  %v10245_v53 = vunpack.i.l.bf16 %v10244_v20  ;;  %v13745_v31 = vmax.f32 %v13638_v42, %v3113_v56  ;;  %v9909_v56 = vld [vmem:[%s17329_s3 + $0x14] sm:$0xf] }
 0x3c3   : > { %8986 = vmatmul.msk.bf16.gmra.mxu3 %vm3567_vm7, %v3429_v63  ;;  %9002 = vmatmul.msk.bf16.gmra.mxu1 %vm3567_vm7, %v3429_v63  ;;  %v13740_v63 = vmax.f32 %v13633_v52, %v3114_v11 }
 0x3c4   : > { %3681 = vmatmul.bf16.gmra.mxu2 %v3428_v47  ;;  %3859 = vmatmul.bf16.gmra.mxu0 %v3428_v47  ;;  %v3022_v13 = vmax.f32 %v18140_v50, %v10246_v14  ;;  %v2900_v10 = vsel %vm2874_vm6, %v10245_v53, %v10246_v14  ;;  %v3731_v7 = vpop.f32.mrf.mxu3  ;;  %18143 = vst [vmem:[#allocation73_spill] sm:$0xff] %v13745_v31 }
 0x3c5   : > { %18141 = vst [vmem:[#allocation49_spill] sm:$0xff] %v13740_v63  ;;  %v3021_v47 = vmax.f32 %v18142_v35, %v2900_v10  ;;  %v3642_v20 = vpop.f32.mrf.mxu2  ;;  %4144 = vmatpush.bf16.msra.mxu2 %v9019_v12  ;;  %v2901_v14 = vsel %vm2874_vm6, %v10250_v49, %v10251_v57  ;;  %v3327_v53 = vrot.slane %v13740_v63, 2  ;;  %v9023_v49 = vor.u32 %v9909_v56, %v9020_v25 }
 0x3c6   : > { %v3086_v54 = vrot.slane %v3022_v13, 1  ;;  %v13747_v33 = vadd.f32 %v3731_v7, %v3642_v20  ;;  %v3911_v44 = vpop.f32.mrf.mxu1 }
 0x3c7   : > { %v3085_v24 = vrot.slane %v3021_v47, 1  ;;  %v3822_v50 = vpop.f32.mrf.mxu0  ;;  %4322 = vmatpush.bf16.msra.mxu0 %v9023_v49 }
 0x3c8   : > { %v3112_v52 = vsel %vm501_vm0, %v3084_v5, %v3086_v54  ;;  %v13752_v11 = vadd.f32 %v3911_v44, %v3822_v50  ;;  %v3326_v5 = vrot.slane %v13745_v31, 2  ;;  %v18148_v50 = vrot.slane %v13683_v9, 2 }
 0x3c9   : > { %v13754_v32 = vmax.f32 %v3020_v46, %v3112_v52  ;;  %v3111_v42 = vsel %vm501_vm0, %v3083_v60, %v3085_v24  ;;  %v18146_v46 = vmax.f32 %v13215_v45, 0.0  ;;  %v18147_v60 = vmax.f32 %v13204_v4, 0.0 }
 0x3ca   : > { %v13765_v26 = vmax.f32 %v3019_v28, %v3111_v42  ;;  %v3361_v45 = vsel %vm1248_vm2, %v18148_v50, %v3327_v53  ;;  %v18149_v52 = vrot.slane %v13687_v17, 2 }
 0x3cb   : > { %18144 = vst [vmem:[#allocation72_spill] sm:$0xff] %v13754_v32  ;;  %v3024_v10 = vmax.f32 %v18146_v46, %v10251_v57  ;;  %v3023_v7 = vmax.f32 %v18147_v60, %v2901_v14  ;;  %v17528_v12 = vrot.slane %v13754_v32, 2 }
 0x3cc   : > { %18145 = vst [vmem:[#allocation20_spill] sm:$0xff] %v13765_v26  ;;  %v3733_v35 = vpop.f32.mrf.mxu3  ;;  %v3328_v20 = vrot.slane %v13765_v26, 2  ;;  %v3360_v42 = vsel %vm1248_vm2, %v18149_v52, %v3326_v5  ;;  %v18153_v26 = vmax.f32 %v13238_v3, 0.0 }
 0x3cd   : > { %v3644_v44 = vpop.f32.mrf.mxu2  ;;  %v3359_v28 = vsel %vm1248_vm2, %v3327_v53, %v17528_v12  ;;  %v3088_v56 = vrot.slane %v3024_v10, 1  ;;  %v3087_v25 = vrot.slane %v3023_v7, 1 }
 0x3ce   : > { %v13782_v57 = vadd.f32 %v3733_v35, %v3644_v44  ;;  %v3431_v4 = vpack.c.bf16 %v3359_v28, %v3361_v45  ;;  %v3358_v14 = vsel %vm1248_vm2, %v3326_v5, %v3328_v20  ;;  %v3914_v49 = vpop.f32.mrf.mxu1  ;;  %v10264_v28 = vpop.permute.xlu2 %10263 }
 0x3cf   : > { %v3430_v46 = vpack.c.bf16 %v3358_v14, %v3360_v42  ;;  %v3110_v12 = vsel %vm501_vm0, %v3086_v54, %v3088_v56  ;;  %v3109_v53 = vsel %vm501_vm0, %v3085_v24, %v3087_v25  ;;  %v18152_v54 = vmax.f32 %v13242_v19, 0.0 }
 0x3d0   : > { %v3825_v60 = vpop.f32.mrf.mxu0  ;;  %v13798_v45 = vmax.f32 %v3022_v13, %v3110_v12  ;;  %v13800_v14 = vmax.f32 %v3021_v47, %v3109_v53 }
 0x3d1   : > { %v13794_v35 = vadd.f32 %v3914_v49, %v3825_v60  ;;  %v10254_v44 = vpop.permute.xlu0 %10253  ;;  %v10266_v49 = vunpack.i.h.bf16 %v10264_v28  ;;  %v10265_v60 = vunpack.i.l.bf16 %v10264_v28 }
 0x3d2   : > { %v10256_v5 = vunpack.i.h.bf16 %v10254_v44  ;;  %v10255_v50 = vunpack.i.l.bf16 %v10254_v44  ;;  %18151 = vst [vmem:[#allocation41_spill] sm:$0xff] %v13800_v14  ;;  %v3331_v19 = vrot.slane %v13798_v45, 2  ;;  %v3330_v53 = vrot.slane %v13800_v14, 2 }
 0x3d3   : > { %18150 = vst [vmem:[#allocation21_spill] sm:$0xff] %v13794_v35  ;;  %8987 = vmatmul.msk.bf16.gmra.mxu3 %vm3567_vm7, %v3431_v4  ;;  %9003 = vmatmul.msk.bf16.gmra.mxu1 %vm3567_vm7, %v3431_v4 }
 0x3d4   : > { %3686 = vmatmul.bf16.gmra.mxu2 %v3430_v46  ;;  %3864 = vmatmul.bf16.gmra.mxu0 %v3430_v46  ;;  %v3026_v52 = vmax.f32 %v18152_v54, %v10256_v5  ;;  %v2902_v24 = vsel %vm2874_vm6, %v10255_v50, %v10256_v5  ;;  %v3736_v42 = vpop.f32.mrf.mxu3  ;;  %v2904_v5 = vsel %vm2874_vm6, %v10265_v60, %v10266_v49  ;;  %v18157_v60 = vmax.f32 %v13352_v0, 0.0 }
 0x3d5   : > { %v3025_v35 = vmax.f32 %v18153_v26, %v2902_v24 }
 0x3d6   : > { %v3647_v4 = vpop.f32.mrf.mxu2  ;;  %v3090_v31 = vrot.slane %v3026_v52, 1  ;;  %v3916_v13 = vpop.f32.mrf.mxu1 }
 0x3d7   : > { %v13807_v44 = vadd.f32 %v3736_v42, %v3647_v4  ;;  %v3089_v46 = vrot.slane %v3025_v35, 1 }
 0x3d8   : > { %v3108_v47 = vsel %vm501_vm0, %v3088_v56, %v3090_v31  ;;  %v3827_v12 = vpop.f32.mrf.mxu0  ;;  %v18156_v56 = vmax.f32 %v13369_v43, 0.0 }
 0x3d9   : > { %v13814_v28 = vmax.f32 %v3024_v10, %v3108_v47  ;;  %v3107_v3 = vsel %vm501_vm0, %v3087_v25, %v3089_v46  ;;  %v13818_v26 = vadd.f32 %v3916_v13, %v3827_v12  ;;  %v10259_v50 = vpop.permute.xlu1 %10258  ;;  %v13829_v10 = vmax.f32 %v18157_v60, %v2904_v5 }
 0x3da   : > { %v13820_v54 = vmax.f32 %v3023_v7, %v3107_v3  ;;  %v10261_v24 = vunpack.i.h.bf16 %v10259_v50  ;;  %v10260_v42 = vunpack.i.l.bf16 %v10259_v50  ;;  %v13824_v4 = vmax.f32 %v18156_v56, %v10266_v49 }
 0x3db   : > { %18154 = vst [vmem:[#allocation75_spill] sm:$0xff] %v13814_v28  ;;  %v3333_v14 = vrot.slane %v13814_v28, 2  ;;  %v18158_v47 = vmax.f32 %v13293_v40, 0.0  ;;  %v18159_v3 = vmax.f32 %v13289_v61, 0.0  ;;  %v18160_v56 = vrot.slane %v13754_v32, 2 }
 0x3dc   : > { %18155 = vst [vmem:[#allocation74_spill] sm:$0xff] %v13820_v54  ;;  %v2903_v13 = vsel %vm2874_vm6, %v10260_v42, %v10261_v24  ;;  %v3738_v12 = vpop.f32.mrf.mxu3  ;;  %v3332_v7 = vrot.slane %v13820_v54, 2  ;;  %v3356_v40 = vsel %vm1248_vm2, %v3328_v20, %v3330_v53  ;;  %v3094_v60 = vrot.slane %v13824_v4, 1 }
 0x3dd   : > { %v3028_v25 = vmax.f32 %v18158_v47, %v10261_v24  ;;  %v3027_v50 = vmax.f32 %v18159_v3, %v2903_v13  ;;  %v3355_v49 = vsel %vm1248_vm2, %v3331_v19, %v3333_v14  ;;  %v3357_v0 = vsel %vm1248_vm2, %v18160_v56, %v3331_v19 }
 0x3de   : > { %v3649_v43 = vpop.f32.mrf.mxu2  ;;  %v3433_v42 = vpack.c.bf16 %v3355_v49, %v3357_v0  ;;  %v3354_v61 = vsel %vm1248_vm2, %v3330_v53, %v3332_v7  ;;  %v3919_v13 = vpop.f32.mrf.mxu1  ;;  %v3093_v54 = vrot.slane %v13829_v10, 1  ;;  %v9010_v49 = vld [vmem:[%s17329_s3] sm:$0xf] }
 0x3df   : > { %v3092_v5 = vrot.slane %v3028_v25, 1  ;;  %v13845_v24 = vadd.f32 %v3738_v12, %v3649_v43  ;;  %v3091_v47 = vrot.slane %v3027_v50, 1  ;;  %v3432_v3 = vpack.c.bf16 %v3354_v61, %v3356_v40 }
 0x3e0   : > { %v3830_v28 = vpop.f32.mrf.mxu0 }
 0x3e1   : > { %v3104_v19 = vsel %vm501_vm0, %v3092_v5, %v3094_v60  ;;  %v3106_v20 = vsel %vm501_vm0, %v3090_v31, %v3092_v5  ;;  %v3103_v12 = vsel %vm501_vm0, %v3091_v47, %v3093_v54  ;;  %v3105_v53 = vsel %vm501_vm0, %v3089_v46, %v3091_v47  ;;  %v9908_v31 = vld [vmem:[%s17329_s3 + $0x4] sm:$0xf0] }
 0x3e2   : > { %v13860_v43 = vadd.f32 %v3919_v13, %v3830_v28  ;;  %v13869_v56 = vmax.f32 %v3026_v52, %v3106_v20  ;;  %v13871_v0 = vmax.f32 %v3028_v25, %v3104_v19  ;;  %v9011_v46 = vor.u32 %v9908_v31, %v9010_v49  ;;  %v9012_v20 = vld [vmem:[%s17329_s3 + $0x8] sm:$0xf0] }
 0x3e3   : > { %8988 = vmatmul.msk.bf16.gmra.mxu3 %vm3567_vm7, %v3433_v42  ;;  %9004 = vmatmul.msk.bf16.gmra.mxu1 %vm3567_vm7, %v3433_v42  ;;  %v13873_v28 = vmax.f32 %v3025_v35, %v3105_v53  ;;  %v13875_v5 = vmax.f32 %v3027_v50, %v3103_v12  ;;  %v9907_v50 = vld [vmem:[%s17329_s3 + $0x4] sm:$0xf]  ;;  %v18167_v31 = vmax.f32 %v13412_v22, 0.0 }
 0x3e4   : > { %18161 = vst [vmem:[#allocation32_spill] sm:$0xff] %v13860_v43  ;;  %3691 = vmatmul.bf16.gmra.mxu2 %v3432_v3  ;;  %3869 = vmatmul.bf16.gmra.mxu0 %v3432_v3  ;;  %v3741_v40 = vpop.f32.mrf.mxu3  ;;  %v3335_v3 = vrot.slane %v13869_v56, 2  ;;  %v3337_v43 = vrot.slane %v13871_v0, 2  ;;  %v9015_v49 = vor.u32 %v9907_v50, %v9012_v20 }
 0x3e5   : > { %18162 = vst [vmem:[#allocation33_spill] sm:$0xff] %v13869_v56  ;;  %4145 = vmatpush.bf16.msra.mxu2 %v9011_v46  ;;  %v3334_v19 = vrot.slane %v13873_v28, 2  ;;  %v3336_v35 = vrot.slane %v13875_v5, 2 }
 0x3e6   : > { %18163 = vst [vmem:[#allocation51_spill] sm:$0xff] %v13871_v0  ;;  %v3652_v42 = vpop.f32.mrf.mxu2  ;;  %v3921_v47 = vpop.f32.mrf.mxu1  ;;  %4323 = vmatpush.bf16.msra.mxu0 %v9015_v49 }
 0x3e7   : > { %18164 = vst [vmem:[#allocation40_spill] sm:$0xff] %v13873_v28  ;;  %v13877_v61 = vadd.f32 %v3741_v40, %v3652_v42  ;;  %v3352_v22 = vsel %vm1248_vm2, %v3332_v7, %v3334_v19 }
 0x3e8   : > { %18165 = vst [vmem:[#allocation47_spill] sm:$0xff] %v13875_v5  ;;  %v3832_v13 = vpop.f32.mrf.mxu0  ;;  %v18168_v5 = vmax.f32 %v13404_v2, 0.0 }
 0x3e9   : > { %v13881_v52 = vadd.f32 %v3921_v47, %v3832_v13  ;;  %v3351_v47 = vsel %vm1248_vm2, %v3335_v3, %v3337_v43  ;;  %v3353_v13 = vsel %vm1248_vm2, %v3333_v14, %v3335_v3 }
 0x3ea   : > { %v10269_v25 = vpop.permute.xlu0 %10268 }
 0x3eb   : > { %18166 = vst [vmem:[#allocation22_spill] sm:$0xff] %v13881_v52  ;;  %v10271_v12 = vunpack.i.h.bf16 %v10269_v25  ;;  %v10270_v53 = vunpack.i.l.bf16 %v10269_v25  ;;  %v3350_v25 = vsel %vm1248_vm2, %v3334_v19, %v3336_v35  ;;  %v18169_v19 = vmax.f32 %v13450_v8, 0.0 }
 0x3ec   : > { %v3743_v42 = vpop.f32.mrf.mxu3  ;;  %v3434_v52 = vpack.c.bf16 %v3350_v25, %v3352_v22 }
 0x3ed   : > { %v3032_v40 = vmax.f32 %v18167_v31, %v10271_v12  ;;  %v2905_v46 = vsel %vm2874_vm6, %v10270_v53, %v10271_v12  ;;  %v3435_v31 = vpack.c.bf16 %v3351_v47, %v3353_v13 }
 0x3ee   : > { %v3031_v0 = vmax.f32 %v18168_v5, %v2905_v46  ;;  %v3654_v28 = vpop.f32.mrf.mxu2  ;;  %v3924_v53 = vpop.f32.mrf.mxu1 }
 0x3ef   : > { %v3096_v50 = vrot.slane %v3032_v40, 1  ;;  %v13904_v20 = vadd.f32 %v3743_v42, %v3654_v28 }
 0x3f0   : > { %v3095_v12 = vrot.slane %v3031_v0, 1 }
 0x3f1   : > { %v3835_v56 = vpop.f32.mrf.mxu0  ;;  %v10274_v2 = vpop.permute.xlu1 %10273  ;;  %v3102_v5 = vsel %vm501_vm0, %v3094_v60, %v3096_v50  ;;  %v18170_v60 = vmax.f32 %v13439_v27, 0.0 }
 0x3f2   : > { %v13906_v14 = vadd.f32 %v3924_v53, %v3835_v56  ;;  %v10276_v3 = vunpack.i.h.bf16 %v10274_v2  ;;  %v10275_v7 = vunpack.i.l.bf16 %v10274_v2  ;;  %v3101_v28 = vsel %vm501_vm0, %v3093_v54, %v3095_v12 }
 0x3f3   : > { %8989 = vmatmul.msk.bf16.gmra.mxu3 %vm3567_vm7, %v3435_v31  ;;  %9005 = vmatmul.msk.bf16.gmra.mxu1 %vm3567_vm7, %v3435_v31  ;;  %v13918_v42 = vmax.f32 %v13824_v4, %v3102_v5  ;;  %v13923_v25 = vmax.f32 %v13829_v10, %v3101_v28 }
 0x3f4   : > { %3696 = vmatmul.bf16.gmra.mxu2 %v3434_v52  ;;  %3874 = vmatmul.bf16.gmra.mxu0 %v3434_v52  ;;  %v3034_v49 = vmax.f32 %v18169_v19, %v10276_v3  ;;  %v2906_v56 = vsel %vm2874_vm6, %v10275_v7, %v10276_v3  ;;  %v3746_v46 = vpop.f32.mrf.mxu3 }
 0x3f5   : > { %v3033_v47 = vmax.f32 %v18170_v60, %v2906_v56  ;;  %18171 = vst [vmem:[#allocation23_spill] sm:$0xff] %v13923_v25  ;;  %v3339_v27 = vrot.slane %v13918_v42, 2  ;;  %v3338_v3 = vrot.slane %v13923_v25, 2 }
 0x3f6   : > { %v3098_v22 = vrot.slane %v3034_v49, 1  ;;  %v3926_v52 = vpop.f32.mrf.mxu1 }
 0x3f7   : > { %v3657_v13 = vpop.f32.mrf.mxu2  ;;  %v3097_v54 = vrot.slane %v3033_v47, 1  ;;  %v3348_v60 = vsel %vm1248_vm2, %v3336_v35, %v3338_v3  ;;  %v9962_v35 = vld [vmem:[%s17329_s3 + $0x1c4] sm:$0xf0] }
 0x3f8   : > { %v13925_v53 = vadd.f32 %v3746_v46, %v3657_v13  ;;  %v3100_v8 = vsel %vm501_vm0, %v3096_v50, %v3098_v22 }
 0x3f9   : > { %v3837_v31 = vpop.f32.mrf.mxu0  ;;  %v13929_v2 = vmax.f32 %v3032_v40, %v3100_v8  ;;  %v3099_v4 = vsel %vm501_vm0, %v3095_v12, %v3097_v54  ;;  %v3349_v12 = vsel %vm1248_vm2, %v3337_v43, %v3339_v27  ;;  %v18174_v43 = vrot.slane %v12736_v18, 1 }
 0x3fa   : > { %v13934_v5 = vmax.f32 %v3031_v0, %v3099_v4  ;;  %v13936_v10 = vadd.f32 %v3926_v52, %v3837_v31  ;;  %v18173_v31 = vrot.slane %v12715_v30, 1  ;;  %v9199_v30 = vld [vmem:[%s17329_s3 + $0x1c0] sm:$0xf] }
 0x3fb   : > { %v3341_v7 = vrot.slane %v13929_v2, 2 }
 0x3fc   : > { %18172 = vst [vmem:[#allocation34_spill] sm:$0xff] %v13934_v5  ;;  %v3748_v28 = vpop.f32.mrf.mxu3  ;;  %v3340_v19 = vrot.slane %v13934_v5, 2  ;;  %v3162_v4 = vsel %vm501_vm0, %v3098_v22, %v18173_v31  ;;  %v9140_v22 = vld [vmem:[%s17329_s3 + $0x1f0] sm:$0x11]  ;;  %v9201_v31 = vld [vmem:[%s17329_s3 + $0x1c8] sm:$0xf0] }
 0x3fd   : > { %v3347_v40 = vsel %vm1248_vm2, %v3339_v27, %v3341_v7  ;;  %v3161_v27 = vsel %vm501_vm0, %v3097_v54, %v18174_v43  ;;  %v13972_v18 = vmax.f32 %v3034_v49, %v3162_v4  ;;  %v9200_v54 = vor.u32 %v9962_v35, %v9199_v30 }
 0x3fe   : > { %v3437_v0 = vpack.c.bf16 %v3347_v40, %v3349_v12  ;;  %v3346_v46 = vsel %vm1248_vm2, %v3338_v3, %v3340_v19  ;;  %v4738_v4 = vunpack.c.h.b16 %v9140_v22  ;;  %vm7401_vm0 = vcmask 1047559  }
 0x3ff   : > { %v3659_v50 = vpop.f32.mrf.mxu2  ;;  %v3436_v52 = vpack.c.bf16 %v3346_v46, %v3348_v60  ;;  %18175 = vst [vmem:[#allocation48_spill] sm:$0xff] %v13972_v18  ;;  %4835 = vmatpush.bf16.msrb.mxu2 %v9200_v54 }
 0x400   : > { %v13945_v56 = vadd.f32 %v3748_v28, %v3659_v50  ;;  %v3929_v13 = vpop.f32.mrf.mxu1  ;;  %v4737_v28 = vunpack.c.l.b16 %v9140_v22  ;;  %v13974_v50 = vmax.f32 %v3033_v47, %v3161_v27  ;;  %v9961_v47 = vld [vmem:[%s17329_s3 + $0x1c4] sm:$0xf]  ;;  %v4760_v27 = vpack.c.b16 %v4738_v4, %v4738_v4 }
 0x401   : > { %v3840_v8 = vpop.f32.mrf.mxu0  ;;  %v9204_v43 = vor.u32 %v9961_v47, %v9201_v31 }
 0x402   : > { %v13955_v5 = vadd.f32 %v3929_v13, %v3840_v8  ;;  %18176 = vst [vmem:[#allocation24_spill] sm:$0xff] %v13974_v50  ;;  %v3343_v13 = vrot.slane %v13972_v18, 2  ;;  %v3342_v49 = vrot.slane %v13974_v50, 2 }
 0x403   : > { %8990 = vmatmul.msk.bf16.gmra.mxu3 %vm3567_vm7, %v3437_v0  ;;  %9006 = vmatmul.msk.bf16.gmra.mxu1 %vm3567_vm7, %v3437_v0  ;;  %v4759_v0 = vpack.c.b16 %v4737_v28, %v4737_v28 }
 0x404   : > { %3701 = vmatmul.bf16.gmra.mxu2 %v3436_v52  ;;  %3879 = vmatmul.bf16.gmra.mxu0 %v3436_v52  ;;  %v3345_v35 = vsel %vm1248_vm2, %v3341_v7, %v3343_v13 }
 0x405   : > { %v4830_v52 = vsel %vm3616_vm5, %v4759_v0, 0  ;;  %5013 = vmatpush.bf16.msrb.mxu0 %v9204_v43  ;;  %v18178_v0 = vrot.slane %v12826_v21, 2 }
 0x406   : > { %v3751_v3 = vpop.f32.mrf.mxu3  ;;  %4929 = vmatpush.bf16.msrb.mxu3 %v4830_v52 }
 0x407   : > { %v3662_v40 = vpop.f32.mrf.mxu2  ;;  %v3406_v22 = vsel %vm1248_vm2, %v3342_v49, %v18178_v0 }
 0x408   : > { %v13976_v12 = vadd.f32 %v3751_v3, %v3662_v40  ;;  %v3931_v46 = vpop.f32.mrf.mxu1  ;;  %v18177_v3 = vrot.slane %v12815_v62, 2  ;;  %v3344_v40 = vsel %vm1248_vm2, %v3340_v19, %v3342_v49 }
 0x409   : > { %v3842_v60 = vpop.f32.mrf.mxu0  ;;  %v3438_v31 = vpack.c.bf16 %v3406_v22, %v3344_v40  ;;  %v18180_v40 = vld [vmem:[#allocation53_spill] sm:$0xff] }
 0x40a   : > { %v13980_v8 = vadd.f32 %v3931_v46, %v3842_v60  ;;  %v3407_v54 = vsel %vm1248_vm2, %v3343_v13, %v18177_v3  ;;  %v4833_v46 = vsel %vm3616_vm5, %v4760_v27, 0  ;;  %v3228_v0 = vpack.c.bf16 %v18180_v40, %v12815_v62  ;;  %v18197_v40 = vld [vmem:[#allocation44_spill] sm:$0xff] }
 0x40b   : > { %5107 = vmatpush.bf16.msrb.mxu1 %v4833_v46  ;;  %v3439_v52 = vpack.c.bf16 %v3407_v54, %v3345_v35  ;;  %v18181_v46 = vld [vmem:[#allocation37_spill] sm:$0xff] }
 0x40e   : > { %v3753_v30 = vpop.f32.mrf.mxu3 }
 0x40f   : > { %v3664_v28 = vpop.f32.mrf.mxu2 }
 0x410   : > { %v14002_v60 = vadd.f32 %v3753_v30, %v3664_v28  ;;  %v3934_v7 = vpop.f32.mrf.mxu1 }
 0x411   : > { %v3845_v47 = vpop.f32.mrf.mxu0 }
 0x412   : > { %v14004_v13 = vadd.f32 %v3934_v7, %v3845_v47  ;;  %v3227_v7 = vpack.c.bf16 %v18181_v46, %v12826_v21  ;;  %v9191_v47 = vld [vmem:[%s17329_s3 + $0x1b0] sm:$0xf] }
 0x413   : > { %8991 = vmatmul.msk.bf16.gmra.mxu3 %vm3567_vm7, %v3439_v52  ;;  %9007 = vmatmul.msk.bf16.gmra.mxu1 %vm3567_vm7, %v3439_v52 }
 0x414   : > { %3706 = vmatmul.bf16.gmra.mxu2 %v3438_v31  ;;  %3884 = vmatmul.bf16.gmra.mxu0 %v3438_v31  ;;  %v9960_v31 = vld [vmem:[%s17329_s3 + $0x1b4] sm:$0xf0] }
 0x416   : > { %v3756_v19 = vpop.f32.mrf.mxu3 }
 0x417   : > { %v3667_v4 = vpop.f32.mrf.mxu2 }
 0x418   : > { %v14008_v49 = vadd.f32 %v3756_v19, %v3667_v4  ;;  %v3936_v43 = vpop.f32.mrf.mxu1  ;;  %v9192_v4 = vor.u32 %v9960_v31, %v9191_v47 }
 0x419   : > { %v3847_v27 = vpop.f32.mrf.mxu0 }
 0x41a   : > { %v14010_v30 = vadd.f32 %v3936_v43, %v3847_v27  ;;  %4836 = vmatpush.bf16.msrb.mxu2 %v9192_v4  ;;  %v18186_v4 = vld [vmem:[#allocation39_spill] sm:$0xff] }
 0x41e   : > { %v3758_v3 = vpop.f32.mrf.mxu3 }
 0x41f   : > { %v3669_v35 = vpop.f32.mrf.mxu2 }
 0x420   : > { %v14012_v54 = vadd.f32 %v3758_v3, %v3669_v35  ;;  %v3939_v28 = vpop.f32.mrf.mxu1 }
 0x421   : > { %v3850_v22 = vpop.f32.mrf.mxu0 }
 0x422   : > { %18179 = vst [vmem:[#allocation35_spill] sm:$0xff] %v14012_v54  ;;  %v14018_v52 = vadd.f32 %v3939_v28, %v3850_v22  ;;  %v9193_v22 = vld [vmem:[%s17329_s3 + $0x1b8] sm:$0xf0] }
 0x423   : > { %9088 = vmatmul.msk.bf16.vlgmr.msra.gmra.mxu3 %vm3567_vm7, %v3228_v0  ;;  %9104 = vmatmul.msk.bf16.vlgmr.msra.gmra.mxu1 %vm3567_vm7, %v3228_v0  ;;  %v9959_v0 = vld [vmem:[%s17329_s3 + $0x1b4] sm:$0xf] }
 0x424   : > { %18182 = vst [vmem:[#allocation36_spill] sm:$0xff] %v14018_v52  ;;  %4146 = vmatmul.bf16.vlgmr.msra.gmra.mxu2 %v3227_v7  ;;  %4324 = vmatmul.bf16.vlgmr.msra.gmra.mxu0 %v3227_v7  ;;  %v9196_v7 = vor.u32 %v9959_v0, %v9193_v22 }
 0x426   : > { %v3761_v19 = vpop.f32.mrf.mxu3  ;;  %5014 = vmatpush.bf16.msrb.mxu0 %v9196_v7 }
 0x427   : > { %v3672_v43 = vpop.f32.mrf.mxu2 }
 0x428   : > { %v14028_v27 = vadd.f32 %v3761_v19, %v3672_v43  ;;  %v3941_v3 = vpop.f32.mrf.mxu1  ;;  %v18187_v43 = vld [vmem:[#allocation27_spill] sm:$0xff] }
 0x429   : > { %v3852_v35 = vpop.f32.mrf.mxu0 }
 0x42a   : > { %18183 = vst [vmem:[#allocation25_spill] sm:$0xff] %v14028_v27  ;;  %v14030_v28 = vadd.f32 %v3941_v3, %v3852_v35  ;;  %v3230_v27 = vpack.c.bf16 %v18187_v43, %v18186_v4  ;;  %v18188_v35 = vld [vmem:[#allocation26_spill] sm:$0xff] }
 0x42c   : > { %18184 = vst [vmem:[#allocation76_spill] sm:$0xff] %v14030_v28  ;;  %v18189_v28 = vld [vmem:[#allocation57_spill] sm:$0xff] }
 0x42d   : > { %v3229_v54 = vpack.c.bf16 %v18189_v28, %v18188_v35 }
 0x42e   : > { %v3763_v52 = vpop.f32.mrf.mxu3 }
 0x42f   : > { %v3674_v47 = vpop.f32.mrf.mxu2 }
 0x430   : > { %v14038_v31 = vadd.f32 %v3763_v52, %v3674_v47  ;;  %v3944_v19 = vpop.f32.mrf.mxu1 }
 0x431   : > { %v3855_v3 = vpop.f32.mrf.mxu0 }
 0x432   : > { %18185 = vst [vmem:[#allocation77_spill] sm:$0xff] %v14038_v31  ;;  %v14044_v21 = vadd.f32 %v3944_v19, %v3855_v3  ;;  %v18194_v3 = vld [vmem:[#allocation42_spill] sm:$0xff] }
 0x433   : > { %9089 = vmatmul.msk.bf16.gmra.mxu3 %vm3567_vm7, %v3230_v27  ;;  %9105 = vmatmul.msk.bf16.gmra.mxu1 %vm3567_vm7, %v3230_v27  ;;  %v18196_v27 = vld [vmem:[#allocation43_spill] sm:$0xff] }
 0x434   : > { %18190 = vst [vmem:[#allocation78_spill] sm:$0xff] %v14044_v21  ;;  %4151 = vmatmul.bf16.gmra.mxu2 %v3229_v54  ;;  %4329 = vmatmul.bf16.gmra.mxu0 %v3229_v54  ;;  %v18195_v21 = vld [vmem:[#allocation12_spill] sm:$0xff]  ;;  %v3231_v54 = vpack.c.bf16 %v18197_v40, %v18196_v27 }
 0x435   : > { %v3232_v28 = vpack.c.bf16 %v18195_v21, %v18194_v3 }
 0x436   : > { %v3766_v0 = vpop.f32.mrf.mxu3 }
 0x437   : > { %v3677_v22 = vpop.f32.mrf.mxu2 }
 0x438   : > { %v14048_v52 = vadd.f32 %v3766_v0, %v3677_v22  ;;  %v3946_v7 = vpop.f32.mrf.mxu1 }
 0x439   : > { %v3857_v47 = vpop.f32.mrf.mxu0 }
 0x43a   : > { %18191 = vst [vmem:[#allocation79_spill] sm:$0xff] %v14048_v52  ;;  %v14050_v31 = vadd.f32 %v3946_v7, %v3857_v47 }
 0x43c   : > { %18192 = vst [vmem:[#allocation80_spill] sm:$0xff] %v14050_v31 }
 0x43e   : > { %v3768_v43 = vpop.f32.mrf.mxu3 }
 0x43f   : > { %v3679_v29 = vpop.f32.mrf.mxu2 }
 0x440   : > { %v14052_v62 = vadd.f32 %v3768_v43, %v3679_v29  ;;  %v3949_v19 = vpop.f32.mrf.mxu1  ;;  %v9183_v29 = vld [vmem:[%s17329_s3 + $0x1a0] sm:$0xf]  ;;  %v9958_v43 = vld [vmem:[%s17329_s3 + $0x1a4] sm:$0xf0] }
 0x441   : > { %v3860_v46 = vpop.f32.mrf.mxu0  ;;  %v9184_v22 = vor.u32 %v9958_v43, %v9183_v29 }
 0x442   : > { %18193 = vst [vmem:[#allocation81_spill] sm:$0xff] %v14052_v62  ;;  %v14058_v35 = vadd.f32 %v3949_v19, %v3860_v46 }
 0x443   : > { %9090 = vmatmul.msk.bf16.gmra.mxu3 %vm3567_vm7, %v3232_v28  ;;  %9106 = vmatmul.msk.bf16.gmra.mxu1 %vm3567_vm7, %v3232_v28  ;;  %v9957_v28 = vld [vmem:[%s17329_s3 + $0x1a4] sm:$0xf] }
 0x444   : > { %18198 = vst [vmem:[#allocation82_spill] sm:$0xff] %v14058_v35  ;;  %4156 = vmatmul.bf16.gmra.mxu2 %v3231_v54  ;;  %4334 = vmatmul.bf16.gmra.mxu0 %v3231_v54  ;;  %v9185_v54 = vld [vmem:[%s17329_s3 + $0x1a8] sm:$0xf0] }
 0x445   : > { %4837 = vmatpush.bf16.msrb.mxu2 %v9184_v22  ;;  %v9188_v62 = vor.u32 %v9957_v28, %v9185_v54  ;;  %v18202_v22 = vld [vmem:[#allocation45_spill] sm:$0xff] }
 0x446   : > { %v3771_v0 = vpop.f32.mrf.mxu3 }
 0x447   : > { %v3682_v7 = vpop.f32.mrf.mxu2  ;;  %5015 = vmatpush.bf16.msrb.mxu0 %v9188_v62 }
 0x448   : > { %v14068_v47 = vadd.f32 %v3771_v0, %v3682_v7  ;;  %v3951_v46 = vpop.f32.mrf.mxu1  ;;  %v18203_v7 = vld [vmem:[#allocation29_spill] sm:$0xff] }
 0x449   : > { %v3862_v19 = vpop.f32.mrf.mxu0 }
 0x44a   : > { %18199 = vst [vmem:[#allocation83_spill] sm:$0xff] %v14068_v47  ;;  %v14070_v35 = vadd.f32 %v3951_v46, %v3862_v19  ;;  %v3234_v47 = vpack.c.bf16 %v18203_v7, %v18202_v22  ;;  %v18204_v19 = vld [vmem:[#allocation28_spill] sm:$0xff] }
 0x44c   : > { %18200 = vst [vmem:[#allocation84_spill] sm:$0xff] %v14070_v35  ;;  %v18205_v35 = vld [vmem:[#allocation30_spill] sm:$0xff] }
 0x44d   : > { %v3233_v21 = vpack.c.bf16 %v18205_v35, %v18204_v19  ;;  %v9215_v35 = vld [vmem:[%s17329_s3 + $0x1e0] sm:$0xf]  ;;  %v18212_v19 = vld [vmem:[#allocation50_spill] sm:$0xff] }
 0x44e   : > { %v3773_v40 = vpop.f32.mrf.mxu3 }
 0x44f   : > { %v3684_v29 = vpop.f32.mrf.mxu2 }
 0x450   : > { %v14078_v43 = vadd.f32 %v3773_v40, %v3684_v29  ;;  %v3954_v0 = vpop.f32.mrf.mxu1 }
 0x451   : > { %v3865_v46 = vpop.f32.mrf.mxu0 }
 0x452   : > { %18201 = vst [vmem:[#allocation85_spill] sm:$0xff] %v14078_v43  ;;  %v14084_v31 = vadd.f32 %v3954_v0, %v3865_v46  ;;  %v9966_v0 = vld [vmem:[%s17329_s3 + $0x1e4] sm:$0xf0] }
 0x453   : > { %9091 = vmatmul.msk.bf16.gmra.mxu3 %vm3567_vm7, %v3234_v47  ;;  %9107 = vmatmul.msk.bf16.gmra.mxu1 %vm3567_vm7, %v3234_v47  ;;  %v9216_v46 = vor.u32 %v9966_v0, %v9215_v35  ;;  %v18213_v35 = vld [vmem:[#allocation55_spill] sm:$0xff] }
 0x454   : > { %18206 = vst [vmem:[#allocation86_spill] sm:$0xff] %v14084_v31  ;;  %4161 = vmatmul.bf16.gmra.mxu2 %v3233_v21  ;;  %4339 = vmatmul.bf16.gmra.mxu0 %v3233_v21  ;;  %v3235_v0 = vpack.c.bf16 %v18213_v35, %v18212_v19 }
 0x455   : > { %4930 = vmatpush.bf16.msrb.mxu3 %v9216_v46 }
 0x456   : > { %v3776_v62 = vpop.f32.mrf.mxu3 }
 0x457   : > { %v3687_v28 = vpop.f32.mrf.mxu2 }
 0x458   : > { %v14088_v40 = vadd.f32 %v3776_v62, %v3687_v28  ;;  %v3956_v54 = vpop.f32.mrf.mxu1  ;;  %v18210_v28 = vld [vmem:[#allocation31_spill] sm:$0xff] }
 0x459   : > { %v3867_v29 = vpop.f32.mrf.mxu0 }
 0x45a   : > { %18207 = vst [vmem:[#allocation87_spill] sm:$0xff] %v14088_v40  ;;  %v14090_v43 = vadd.f32 %v3956_v54, %v3867_v29  ;;  %v18211_v40 = vld [vmem:[#allocation46_spill] sm:$0xff]  ;;  %v9965_v54 = vld [vmem:[%s17329_s3 + $0x1e4] sm:$0xf] }
 0x45b   : > { %v3236_v7 = vpack.c.bf16 %v18211_v40, %v18210_v28  ;;  %v9217_v29 = vld [vmem:[%s17329_s3 + $0x1e8] sm:$0xf0] }
 0x45c   : > { %18208 = vst [vmem:[#allocation88_spill] sm:$0xff] %v14090_v43  ;;  %v9220_v46 = vor.u32 %v9965_v54, %v9217_v29 }
 0x45e   : > { %v3778_v47 = vpop.f32.mrf.mxu3  ;;  %5108 = vmatpush.bf16.msrb.mxu1 %v9220_v46  ;;  %v9177_v46 = vld [vmem:[%s17329_s3 + $0x198] sm:$0xf0] }
 0x45f   : > { %v3689_v21 = vpop.f32.mrf.mxu2 }
 0x460   : > { %v14098_v31 = vadd.f32 %v3778_v47, %v3689_v21  ;;  %v3959_v62 = vpop.f32.mrf.mxu1  ;;  %v9175_v47 = vld [vmem:[%s17329_s3 + $0x190] sm:$0xf]  ;;  %v9956_v21 = vld [vmem:[%s17329_s3 + $0x194] sm:$0xf0] }
 0x461   : > { %v3870_v43 = vpop.f32.mrf.mxu0  ;;  %v9176_v35 = vor.u32 %v9956_v21, %v9175_v47 }
 0x462   : > { %18209 = vst [vmem:[#allocation89_spill] sm:$0xff] %v14098_v31  ;;  %v14110_v22 = vadd.f32 %v3959_v62, %v3870_v43 }
 0x463   : > { %9092 = vmatmul.msk.bf16.gmra.mxu3 %vm3567_vm7, %v3236_v7  ;;  %9108 = vmatmul.msk.bf16.gmra.mxu1 %vm3567_vm7, %v3236_v7 }
 0x464   : > { %18214 = vst [vmem:[#allocation90_spill] sm:$0xff] %v14110_v22  ;;  %4166 = vmatmul.bf16.gmra.mxu2 %v3235_v0  ;;  %4344 = vmatmul.bf16.gmra.mxu0 %v3235_v0  ;;  %v9955_v0 = vld [vmem:[%s17329_s3 + $0x194] sm:$0xf] }
 0x465   : > { %4838 = vmatpush.bf16.msrb.mxu2 %v9176_v35  ;;  %v9180_v22 = vor.u32 %v9955_v0, %v9177_v46  ;;  %v18218_v35 = vld [vmem:[#allocation52_spill] sm:$0xff] }
 0x466   : > { %v3781_v31 = vpop.f32.mrf.mxu3 }
 0x467   : > { %v3692_v54 = vpop.f32.mrf.mxu2  ;;  %5016 = vmatpush.bf16.msrb.mxu0 %v9180_v22 }
 0x468   : > { %v14120_v43 = vadd.f32 %v3781_v31, %v3692_v54  ;;  %v3961_v62 = vpop.f32.mrf.mxu1  ;;  %v18219_v54 = vld [vmem:[#allocation11_spill] sm:$0xff] }
 0x469   : > { %v3872_v29 = vpop.f32.mrf.mxu0 }
 0x46a   : > { %18215 = vst [vmem:[#allocation91_spill] sm:$0xff] %v14120_v43  ;;  %v14122_v7 = vadd.f32 %v3961_v62, %v3872_v29  ;;  %v3238_v43 = vpack.c.bf16 %v18219_v54, %v18218_v35  ;;  %v18220_v29 = vld [vmem:[#allocation54_spill] sm:$0xff] }
 0x46c   : > { %18216 = vst [vmem:[#allocation92_spill] sm:$0xff] %v14122_v7  ;;  %v18221_v7 = vld [vmem:[#allocation56_spill] sm:$0xff] }
 0x46d   : > { %v3237_v19 = vpack.c.bf16 %v18221_v7, %v18220_v29 }
 0x46e   : > { %v3783_v40 = vpop.f32.mrf.mxu3 }
 0x46f   : > { %v3694_v47 = vpop.f32.mrf.mxu2 }
 0x470   : > { %v14130_v21 = vadd.f32 %v3783_v40, %v3694_v47  ;;  %v3964_v31 = vpop.f32.mrf.mxu1 }
 0x471   : > { %v3875_v62 = vpop.f32.mrf.mxu0 }
 0x472   : > { %18217 = vst [vmem:[#allocation93_spill] sm:$0xff] %v14130_v21  ;;  %v14136_v28 = vadd.f32 %v3964_v31, %v3875_v62  ;;  %v3240_v62 = vpack.c.bf16 %v13424_v55, %v13355_v39 }
 0x473   : > { %9093 = vmatmul.msk.bf16.gmra.mxu3 %vm3567_vm7, %v3238_v43  ;;  %9109 = vmatmul.msk.bf16.gmra.mxu1 %vm3567_vm7, %v3238_v43 }
 0x474   : > { %18222 = vst [vmem:[#allocation94_spill] sm:$0xff] %v14136_v28  ;;  %4171 = vmatmul.bf16.gmra.mxu2 %v3237_v19  ;;  %4349 = vmatmul.bf16.gmra.mxu0 %v3237_v19  ;;  %v3239_v19 = vpack.c.bf16 %v13421_v34, %v13365_v1 }
 0x476   : > { %v3786_v22 = vpop.f32.mrf.mxu3 }
 0x477   : > { %v3697_v0 = vpop.f32.mrf.mxu2 }
 0x478   : > { %v14140_v40 = vadd.f32 %v3786_v22, %v3697_v0  ;;  %v3966_v46 = vpop.f32.mrf.mxu1 }
 0x479   : > { %v3877_v47 = vpop.f32.mrf.mxu0 }
 0x47a   : > { %v14142_v21 = vadd.f32 %v3966_v46, %v3877_v47 }
 0x47c   : > { %18223 = vst [vmem:[#allocation95_spill] sm:$0xff] %v14142_v21 }
 0x47e   : > { %v3788_v54 = vpop.f32.mrf.mxu3 }
 0x47f   : > { %v3699_v35 = vpop.f32.mrf.mxu2 }
 0x480   : > { %v14144_v52 = vadd.f32 %v3788_v54, %v3699_v35  ;;  %v3969_v31 = vpop.f32.mrf.mxu1  ;;  %v9167_v35 = vld [vmem:[%s17329_s3 + $0x180] sm:$0xf]  ;;  %v9954_v54 = vld [vmem:[%s17329_s3 + $0x184] sm:$0xf0] }
 0x481   : > { %v3880_v28 = vpop.f32.mrf.mxu0  ;;  %v9168_v0 = vor.u32 %v9954_v54, %v9167_v35 }
 0x482   : > { %18224 = vst [vmem:[#allocation96_spill] sm:$0xff] %v14144_v52  ;;  %v14150_v43 = vadd.f32 %v3969_v31, %v3880_v28 }
 0x483   : > { %9094 = vmatmul.msk.bf16.gmra.mxu3 %vm3567_vm7, %v3240_v62  ;;  %9110 = vmatmul.msk.bf16.gmra.mxu1 %vm3567_vm7, %v3240_v62  ;;  %v9953_v62 = vld [vmem:[%s17329_s3 + $0x184] sm:$0xf] }
 0x484   : > { %18225 = vst [vmem:[#allocation97_spill] sm:$0xff] %v14150_v43  ;;  %4176 = vmatmul.bf16.gmra.mxu2 %v3239_v19  ;;  %4354 = vmatmul.bf16.gmra.mxu0 %v3239_v19  ;;  %v9169_v19 = vld [vmem:[%s17329_s3 + $0x188] sm:$0xf0] }
 0x485   : > { %4839 = vmatpush.bf16.msrb.mxu2 %v9168_v0  ;;  %v9172_v34 = vor.u32 %v9953_v62, %v9169_v19 }
 0x486   : > { %v3791_v22 = vpop.f32.mrf.mxu3 }
 0x487   : > { %v3702_v46 = vpop.f32.mrf.mxu2  ;;  %5017 = vmatpush.bf16.msrb.mxu0 %v9172_v34 }
 0x488   : > { %v14160_v47 = vadd.f32 %v3791_v22, %v3702_v46  ;;  %v3971_v28 = vpop.f32.mrf.mxu1  ;;  %v3242_v22 = vpack.c.bf16 %v13507_v51, %v13445_v37  ;;  %v18229_v46 = vld [vmem:[#allocation62_spill] sm:$0xff] }
 0x489   : > { %v3882_v31 = vpop.f32.mrf.mxu0 }
 0x48a   : > { %18226 = vst [vmem:[#allocation98_spill] sm:$0xff] %v14160_v47  ;;  %v14162_v43 = vadd.f32 %v3971_v28, %v3882_v31  ;;  %v3241_v28 = vpack.c.bf16 %v18229_v46, %v13453_v36  ;;  %v18234_v36 = vld [vmem:[#allocation68_spill] sm:$0xff] }
 0x48c   : > { %18227 = vst [vmem:[#allocation99_spill] sm:$0xff] %v14162_v43 }
 0x48e   : > { %v3793_v52 = vpop.f32.mrf.mxu3 }
 0x48f   : > { %v3704_v55 = vpop.f32.mrf.mxu2 }
 0x490   : > { %v14170_v35 = vadd.f32 %v3793_v52, %v3704_v55  ;;  %v3974_v54 = vpop.f32.mrf.mxu1 }
 0x491   : > { %v3885_v0 = vpop.f32.mrf.mxu0 }
 0x492   : > { %18228 = vst [vmem:[#allocation100_spill] sm:$0xff] %v14170_v35  ;;  %v14176_v31 = vadd.f32 %v3974_v54, %v3885_v0  ;;  %v18232_v0 = vld [vmem:[#allocation63_spill] sm:$0xff] }
 0x493   : > { %9095 = vmatmul.msk.bf16.gmra.mxu3 %vm3567_vm7, %v3242_v22  ;;  %9111 = vmatmul.msk.bf16.gmra.mxu1 %vm3567_vm7, %v3242_v22  ;;  %v18233_v22 = vld [vmem:[#allocation65_spill] sm:$0xff] }
 0x494   : > { %18230 = vst [vmem:[#allocation101_spill] sm:$0xff] %v14176_v31  ;;  %4181 = vmatmul.bf16.gmra.mxu2 %v3241_v28  ;;  %4359 = vmatmul.bf16.gmra.mxu0 %v3241_v28  ;;  %v3244_v31 = vpack.c.bf16 %v13548_v15, %v18232_v0  ;;  %v3243_v28 = vpack.c.bf16 %v13553_v41, %v18233_v22  ;;  %v18245_v41 = vld [vmem:[#allocation13_spill] sm:$0xff]  ;;  %v18246_v15 = vld [vmem:[#allocation70_spill] sm:$0xff] }
 0x496   : > { %v3796_v62 = vpop.f32.mrf.mxu3 }
 0x497   : > { %v3707_v55 = vpop.f32.mrf.mxu2 }
 0x498   : > { %v14180_v52 = vadd.f32 %v3796_v62, %v3707_v55  ;;  %v3976_v34 = vpop.f32.mrf.mxu1 }
 0x499   : > { %v3887_v19 = vpop.f32.mrf.mxu0 }
 0x49a   : > { %v14182_v35 = vadd.f32 %v3976_v34, %v3887_v19 }
 0x49e   : > { %v3798_v43 = vpop.f32.mrf.mxu3 }
 0x49f   : > { %v3709_v51 = vpop.f32.mrf.mxu2 }
 0x4a0   : > { %v14184_v47 = vadd.f32 %v3798_v43, %v3709_v51  ;;  %v4414_v54 = vpop.f32.mrf.mxu1  ;;  %v9159_v51 = vld [vmem:[%s17329_s3 + $0x170] sm:$0xf]  ;;  %v9952_v43 = vld [vmem:[%s17329_s3 + $0x174] sm:$0xf0] }
 0x4a1   : > { %v4325_v46 = vpop.f32.mrf.mxu0  ;;  %v9160_v34 = vor.u32 %v9952_v43, %v9159_v51  ;;  %v9161_v51 = vld [vmem:[%s17329_s3 + $0x178] sm:$0xf0] }
 0x4a2   : > { %18231 = vst [vmem:[#allocation102_spill] sm:$0xff] %v14184_v47  ;;  %v4326_v21 = vadd.f32 %v4325_v46, %v18234_v36 }
 0x4a3   : > { %9096 = vmatmul.msk.bf16.gmra.mxu3 %vm3567_vm7, %v3244_v31  ;;  %9112 = vmatmul.msk.bf16.gmra.mxu1 %vm3567_vm7, %v3244_v31 }
 0x4a4   : > { %4186 = vmatmul.bf16.gmra.mxu2 %v3243_v28  ;;  %v14193_v62 = vadd.f32 %v4414_v54, %v4326_v21  ;;  %4364 = vmatmul.bf16.gmra.mxu0 %v3243_v28 }
 0x4a5   : > { %4840 = vmatpush.bf16.msrb.mxu2 %v9160_v34 }
 0x4a6   : > { %18235 = vst [vmem:[#allocation68_spill] sm:$0xff] %v14193_v62  ;;  %v4236_v55 = vpop.f32.mrf.mxu3  ;;  %v9951_v62 = vld [vmem:[%s17329_s3 + $0x174] sm:$0xf] }
 0x4a7   : > { %v4147_v19 = vpop.f32.mrf.mxu2  ;;  %v9164_v47 = vor.u32 %v9951_v62, %v9161_v51  ;;  %v9964_v62 = vld [vmem:[%s17329_s3 + $0x1d4] sm:$0xf0] }
 0x4a8   : > { %v4148_v36 = vadd.f32 %v4147_v19, %v13610_v23  ;;  %v4416_v46 = vpop.f32.mrf.mxu1  ;;  %v18238_v19 = vld [vmem:[#allocation66_spill] sm:$0xff] }
 0x4a9   : > { %v4327_v21 = vpop.f32.mrf.mxu0  ;;  %5018 = vmatpush.bf16.msrb.mxu0 %v9164_v47 }
 0x4aa   : > { %v14202_v31 = vadd.f32 %v4236_v55, %v4148_v36  ;;  %v4328_v54 = vadd.f32 %v4327_v21, %v13614_v59  ;;  %v3246_v59 = vpack.c.bf16 %v18238_v19, %v13558_v6  ;;  %v18240_v21 = vld [vmem:[#allocation67_spill] sm:$0xff] }
 0x4ac   : > { %18236 = vst [vmem:[#allocation103_spill] sm:$0xff] %v14202_v31  ;;  %v14205_v28 = vadd.f32 %v4416_v46, %v4328_v54  ;;  %v3245_v54 = vpack.c.bf16 %v18240_v21, %v13563_v48  ;;  %v18244_v21 = vld [vmem:[#allocation71_spill] sm:$0xff] }
 0x4ae   : > { %18237 = vst [vmem:[#allocation104_spill] sm:$0xff] %v14205_v28  ;;  %v4238_v43 = vpop.f32.mrf.mxu3  ;;  %v9207_v28 = vld [vmem:[%s17329_s3 + $0x1d0] sm:$0xf] }
 0x4af   : > { %v4149_v23 = vpop.f32.mrf.mxu2  ;;  %v9208_v47 = vor.u32 %v9964_v62, %v9207_v28 }
 0x4b0   : > { %v4150_v34 = vadd.f32 %v4149_v23, %v13656_v38  ;;  %v4419_v55 = vpop.f32.mrf.mxu1  ;;  %v9209_v23 = vld [vmem:[%s17329_s3 + $0x1d8] sm:$0xf0] }
 0x4b1   : > { %v4330_v46 = vpop.f32.mrf.mxu0  ;;  %4931 = vmatpush.bf16.msrb.mxu3 %v9208_v47 }
 0x4b2   : > { %v14216_v36 = vadd.f32 %v4238_v43, %v4150_v34  ;;  %v4331_v38 = vadd.f32 %v4330_v46, %v13662_v16  ;;  %v9963_v43 = vld [vmem:[%s17329_s3 + $0x1d4] sm:$0xf] }
 0x4b3   : > { %9097 = vmatmul.msk.bf16.gmra.mxu3 %vm3567_vm7, %v3246_v59  ;;  %9113 = vmatmul.msk.bf16.gmra.mxu1 %vm3567_vm7, %v3246_v59  ;;  %v9212_v16 = vor.u32 %v9963_v43, %v9209_v23  ;;  %v3248_v43 = vpack.c.bf16 %v18246_v15, %v18245_v41 }
 0x4b4   : > { %18239 = vst [vmem:[#allocation105_spill] sm:$0xff] %v14216_v36  ;;  %4191 = vmatmul.bf16.gmra.mxu2 %v3245_v54  ;;  %v14229_v51 = vadd.f32 %v4419_v55, %v4331_v38  ;;  %4369 = vmatmul.bf16.gmra.mxu0 %v3245_v54  ;;  %v18243_v54 = vld [vmem:[#allocation17_spill] sm:$0xff] }
 0x4b5   : > { %5109 = vmatpush.bf16.msrb.mxu1 %v9212_v16  ;;  %v18247_v16 = vld [vmem:[#allocation14_spill] sm:$0xff] }
 0x4b6   : > { %18241 = vst [vmem:[#allocation106_spill] sm:$0xff] %v14229_v51  ;;  %v4241_v34 = vpop.f32.mrf.mxu3 }
 0x4b7   : > { %v4152_v46 = vpop.f32.mrf.mxu2 }
 0x4b8   : > { %v4153_v28 = vadd.f32 %v4152_v46, %v13689_v58  ;;  %v4421_v59 = vpop.f32.mrf.mxu1  ;;  %v18248_v46 = vld [vmem:[#allocation69_spill] sm:$0xff] }
 0x4b9   : > { %v4332_v55 = vpop.f32.mrf.mxu0 }
 0x4ba   : > { %v14238_v62 = vadd.f32 %v4241_v34, %v4153_v28  ;;  %v4333_v38 = vadd.f32 %v4332_v55, %v18243_v54  ;;  %v3247_v34 = vpack.c.bf16 %v18248_v46, %v18247_v16  ;;  %v18249_v28 = vld [vmem:[#allocation18_spill] sm:$0xff] }
 0x4bc   : > { %18242 = vst [vmem:[#allocation107_spill] sm:$0xff] %v14238_v62  ;;  %v14241_v47 = vadd.f32 %v4421_v59, %v4333_v38 }
 0x4be   : > { %v4243_v51 = vpop.f32.mrf.mxu3 }
 0x4bf   : > { %v4154_v36 = vpop.f32.mrf.mxu2 }
 0x4c0   : > { %v4155_v19 = vadd.f32 %v4154_v36, %v18244_v21  ;;  %v4424_v31 = vpop.f32.mrf.mxu1  ;;  %v9151_v36 = vld [vmem:[%s17329_s3 + $0x160] sm:$0xf] }
 0x4c1   : > { %v4335_v58 = vpop.f32.mrf.mxu0 }
 0x4c2   : > { %v14246_v23 = vadd.f32 %v4243_v51, %v4155_v19  ;;  %v4336_v62 = vadd.f32 %v4335_v58, %v18249_v28  ;;  %v9950_v19 = vld [vmem:[%s17329_s3 + $0x164] sm:$0xf0]  ;;  %v9153_v28 = vld [vmem:[%s17329_s3 + $0x168] sm:$0xf0] }
 0x4c3   : > { %9098 = vmatmul.msk.bf16.gmra.mxu3 %vm3567_vm7, %v3248_v43  ;;  %9114 = vmatmul.msk.bf16.gmra.mxu1 %vm3567_vm7, %v3248_v43  ;;  %v9152_v51 = vor.u32 %v9950_v19, %v9151_v36 }
 0x4c4   : > { %4196 = vmatmul.bf16.gmra.mxu2 %v3247_v34  ;;  %v14253_v59 = vadd.f32 %v4424_v31, %v4336_v62  ;;  %4374 = vmatmul.bf16.gmra.mxu0 %v3247_v34  ;;  %v9949_v34 = vld [vmem:[%s17329_s3 + $0x164] sm:$0xf] }
 0x4c5   : > { %4841 = vmatpush.bf16.msrb.mxu2 %v9152_v51  ;;  %v9156_v19 = vor.u32 %v9949_v34, %v9153_v28 }
 0x4c6   : > { %v4246_v21 = vpop.f32.mrf.mxu3 }
 0x4c7   : > { %v4157_v55 = vpop.f32.mrf.mxu2  ;;  %5019 = vmatpush.bf16.msrb.mxu0 %v9156_v19 }
 0x4c8   : > { %v4158_v54 = vadd.f32 %v4157_v55, %v13747_v33  ;;  %v4426_v38 = vpop.f32.mrf.mxu1 }
 0x4c9   : > { %v4337_v31 = vpop.f32.mrf.mxu0 }
 0x4ca   : > { %v14262_v43 = vadd.f32 %v4246_v21, %v4158_v54  ;;  %v4338_v62 = vadd.f32 %v4337_v31, %v13752_v11  ;;  %v3250_v11 = vpack.c.bf16 %v13740_v63, %v13683_v9 }
 0x4cc   : > { %v14265_v58 = vadd.f32 %v4426_v38, %v4338_v62  ;;  %v18252_v38 = vld [vmem:[#allocation73_spill] sm:$0xff] }
 0x4cd   : > { %v3249_v31 = vpack.c.bf16 %v18252_v38, %v13687_v17  ;;  %v18253_v62 = vld [vmem:[#allocation21_spill] sm:$0xff] }
 0x4ce   : > { %18250 = vst [vmem:[#allocation17_spill] sm:$0xff] %v14265_v58  ;;  %v4248_v36 = vpop.f32.mrf.mxu3 }
 0x4cf   : > { %v4159_v33 = vpop.f32.mrf.mxu2 }
 0x4d0   : > { %v4160_v51 = vadd.f32 %v4159_v33, %v13782_v57  ;;  %v4429_v21 = vpop.f32.mrf.mxu1 }
 0x4d1   : > { %v4340_v54 = vpop.f32.mrf.mxu0 }
 0x4d2   : > { %v14276_v55 = vadd.f32 %v4248_v36, %v4160_v51  ;;  %v4341_v58 = vadd.f32 %v4340_v54, %v18253_v62 }
 0x4d3   : > { %9099 = vmatmul.msk.bf16.gmra.mxu3 %vm3567_vm7, %v3250_v11  ;;  %9115 = vmatmul.msk.bf16.gmra.mxu1 %vm3567_vm7, %v3250_v11 }
 0x4d4   : > { %18251 = vst [vmem:[#allocation71_spill] sm:$0xff] %v14276_v55  ;;  %4201 = vmatmul.bf16.gmra.mxu2 %v3249_v31  ;;  %v14283_v34 = vadd.f32 %v4429_v21, %v4341_v58  ;;  %4379 = vmatmul.bf16.gmra.mxu0 %v3249_v31  ;;  %v3252_v58 = vpack.c.bf16 %v13798_v45, %v13754_v32 }
 0x4d6   : > { %v4251_v57 = vpop.f32.mrf.mxu3 }
 0x4d7   : > { %v4162_v28 = vpop.f32.mrf.mxu2 }
 0x4d8   : > { %v4163_v19 = vadd.f32 %v4162_v28, %v13807_v44  ;;  %v4431_v36 = vpop.f32.mrf.mxu1  ;;  %v18256_v44 = vld [vmem:[#allocation20_spill] sm:$0xff]  ;;  %v18257_v28 = vld [vmem:[#allocation41_spill] sm:$0xff] }
 0x4d9   : > { %v4342_v51 = vpop.f32.mrf.mxu0 }
 0x4da   : > { %v14286_v33 = vadd.f32 %v4251_v57, %v4163_v19  ;;  %v4343_v55 = vadd.f32 %v4342_v51, %v13818_v26  ;;  %v3251_v57 = vpack.c.bf16 %v18257_v28, %v18256_v44  ;;  %v18258_v19 = vld [vmem:[#allocation32_spill] sm:$0xff] }
 0x4dc   : > { %18254 = vst [vmem:[#allocation70_spill] sm:$0xff] %v14286_v33  ;;  %v14289_v38 = vadd.f32 %v4431_v36, %v4343_v55  ;;  %v9948_v55 = vld [vmem:[%s17329_s3 + $0x154] sm:$0xf0] }
 0x4de   : > { %v4253_v54 = vpop.f32.mrf.mxu3 }
 0x4df   : > { %v4164_v62 = vpop.f32.mrf.mxu2 }
 0x4e0   : > { %v4165_v11 = vadd.f32 %v4164_v62, %v13845_v24  ;;  %v4434_v63 = vpop.f32.mrf.mxu1  ;;  %v9143_v24 = vld [vmem:[%s17329_s3 + $0x150] sm:$0xf] }
 0x4e1   : > { %v4345_v31 = vpop.f32.mrf.mxu0  ;;  %v9144_v51 = vor.u32 %v9948_v55, %v9143_v24  ;;  %v9145_v24 = vld [vmem:[%s17329_s3 + $0x158] sm:$0xf0] }
 0x4e2   : > { %v14294_v21 = vadd.f32 %v4253_v54, %v4165_v11  ;;  %v4346_v33 = vadd.f32 %v4345_v31, %v18258_v19  ;;  %v9947_v19 = vld [vmem:[%s17329_s3 + $0x154] sm:$0xf] }
 0x4e3   : > { %9100 = vmatmul.msk.bf16.gmra.mxu3 %vm3567_vm7, %v3252_v58  ;;  %9116 = vmatmul.msk.bf16.gmra.mxu1 %vm3567_vm7, %v3252_v58 }
 0x4e4   : > { %18255 = vst [vmem:[#allocation69_spill] sm:$0xff] %v14294_v21  ;;  %4206 = vmatmul.bf16.gmra.mxu2 %v3251_v57  ;;  %v14301_v26 = vadd.f32 %v4434_v63, %v4346_v33  ;;  %4384 = vmatmul.bf16.gmra.mxu0 %v3251_v57  ;;  %v18261_v33 = vld [vmem:[#allocation22_spill] sm:$0xff] }
 0x4e5   : > { %4842 = vmatpush.bf16.msrb.mxu2 %v9144_v51 }
 0x4e6   : > { %18259 = vst [vmem:[#allocation18_spill] sm:$0xff] %v14301_v26  ;;  %v4256_v36 = vpop.f32.mrf.mxu3  ;;  %v9148_v26 = vor.u32 %v9947_v19, %v9145_v24 }
 0x4e7   : > { %v4167_v54 = vpop.f32.mrf.mxu2 }
 0x4e8   : > { %v4168_v62 = vadd.f32 %v4167_v54, %v13877_v61  ;;  %v4436_v11 = vpop.f32.mrf.mxu1  ;;  %5020 = vmatpush.bf16.msrb.mxu0 %v9148_v26  ;;  %v18263_v54 = vld [vmem:[#allocation75_spill] sm:$0xff] }
 0x4e9   : > { %v4347_v63 = vpop.f32.mrf.mxu0 }
 0x4ea   : > { %v14310_v58 = vadd.f32 %v4256_v36, %v4168_v62  ;;  %v4348_v31 = vadd.f32 %v4347_v63, %v18261_v33  ;;  %v18264_v62 = vld [vmem:[#allocation33_spill] sm:$0xff] }
 0x4eb   : > { %v3254_v63 = vpack.c.bf16 %v18264_v62, %v18263_v54 }
 0x4ec   : > { %18260 = vst [vmem:[#allocation21_spill] sm:$0xff] %v14310_v58  ;;  %v14313_v57 = vadd.f32 %v4436_v11, %v4348_v31  ;;  %v18266_v31 = vld [vmem:[#allocation74_spill] sm:$0xff] }
 0x4ee   : > { %18262 = vst [vmem:[#allocation32_spill] sm:$0xff] %v14313_v57  ;;  %v4258_v55 = vpop.f32.mrf.mxu3  ;;  %v18267_v57 = vld [vmem:[#allocation40_spill] sm:$0xff] }
 0x4ef   : > { %v4169_v61 = vpop.f32.mrf.mxu2  ;;  %v3253_v58 = vpack.c.bf16 %v18267_v57, %v18266_v31 }
 0x4f0   : > { %v4170_v51 = vadd.f32 %v4169_v61, %v13904_v20  ;;  %v4439_v36 = vpop.f32.mrf.mxu1 }
 0x4f1   : > { %v4350_v33 = vpop.f32.mrf.mxu0 }
 0x4f2   : > { %v14324_v11 = vadd.f32 %v4258_v55, %v4170_v51  ;;  %v4351_v21 = vadd.f32 %v4350_v33, %v13906_v14 }
 0x4f3   : > { %9101 = vmatmul.msk.bf16.gmra.mxu3 %vm3567_vm7, %v3254_v63  ;;  %9117 = vmatmul.msk.bf16.gmra.mxu1 %vm3567_vm7, %v3254_v63 }
 0x4f4   : > { %18265 = vst [vmem:[#allocation22_spill] sm:$0xff] %v14324_v11  ;;  %4211 = vmatmul.bf16.gmra.mxu2 %v3253_v58  ;;  %v14331_v19 = vadd.f32 %v4439_v36, %v4351_v21  ;;  %4389 = vmatmul.bf16.gmra.mxu0 %v3253_v58  ;;  %v18269_v21 = vld [vmem:[#allocation51_spill] sm:$0xff] }
 0x4f5   : > { %v3256_v58 = vpack.c.bf16 %v13918_v42, %v18269_v21 }
 0x4f6   : > { %18268 = vst [vmem:[#allocation108_spill] sm:$0xff] %v14331_v19  ;;  %v4261_v20 = vpop.f32.mrf.mxu3 }
 0x4f7   : > { %v4172_v26 = vpop.f32.mrf.mxu2 }
 0x4f8   : > { %v4173_v24 = vadd.f32 %v4172_v26, %v13925_v53  ;;  %v4441_v55 = vpop.f32.mrf.mxu1  ;;  %v18271_v53 = vld [vmem:[#allocation47_spill] sm:$0xff] }
 0x4f9   : > { %v4352_v51 = vpop.f32.mrf.mxu0 }
 0x4fa   : > { %v14334_v61 = vadd.f32 %v4261_v20, %v4173_v24  ;;  %v4353_v11 = vadd.f32 %v4352_v51, %v13936_v10  ;;  %v3255_v20 = vpack.c.bf16 %v13923_v25, %v18271_v53 }
 0x4fc   : > { %v14337_v57 = vadd.f32 %v4441_v55, %v4353_v11  ;;  %v9982_v11 = vld [vmem:[%s17329_s3 + $0x26c] sm:$0xf0] }
 0x4fe   : > { %v4263_v14 = vpop.f32.mrf.mxu3 }
 0x4ff   : > { %v4174_v33 = vpop.f32.mrf.mxu2 }
 0x500   : > { %v4175_v63 = vadd.f32 %v4174_v33, %v13945_v56  ;;  %v4444_v62 = vpop.f32.mrf.mxu1  ;;  %v9332_v56 = vld [vmem:[%s17329_s3 + $0x268] sm:$0xf] }
 0x501   : > { %v4355_v19 = vpop.f32.mrf.mxu0  ;;  %v9333_v24 = vor.u32 %v9982_v11, %v9332_v56  ;;  %v9981_v56 = vld [vmem:[%s17329_s3 + $0x26c] sm:$0xf] }
 0x502   : > { %v14342_v36 = vadd.f32 %v4263_v14, %v4175_v63  ;;  %v4356_v26 = vadd.f32 %v4355_v19, %v13955_v5  ;;  %v9273_v5 = vld [vmem:[%s17329_s3 + $0x298] sm:$0x11] }
 0x503   : > { %9102 = vmatmul.msk.bf16.gmra.mxu3 %vm3567_vm7, %v3256_v58  ;;  %9118 = vmatmul.msk.bf16.gmra.mxu1 %vm3567_vm7, %v3256_v58  ;;  %v5499_v55 = vunpack.c.l.b16 %v9273_v5  ;;  %v5500_v11 = vunpack.c.h.b16 %v9273_v5 }
 0x504   : > { %18270 = vst [vmem:[#allocation109_spill] sm:$0xff] %v14342_v36  ;;  %4216 = vmatmul.bf16.gmra.mxu2 %v3255_v20  ;;  %v14349_v10 = vadd.f32 %v4444_v62, %v4356_v26  ;;  %4394 = vmatmul.bf16.gmra.mxu0 %v3255_v20 }
 0x505   : > { %5597 = vmatpush.bf16.msra.mxu2 %v9333_v24  ;;  %v5521_v14 = vpack.c.b16 %v5499_v55, %v5499_v55 }
 0x506   : > { %18272 = vst [vmem:[#allocation110_spill] sm:$0xff] %v14349_v10  ;;  %v4266_v19 = vpop.f32.mrf.mxu3 }
 0x507   : > { %v4177_v51 = vpop.f32.mrf.mxu2  ;;  %v5592_v20 = vsel %vm3616_vm5, %v5521_v14, 0  ;;  %v3258_v14 = vpack.c.bf16 %v13972_v18, %v13929_v2 }
 0x508   : > { %v4178_v62 = vadd.f32 %v4177_v51, %v13976_v12  ;;  %v4446_v33 = vpop.f32.mrf.mxu1  ;;  %5691 = vmatpush.bf16.msra.mxu3 %v5592_v20  ;;  %v9334_v12 = vld [vmem:[%s17329_s3 + $0x270] sm:$0xf0]  ;;  %v5522_v51 = vpack.c.b16 %v5500_v11, %v5500_v11 }
 0x509   : > { %v4357_v58 = vpop.f32.mrf.mxu0 }
 0x50a   : > { %v14361_v63 = vadd.f32 %v4266_v19, %v4178_v62  ;;  %v4358_v26 = vadd.f32 %v4357_v58, %v13980_v8  ;;  %v9337_v19 = vor.u32 %v9981_v56, %v9334_v12 }
 0x50c   : > { %18273 = vst [vmem:[#allocation111_spill] sm:$0xff] %v14361_v63  ;;  %v14365_v10 = vadd.f32 %v4446_v33, %v4358_v26  ;;  %5775 = vmatpush.bf16.msra.mxu0 %v9337_v19  ;;  %v5595_v33 = vsel %vm3616_vm5, %v5522_v51, 0  ;;  %v18276_v26 = vld [vmem:[#allocation34_spill] sm:$0xff]  ;;  %v4499_v51 = vrot.slane %v18186_v4, 4  ;;  %v18288_v63 = vld [vmem:[#allocation36_spill] sm:$0xff] }
 0x50d   : > { %5869 = vmatpush.bf16.msra.mxu1 %v5595_v33 }
 0x50e   : > { %18274 = vst [vmem:[#allocation112_spill] sm:$0xff] %v14365_v10  ;;  %v4268_v24 = vpop.f32.mrf.mxu3  ;;  %v3257_v10 = vpack.c.bf16 %v13974_v50, %v18276_v26 }
 0x50f   : > { %v4179_v55 = vpop.f32.mrf.mxu2 }
 0x510   : > { %v4180_v62 = vadd.f32 %v4179_v55, %v14002_v60  ;;  %v4449_v8 = vpop.f32.mrf.mxu1 }
 0x511   : > { %v4360_v20 = vpop.f32.mrf.mxu0 }
 0x512   : > { %v14377_v58 = vadd.f32 %v4268_v24, %v4180_v62  ;;  %v4361_v5 = vadd.f32 %v4360_v20, %v14004_v13  ;;  %v18279_v62 = vld [vmem:[#allocation26_spill] sm:$0xff]  ;;  %v18280_v20 = vld [vmem:[#allocation53_spill] sm:$0xff] }
 0x513   : > { %9103 = vmatmul.msk.bf16.gmra.mxu3 %vm3567_vm7, %v3258_v14  ;;  %9119 = vmatmul.msk.bf16.gmra.mxu1 %vm3567_vm7, %v3258_v14  ;;  %v4498_v33 = vrot.slane %v18279_v62, 4  ;;  %v4497_v14 = vrot.slane %v18280_v20, 4 }
 0x514   : > { %18275 = vst [vmem:[#allocation113_spill] sm:$0xff] %v14377_v58  ;;  %4221 = vmatmul.bf16.gmra.mxu2 %v3257_v10  ;;  %v14384_v60 = vadd.f32 %v4449_v8, %v4361_v5  ;;  %4399 = vmatmul.bf16.gmra.mxu0 %v3257_v10  ;;  %v18282_v8 = vld [vmem:[#allocation37_spill] sm:$0xff] }
 0x515   : > { %v4496_v10 = vrot.slane %v18282_v8, 4 }
 0x516   : > { %18277 = vst [vmem:[#allocation114_spill] sm:$0xff] %v14384_v60  ;;  %v4271_v56 = vpop.f32.mrf.mxu3  ;;  %v18283_v60 = vld [vmem:[#allocation10_spill] sm:$0xff] }
 0x517   : > { %v4182_v12 = vpop.f32.mrf.mxu2  ;;  %v17575_v50 = vrot.slane %v18283_v60, 4 }
 0x518   : > { %v4183_v11 = vadd.f32 %v4182_v12, %v14008_v49  ;;  %v4451_v24 = vpop.f32.mrf.mxu1  ;;  %v18284_v49 = vld [vmem:[#allocation7_spill] sm:$0xff] }
 0x519   : > { %v4362_v55 = vpop.f32.mrf.mxu0  ;;  %vm5319_vm8 = vcmp.lt.s32.totalorder %v18284_v49, 2  ;;  %v18528_v49 = vld [vmem:[#allocation53_spill] sm:$0xff] }
 0x51a   : > { %v14387_v19 = vadd.f32 %v4271_v56, %v4183_v11  ;;  %v4363_v13 = vadd.f32 %v4362_v55, %v14010_v30  ;;  %v4617_v56 = vsel %vm2136_vm4, %v4497_v14, %v4499_v51  ;;  %v18285_v11 = vld [vmem:[#allocation38_spill] sm:$0xff]  ;;  %v4616_v30 = vsel %vm2136_vm4, %v4496_v10, %v4498_v33  ;;  %v18286_v55 = vld [vmem:[#allocation35_spill] sm:$0xff] }
 0x51c   : > { %18278 = vst [vmem:[#allocation115_spill] sm:$0xff] %v14387_v19  ;;  %v14393_v58 = vadd.f32 %v4451_v24, %v4363_v13  ;;  %v17574_v19 = vrot.slane %v18285_v11, 4  ;;  %v4619_v24 = vsel %vm2136_vm4, %v17575_v50, %v4497_v14  ;;  %v9324_v14 = vld [vmem:[%s17329_s3 + $0x258] sm:$0xf]  ;;  %v4503_v50 = vrot.slane %v18194_v3, 4 }
 0x51d   : > { %v4623_v8 = vpack.c.bf16 %v4617_v56, %v4619_v24 }
 0x51e   : > { %18281 = vst [vmem:[#allocation116_spill] sm:$0xff] %v14393_v58  ;;  %v4273_v5 = vpop.f32.mrf.mxu3  ;;  %v4618_v58 = vsel %vm2136_vm4, %v17574_v19, %v4496_v10 }
 0x51f   : > { %v4184_v12 = vpop.f32.mrf.mxu2  ;;  %v4622_v18 = vpack.c.bf16 %v4616_v30, %v4618_v58  ;;  %v18292_v30 = vld [vmem:[#allocation27_spill] sm:$0xff] }
 0x520   : > { %v4185_v62 = vadd.f32 %v4184_v12, %v18286_v55  ;;  %v4454_v13 = vpop.f32.mrf.mxu1  ;;  %v18293_v55 = vld [vmem:[#allocation76_spill] sm:$0xff] }
 0x521   : > { %v4365_v4 = vpop.f32.mrf.mxu0 }
 0x522   : > { %v14411_v20 = vadd.f32 %v4273_v5, %v4185_v62  ;;  %v4366_v36 = vadd.f32 %v4365_v4, %v18288_v63  ;;  %v9980_v62 = vld [vmem:[%s17329_s3 + $0x25c] sm:$0xf0] }
 0x523   : > { %9221 = vmatmul.msk.bf16.vlgmr.msrb.gmra.mxu3 %vm3567_vm7, %v4623_v8  ;;  %9237 = vmatmul.msk.bf16.vlgmr.msrb.gmra.mxu1 %vm3567_vm7, %v4623_v8  ;;  %v9325_v58 = vor.u32 %v9980_v62, %v9324_v14  ;;  %v18290_v4 = vld [vmem:[#allocation25_spill] sm:$0xff]  ;;  %v4502_v14 = vrot.slane %v18196_v27, 4  ;;  %v9979_v62 = vld [vmem:[%s17329_s3 + $0x25c] sm:$0xf] }
 0x524   : > { %18287 = vst [vmem:[#allocation35_spill] sm:$0xff] %v14411_v20  ;;  %4843 = vmatmul.bf16.vlgmr.msrb.gmra.mxu2 %v4622_v18  ;;  %v14416_v12 = vadd.f32 %v4454_v13, %v4366_v36  ;;  %5021 = vmatmul.bf16.vlgmr.msrb.gmra.mxu0 %v4622_v18  ;;  %v4501_v18 = vrot.slane %v18292_v30, 4  ;;  %v18294_v13 = vld [vmem:[#allocation57_spill] sm:$0xff]  ;;  %v18297_v20 = vld [vmem:[#allocation78_spill] sm:$0xff] }
 0x525   : > { %5598 = vmatpush.bf16.msra.mxu2 %v9325_v58  ;;  %v4500_v19 = vrot.slane %v18294_v13, 4 }
 0x526   : > { %18289 = vst [vmem:[#allocation36_spill] sm:$0xff] %v14416_v12  ;;  %v4276_v10 = vpop.f32.mrf.mxu3 }
 0x527   : > { %v4187_v5 = vpop.f32.mrf.mxu2 }
 0x528   : > { %v4188_v63 = vadd.f32 %v4187_v5, %v18290_v4  ;;  %v4456_v56 = vpop.f32.mrf.mxu1  ;;  %v4613_v5 = vsel %vm2136_vm4, %v4501_v18, %v4503_v50  ;;  %v4615_v4 = vsel %vm2136_vm4, %v4499_v51, %v4501_v18  ;;  %v18298_v18 = vld [vmem:[#allocation79_spill] sm:$0xff] }
 0x529   : > { %v4367_v36 = vpop.f32.mrf.mxu0  ;;  %v4625_v3 = vpack.c.bf16 %v4613_v5, %v4615_v4 }
 0x52a   : > { %v14425_v8 = vadd.f32 %v4276_v10, %v4188_v63  ;;  %v4368_v24 = vadd.f32 %v4367_v36, %v18293_v55  ;;  %v9326_v10 = vld [vmem:[%s17329_s3 + $0x260] sm:$0xf0]  ;;  %v4612_v36 = vsel %vm2136_vm4, %v4500_v19, %v4502_v14  ;;  %v4614_v55 = vsel %vm2136_vm4, %v4498_v33, %v4500_v19 }
 0x52b   : > { %v9329_v63 = vor.u32 %v9979_v62, %v9326_v10 }
 0x52c   : > { %18291 = vst [vmem:[#allocation25_spill] sm:$0xff] %v14425_v8  ;;  %v14431_v12 = vadd.f32 %v4456_v56, %v4368_v24  ;;  %v18296_v24 = vld [vmem:[#allocation77_spill] sm:$0xff]  ;;  %v4624_v8 = vpack.c.bf16 %v4612_v36, %v4614_v55  ;;  %v18303_v36 = vld [vmem:[#allocation12_spill] sm:$0xff] }
 0x52d   : > { %5776 = vmatpush.bf16.msra.mxu0 %v9329_v63  ;;  %v18301_v63 = vld [vmem:[#allocation80_spill] sm:$0xff] }
 0x52e   : > { %18295 = vst [vmem:[#allocation76_spill] sm:$0xff] %v14431_v12  ;;  %v4278_v58 = vpop.f32.mrf.mxu3 }
 0x52f   : > { %v4189_v56 = vpop.f32.mrf.mxu2 }
 0x530   : > { %v4190_v27 = vadd.f32 %v4189_v56, %v18296_v24  ;;  %v4459_v12 = vpop.f32.mrf.mxu1 }
 0x531   : > { %v4370_v30 = vpop.f32.mrf.mxu0 }
 0x532   : > { %v14449_v13 = vadd.f32 %v4278_v58, %v4190_v27  ;;  %v4371_v11 = vadd.f32 %v4370_v30, %v18297_v20  ;;  %v18300_v58 = vld [vmem:[#allocation45_spill] sm:$0xff]  ;;  %v18302_v30 = vld [vmem:[#allocation28_spill] sm:$0xff] }
 0x533   : > { %9222 = vmatmul.msk.bf16.gmra.mxu3 %vm3567_vm7, %v4625_v3  ;;  %9238 = vmatmul.msk.bf16.gmra.mxu1 %vm3567_vm7, %v4625_v3  ;;  %v4507_v4 = vrot.slane %v18300_v58, 4  ;;  %v4506_v56 = vrot.slane %v18302_v30, 4  ;;  %v4505_v3 = vrot.slane %v18303_v36, 4  ;;  %v18308_v36 = vld [vmem:[#allocation82_spill] sm:$0xff] }
 0x534   : > { %4848 = vmatmul.bf16.gmra.mxu2 %v4624_v8  ;;  %v14454_v51 = vadd.f32 %v4459_v12, %v4371_v11  ;;  %5026 = vmatmul.bf16.gmra.mxu0 %v4624_v8  ;;  %v18305_v11 = vld [vmem:[#allocation44_spill] sm:$0xff] }
 0x535   : > { %v4504_v12 = vrot.slane %v18305_v11, 4  ;;  %v4609_v24 = vsel %vm2136_vm4, %v4505_v3, %v4507_v4 }
 0x536   : > { %v4281_v19 = vpop.f32.mrf.mxu3 }
 0x537   : > { %v4192_v33 = vpop.f32.mrf.mxu2 }
 0x538   : > { %v4193_v62 = vadd.f32 %v4192_v33, %v18298_v18  ;;  %v4461_v10 = vpop.f32.mrf.mxu1  ;;  %v18306_v18 = vld [vmem:[#allocation81_spill] sm:$0xff] }
 0x539   : > { %v4372_v27 = vpop.f32.mrf.mxu0 }
 0x53a   : > { %v14457_v5 = vadd.f32 %v4281_v19, %v4193_v62  ;;  %v4373_v20 = vadd.f32 %v4372_v27, %v18301_v63  ;;  %v4608_v19 = vsel %vm2136_vm4, %v4504_v12, %v4506_v56  ;;  %v4611_v27 = vsel %vm2136_vm4, %v4503_v50, %v4505_v3  ;;  %v9316_v50 = vld [vmem:[%s17329_s3 + $0x248] sm:$0xf] }
 0x53b   : > { %v4627_v30 = vpack.c.bf16 %v4609_v24, %v4611_v27  ;;  %v18314_v27 = vld [vmem:[#allocation50_spill] sm:$0xff] }
 0x53c   : > { %18299 = vst [vmem:[#allocation77_spill] sm:$0xff] %v14457_v5  ;;  %v14463_v55 = vadd.f32 %v4461_v10, %v4373_v20  ;;  %v4610_v10 = vsel %vm2136_vm4, %v4502_v14, %v4504_v12  ;;  %v9978_v14 = vld [vmem:[%s17329_s3 + $0x24c] sm:$0xf0]  ;;  %v18317_v5 = vld [vmem:[#allocation30_spill] sm:$0xff] }
 0x53d   : > { %v9317_v12 = vor.u32 %v9978_v14, %v9316_v50  ;;  %v4508_v50 = vrot.slane %v18317_v5, 4  ;;  %v9977_v14 = vld [vmem:[%s17329_s3 + $0x24c] sm:$0xf] }
 0x53e   : > { %18304 = vst [vmem:[#allocation78_spill] sm:$0xff] %v14463_v55  ;;  %v4283_v8 = vpop.f32.mrf.mxu3  ;;  %v4626_v55 = vpack.c.bf16 %v4608_v19, %v4610_v10  ;;  %v18312_v19 = vld [vmem:[#allocation31_spill] sm:$0xff]  ;;  %v18315_v10 = vld [vmem:[#allocation29_spill] sm:$0xff] }
 0x53f   : > { %v4194_v33 = vpop.f32.mrf.mxu2  ;;  %5599 = vmatpush.bf16.msra.mxu2 %v9317_v12 }
 0x540   : > { %v4195_v62 = vadd.f32 %v4194_v33, %v18306_v18  ;;  %v4464_v63 = vpop.f32.mrf.mxu1  ;;  %v18313_v18 = vld [vmem:[#allocation84_spill] sm:$0xff] }
 0x541   : > { %v4375_v11 = vpop.f32.mrf.mxu0 }
 0x542   : > { %v14475_v20 = vadd.f32 %v4283_v8, %v4195_v62  ;;  %v4376_v58 = vadd.f32 %v4375_v11, %v18308_v36  ;;  %v18310_v36 = vld [vmem:[#allocation83_spill] sm:$0xff] }
 0x543   : > { %9223 = vmatmul.msk.bf16.gmra.mxu3 %vm3567_vm7, %v4627_v30  ;;  %9239 = vmatmul.msk.bf16.gmra.mxu1 %vm3567_vm7, %v4627_v30 }
 0x544   : > { %18307 = vst [vmem:[#allocation79_spill] sm:$0xff] %v14475_v20  ;;  %4853 = vmatmul.bf16.gmra.mxu2 %v4626_v55  ;;  %v14480_v33 = vadd.f32 %v4464_v63, %v4376_v58  ;;  %5031 = vmatmul.bf16.gmra.mxu0 %v4626_v55  ;;  %v4511_v55 = vrot.slane %v18312_v19, 4  ;;  %v4510_v63 = vrot.slane %v18314_v27, 4 }
 0x546   : > { %18309 = vst [vmem:[#allocation80_spill] sm:$0xff] %v14480_v33  ;;  %v4286_v3 = vpop.f32.mrf.mxu3  ;;  %v4509_v33 = vrot.slane %v18315_v10, 4  ;;  %v4606_v10 = vsel %vm2136_vm4, %v4506_v56, %v4508_v50 }
 0x547   : > { %v4197_v8 = vpop.f32.mrf.mxu2 }
 0x548   : > { %v4198_v11 = vadd.f32 %v4197_v8, %v18310_v36  ;;  %v4466_v24 = vpop.f32.mrf.mxu1  ;;  %v4605_v8 = vsel %vm2136_vm4, %v4509_v33, %v4511_v55 }
 0x549   : > { %v4377_v58 = vpop.f32.mrf.mxu0 }
 0x54a   : > { %v14489_v30 = vadd.f32 %v4286_v3, %v4198_v11  ;;  %v4378_v62 = vadd.f32 %v4377_v58, %v18313_v18  ;;  %v9318_v3 = vld [vmem:[%s17329_s3 + $0x250] sm:$0xf0]  ;;  %v18318_v58 = vld [vmem:[#allocation85_spill] sm:$0xff] }
 0x54b   : > { %v9321_v36 = vor.u32 %v9977_v14, %v9318_v3  ;;  %v18319_v14 = vld [vmem:[#allocation86_spill] sm:$0xff] }
 0x54c   : > { %18311 = vst [vmem:[#allocation81_spill] sm:$0xff] %v14489_v30  ;;  %v14495_v20 = vadd.f32 %v4466_v24, %v4378_v62  ;;  %v4604_v24 = vsel %vm2136_vm4, %v4508_v50, %v4510_v63  ;;  %v4607_v62 = vsel %vm2136_vm4, %v4507_v4, %v4509_v33 }
 0x54d   : > { %5777 = vmatpush.bf16.msra.mxu0 %v9321_v36  ;;  %v4628_v30 = vpack.c.bf16 %v4604_v24, %v4606_v10  ;;  %v18324_v24 = vld [vmem:[#allocation52_spill] sm:$0xff] }
 0x54e   : > { %18316 = vst [vmem:[#allocation82_spill] sm:$0xff] %v14495_v20  ;;  %v4288_v12 = vpop.f32.mrf.mxu3  ;;  %v4629_v20 = vpack.c.bf16 %v4605_v8, %v4607_v62  ;;  %v18321_v8 = vld [vmem:[#allocation87_spill] sm:$0xff] }
 0x54f   : > { %v4199_v11 = vpop.f32.mrf.mxu2 }
 0x550   : > { %v4200_v18 = vadd.f32 %v4199_v11, %v18318_v58  ;;  %v4469_v5 = vpop.f32.mrf.mxu1 }
 0x551   : > { %v4380_v19 = vpop.f32.mrf.mxu0 }
 0x552   : > { %v14513_v27 = vadd.f32 %v4288_v12, %v4200_v18  ;;  %v4381_v3 = vadd.f32 %v4380_v19, %v18319_v14  ;;  %v18323_v12 = vld [vmem:[#allocation46_spill] sm:$0xff]  ;;  %v4515_v19 = vrot.slane %v18324_v24, 4  ;;  %v18325_v18 = vld [vmem:[#allocation88_spill] sm:$0xff]  ;;  %v18326_v14 = vld [vmem:[#allocation55_spill] sm:$0xff] }
 0x553   : > { %9224 = vmatmul.msk.bf16.gmra.mxu3 %vm3567_vm7, %v4629_v20  ;;  %9240 = vmatmul.msk.bf16.gmra.mxu1 %vm3567_vm7, %v4629_v20  ;;  %v4513_v10 = vrot.slane %v18323_v12, 4  ;;  %v4512_v20 = vrot.slane %v18326_v14, 4 }
 0x554   : > { %4858 = vmatmul.bf16.gmra.mxu2 %v4628_v30  ;;  %v14518_v11 = vadd.f32 %v4469_v5, %v4381_v3  ;;  %5036 = vmatmul.bf16.gmra.mxu0 %v4628_v30  ;;  %v4514_v5 = vrot.slane %v18220_v29, 4  ;;  %v9348_v30 = vld [vmem:[%s17329_s3 + $0x288] sm:$0xf] }
 0x556   : > { %18320 = vst [vmem:[#allocation83_spill] sm:$0xff] %v14518_v11  ;;  %v4291_v4 = vpop.f32.mrf.mxu3 }
 0x557   : > { %v4202_v33 = vpop.f32.mrf.mxu2 }
 0x558   : > { %v4203_v36 = vadd.f32 %v4202_v33, %v18321_v8  ;;  %v4471_v58 = vpop.f32.mrf.mxu1  ;;  %v4601_v8 = vsel %vm2136_vm4, %v4513_v10, %v4515_v19 }
 0x559   : > { %v4382_v50 = vpop.f32.mrf.mxu0 }
 0x55a   : > { %v14521_v56 = vadd.f32 %v4291_v4, %v4203_v36  ;;  %v4383_v62 = vadd.f32 %v4382_v50, %v18325_v18  ;;  %v9986_v4 = vld [vmem:[%s17329_s3 + $0x28c] sm:$0xf0]  ;;  %v4603_v36 = vsel %vm2136_vm4, %v4511_v55, %v4513_v10  ;;  %v9985_v55 = vld [vmem:[%s17329_s3 + $0x28c] sm:$0xf]  ;;  %v9350_v10 = vld [vmem:[%s17329_s3 + $0x290] sm:$0xf0] }
 0x55b   : > { %v9349_v50 = vor.u32 %v9986_v4, %v9348_v30  ;;  %v4631_v24 = vpack.c.bf16 %v4601_v8, %v4603_v36  ;;  %v18329_v30 = vld [vmem:[#allocation90_spill] sm:$0xff]  ;;  %v18330_v36 = vld [vmem:[#allocation91_spill] sm:$0xff] }
 0x55c   : > { %18322 = vst [vmem:[#allocation84_spill] sm:$0xff] %v14521_v56  ;;  %v14528_v3 = vadd.f32 %v4471_v58, %v4383_v62  ;;  %v4600_v58 = vsel %vm2136_vm4, %v4512_v20, %v4514_v5  ;;  %v4602_v62 = vsel %vm2136_vm4, %v4510_v63, %v4512_v20  ;;  %v9353_v63 = vor.u32 %v9985_v55, %v9350_v10  ;;  %v9308_v20 = vld [vmem:[%s17329_s3 + $0x238] sm:$0xf]  ;;  %v18332_v10 = vld [vmem:[#allocation11_spill] sm:$0xff] }
 0x55d   : > { %5692 = vmatpush.bf16.msra.mxu3 %v9349_v50  ;;  %v4630_v11 = vpack.c.bf16 %v4600_v58, %v4602_v62  ;;  %v18331_v58 = vld [vmem:[#allocation92_spill] sm:$0xff]  ;;  %v4518_v55 = vrot.slane %v13365_v1, 4 }
 0x55e   : > { %18327 = vst [vmem:[#allocation85_spill] sm:$0xff] %v14528_v3  ;;  %v4293_v33 = vpop.f32.mrf.mxu3  ;;  %v18328_v3 = vld [vmem:[#allocation89_spill] sm:$0xff]  ;;  %5870 = vmatpush.bf16.msra.mxu1 %v9353_v63  ;;  %v4516_v63 = vrot.slane %v18221_v7, 4 }
 0x55f   : > { %v4204_v18 = vpop.f32.mrf.mxu2 }
 0x560   : > { %v4205_v29 = vadd.f32 %v4204_v18, %v18328_v3  ;;  %v4474_v14 = vpop.f32.mrf.mxu1  ;;  %v9976_v3 = vld [vmem:[%s17329_s3 + $0x23c] sm:$0xf0] }
 0x561   : > { %v4385_v56 = vpop.f32.mrf.mxu0 }
 0x562   : > { %v14545_v12 = vadd.f32 %v4293_v33, %v4205_v29  ;;  %v4386_v4 = vadd.f32 %v4385_v56, %v18329_v30  ;;  %v9309_v56 = vor.u32 %v9976_v3, %v9308_v20  ;;  %v4517_v30 = vrot.slane %v18332_v10, 4  ;;  %v9975_v20 = vld [vmem:[%s17329_s3 + $0x23c] sm:$0xf]  ;;  %v9310_v3 = vld [vmem:[%s17329_s3 + $0x240] sm:$0xf0] }
 0x563   : > { %9225 = vmatmul.msk.bf16.gmra.mxu3 %vm3567_vm7, %v4631_v24  ;;  %9241 = vmatmul.msk.bf16.gmra.mxu1 %vm3567_vm7, %v4631_v24 }
 0x564   : > { %4863 = vmatmul.bf16.gmra.mxu2 %v4630_v11  ;;  %v14556_v29 = vadd.f32 %v4474_v14, %v4386_v4  ;;  %5041 = vmatmul.bf16.gmra.mxu0 %v4630_v11  ;;  %v4519_v11 = vrot.slane %v13355_v39, 4 }
 0x565   : > { %5600 = vmatpush.bf16.msra.mxu2 %v9309_v56 }
 0x566   : > { %v4296_v33 = vpop.f32.mrf.mxu3  ;;  %v4597_v56 = vsel %vm2136_vm4, %v4517_v30, %v4519_v11 }
 0x567   : > { %v4207_v8 = vpop.f32.mrf.mxu2 }
 0x568   : > { %v4208_v50 = vadd.f32 %v4207_v8, %v18330_v36  ;;  %v4476_v24 = vpop.f32.mrf.mxu1  ;;  %v9313_v8 = vor.u32 %v9975_v20, %v9310_v3  ;;  %v18335_v20 = vld [vmem:[#allocation94_spill] sm:$0xff] }
 0x569   : > { %v4387_v14 = vpop.f32.mrf.mxu0 }
 0x56a   : > { %v14565_v18 = vadd.f32 %v4296_v33, %v4208_v50  ;;  %v4388_v62 = vadd.f32 %v4387_v14, %v18331_v58  ;;  %v4596_v50 = vsel %vm2136_vm4, %v4516_v63, %v4518_v55  ;;  %v4599_v58 = vsel %vm2136_vm4, %v4515_v19, %v4517_v30  ;;  %5778 = vmatpush.bf16.msra.mxu0 %v9313_v8 }
 0x56b   : > { %v4633_v7 = vpack.c.bf16 %v4597_v56, %v4599_v58 }
 0x56c   : > { %v14571_v4 = vadd.f32 %v4476_v24, %v4388_v62  ;;  %v18334_v24 = vld [vmem:[#allocation93_spill] sm:$0xff] }
 0x56e   : > { %18333 = vst [vmem:[#allocation86_spill] sm:$0xff] %v14571_v4  ;;  %v4298_v33 = vpop.f32.mrf.mxu3  ;;  %v4598_v4 = vsel %vm2136_vm4, %v4514_v5, %v4516_v63 }
 0x56f   : > { %v4209_v36 = vpop.f32.mrf.mxu2  ;;  %v4632_v39 = vpack.c.bf16 %v4596_v50, %v4598_v4  ;;  %v4523_v4 = vrot.slane %v13445_v37, 4  ;;  %v18338_v50 = vld [vmem:[#allocation60_spill] sm:$0xff] }
 0x570   : > { %v4210_v14 = vadd.f32 %v4209_v36, %v18334_v24  ;;  %v4479_v62 = vpop.f32.mrf.mxu1  ;;  %v4522_v24 = vrot.slane %v18338_v50, 4 }
 0x571   : > { %v4390_v1 = vpop.f32.mrf.mxu0 }
 0x572   : > { %v14589_v10 = vadd.f32 %v4298_v33, %v4210_v14  ;;  %v4391_v3 = vadd.f32 %v4390_v1, %v18335_v20  ;;  %v18337_v33 = vld [vmem:[#allocation95_spill] sm:$0xff]  ;;  %v18339_v14 = vld [vmem:[#allocation16_spill] sm:$0xff] }
 0x573   : > { %9226 = vmatmul.msk.bf16.gmra.mxu3 %vm3567_vm7, %v4633_v7  ;;  %9242 = vmatmul.msk.bf16.gmra.mxu1 %vm3567_vm7, %v4633_v7  ;;  %v4521_v7 = vrot.slane %v18339_v14, 4  ;;  %v18344_v14 = vld [vmem:[#allocation97_spill] sm:$0xff] }
 0x574   : > { %4868 = vmatmul.bf16.gmra.mxu2 %v4632_v39  ;;  %v14594_v36 = vadd.f32 %v4479_v62, %v4391_v3  ;;  %5046 = vmatmul.bf16.gmra.mxu0 %v4632_v39  ;;  %v18341_v62 = vld [vmem:[#allocation15_spill] sm:$0xff] }
 0x575   : > { %v4520_v39 = vrot.slane %v18341_v62, 4 }
 0x576   : > { %v4301_v19 = vpop.f32.mrf.mxu3 }
 0x577   : > { %v4212_v30 = vpop.f32.mrf.mxu2 }
 0x578   : > { %v4213_v56 = vadd.f32 %v4212_v30, %v14140_v40  ;;  %v4481_v8 = vpop.f32.mrf.mxu1  ;;  %v4593_v40 = vsel %vm2136_vm4, %v4521_v7, %v4523_v4  ;;  %v18342_v30 = vld [vmem:[#allocation96_spill] sm:$0xff] }
 0x579   : > { %v4392_v63 = vpop.f32.mrf.mxu0 }
 0x57a   : > { %v14597_v5 = vadd.f32 %v4301_v19, %v4213_v56  ;;  %v4393_v1 = vadd.f32 %v4392_v63, %v18337_v33  ;;  %v4592_v19 = vsel %vm2136_vm4, %v4520_v39, %v4522_v24  ;;  %v4595_v63 = vsel %vm2136_vm4, %v4519_v11, %v4521_v7  ;;  %v9300_v11 = vld [vmem:[%s17329_s3 + $0x228] sm:$0xf] }
 0x57b   : > { %v4635_v50 = vpack.c.bf16 %v4593_v40, %v4595_v63 }
 0x57c   : > { %18336 = vst [vmem:[#allocation87_spill] sm:$0xff] %v14597_v5  ;;  %v14603_v58 = vadd.f32 %v4481_v8, %v4393_v1  ;;  %v4594_v8 = vsel %vm2136_vm4, %v4518_v55, %v4520_v39  ;;  %v9974_v55 = vld [vmem:[%s17329_s3 + $0x22c] sm:$0xf0] }
 0x57d   : > { %v9301_v39 = vor.u32 %v9974_v55, %v9300_v11  ;;  %v9973_v11 = vld [vmem:[%s17329_s3 + $0x22c] sm:$0xf]  ;;  %v9302_v55 = vld [vmem:[%s17329_s3 + $0x230] sm:$0xf0] }
 0x57e   : > { %18340 = vst [vmem:[#allocation88_spill] sm:$0xff] %v14603_v58  ;;  %v4303_v20 = vpop.f32.mrf.mxu3  ;;  %v4634_v58 = vpack.c.bf16 %v4592_v19, %v4594_v8  ;;  %v18348_v19 = vld [vmem:[#allocation19_spill] sm:$0xff] }
 0x57f   : > { %v4214_v3 = vpop.f32.mrf.mxu2  ;;  %5601 = vmatpush.bf16.msra.mxu2 %v9301_v39 }
 0x580   : > { %v4215_v56 = vadd.f32 %v4214_v3, %v18342_v30  ;;  %v4484_v33 = vpop.f32.mrf.mxu1  ;;  %v4527_v30 = vrot.slane %v18232_v0, 4 }
 0x581   : > { %v4395_v62 = vpop.f32.mrf.mxu0 }
 0x582   : > { %v14615_v1 = vadd.f32 %v4303_v20, %v4215_v56  ;;  %v4396_v37 = vadd.f32 %v4395_v62, %v18344_v14  ;;  %v18346_v14 = vld [vmem:[#allocation98_spill] sm:$0xff]  ;;  %v18349_v56 = vld [vmem:[#allocation99_spill] sm:$0xff] }
 0x583   : > { %9227 = vmatmul.msk.bf16.gmra.mxu3 %vm3567_vm7, %v4635_v50  ;;  %9243 = vmatmul.msk.bf16.gmra.mxu1 %vm3567_vm7, %v4635_v50 }
 0x584   : > { %18343 = vst [vmem:[#allocation89_spill] sm:$0xff] %v14615_v1  ;;  %4873 = vmatmul.bf16.gmra.mxu2 %v4634_v58  ;;  %v14620_v3 = vadd.f32 %v4484_v33, %v4396_v37  ;;  %5051 = vmatmul.bf16.gmra.mxu0 %v4634_v58  ;;  %v4525_v58 = vrot.slane %v18348_v19, 4  ;;  %v18350_v33 = vld [vmem:[#allocation62_spill] sm:$0xff] }
 0x585   : > { %v4524_v8 = vrot.slane %v18350_v33, 4 }
 0x586   : > { %18345 = vst [vmem:[#allocation90_spill] sm:$0xff] %v14620_v3  ;;  %v4306_v7 = vpop.f32.mrf.mxu3  ;;  %v4526_v3 = vrot.slane %v18233_v22, 4  ;;  %v4589_v39 = vsel %vm2136_vm4, %v4525_v58, %v4527_v30 }
 0x587   : > { %v4217_v20 = vpop.f32.mrf.mxu2 }
 0x588   : > { %v4218_v62 = vadd.f32 %v4217_v20, %v18346_v14  ;;  %v4486_v40 = vpop.f32.mrf.mxu1  ;;  %v4591_v20 = vsel %vm2136_vm4, %v4523_v4, %v4525_v58  ;;  %v9305_v14 = vor.u32 %v9973_v11, %v9302_v55 }
 0x589   : > { %v4397_v37 = vpop.f32.mrf.mxu0  ;;  %v4637_v22 = vpack.c.bf16 %v4589_v39, %v4591_v20  ;;  %v4531_v39 = vrot.slane %v13558_v6, 4  ;;  %v18354_v20 = vld [vmem:[#allocation64_spill] sm:$0xff] }
 0x58a   : > { %v14629_v50 = vadd.f32 %v4306_v7, %v4218_v62  ;;  %v4398_v63 = vadd.f32 %v4397_v37, %v18349_v56  ;;  %v4590_v37 = vsel %vm2136_vm4, %v4522_v24, %v4524_v8  ;;  %v18352_v56 = vld [vmem:[#allocation100_spill] sm:$0xff]  ;;  %5779 = vmatpush.bf16.msra.mxu0 %v9305_v14 }
 0x58c   : > { %18347 = vst [vmem:[#allocation91_spill] sm:$0xff] %v14629_v50  ;;  %v14636_v1 = vadd.f32 %v4486_v40, %v4398_v63  ;;  %v4588_v40 = vsel %vm2136_vm4, %v4524_v8, %v4526_v3  ;;  %v18353_v50 = vld [vmem:[#allocation101_spill] sm:$0xff] }
 0x58d   : > { %v4636_v19 = vpack.c.bf16 %v4588_v40, %v4590_v37  ;;  %v18356_v37 = vld [vmem:[#allocation102_spill] sm:$0xff] }
 0x58e   : > { %18351 = vst [vmem:[#allocation92_spill] sm:$0xff] %v14636_v1  ;;  %v4308_v7 = vpop.f32.mrf.mxu3 }
 0x58f   : > { %v4219_v62 = vpop.f32.mrf.mxu2 }
 0x590   : > { %v4220_v63 = vadd.f32 %v4219_v62, %v18352_v56  ;;  %v4489_v1 = vpop.f32.mrf.mxu1 }
 0x591   : > { %v4400_v0 = vpop.f32.mrf.mxu0 }
 0x592   : > { %v14653_v33 = vadd.f32 %v4308_v7, %v4220_v63  ;;  %v4401_v5 = vadd.f32 %v4400_v0, %v18353_v50  ;;  %v4530_v50 = vrot.slane %v13563_v48, 4 }
 0x593   : > { %9228 = vmatmul.msk.bf16.gmra.mxu3 %vm3567_vm7, %v4637_v22  ;;  %9244 = vmatmul.msk.bf16.gmra.mxu1 %vm3567_vm7, %v4637_v22  ;;  %v4529_v22 = vrot.slane %v18354_v20, 4 }
 0x594   : > { %4878 = vmatmul.bf16.gmra.mxu2 %v4636_v19  ;;  %v14658_v4 = vadd.f32 %v4489_v1, %v4401_v5  ;;  %5056 = vmatmul.bf16.gmra.mxu0 %v4636_v19  ;;  %v18355_v5 = vld [vmem:[#allocation8_spill] sm:$0xff] }
 0x595   : > { %v4528_v1 = vrot.slane %v18355_v5, 4  ;;  %v18357_v5 = vld [vmem:[#allocation68_spill] sm:$0xff] }
 0x596   : > { %v4311_v24 = vpop.f32.mrf.mxu3 }
 0x597   : > { %v4222_v58 = vpop.f32.mrf.mxu2  ;;  %v4584_v40 = vsel %vm2136_vm4, %v4528_v1, %v4530_v50 }
 0x598   : > { %v4223_v8 = vadd.f32 %v4222_v58, %v14180_v52  ;;  %v4491_v11 = vpop.f32.mrf.mxu1  ;;  %v4585_v52 = vsel %vm2136_vm4, %v4529_v22, %v4531_v39  ;;  %v4586_v58 = vsel %vm2136_vm4, %v4526_v3, %v4528_v1  ;;  %v9972_v3 = vld [vmem:[%s17329_s3 + $0x21c] sm:$0xf0] }
 0x599   : > { %v4402_v7 = vpop.f32.mrf.mxu0 }
 0x59a   : > { %v14661_v55 = vadd.f32 %v4311_v24, %v4223_v8  ;;  %v4403_v0 = vadd.f32 %v4402_v7, %v14182_v35  ;;  %v4587_v35 = vsel %vm2136_vm4, %v4527_v30, %v4529_v22  ;;  %v4638_v7 = vpack.c.bf16 %v4584_v40, %v4586_v58  ;;  %v9292_v30 = vld [vmem:[%s17329_s3 + $0x218] sm:$0xf]  ;;  %v18361_v58 = vld [vmem:[#allocation66_spill] sm:$0xff] }
 0x59b   : > { %v4639_v24 = vpack.c.bf16 %v4585_v52, %v4587_v35  ;;  %v9293_v1 = vor.u32 %v9972_v3, %v9292_v30  ;;  %v4535_v35 = vrot.slane %v18245_v41, 4  ;;  %v9971_v3 = vld [vmem:[%s17329_s3 + $0x21c] sm:$0xf] }
 0x59c   : > { %v14667_v14 = vadd.f32 %v4491_v11, %v4403_v0 }
 0x59d   : > { %5602 = vmatpush.bf16.msra.mxu2 %v9293_v1 }
 0x59e   : > { %v4313_v19 = vpop.f32.mrf.mxu3 }
 0x59f   : > { %v4224_v62 = vpop.f32.mrf.mxu2 }
 0x5a0   : > { %v4225_v56 = vadd.f32 %v4224_v62, %v18356_v37  ;;  %v5111_v63 = vpop.f32.mrf.mxu1  ;;  %v18359_v37 = vld [vmem:[#allocation103_spill] sm:$0xff] }
 0x5a1   : > { %v5022_v11 = vpop.f32.mrf.mxu0 }
 0x5a2   : > { %v14679_v8 = vadd.f32 %v4313_v19, %v4225_v56  ;;  %v5112_v0 = vadd.f32 %v5111_v63, %v5022_v11  ;;  %v4533_v11 = vrot.slane %v18361_v58, 4  ;;  %v18365_v58 = vld [vmem:[#allocation105_spill] sm:$0xff] }
 0x5a3   : > { %9229 = vmatmul.msk.bf16.gmra.mxu3 %vm3567_vm7, %v4639_v24  ;;  %9245 = vmatmul.msk.bf16.gmra.mxu1 %vm3567_vm7, %v4639_v24  ;;  %v4534_v24 = vrot.slane %v18247_v16, 4 }
 0x5a4   : > { %4883 = vmatmul.bf16.gmra.mxu2 %v4638_v7  ;;  %v14684_v62 = vadd.f32 %v5112_v0, %v18357_v5  ;;  %5061 = vmatmul.bf16.gmra.mxu0 %v4638_v7  ;;  %v18362_v7 = vld [vmem:[#allocation104_spill] sm:$0xff] }
 0x5a6   : > { %18358 = vst [vmem:[#allocation93_spill] sm:$0xff] %v14684_v62  ;;  %v4933_v22 = vpop.f32.mrf.mxu3  ;;  %v18364_v62 = vld [vmem:[#allocation67_spill] sm:$0xff] }
 0x5a7   : > { %v4844_v19 = vpop.f32.mrf.mxu2  ;;  %v4532_v30 = vrot.slane %v18364_v62, 4 }
 0x5a8   : > { %v4934_v52 = vadd.f32 %v4933_v22, %v4844_v19  ;;  %v5113_v40 = vpop.f32.mrf.mxu1  ;;  %v9294_v22 = vld [vmem:[%s17329_s3 + $0x220] sm:$0xf0]  ;;  %v4581_v19 = vsel %vm2136_vm4, %v4533_v11, %v4535_v35 }
 0x5a9   : > { %v5024_v5 = vpop.f32.mrf.mxu0 }
 0x5aa   : > { %v14693_v56 = vadd.f32 %v4934_v52, %v18359_v37  ;;  %v5114_v63 = vadd.f32 %v5113_v40, %v5024_v5  ;;  %v9297_v52 = vor.u32 %v9971_v3, %v9294_v22  ;;  %v4580_v37 = vsel %vm2136_vm4, %v4532_v30, %v4534_v24  ;;  %v9340_v3 = vld [vmem:[%s17329_s3 + $0x278] sm:$0xf]  ;;  %v9984_v22 = vld [vmem:[%s17329_s3 + $0x27c] sm:$0xf0] }
 0x5ac   : > { %18360 = vst [vmem:[#allocation94_spill] sm:$0xff] %v14693_v56  ;;  %v14699_v0 = vadd.f32 %v5114_v63, %v18362_v7  ;;  %v4583_v63 = vsel %vm2136_vm4, %v4531_v39, %v4533_v11  ;;  %5780 = vmatpush.bf16.msra.mxu0 %v9297_v52  ;;  %v9341_v11 = vor.u32 %v9984_v22, %v9340_v3  ;;  %v4536_v3 = vrot.slane %v18248_v46, 4 }
 0x5ad   : > { %v4641_v62 = vpack.c.bf16 %v4581_v19, %v4583_v63  ;;  %v4539_v63 = vrot.slane %v13683_v9, 4  ;;  %v4538_v22 = vrot.slane %v13687_v17, 4 }
 0x5ae   : > { %18363 = vst [vmem:[#allocation95_spill] sm:$0xff] %v14699_v0  ;;  %v4935_v1 = vpop.f32.mrf.mxu3  ;;  %v4582_v0 = vsel %vm2136_vm4, %v4530_v50, %v4532_v30  ;;  %v18366_v50 = vld [vmem:[#allocation106_spill] sm:$0xff]  ;;  %5693 = vmatpush.bf16.msra.mxu3 %v9341_v11  ;;  %v9342_v30 = vld [vmem:[%s17329_s3 + $0x280] sm:$0xf0] }
 0x5af   : > { %v4846_v40 = vpop.f32.mrf.mxu2  ;;  %v4640_v56 = vpack.c.bf16 %v4580_v37, %v4582_v0  ;;  %v9983_v0 = vld [vmem:[%s17329_s3 + $0x27c] sm:$0xf] }
 0x5b0   : > { %v4936_v5 = vadd.f32 %v4935_v1, %v4846_v40  ;;  %v5116_v7 = vpop.f32.mrf.mxu1  ;;  %v9345_v1 = vor.u32 %v9983_v0, %v9342_v30  ;;  %v18367_v40 = vld [vmem:[#allocation107_spill] sm:$0xff] }
 0x5b1   : > { %v5027_v41 = vpop.f32.mrf.mxu0 }
 0x5b2   : > { %v14717_v16 = vadd.f32 %v4936_v5, %v18365_v58  ;;  %v5117_v39 = vadd.f32 %v5116_v7, %v5027_v41  ;;  %5871 = vmatpush.bf16.msra.mxu1 %v9345_v1  ;;  %v4578_v1 = vsel %vm2136_vm4, %v4534_v24, %v4536_v3  ;;  %v9284_v24 = vld [vmem:[%s17329_s3 + $0x208] sm:$0xf] }
 0x5b3   : > { %9230 = vmatmul.msk.bf16.gmra.mxu3 %vm3567_vm7, %v4641_v62  ;;  %9246 = vmatmul.msk.bf16.gmra.mxu1 %vm3567_vm7, %v4641_v62 }
 0x5b4   : > { %4888 = vmatmul.bf16.gmra.mxu2 %v4640_v56  ;;  %v14728_v58 = vadd.f32 %v5117_v39, %v18366_v50  ;;  %5066 = vmatmul.bf16.gmra.mxu0 %v4640_v56  ;;  %v4537_v56 = vrot.slane %v18246_v15, 4 }
 0x5b6   : > { %v4938_v41 = vpop.f32.mrf.mxu3  ;;  %v4577_v50 = vsel %vm2136_vm4, %v4537_v56, %v4539_v63  ;;  %v4579_v0 = vsel %vm2136_vm4, %v4535_v35, %v4537_v56 }
 0x5b7   : > { %v4849_v19 = vpop.f32.mrf.mxu2 }
 0x5b8   : > { %v4939_v52 = vadd.f32 %v4938_v41, %v4849_v19  ;;  %v5118_v62 = vpop.f32.mrf.mxu1  ;;  %v4576_v41 = vsel %vm2136_vm4, %v4536_v3, %v4538_v22 }
 0x5b9   : > { %v5029_v5 = vpop.f32.mrf.mxu0 }
 0x5ba   : > { %v14737_v37 = vadd.f32 %v4939_v52, %v18367_v40  ;;  %v5119_v7 = vadd.f32 %v5118_v62, %v5029_v5  ;;  %v4643_v62 = vpack.c.bf16 %v4577_v50, %v4579_v0  ;;  %v4642_v5 = vpack.c.bf16 %v4576_v41, %v4578_v1 }
 0x5bb   : > { %v4543_v41 = vrot.slane %v13754_v32, 4 }
 0x5bc   : > { %v14744_v39 = vadd.f32 %v5119_v7, %v14241_v47 }
 0x5be   : > { %v4940_v11 = vpop.f32.mrf.mxu3 }
 0x5bf   : > { %v4851_v30 = vpop.f32.mrf.mxu2 }
 0x5c0   : > { %v4941_v19 = vadd.f32 %v4940_v11, %v4851_v30  ;;  %v5121_v52 = vpop.f32.mrf.mxu1 }
 0x5c1   : > { %v5032_v40 = vpop.f32.mrf.mxu0 }
 0x5c2   : > { %v14755_v47 = vadd.f32 %v4941_v19, %v14246_v23  ;;  %v5122_v7 = vadd.f32 %v5121_v52, %v5032_v40  ;;  %v9970_v23 = vld [vmem:[%s17329_s3 + $0x20c] sm:$0xf0]  ;;  %v4542_v19 = vrot.slane %v18256_v44, 4  ;;  %v18369_v52 = vld [vmem:[#allocation49_spill] sm:$0xff] }
 0x5c3   : > { %9231 = vmatmul.msk.bf16.gmra.mxu3 %vm3567_vm7, %v4643_v62  ;;  %9247 = vmatmul.msk.bf16.gmra.mxu1 %vm3567_vm7, %v4643_v62  ;;  %v9285_v3 = vor.u32 %v9970_v23, %v9284_v24  ;;  %v4541_v62 = vrot.slane %v18369_v52, 4  ;;  %v18370_v40 = vld [vmem:[#allocation17_spill] sm:$0xff]  ;;  %v9969_v23 = vld [vmem:[%s17329_s3 + $0x20c] sm:$0xf]  ;;  %v18373_v52 = vld [vmem:[#allocation71_spill] sm:$0xff] }
 0x5c4   : > { %4893 = vmatmul.bf16.gmra.mxu2 %v4642_v5  ;;  %v14760_v35 = vadd.f32 %v5122_v7, %v14253_v59  ;;  %5071 = vmatmul.bf16.gmra.mxu0 %v4642_v5  ;;  %v18372_v7 = vld [vmem:[#allocation73_spill] sm:$0xff] }
 0x5c5   : > { %5603 = vmatpush.bf16.msra.mxu2 %v9285_v3  ;;  %v4540_v24 = vrot.slane %v18372_v7, 4  ;;  %v4573_v3 = vsel %vm2136_vm4, %v4541_v62, %v4543_v41 }
 0x5c6   : > { %v4943_v56 = vpop.f32.mrf.mxu3 }
 0x5c7   : > { %v4854_v11 = vpop.f32.mrf.mxu2 }
 0x5c8   : > { %v4944_v50 = vadd.f32 %v4943_v56, %v4854_v11  ;;  %v5123_v0 = vpop.f32.mrf.mxu1 }
 0x5c9   : > { %v5034_v59 = vpop.f32.mrf.mxu0 }
 0x5ca   : > { %v14769_v30 = vadd.f32 %v4944_v50, %v14262_v43  ;;  %v5124_v1 = vadd.f32 %v5123_v0, %v5034_v59  ;;  %v9286_v43 = vld [vmem:[%s17329_s3 + $0x210] sm:$0xf0]  ;;  %v4572_v0 = vsel %vm2136_vm4, %v4540_v24, %v4542_v19 }
 0x5cb   : > { %v9289_v11 = vor.u32 %v9969_v23, %v9286_v43 }
 0x5cc   : > { %18368 = vst [vmem:[#allocation96_spill] sm:$0xff] %v14769_v30  ;;  %v14775_v5 = vadd.f32 %v5124_v1, %v18370_v40  ;;  %v4575_v1 = vsel %vm2136_vm4, %v4539_v63, %v4541_v62 }
 0x5cd   : > { %5781 = vmatpush.bf16.msra.mxu0 %v9289_v11  ;;  %v4645_v7 = vpack.c.bf16 %v4573_v3, %v4575_v1  ;;  %v4546_v11 = vrot.slane %v18266_v31, 4 }
 0x5ce   : > { %18371 = vst [vmem:[#allocation97_spill] sm:$0xff] %v14775_v5  ;;  %v4945_v56 = vpop.f32.mrf.mxu3  ;;  %v4574_v5 = vsel %vm2136_vm4, %v4538_v22, %v4540_v24  ;;  %v18374_v22 = vld [vmem:[#allocation70_spill] sm:$0xff] }
 0x5cf   : > { %v4856_v50 = vpop.f32.mrf.mxu2  ;;  %v4644_v30 = vpack.c.bf16 %v4572_v0, %v4574_v5  ;;  %v4547_v5 = vrot.slane %v18263_v54, 4 }
 0x5d0   : > { %v4946_v59 = vadd.f32 %v4945_v56, %v4856_v50  ;;  %v5126_v40 = vpop.f32.mrf.mxu1 }
 0x5d1   : > { %v5037_v32 = vpop.f32.mrf.mxu0 }
 0x5d2   : > { %v14793_v44 = vadd.f32 %v4946_v59, %v18373_v52  ;;  %v5127_v23 = vadd.f32 %v5126_v40, %v5037_v32 }
 0x5d3   : > { %9232 = vmatmul.msk.bf16.gmra.mxu3 %vm3567_vm7, %v4645_v7  ;;  %9248 = vmatmul.msk.bf16.gmra.mxu1 %vm3567_vm7, %v4645_v7  ;;  %v4545_v7 = vrot.slane %v13798_v45, 4 }
 0x5d4   : > { %4898 = vmatmul.bf16.gmra.mxu2 %v4644_v30  ;;  %v14798_v43 = vadd.f32 %v5127_v23, %v14283_v34  ;;  %5076 = vmatmul.bf16.gmra.mxu0 %v4644_v30  ;;  %v4544_v34 = vrot.slane %v18257_v28, 4 }
 0x5d5   : > { %v4569_v0 = vsel %vm2136_vm4, %v4545_v7, %v4547_v5  ;;  %v4571_v23 = vsel %vm2136_vm4, %v4543_v41, %v4545_v7  ;;  %v9276_v41 = vld [vmem:[%s17329_s3 + $0x1f8] sm:$0xf] }
 0x5d6   : > { %v4948_v63 = vpop.f32.mrf.mxu3  ;;  %v4568_v1 = vsel %vm2136_vm4, %v4544_v34, %v4546_v11 }
 0x5d7   : > { %v4859_v62 = vpop.f32.mrf.mxu2 }
 0x5d8   : > { %v4949_v56 = vadd.f32 %v4948_v63, %v4859_v62  ;;  %v5128_v3 = vpop.f32.mrf.mxu1  ;;  %v4647_v62 = vpack.c.bf16 %v4569_v0, %v4571_v23  ;;  %v18379_v23 = vld [vmem:[#allocation21_spill] sm:$0xff] }
 0x5d9   : > { %v5039_v52 = vpop.f32.mrf.mxu0 }
 0x5da   : > { %v14801_v24 = vadd.f32 %v4949_v56, %v18374_v22  ;;  %v5129_v32 = vadd.f32 %v5128_v3, %v5039_v52  ;;  %v18375_v56 = vld [vmem:[#allocation69_spill] sm:$0xff] }
 0x5dc   : > { %v14807_v50 = vadd.f32 %v5129_v32, %v14289_v38  ;;  %v4570_v38 = vsel %vm2136_vm4, %v4542_v19, %v4544_v34  ;;  %v9968_v19 = vld [vmem:[%s17329_s3 + $0x1fc] sm:$0xf0] }
 0x5dd   : > { %v4646_v52 = vpack.c.bf16 %v4568_v1, %v4570_v38  ;;  %v9277_v34 = vor.u32 %v9968_v19, %v9276_v41  ;;  %v18381_v38 = vld [vmem:[#allocation33_spill] sm:$0xff]  ;;  %v9967_v41 = vld [vmem:[%s17329_s3 + $0x1fc] sm:$0xf] }
 0x5de   : > { %v4950_v30 = vpop.f32.mrf.mxu3  ;;  %v9278_v19 = vld [vmem:[%s17329_s3 + $0x200] sm:$0xf0] }
 0x5df   : > { %v4861_v59 = vpop.f32.mrf.mxu2  ;;  %5604 = vmatpush.bf16.msra.mxu2 %v9277_v34 }
 0x5e0   : > { %v4951_v40 = vadd.f32 %v4950_v30, %v4861_v59  ;;  %v5131_v63 = vpop.f32.mrf.mxu1  ;;  %v18377_v30 = vld [vmem:[#allocation18_spill] sm:$0xff] }
 0x5e1   : > { %v5042_v22 = vpop.f32.mrf.mxu0 }
 0x5e2   : > { %v14819_v3 = vadd.f32 %v4951_v40, %v18375_v56  ;;  %v5132_v32 = vadd.f32 %v5131_v63, %v5042_v22  ;;  %v4549_v56 = vrot.slane %v18381_v38, 4  ;;  %v4551_v22 = vrot.slane %v18269_v21, 4 }
 0x5e3   : > { %9233 = vmatmul.msk.bf16.gmra.mxu3 %vm3567_vm7, %v4647_v62  ;;  %9249 = vmatmul.msk.bf16.gmra.mxu1 %vm3567_vm7, %v4647_v62 }
 0x5e4   : > { %18376 = vst [vmem:[#allocation98_spill] sm:$0xff] %v14819_v3  ;;  %4903 = vmatmul.bf16.gmra.mxu2 %v4646_v52  ;;  %v14824_v59 = vadd.f32 %v5132_v32, %v18377_v30  ;;  %5081 = vmatmul.bf16.gmra.mxu0 %v4646_v52  ;;  %v18382_v32 = vld [vmem:[#allocation40_spill] sm:$0xff]  ;;  %v4565_v34 = vsel %vm2136_vm4, %v4549_v56, %v4551_v22 }
 0x5e5   : > { %v4548_v30 = vrot.slane %v18382_v32, 4  ;;  %v18383_v3 = vld [vmem:[#allocation32_spill] sm:$0xff] }
 0x5e6   : > { %18378 = vst [vmem:[#allocation99_spill] sm:$0xff] %v14824_v59  ;;  %v4953_v7 = vpop.f32.mrf.mxu3  ;;  %v4550_v59 = vrot.slane %v18271_v53, 4  ;;  %v18385_v53 = vld [vmem:[#allocation22_spill] sm:$0xff] }
 0x5e7   : > { %v4864_v0 = vpop.f32.mrf.mxu2 }
 0x5e8   : > { %v4954_v1 = vadd.f32 %v4953_v7, %v4864_v0  ;;  %v5133_v40 = vpop.f32.mrf.mxu1  ;;  %v4567_v0 = vsel %vm2136_vm4, %v4547_v5, %v4549_v56  ;;  %v18386_v5 = vld [vmem:[#allocation108_spill] sm:$0xff] }
 0x5e9   : > { %v5044_v62 = vpop.f32.mrf.mxu0 }
 0x5ea   : > { %v14833_v63 = vadd.f32 %v4954_v1, %v18379_v23  ;;  %v5134_v52 = vadd.f32 %v5133_v40, %v5044_v62  ;;  %v9281_v1 = vor.u32 %v9967_v41, %v9278_v19  ;;  %v4566_v23 = vsel %vm2136_vm4, %v4546_v11, %v4548_v30 }
 0x5ec   : > { %18380 = vst [vmem:[#allocation100_spill] sm:$0xff] %v14833_v63  ;;  %v14840_v28 = vadd.f32 %v5134_v52, %v18383_v3  ;;  %v4564_v3 = vsel %vm2136_vm4, %v4548_v30, %v4550_v59  ;;  %5782 = vmatpush.bf16.msra.mxu0 %v9281_v1 }
 0x5ed   : > { %v4648_v38 = vpack.c.bf16 %v4564_v3, %v4566_v23 }
 0x5ee   : > { %18384 = vst [vmem:[#allocation101_spill] sm:$0xff] %v14840_v28  ;;  %v4955_v7 = vpop.f32.mrf.mxu3  ;;  %v4649_v28 = vpack.c.bf16 %v4565_v34, %v4567_v0  ;;  %v4555_v34 = vrot.slane %v13929_v2, 4  ;;  %v4554_v0 = vrot.slane %v18276_v26, 4 }
 0x5ef   : > { %v4866_v40 = vpop.f32.mrf.mxu2 }
 0x5f0   : > { %v4956_v62 = vadd.f32 %v4955_v7, %v4866_v40  ;;  %v5136_v52 = vpop.f32.mrf.mxu1 }
 0x5f1   : > { %v5047_v21 = vpop.f32.mrf.mxu0 }
 0x5f2   : > { %v14857_v32 = vadd.f32 %v4956_v62, %v18385_v53  ;;  %v5137_v63 = vadd.f32 %v5136_v52, %v5047_v21 }
 0x5f3   : > { %9234 = vmatmul.msk.bf16.gmra.mxu3 %vm3567_vm7, %v4649_v28  ;;  %9250 = vmatmul.msk.bf16.gmra.mxu1 %vm3567_vm7, %v4649_v28  ;;  %v4553_v28 = vrot.slane %v13918_v42, 4 }
 0x5f4   : > { %4908 = vmatmul.bf16.gmra.mxu2 %v4648_v38  ;;  %v14862_v56 = vadd.f32 %v5137_v63, %v18386_v5  ;;  %5086 = vmatmul.bf16.gmra.mxu0 %v4648_v38  ;;  %v4552_v63 = vrot.slane %v13923_v25, 4  ;;  %v18396_v25 = vld [vmem:[#allocation112_spill] sm:$0xff] }
 0x5f5   : > { %v4561_v40 = vsel %vm2136_vm4, %v4553_v28, %v4555_v34  ;;  %v4563_v62 = vsel %vm2136_vm4, %v4551_v22, %v4553_v28  ;;  %v9465_v22 = vld [vmem:[%s17329_s3 + $0x310] sm:$0xf]  ;;  %v9406_v28 = vld [vmem:[%s17329_s3 + $0x340] sm:$0x11] }
 0x5f6   : > { %v4958_v11 = vpop.f32.mrf.mxu3  ;;  %v4651_v5 = vpack.c.bf16 %v4561_v40, %v4563_v62 }
 0x5f7   : > { %v4869_v30 = vpop.f32.mrf.mxu2 }
 0x5f8   : > { %v4959_v41 = vadd.f32 %v4958_v11, %v4869_v30  ;;  %v5138_v19 = vpop.f32.mrf.mxu1  ;;  %v18388_v11 = vld [vmem:[#allocation109_spill] sm:$0xff] }
 0x5f9   : > { %v5049_v53 = vpop.f32.mrf.mxu0 }
 0x5fa   : > { %v14865_v7 = vadd.f32 %v4959_v41, %v14334_v61  ;;  %v5139_v21 = vadd.f32 %v5138_v19, %v5049_v53  ;;  %v4560_v61 = vsel %vm2136_vm4, %v4552_v63, %v4554_v0 }
 0x5fc   : > { %v14871_v1 = vadd.f32 %v5139_v21, %v14337_v57  ;;  %v4562_v57 = vsel %vm2136_vm4, %v4550_v59, %v4552_v63  ;;  %v18390_v21 = vld [vmem:[#allocation110_spill] sm:$0xff]  ;;  %v10002_v59 = vld [vmem:[%s17329_s3 + $0x314] sm:$0xf0] }
 0x5fd   : > { %v4650_v19 = vpack.c.bf16 %v4560_v61, %v4562_v57  ;;  %v9466_v40 = vor.u32 %v10002_v59, %v9465_v22  ;;  %v10001_v59 = vld [vmem:[%s17329_s3 + $0x314] sm:$0xf] }
 0x5fe   : > { %18387 = vst [vmem:[#allocation64_spill] sm:$0xff] %v14871_v1  ;;  %v4960_v38 = vpop.f32.mrf.mxu3 }
 0x5ff   : > { %v4871_v3 = vpop.f32.mrf.mxu2  ;;  %6230 = vmatpush.bf16.msrb.mxu2 %v9466_v40  ;;  %v6133_v40 = vunpack.c.h.b16 %v9406_v28 }
 0x600   : > { %v4961_v23 = vadd.f32 %v4960_v38, %v4871_v3  ;;  %v5141_v52 = vpop.f32.mrf.mxu1  ;;  %v6132_v3 = vunpack.c.l.b16 %v9406_v28 }
 0x601   : > { %v5052_v41 = vpop.f32.mrf.mxu0  ;;  %v6155_v28 = vpack.c.b16 %v6133_v40, %v6133_v40 }
 0x602   : > { %v14883_v30 = vadd.f32 %v4961_v23, %v18388_v11  ;;  %v5142_v53 = vadd.f32 %v5141_v52, %v5052_v41  ;;  %v6154_v62 = vpack.c.b16 %v6132_v3, %v6132_v3  ;;  %v18394_v41 = vld [vmem:[#allocation48_spill] sm:$0xff] }
 0x603   : > { %9235 = vmatmul.msk.bf16.gmra.mxu3 %vm3567_vm7, %v4651_v5  ;;  %9251 = vmatmul.msk.bf16.gmra.mxu1 %vm3567_vm7, %v4651_v5  ;;  %v18392_v5 = vld [vmem:[#allocation111_spill] sm:$0xff] }
 0x604   : > { %18389 = vst [vmem:[#allocation102_spill] sm:$0xff] %v14883_v30  ;;  %4913 = vmatmul.bf16.gmra.mxu2 %v4650_v19  ;;  %v14888_v38 = vadd.f32 %v5142_v53, %v18390_v21  ;;  %5091 = vmatmul.bf16.gmra.mxu0 %v4650_v19  ;;  %v4557_v19 = vrot.slane %v18394_v41, 4  ;;  %v6225_v53 = vsel %vm3616_vm5, %v6154_v62, 0  ;;  %v6228_v41 = vsel %vm3616_vm5, %v6155_v28, 0  ;;  %v18410_v28 = vld [vmem:[#allocation116_spill] sm:$0xff] }
 0x605   : > { %6324 = vmatpush.bf16.msrb.mxu3 %v6225_v53  ;;  %6502 = vmatpush.bf16.msrb.mxu1 %v6228_v41  ;;  %vm8258_vm5 = vcmask 687104  }
 0x606   : > { %18391 = vst [vmem:[#allocation68_spill] sm:$0xff] %v14888_v38  ;;  %v4963_v63 = vpop.f32.mrf.mxu3  ;;  %v18395_v38 = vld [vmem:[#allocation24_spill] sm:$0xff] }
 0x607   : > { %v4874_v61 = vpop.f32.mrf.mxu2  ;;  %v4556_v30 = vrot.slane %v18395_v38, 4 }
 0x608   : > { %v4964_v23 = vadd.f32 %v4963_v63, %v4874_v61  ;;  %v5143_v52 = vpop.f32.mrf.mxu1  ;;  %v9467_v63 = vld [vmem:[%s17329_s3 + $0x318] sm:$0xf0]  ;;  %v4559_v61 = vsel %vm2136_vm4, %v4555_v34, %v4557_v19 }
 0x609   : > { %v5054_v11 = vpop.f32.mrf.mxu0 }
 0x60a   : > { %v14900_v57 = vadd.f32 %v4964_v23, %v18392_v5  ;;  %v5144_v21 = vadd.f32 %v5143_v52, %v5054_v11  ;;  %v18398_v23 = vrot.slane %v18283_v60, 4  ;;  %v4558_v5 = vsel %vm2136_vm4, %v4554_v0, %v4556_v30  ;;  %v18399_v11 = vld [vmem:[#allocation38_spill] sm:$0xff] }
 0x60b   : > { %v18400_v53 = vrot.slane %v18399_v11, 4  ;;  %v18403_v0 = vld [vmem:[#allocation114_spill] sm:$0xff] }
 0x60c   : > { %18393 = vst [vmem:[#allocation103_spill] sm:$0xff] %v14900_v57  ;;  %v14906_v22 = vadd.f32 %v5144_v21, %v18396_v25  ;;  %v4621_v62 = vsel %vm2136_vm4, %v4557_v19, %v18398_v23  ;;  %v9470_v25 = vor.u32 %v10001_v59, %v9467_v63  ;;  %v18401_v57 = vld [vmem:[#allocation113_spill] sm:$0xff] }
 0x60d   : > { %v4620_v21 = vsel %vm2136_vm4, %v4556_v30, %v18400_v53  ;;  %v4653_v34 = vpack.c.bf16 %v4621_v62, %v4559_v61  ;;  %v18405_v62 = vld [vmem:[#allocation115_spill] sm:$0xff]  ;;  %v18409_v53 = vld [vmem:[#allocation53_spill] sm:$0xff]  ;;  %vm8187_vm4 = vcmask 982016  }
 0x60e   : > { %18397 = vst [vmem:[#allocation104_spill] sm:$0xff] %v14906_v22  ;;  %v4965_v3 = vpop.f32.mrf.mxu3  ;;  %6408 = vmatpush.bf16.msrb.mxu0 %v9470_v25  ;;  %v4652_v59 = vpack.c.bf16 %v4620_v21, %v4558_v5  ;;  %v18407_v25 = vld [vmem:[#allocation39_spill] sm:$0xff]  ;;  %v5258_v21 = vrot.slane %v18409_v53, 6 }
 0x60f   : > { %v4876_v52 = vpop.f32.mrf.mxu2  ;;  %v5260_v41 = vrot.slane %v18407_v25, 6 }
 0x610   : > { %v4966_v22 = vadd.f32 %v4965_v3, %v4876_v52  ;;  %v5146_v38 = vpop.f32.mrf.mxu1  ;;  %v18408_v52 = vld [vmem:[#allocation26_spill] sm:$0xff] }
 0x611   : > { %v5057_v19 = vpop.f32.mrf.mxu0  ;;  %v5259_v5 = vrot.slane %v18408_v52, 6 }
 0x612   : > { %v14928_v1 = vadd.f32 %v4966_v22, %v18401_v57  ;;  %v5147_v63 = vadd.f32 %v5146_v38, %v5057_v19  ;;  %v18412_v19 = vld [vmem:[#allocation37_spill] sm:$0xff] }
 0x613   : > { %9236 = vmatmul.msk.bf16.gmra.mxu3 %vm3567_vm7, %v4653_v34  ;;  %9252 = vmatmul.msk.bf16.gmra.mxu1 %vm3567_vm7, %v4653_v34 }
 0x614   : > { %18402 = vst [vmem:[#allocation105_spill] sm:$0xff] %v14928_v1  ;;  %4918 = vmatmul.bf16.gmra.mxu2 %v4652_v59  ;;  %v14933_v30 = vadd.f32 %v5147_v63, %v18403_v0  ;;  %5096 = vmatmul.bf16.gmra.mxu0 %v4652_v59  ;;  %v5257_v59 = vrot.slane %v18412_v19, 6  ;;  %v17600_v0 = vrot.slane %v18283_v60, 6  ;;  %v18413_v19 = vld [vmem:[#allocation35_spill] sm:$0xff] }
 0x615   : > { %v18424_v1 = vld [vmem:[#allocation43_spill] sm:$0xff] }
 0x616   : > { %18404 = vst [vmem:[#allocation106_spill] sm:$0xff] %v14933_v30  ;;  %v4968_v40 = vpop.f32.mrf.mxu3 }
 0x617   : > { %v4879_v3 = vpop.f32.mrf.mxu2 }
 0x618   : > { %v4969_v61 = vadd.f32 %v4968_v40, %v4879_v3  ;;  %v5148_v23 = vpop.f32.mrf.mxu1  ;;  %v5379_v40 = vsel %vm5319_vm8, %v5258_v21, %v5260_v41 }
 0x619   : > { %v5059_v22 = vpop.f32.mrf.mxu0 }
 0x61a   : > { %v14936_v57 = vadd.f32 %v4969_v61, %v18405_v62  ;;  %v5149_v38 = vadd.f32 %v5148_v23, %v5059_v22  ;;  %v17599_v61 = vrot.slane %v18399_v11, 6  ;;  %v5378_v23 = vsel %vm5319_vm8, %v5257_v59, %v5259_v5 }
 0x61b   : > { %v5381_v22 = vsel %vm5319_vm8, %v17600_v0, %v5258_v21  ;;  %v18421_v0 = vld [vmem:[#allocation42_spill] sm:$0xff] }
 0x61c   : > { %18406 = vst [vmem:[#allocation107_spill] sm:$0xff] %v14936_v57  ;;  %v14942_v34 = vadd.f32 %v5149_v38, %v18410_v28  ;;  %v5385_v28 = vpack.c.bf16 %v5379_v40, %v5381_v22  ;;  %v5380_v52 = vsel %vm5319_vm8, %v17599_v61, %v5257_v59  ;;  %v9457_v40 = vld [vmem:[%s17329_s3 + $0x300] sm:$0xf] }
 0x61e   : > { %18411 = vst [vmem:[#allocation17_spill] sm:$0xff] %v14942_v34  ;;  %v4970_v63 = vpop.f32.mrf.mxu3  ;;  %v5384_v34 = vpack.c.bf16 %v5378_v23, %v5380_v52 }
 0x61f   : > { %v4881_v3 = vpop.f32.mrf.mxu2 }
 0x620   : > { %v4971_v62 = vadd.f32 %v4970_v63, %v4881_v3  ;;  %v5151_v38 = vpop.f32.mrf.mxu1  ;;  %v18415_v63 = vld [vmem:[#allocation36_spill] sm:$0xff] }
 0x621   : > { %v5062_v53 = vpop.f32.mrf.mxu0 }
 0x622   : > { %v14961_v25 = vadd.f32 %v4971_v62, %v18413_v19  ;;  %v5152_v57 = vadd.f32 %v5151_v38, %v5062_v53  ;;  %v10000_v19 = vld [vmem:[%s17329_s3 + $0x304] sm:$0xf0]  ;;  %v18417_v62 = vld [vmem:[#allocation25_spill] sm:$0xff]  ;;  %v18419_v38 = vld [vmem:[#allocation27_spill] sm:$0xff] }
 0x623   : > { %9354 = vmatmul.msk.bf16.vlgmr.msra.gmra.mxu3 %vm3567_vm7, %v5385_v28  ;;  %9370 = vmatmul.msk.bf16.vlgmr.msra.gmra.mxu1 %vm3567_vm7, %v5385_v28  ;;  %v9458_v52 = vor.u32 %v10000_v19, %v9457_v40  ;;  %v5263_v40 = vrot.slane %v18424_v1, 6  ;;  %v9999_v19 = vld [vmem:[%s17329_s3 + $0x304] sm:$0xf] }
 0x624   : > { %18414 = vst [vmem:[#allocation71_spill] sm:$0xff] %v14961_v25  ;;  %5605 = vmatmul.bf16.vlgmr.msra.gmra.mxu2 %v5384_v34  ;;  %v14966_v21 = vadd.f32 %v5152_v57, %v18415_v63  ;;  %5783 = vmatmul.bf16.vlgmr.msra.gmra.mxu0 %v5384_v34  ;;  %v5262_v34 = vrot.slane %v18419_v38, 6  ;;  %v18420_v63 = vld [vmem:[#allocation57_spill] sm:$0xff]  ;;  %v18422_v25 = vld [vmem:[#allocation76_spill] sm:$0xff] }
 0x625   : > { %6231 = vmatpush.bf16.msrb.mxu2 %v9458_v52  ;;  %v5261_v61 = vrot.slane %v18420_v63, 6 }
 0x626   : > { %18416 = vst [vmem:[#allocation70_spill] sm:$0xff] %v14966_v21  ;;  %v4973_v59 = vpop.f32.mrf.mxu3  ;;  %v5264_v21 = vrot.slane %v18421_v0, 6 }
 0x627   : > { %v4884_v53 = vpop.f32.mrf.mxu2 }
 0x628   : > { %v4974_v3 = vadd.f32 %v4973_v59, %v4884_v53  ;;  %v5153_v23 = vpop.f32.mrf.mxu1  ;;  %v9459_v59 = vld [vmem:[%s17329_s3 + $0x308] sm:$0xf0]  ;;  %v5375_v53 = vsel %vm5319_vm8, %v5262_v34, %v5264_v21 }
 0x629   : > { %v5064_v57 = vpop.f32.mrf.mxu0 }
 0x62a   : > { %v14975_v22 = vadd.f32 %v4974_v3, %v18417_v62  ;;  %v5154_v28 = vadd.f32 %v5153_v23, %v5064_v57  ;;  %v5377_v3 = vsel %vm5319_vm8, %v5260_v41, %v5262_v34  ;;  %v9462_v23 = vor.u32 %v9999_v19, %v9459_v59  ;;  %v18425_v59 = vld [vmem:[#allocation77_spill] sm:$0xff] }
 0x62b   : > { %v5374_v62 = vsel %vm5319_vm8, %v5261_v61, %v5263_v40  ;;  %v5376_v57 = vsel %vm5319_vm8, %v5259_v5, %v5261_v61  ;;  %v5387_v63 = vpack.c.bf16 %v5375_v53, %v5377_v3  ;;  %v18427_v53 = vld [vmem:[#allocation45_spill] sm:$0xff] }
 0x62c   : > { %18418 = vst [vmem:[#allocation69_spill] sm:$0xff] %v14975_v22  ;;  %v14981_v30 = vadd.f32 %v5154_v28, %v18422_v25  ;;  %6409 = vmatpush.bf16.msrb.mxu0 %v9462_v23  ;;  %v5268_v3 = vrot.slane %v18427_v53, 6 }
 0x62e   : > { %18423 = vst [vmem:[#allocation18_spill] sm:$0xff] %v14981_v30  ;;  %v4975_v52 = vpop.f32.mrf.mxu3  ;;  %v5386_v30 = vpack.c.bf16 %v5374_v62, %v5376_v57  ;;  %v18430_v62 = vld [vmem:[#allocation78_spill] sm:$0xff] }
 0x62f   : > { %v4886_v25 = vpop.f32.mrf.mxu2 }
 0x630   : > { %v4976_v28 = vadd.f32 %v4975_v52, %v4886_v25  ;;  %v5156_v1 = vpop.f32.mrf.mxu1  ;;  %v18429_v25 = vld [vmem:[#allocation12_spill] sm:$0xff] }
 0x631   : > { %v5067_v38 = vpop.f32.mrf.mxu0 }
 0x632   : > { %v14999_v0 = vadd.f32 %v4976_v28, %v14449_v13  ;;  %v5157_v22 = vadd.f32 %v5156_v1, %v5067_v38  ;;  %v18428_v38 = vld [vmem:[#allocation28_spill] sm:$0xff] }
 0x633   : > { %9355 = vmatmul.msk.bf16.gmra.mxu3 %vm3567_vm7, %v5387_v63  ;;  %9371 = vmatmul.msk.bf16.gmra.mxu1 %vm3567_vm7, %v5387_v63  ;;  %v5267_v23 = vrot.slane %v18428_v38, 6  ;;  %v5266_v63 = vrot.slane %v18429_v25, 6 }
 0x634   : > { %5610 = vmatmul.bf16.gmra.mxu2 %v5386_v30  ;;  %v15004_v41 = vadd.f32 %v5157_v22, %v14454_v51  ;;  %5788 = vmatmul.bf16.gmra.mxu0 %v5386_v30  ;;  %v18432_v51 = vld [vmem:[#allocation44_spill] sm:$0xff] }
 0x635   : > { %v5265_v30 = vrot.slane %v18432_v51, 6  ;;  %v5371_v28 = vsel %vm5319_vm8, %v5266_v63, %v5268_v3 }
 0x636   : > { %v4978_v5 = vpop.f32.mrf.mxu3 }
 0x637   : > { %v4889_v61 = vpop.f32.mrf.mxu2 }
 0x638   : > { %v4979_v34 = vadd.f32 %v4978_v5, %v4889_v61  ;;  %v5158_v19 = vpop.f32.mrf.mxu1  ;;  %v5370_v61 = vsel %vm5319_vm8, %v5265_v30, %v5267_v23 }
 0x639   : > { %v5069_v13 = vpop.f32.mrf.mxu0 }
 0x63a   : > { %v15007_v52 = vadd.f32 %v4979_v34, %v18425_v59  ;;  %v5159_v1 = vadd.f32 %v5158_v19, %v5069_v13  ;;  %v5373_v19 = vsel %vm5319_vm8, %v5264_v21, %v5266_v63  ;;  %v9449_v21 = vld [vmem:[%s17329_s3 + $0x2f0] sm:$0xf] }
 0x63b   : > { %v5389_v13 = vpack.c.bf16 %v5371_v28, %v5373_v19 }
 0x63c   : > { %18426 = vst [vmem:[#allocation21_spill] sm:$0xff] %v15007_v52  ;;  %v15013_v57 = vadd.f32 %v5159_v1, %v18430_v62  ;;  %v5372_v1 = vsel %vm5319_vm8, %v5263_v40, %v5265_v30  ;;  %v18433_v62 = vld [vmem:[#allocation79_spill] sm:$0xff]  ;;  %v9998_v40 = vld [vmem:[%s17329_s3 + $0x2f4] sm:$0xf0]  ;;  %v18443_v52 = vld [vmem:[#allocation30_spill] sm:$0xff] }
 0x63d   : > { %v5388_v53 = vpack.c.bf16 %v5370_v61, %v5372_v1  ;;  %v9450_v30 = vor.u32 %v9998_v40, %v9449_v21  ;;  %v18439_v1 = vld [vmem:[#allocation50_spill] sm:$0xff]  ;;  %v5269_v21 = vrot.slane %v18443_v52, 6  ;;  %v9997_v40 = vld [vmem:[%s17329_s3 + $0x2f4] sm:$0xf] }
 0x63e   : > { %18431 = vst [vmem:[#allocation32_spill] sm:$0xff] %v15013_v57  ;;  %v4980_v22 = vpop.f32.mrf.mxu3 }
 0x63f   : > { %v4891_v5 = vpop.f32.mrf.mxu2  ;;  %6232 = vmatpush.bf16.msrb.mxu2 %v9450_v30  ;;  %v5368_v52 = vsel %vm5319_vm8, %v5267_v23, %v5269_v21  ;;  %v18446_v23 = vld [vmem:[#allocation84_spill] sm:$0xff] }
 0x640   : > { %v4981_v34 = vadd.f32 %v4980_v22, %v4891_v5  ;;  %v5161_v59 = vpop.f32.mrf.mxu1  ;;  %v18435_v22 = vld [vmem:[#allocation80_spill] sm:$0xff] }
 0x641   : > { %v5072_v51 = vpop.f32.mrf.mxu0 }
 0x642   : > { %v15025_v38 = vadd.f32 %v4981_v34, %v18433_v62  ;;  %v5162_v25 = vadd.f32 %v5161_v59, %v5072_v51  ;;  %v18437_v34 = vld [vmem:[#allocation81_spill] sm:$0xff]  ;;  %v18438_v59 = vld [vmem:[#allocation31_spill] sm:$0xff]  ;;  %v5271_v62 = vrot.slane %v18439_v1, 6 }
 0x643   : > { %9356 = vmatmul.msk.bf16.gmra.mxu3 %vm3567_vm7, %v5389_v13  ;;  %9372 = vmatmul.msk.bf16.gmra.mxu1 %vm3567_vm7, %v5389_v13 }
 0x644   : > { %18434 = vst [vmem:[#allocation22_spill] sm:$0xff] %v15025_v38  ;;  %5615 = vmatmul.bf16.gmra.mxu2 %v5388_v53  ;;  %v15030_v5 = vadd.f32 %v5162_v25, %v18435_v22  ;;  %5793 = vmatmul.bf16.gmra.mxu0 %v5388_v53  ;;  %v5272_v53 = vrot.slane %v18438_v59, 6  ;;  %v18440_v22 = vld [vmem:[#allocation29_spill] sm:$0xff]  ;;  %v18441_v38 = vld [vmem:[#allocation82_spill] sm:$0xff] }
 0x646   : > { %18436 = vst [vmem:[#allocation108_spill] sm:$0xff] %v15030_v5  ;;  %v4983_v63 = vpop.f32.mrf.mxu3  ;;  %v5270_v5 = vrot.slane %v18440_v22, 6 }
 0x647   : > { %v4894_v51 = vpop.f32.mrf.mxu2 }
 0x648   : > { %v4984_v28 = vadd.f32 %v4983_v63, %v4894_v51  ;;  %v5163_v61 = vpop.f32.mrf.mxu1  ;;  %v9451_v63 = vld [vmem:[%s17329_s3 + $0x2f8] sm:$0xf0]  ;;  %v5367_v51 = vsel %vm5319_vm8, %v5270_v5, %v5272_v53 }
 0x649   : > { %v5074_v25 = vpop.f32.mrf.mxu0 }
 0x64a   : > { %v15039_v19 = vadd.f32 %v4984_v28, %v18437_v34  ;;  %v5164_v13 = vadd.f32 %v5163_v61, %v5074_v25  ;;  %v9454_v28 = vor.u32 %v9997_v40, %v9451_v63  ;;  %v5369_v25 = vsel %vm5319_vm8, %v5268_v3, %v5270_v5  ;;  %v18445_v63 = vld [vmem:[#allocation83_spill] sm:$0xff] }
 0x64b   : > { %v5391_v1 = vpack.c.bf16 %v5367_v51, %v5369_v25  ;;  %v18450_v25 = vld [vmem:[#allocation55_spill] sm:$0xff] }
 0x64c   : > { %v15045_v57 = vadd.f32 %v5164_v13, %v18441_v38  ;;  %v5366_v38 = vsel %vm5319_vm8, %v5269_v21, %v5271_v62  ;;  %6410 = vmatpush.bf16.msrb.mxu0 %v9454_v28 }
 0x64e   : > { %18442 = vst [vmem:[#allocation109_spill] sm:$0xff] %v15045_v57  ;;  %v4985_v30 = vpop.f32.mrf.mxu3  ;;  %v5390_v57 = vpack.c.bf16 %v5366_v38, %v5368_v52 }
 0x64f   : > { %v4896_v61 = vpop.f32.mrf.mxu2 }
 0x650   : > { %v4986_v34 = vadd.f32 %v4985_v30, %v4896_v61  ;;  %v5166_v13 = vpop.f32.mrf.mxu1  ;;  %v18448_v61 = vld [vmem:[#allocation46_spill] sm:$0xff] }
 0x651   : > { %v5077_v22 = vpop.f32.mrf.mxu0  ;;  %v5274_v52 = vrot.slane %v18448_v61, 6 }
 0x652   : > { %v15063_v59 = vadd.f32 %v4986_v34, %v14513_v27  ;;  %v5167_v40 = vadd.f32 %v5166_v13, %v5077_v22  ;;  %v18449_v22 = vld [vmem:[#allocation52_spill] sm:$0xff]  ;;  %v18451_v13 = vld [vmem:[#allocation54_spill] sm:$0xff] }
 0x653   : > { %9357 = vmatmul.msk.bf16.gmra.mxu3 %vm3567_vm7, %v5391_v1  ;;  %9373 = vmatmul.msk.bf16.gmra.mxu1 %vm3567_vm7, %v5391_v1  ;;  %v5276_v38 = vrot.slane %v18449_v22, 6  ;;  %v5273_v1 = vrot.slane %v18450_v25, 6 }
 0x654   : > { %18444 = vst [vmem:[#allocation110_spill] sm:$0xff] %v15063_v59  ;;  %5620 = vmatmul.bf16.gmra.mxu2 %v5390_v57  ;;  %v15068_v30 = vadd.f32 %v5167_v40, %v18445_v63  ;;  %5798 = vmatmul.bf16.gmra.mxu0 %v5390_v57  ;;  %v5275_v59 = vrot.slane %v18451_v13, 6  ;;  %v18452_v40 = vld [vmem:[#allocation85_spill] sm:$0xff]  ;;  %v9481_v57 = vld [vmem:[%s17329_s3 + $0x330] sm:$0xf] }
 0x656   : > { %v4988_v3 = vpop.f32.mrf.mxu3 }
 0x657   : > { %v4899_v5 = vpop.f32.mrf.mxu2 }
 0x658   : > { %v4989_v51 = vadd.f32 %v4988_v3, %v4899_v5  ;;  %v5168_v28 = vpop.f32.mrf.mxu1  ;;  %v10006_v3 = vld [vmem:[%s17329_s3 + $0x334] sm:$0xf0] }
 0x659   : > { %v5079_v27 = vpop.f32.mrf.mxu0 }
 0x65a   : > { %v15071_v21 = vadd.f32 %v4989_v51, %v18446_v23  ;;  %v5169_v34 = vadd.f32 %v5168_v28, %v5079_v27  ;;  %v5363_v51 = vsel %vm5319_vm8, %v5274_v52, %v5276_v38  ;;  %v5365_v28 = vsel %vm5319_vm8, %v5272_v53, %v5274_v52  ;;  %v10005_v53 = vld [vmem:[%s17329_s3 + $0x334] sm:$0xf]  ;;  %v9483_v52 = vld [vmem:[%s17329_s3 + $0x338] sm:$0xf0] }
 0x65b   : > { %v9482_v23 = vor.u32 %v10006_v3, %v9481_v57  ;;  %v5393_v22 = vpack.c.bf16 %v5363_v51, %v5365_v28 }
 0x65c   : > { %18447 = vst [vmem:[#allocation111_spill] sm:$0xff] %v15071_v21  ;;  %v15078_v63 = vadd.f32 %v5169_v34, %v18452_v40  ;;  %v5362_v34 = vsel %vm5319_vm8, %v5273_v1, %v5275_v59  ;;  %v5364_v40 = vsel %vm5319_vm8, %v5271_v62, %v5273_v1  ;;  %v9486_v62 = vor.u32 %v10005_v53, %v9483_v52  ;;  %v9441_v1 = vld [vmem:[%s17329_s3 + $0x2e0] sm:$0xf]  ;;  %v18457_v52 = vld [vmem:[#allocation86_spill] sm:$0xff] }
 0x65d   : > { %6325 = vmatpush.bf16.msrb.mxu3 %v9482_v23  ;;  %v5392_v21 = vpack.c.bf16 %v5362_v34, %v5364_v40  ;;  %v18456_v40 = vld [vmem:[#allocation11_spill] sm:$0xff] }
 0x65e   : > { %18453 = vst [vmem:[#allocation112_spill] sm:$0xff] %v15078_v63  ;;  %v4990_v5 = vpop.f32.mrf.mxu3  ;;  %6503 = vmatpush.bf16.msrb.mxu1 %v9486_v62  ;;  %v5278_v53 = vrot.slane %v18456_v40, 6  ;;  %v18459_v62 = vld [vmem:[#allocation56_spill] sm:$0xff] }
 0x65f   : > { %v4901_v27 = vpop.f32.mrf.mxu2 }
 0x660   : > { %v4991_v13 = vadd.f32 %v4990_v5, %v4901_v27  ;;  %v5171_v25 = vpop.f32.mrf.mxu1  ;;  %v18455_v27 = vld [vmem:[#allocation58_spill] sm:$0xff] }
 0x661   : > { %v5082_v63 = vpop.f32.mrf.mxu0  ;;  %v5279_v34 = vrot.slane %v18455_v27, 6 }
 0x662   : > { %v15095_v61 = vadd.f32 %v4991_v13, %v14545_v12  ;;  %v5172_v57 = vadd.f32 %v5171_v25, %v5082_v63  ;;  %v9996_v13 = vld [vmem:[%s17329_s3 + $0x2e4] sm:$0xf0] }
 0x663   : > { %9358 = vmatmul.msk.bf16.gmra.mxu3 %vm3567_vm7, %v5393_v22  ;;  %9374 = vmatmul.msk.bf16.gmra.mxu1 %vm3567_vm7, %v5393_v22  ;;  %v9442_v63 = vor.u32 %v9996_v13, %v9441_v1  ;;  %v5277_v1 = vrot.slane %v18459_v62, 6  ;;  %v9995_v13 = vld [vmem:[%s17329_s3 + $0x2e4] sm:$0xf] }
 0x664   : > { %5625 = vmatmul.bf16.gmra.mxu2 %v5392_v21  ;;  %v15106_v12 = vadd.f32 %v5172_v57, %v14556_v29  ;;  %5803 = vmatmul.bf16.gmra.mxu0 %v5392_v21  ;;  %v18454_v21 = vld [vmem:[#allocation59_spill] sm:$0xff] }
 0x665   : > { %6233 = vmatpush.bf16.msrb.mxu2 %v9442_v63  ;;  %v5280_v28 = vrot.slane %v18454_v21, 6  ;;  %v5360_v62 = vsel %vm5319_vm8, %v5275_v59, %v5277_v1  ;;  %v18462_v59 = vld [vmem:[#allocation87_spill] sm:$0xff] }
 0x666   : > { %v4993_v25 = vpop.f32.mrf.mxu3 }
 0x667   : > { %v4904_v3 = vpop.f32.mrf.mxu2  ;;  %v5359_v63 = vsel %vm5319_vm8, %v5278_v53, %v5280_v28 }
 0x668   : > { %v4994_v5 = vadd.f32 %v4993_v25, %v4904_v3  ;;  %v5173_v22 = vpop.f32.mrf.mxu1 }
 0x669   : > { %v5084_v29 = vpop.f32.mrf.mxu0 }
 0x66a   : > { %v15115_v51 = vadd.f32 %v4994_v5, %v14565_v18  ;;  %v5174_v23 = vadd.f32 %v5173_v22, %v5084_v29  ;;  %v9443_v18 = vld [vmem:[%s17329_s3 + $0x2e8] sm:$0xf0]  ;;  %v5358_v22 = vsel %vm5319_vm8, %v5277_v1, %v5279_v34 }
 0x66b   : > { %v9446_v3 = vor.u32 %v9995_v13, %v9443_v18 }
 0x66c   : > { %v15121_v57 = vadd.f32 %v5174_v23, %v18457_v52  ;;  %v5361_v23 = vsel %vm5319_vm8, %v5276_v38, %v5278_v53 }
 0x66d   : > { %6411 = vmatpush.bf16.msrb.mxu0 %v9446_v3  ;;  %v5395_v27 = vpack.c.bf16 %v5359_v63, %v5361_v23  ;;  %v18464_v3 = vld [vmem:[#allocation61_spill] sm:$0xff]  ;;  %v18467_v23 = vld [vmem:[#allocation88_spill] sm:$0xff] }
 0x66e   : > { %18458 = vst [vmem:[#allocation113_spill] sm:$0xff] %v15121_v57  ;;  %v4995_v25 = vpop.f32.mrf.mxu3  ;;  %v5394_v57 = vpack.c.bf16 %v5358_v22, %v5360_v62  ;;  %v5284_v62 = vrot.slane %v18464_v3, 6 }
 0x66f   : > { %v4906_v5 = vpop.f32.mrf.mxu2 }
 0x670   : > { %v4996_v29 = vadd.f32 %v4995_v25, %v4906_v5  ;;  %v5176_v52 = vpop.f32.mrf.mxu1  ;;  %v18465_v5 = vld [vmem:[#allocation60_spill] sm:$0xff] }
 0x671   : > { %v5087_v40 = vpop.f32.mrf.mxu0  ;;  %v5283_v22 = vrot.slane %v18465_v5, 6 }
 0x672   : > { %v15139_v21 = vadd.f32 %v4996_v29, %v14589_v10  ;;  %v5177_v13 = vadd.f32 %v5176_v52, %v5087_v40  ;;  %v18466_v29 = vld [vmem:[#allocation16_spill] sm:$0xff] }
 0x673   : > { %9359 = vmatmul.msk.bf16.gmra.mxu3 %vm3567_vm7, %v5395_v27  ;;  %9375 = vmatmul.msk.bf16.gmra.mxu1 %vm3567_vm7, %v5395_v27  ;;  %v5282_v27 = vrot.slane %v18466_v29, 6 }
 0x674   : > { %18460 = vst [vmem:[#allocation114_spill] sm:$0xff] %v15139_v21  ;;  %5630 = vmatmul.bf16.gmra.mxu2 %v5394_v57  ;;  %v15144_v18 = vadd.f32 %v5177_v13, %v14594_v36  ;;  %5808 = vmatmul.bf16.gmra.mxu0 %v5394_v57  ;;  %v18469_v36 = vld [vmem:[#allocation15_spill] sm:$0xff] }
 0x675   : > { %v5281_v57 = vrot.slane %v18469_v36, 6 }
 0x676   : > { %18461 = vst [vmem:[#allocation115_spill] sm:$0xff] %v15144_v18  ;;  %v4998_v38 = vpop.f32.mrf.mxu3  ;;  %v18479_v18 = vld [vmem:[#allocation92_spill] sm:$0xff] }
 0x677   : > { %v4909_v53 = vpop.f32.mrf.mxu2 }
 0x678   : > { %v4999_v25 = vadd.f32 %v4998_v38, %v4909_v53  ;;  %v5178_v63 = vpop.f32.mrf.mxu1  ;;  %v5355_v38 = vsel %vm5319_vm8, %v5282_v27, %v5284_v62 }
 0x679   : > { %v5089_v10 = vpop.f32.mrf.mxu0 }
 0x67a   : > { %v15147_v1 = vadd.f32 %v4999_v25, %v18462_v59  ;;  %v5179_v40 = vadd.f32 %v5178_v63, %v5089_v10  ;;  %v5354_v25 = vsel %vm5319_vm8, %v5281_v57, %v5283_v22  ;;  %v5357_v63 = vsel %vm5319_vm8, %v5280_v28, %v5282_v27  ;;  %v9433_v28 = vld [vmem:[%s17329_s3 + $0x2d0] sm:$0xf] }
 0x67b   : > { %v5397_v5 = vpack.c.bf16 %v5355_v38, %v5357_v63  ;;  %v18475_v63 = vld [vmem:[#allocation19_spill] sm:$0xff] }
 0x67c   : > { %18463 = vst [vmem:[#allocation116_spill] sm:$0xff] %v15147_v1  ;;  %v15153_v52 = vadd.f32 %v5179_v40, %v18467_v23  ;;  %v5356_v40 = vsel %vm5319_vm8, %v5279_v34, %v5281_v57  ;;  %v18470_v23 = vld [vmem:[#allocation89_spill] sm:$0xff]  ;;  %v9994_v34 = vld [vmem:[%s17329_s3 + $0x2d4] sm:$0xf0] }
 0x67d   : > { %v5396_v29 = vpack.c.bf16 %v5354_v25, %v5356_v40  ;;  %v9434_v57 = vor.u32 %v9994_v34, %v9433_v28  ;;  %v9993_v28 = vld [vmem:[%s17329_s3 + $0x2d4] sm:$0xf]  ;;  %v9435_v34 = vld [vmem:[%s17329_s3 + $0x2d8] sm:$0xf0] }
 0x67e   : > { %18468 = vst [vmem:[#allocation35_spill] sm:$0xff] %v15153_v52  ;;  %v5000_v13 = vpop.f32.mrf.mxu3 }
 0x67f   : > { %v4911_v53 = vpop.f32.mrf.mxu2  ;;  %6234 = vmatpush.bf16.msrb.mxu2 %v9434_v57 }
 0x680   : > { %v5001_v59 = vadd.f32 %v5000_v13, %v4911_v53  ;;  %v5181_v10 = vpop.f32.mrf.mxu1  ;;  %v18472_v13 = vld [vmem:[#allocation90_spill] sm:$0xff] }
 0x681   : > { %v5092_v36 = vpop.f32.mrf.mxu0 }
 0x682   : > { %v15165_v3 = vadd.f32 %v5001_v59, %v18470_v23  ;;  %v5182_v52 = vadd.f32 %v5181_v10, %v5092_v36  ;;  %v18476_v10 = vld [vmem:[#allocation63_spill] sm:$0xff] }
 0x683   : > { %9360 = vmatmul.msk.bf16.gmra.mxu3 %vm3567_vm7, %v5397_v5  ;;  %9376 = vmatmul.msk.bf16.gmra.mxu1 %vm3567_vm7, %v5397_v5  ;;  %v18474_v5 = vld [vmem:[#allocation91_spill] sm:$0xff]  ;;  %v5288_v40 = vrot.slane %v18476_v10, 6 }
 0x684   : > { %18471 = vst [vmem:[#allocation36_spill] sm:$0xff] %v15165_v3  ;;  %5635 = vmatmul.bf16.gmra.mxu2 %v5396_v29  ;;  %v15170_v53 = vadd.f32 %v5182_v52, %v18472_v13  ;;  %5813 = vmatmul.bf16.gmra.mxu0 %v5396_v29  ;;  %v5286_v29 = vrot.slane %v18475_v63, 6  ;;  %v18477_v13 = vld [vmem:[#allocation62_spill] sm:$0xff]  ;;  %v18478_v3 = vld [vmem:[#allocation65_spill] sm:$0xff] }
 0x685   : > { %v5287_v1 = vrot.slane %v18478_v3, 6 }
 0x686   : > { %18473 = vst [vmem:[#allocation25_spill] sm:$0xff] %v15170_v53  ;;  %v5003_v27 = vpop.f32.mrf.mxu3  ;;  %v5285_v53 = vrot.slane %v18477_v13, 6  ;;  %v5351_v57 = vsel %vm5319_vm8, %v5286_v29, %v5288_v40 }
 0x687   : > { %v4914_v36 = vpop.f32.mrf.mxu2 }
 0x688   : > { %v5004_v38 = vadd.f32 %v5003_v27, %v4914_v36  ;;  %v5183_v25 = vpop.f32.mrf.mxu1  ;;  %v5353_v36 = vsel %vm5319_vm8, %v5284_v62, %v5286_v29 }
 0x689   : > { %v5094_v52 = vpop.f32.mrf.mxu0  ;;  %v5399_v3 = vpack.c.bf16 %v5351_v57, %v5353_v36  ;;  %v5291_v57 = vrot.slane %v13563_v48, 6  ;;  %v18490_v48 = vld [vmem:[#allocation67_spill] sm:$0xff] }
 0x68a   : > { %v15179_v59 = vadd.f32 %v5004_v38, %v18474_v5  ;;  %v5184_v23 = vadd.f32 %v5183_v25, %v5094_v52  ;;  %v9438_v38 = vor.u32 %v9993_v28, %v9435_v34  ;;  %v5352_v5 = vsel %vm5319_vm8, %v5283_v22, %v5285_v53 }
 0x68c   : > { %v15186_v21 = vadd.f32 %v5184_v23, %v18479_v18  ;;  %v5350_v18 = vsel %vm5319_vm8, %v5285_v53, %v5287_v1  ;;  %6412 = vmatpush.bf16.msrb.mxu0 %v9438_v38 }
 0x68d   : > { %v5398_v63 = vpack.c.bf16 %v5350_v18, %v5352_v5 }
 0x68e   : > { %18480 = vst [vmem:[#allocation76_spill] sm:$0xff] %v15186_v21  ;;  %v5005_v27 = vpop.f32.mrf.mxu3 }
 0x68f   : > { %v4916_v25 = vpop.f32.mrf.mxu2 }
 0x690   : > { %v5006_v52 = vadd.f32 %v5005_v27, %v4916_v25  ;;  %v5186_v23 = vpop.f32.mrf.mxu1  ;;  %v5292_v27 = vrot.slane %v13558_v6, 6 }
 0x691   : > { %v5097_v10 = vpop.f32.mrf.mxu0 }
 0x692   : > { %v15203_v13 = vadd.f32 %v5006_v52, %v14653_v33  ;;  %v5187_v21 = vadd.f32 %v5186_v23, %v5097_v10 }
 0x693   : > { %9361 = vmatmul.msk.bf16.gmra.mxu3 %vm3567_vm7, %v5399_v3  ;;  %9377 = vmatmul.msk.bf16.gmra.mxu1 %vm3567_vm7, %v5399_v3  ;;  %v5290_v3 = vrot.slane %v18354_v20, 6 }
 0x694   : > { %5640 = vmatmul.bf16.gmra.mxu2 %v5398_v63  ;;  %v15208_v62 = vadd.f32 %v5187_v21, %v14658_v4  ;;  %5818 = vmatmul.bf16.gmra.mxu0 %v5398_v63  ;;  %v18481_v4 = vld [vmem:[#allocation8_spill] sm:$0xff] }
 0x695   : > { %v5289_v21 = vrot.slane %v18481_v4, 6  ;;  %v5347_v38 = vsel %vm5319_vm8, %v5290_v3, %v5292_v27  ;;  %v5349_v5 = vsel %vm5319_vm8, %v5288_v40, %v5290_v3  ;;  %v9425_v40 = vld [vmem:[%s17329_s3 + $0x2c0] sm:$0xf] }
 0x696   : > { %v5008_v22 = vpop.f32.mrf.mxu3  ;;  %v5401_v23 = vpack.c.bf16 %v5347_v38, %v5349_v5  ;;  %v18485_v5 = vld [vmem:[#allocation13_spill] sm:$0xff] }
 0x697   : > { %v4919_v53 = vpop.f32.mrf.mxu2 }
 0x698   : > { %v5009_v29 = vadd.f32 %v5008_v22, %v4919_v53  ;;  %v5188_v28 = vpop.f32.mrf.mxu1 }
 0x699   : > { %v5099_v33 = vpop.f32.mrf.mxu0 }
 0x69a   : > { %v15211_v34 = vadd.f32 %v5009_v29, %v14661_v55  ;;  %v5189_v10 = vadd.f32 %v5188_v28, %v5099_v33  ;;  %v5346_v55 = vsel %vm5319_vm8, %v5289_v21, %v5291_v57  ;;  %v18482_v33 = vld [vmem:[#allocation93_spill] sm:$0xff] }
 0x69c   : > { %v15217_v36 = vadd.f32 %v5189_v10, %v14667_v14  ;;  %v5348_v14 = vsel %vm5319_vm8, %v5287_v1, %v5289_v21 }
 0x69d   : > { %v5400_v29 = vpack.c.bf16 %v5346_v55, %v5348_v14  ;;  %v18486_v14 = vld [vmem:[#allocation14_spill] sm:$0xff] }
 0x69e   : > { %v5010_v63 = vpop.f32.mrf.mxu3 }
 0x69f   : > { %v4921_v25 = vpop.f32.mrf.mxu2 }
 0x6a0   : > { %v5011_v18 = vadd.f32 %v5010_v63, %v4921_v25  ;;  %v5873_v52 = vpop.f32.mrf.mxu1  ;;  %v18484_v25 = vld [vmem:[#allocation94_spill] sm:$0xff] }
 0x6a1   : > { %v5784_v53 = vpop.f32.mrf.mxu0 }
 0x6a2   : > { %v15229_v22 = vadd.f32 %v5011_v18, %v14679_v8  ;;  %v5874_v28 = vadd.f32 %v5873_v52, %v5784_v53  ;;  %v9992_v8 = vld [vmem:[%s17329_s3 + $0x2c4] sm:$0xf0]  ;;  %v5296_v52 = vrot.slane %v18485_v5, 6  ;;  %v5295_v53 = vrot.slane %v18486_v14, 6 }
 0x6a3   : > { %9362 = vmatmul.msk.bf16.gmra.mxu3 %vm3567_vm7, %v5401_v23  ;;  %9378 = vmatmul.msk.bf16.gmra.mxu1 %vm3567_vm7, %v5401_v23  ;;  %v9426_v3 = vor.u32 %v9992_v8, %v9425_v40  ;;  %v5293_v40 = vrot.slane %v18490_v48, 6  ;;  %v9991_v8 = vld [vmem:[%s17329_s3 + $0x2c4] sm:$0xf] }
 0x6a4   : > { %5645 = vmatmul.bf16.gmra.mxu2 %v5400_v29  ;;  %v15234_v10 = vadd.f32 %v5874_v28, %v18482_v33  ;;  %5823 = vmatmul.bf16.gmra.mxu0 %v5400_v29  ;;  %v18487_v29 = vld [vmem:[#allocation66_spill] sm:$0xff]  ;;  %v18488_v33 = vld [vmem:[#allocation95_spill] sm:$0xff] }
 0x6a5   : > { %6235 = vmatpush.bf16.msrb.mxu2 %v9426_v3  ;;  %v5294_v28 = vrot.slane %v18487_v29, 6  ;;  %v5344_v48 = vsel %vm5319_vm8, %v5291_v57, %v5293_v40  ;;  %v9475_v57 = vld [vmem:[%s17329_s3 + $0x328] sm:$0xf0] }
 0x6a6   : > { %18483 = vst [vmem:[#allocation77_spill] sm:$0xff] %v15234_v10  ;;  %v5695_v1 = vpop.f32.mrf.mxu3 }
 0x6a7   : > { %v5606_v21 = vpop.f32.mrf.mxu2 }
 0x6a8   : > { %v5696_v63 = vadd.f32 %v5695_v1, %v5606_v21  ;;  %v5875_v38 = vpop.f32.mrf.mxu1  ;;  %v9427_v1 = vld [vmem:[%s17329_s3 + $0x2c8] sm:$0xf0]  ;;  %v5343_v21 = vsel %vm5319_vm8, %v5294_v28, %v5296_v52 }
 0x6a9   : > { %v5786_v18 = vpop.f32.mrf.mxu0 }
 0x6aa   : > { %v15243_v55 = vadd.f32 %v5696_v63, %v18484_v25  ;;  %v5876_v23 = vadd.f32 %v5875_v38, %v5786_v18  ;;  %v9430_v63 = vor.u32 %v9991_v8, %v9427_v1  ;;  %v5342_v25 = vsel %vm5319_vm8, %v5293_v40, %v5295_v53  ;;  %v9473_v8 = vld [vmem:[%s17329_s3 + $0x320] sm:$0xf]  ;;  %v10004_v1 = vld [vmem:[%s17329_s3 + $0x324] sm:$0xf0] }
 0x6ac   : > { %v15249_v10 = vadd.f32 %v5876_v23, %v18488_v33  ;;  %v5345_v23 = vsel %vm5319_vm8, %v5292_v27, %v5294_v28  ;;  %6413 = vmatpush.bf16.msrb.mxu0 %v9430_v63  ;;  %v9474_v28 = vor.u32 %v10004_v1, %v9473_v8 }
 0x6ad   : > { %v5403_v14 = vpack.c.bf16 %v5343_v21, %v5345_v23  ;;  %v5299_v23 = vrot.slane %v13687_v17, 6 }
 0x6ae   : > { %18489 = vst [vmem:[#allocation78_spill] sm:$0xff] %v15249_v10  ;;  %v5697_v3 = vpop.f32.mrf.mxu3  ;;  %v5402_v10 = vpack.c.bf16 %v5342_v25, %v5344_v48  ;;  %6326 = vmatpush.bf16.msrb.mxu3 %v9474_v28  ;;  %v10003_v48 = vld [vmem:[%s17329_s3 + $0x324] sm:$0xf] }
 0x6af   : > { %v5608_v38 = vpop.f32.mrf.mxu2  ;;  %v9478_v40 = vor.u32 %v10003_v48, %v9475_v57 }
 0x6b0   : > { %v5698_v18 = vadd.f32 %v5697_v3, %v5608_v38  ;;  %v5878_v33 = vpop.f32.mrf.mxu1  ;;  %v5300_v38 = vrot.slane %v13683_v9, 6 }
 0x6b1   : > { %v5789_v29 = vpop.f32.mrf.mxu0  ;;  %6504 = vmatpush.bf16.msrb.mxu1 %v9478_v40 }
 0x6b2   : > { %v15267_v5 = vadd.f32 %v5698_v18, %v14717_v16  ;;  %v5879_v27 = vadd.f32 %v5878_v33, %v5789_v29  ;;  %v5297_v18 = vrot.slane %v18248_v46, 6 }
 0x6b3   : > { %9363 = vmatmul.msk.bf16.gmra.mxu3 %vm3567_vm7, %v5403_v14  ;;  %9379 = vmatmul.msk.bf16.gmra.mxu1 %vm3567_vm7, %v5403_v14 }
 0x6b4   : > { %5650 = vmatmul.bf16.gmra.mxu2 %v5402_v10  ;;  %v15278_v16 = vadd.f32 %v5879_v27, %v14728_v58  ;;  %5828 = vmatmul.bf16.gmra.mxu0 %v5402_v10  ;;  %v5298_v10 = vrot.slane %v18246_v15, 6  ;;  %v5338_v28 = vsel %vm5319_vm8, %v5297_v18, %v5299_v23  ;;  %v5340_v48 = vsel %vm5319_vm8, %v5295_v53, %v5297_v18  ;;  %v9417_v53 = vld [vmem:[%s17329_s3 + $0x2b0] sm:$0xf] }
 0x6b6   : > { %v5700_v29 = vpop.f32.mrf.mxu3  ;;  %v5339_v1 = vsel %vm5319_vm8, %v5298_v10, %v5300_v38 }
 0x6b7   : > { %v5611_v3 = vpop.f32.mrf.mxu2 }
 0x6b8   : > { %v5701_v21 = vadd.f32 %v5700_v29, %v5611_v3  ;;  %v5880_v14 = vpop.f32.mrf.mxu1 }
 0x6b9   : > { %v5791_v58 = vpop.f32.mrf.mxu0 }
 0x6ba   : > { %v15287_v63 = vadd.f32 %v5701_v21, %v14737_v37  ;;  %v5881_v25 = vadd.f32 %v5880_v14, %v5791_v58  ;;  %v5341_v37 = vsel %vm5319_vm8, %v5296_v52, %v5298_v10  ;;  %v5404_v21 = vpack.c.bf16 %v5338_v28, %v5340_v48 }
 0x6bb   : > { %v5405_v40 = vpack.c.bf16 %v5339_v1, %v5341_v37  ;;  %v18492_v1 = vld [vmem:[#allocation96_spill] sm:$0xff] }
 0x6bc   : > { %v15294_v33 = vadd.f32 %v5881_v25, %v14744_v39 }
 0x6be   : > { %v5702_v8 = vpop.f32.mrf.mxu3 }
 0x6bf   : > { %v5613_v27 = vpop.f32.mrf.mxu2 }
 0x6c0   : > { %v5703_v57 = vadd.f32 %v5702_v8, %v5613_v27  ;;  %v5883_v29 = vpop.f32.mrf.mxu1  ;;  %v18493_v27 = vld [vmem:[#allocation72_spill] sm:$0xff] }
 0x6c1   : > { %v5794_v3 = vpop.f32.mrf.mxu0  ;;  %v5304_v28 = vrot.slane %v18493_v27, 6 }
 0x6c2   : > { %v15305_v39 = vadd.f32 %v5703_v57, %v14755_v47  ;;  %v5884_v14 = vadd.f32 %v5883_v29, %v5794_v3  ;;  %v9990_v47 = vld [vmem:[%s17329_s3 + $0x2b4] sm:$0xf0] }
 0x6c3   : > { %9364 = vmatmul.msk.bf16.gmra.mxu3 %vm3567_vm7, %v5405_v40  ;;  %9380 = vmatmul.msk.bf16.gmra.mxu1 %vm3567_vm7, %v5405_v40  ;;  %v9418_v10 = vor.u32 %v9990_v47, %v9417_v53  ;;  %v18494_v57 = vld [vmem:[#allocation20_spill] sm:$0xff]  ;;  %v18495_v40 = vld [vmem:[#allocation49_spill] sm:$0xff]  ;;  %v9989_v47 = vld [vmem:[%s17329_s3 + $0x2b4] sm:$0xf] }
 0x6c4   : > { %5655 = vmatmul.bf16.gmra.mxu2 %v5404_v21  ;;  %v15310_v52 = vadd.f32 %v5884_v14, %v14760_v35  ;;  %5833 = vmatmul.bf16.gmra.mxu0 %v5404_v21  ;;  %v5303_v29 = vrot.slane %v18494_v57, 6  ;;  %v5302_v3 = vrot.slane %v18495_v40, 6  ;;  %v18496_v21 = vld [vmem:[#allocation97_spill] sm:$0xff] }
 0x6c5   : > { %6236 = vmatpush.bf16.msrb.mxu2 %v9418_v10 }
 0x6c6   : > { %18491 = vst [vmem:[#allocation79_spill] sm:$0xff] %v15310_v52  ;;  %v5705_v58 = vpop.f32.mrf.mxu3  ;;  %v18498_v52 = vld [vmem:[#allocation73_spill] sm:$0xff] }
 0x6c7   : > { %v5616_v25 = vpop.f32.mrf.mxu2  ;;  %v5301_v53 = vrot.slane %v18498_v52, 6 }
 0x6c8   : > { %v5706_v18 = vadd.f32 %v5705_v58, %v5616_v25  ;;  %v5885_v8 = vpop.f32.mrf.mxu1  ;;  %v9419_v58 = vld [vmem:[%s17329_s3 + $0x2b8] sm:$0xf0]  ;;  %v5335_v25 = vsel %vm5319_vm8, %v5302_v3, %v5304_v28 }
 0x6c9   : > { %v5796_v35 = vpop.f32.mrf.mxu0  ;;  %v5336_v52 = vsel %vm5319_vm8, %v5299_v23, %v5301_v53 }
 0x6ca   : > { %v15319_v37 = vadd.f32 %v5706_v18, %v18492_v1  ;;  %v5886_v48 = vadd.f32 %v5885_v8, %v5796_v35  ;;  %v9422_v18 = vor.u32 %v9989_v47, %v9419_v58  ;;  %v5334_v1 = vsel %vm5319_vm8, %v5301_v53, %v5303_v29 }
 0x6cb   : > { %v5307_v53 = vrot.slane %v18266_v31, 6  ;;  %v18508_v31 = vld [vmem:[#allocation47_spill] sm:$0xff] }
 0x6cc   : > { %v15325_v14 = vadd.f32 %v5886_v48, %v18496_v21  ;;  %v5337_v48 = vsel %vm5319_vm8, %v5300_v38, %v5302_v3  ;;  %6414 = vmatpush.bf16.msrb.mxu0 %v9422_v18 }
 0x6cd   : > { %v5407_v57 = vpack.c.bf16 %v5335_v25, %v5337_v48 }
 0x6ce   : > { %18497 = vst [vmem:[#allocation80_spill] sm:$0xff] %v15325_v14  ;;  %v5707_v10 = vpop.f32.mrf.mxu3  ;;  %v5406_v14 = vpack.c.bf16 %v5334_v1, %v5336_v52  ;;  %v5308_v52 = vrot.slane %v18263_v54, 6 }
 0x6cf   : > { %v5618_v8 = vpop.f32.mrf.mxu2 }
 0x6d0   : > { %v5708_v35 = vadd.f32 %v5707_v10, %v5618_v8  ;;  %v5888_v21 = vpop.f32.mrf.mxu1 }
 0x6d1   : > { %v5799_v40 = vpop.f32.mrf.mxu0 }
 0x6d2   : > { %v15343_v27 = vadd.f32 %v5708_v35, %v14793_v44  ;;  %v5889_v47 = vadd.f32 %v5888_v21, %v5799_v40 }
 0x6d3   : > { %9365 = vmatmul.msk.bf16.gmra.mxu3 %vm3567_vm7, %v5407_v57  ;;  %9381 = vmatmul.msk.bf16.gmra.mxu1 %vm3567_vm7, %v5407_v57  ;;  %v5306_v57 = vrot.slane %v13798_v45, 6 }
 0x6d4   : > { %5660 = vmatmul.bf16.gmra.mxu2 %v5406_v14  ;;  %v15348_v58 = vadd.f32 %v5889_v47, %v14798_v43  ;;  %5838 = vmatmul.bf16.gmra.mxu0 %v5406_v14  ;;  %v18499_v43 = vld [vmem:[#allocation41_spill] sm:$0xff] }
 0x6d5   : > { %v5305_v14 = vrot.slane %v18499_v43, 6  ;;  %v5331_v1 = vsel %vm5319_vm8, %v5306_v57, %v5308_v52  ;;  %v5333_v21 = vsel %vm5319_vm8, %v5304_v28, %v5306_v57  ;;  %v9409_v28 = vld [vmem:[%s17329_s3 + $0x2a0] sm:$0xf]  ;;  %v5311_v43 = vrot.slane %v18508_v31, 6 }
 0x6d6   : > { %v5710_v38 = vpop.f32.mrf.mxu3 }
 0x6d7   : > { %v5621_v3 = vpop.f32.mrf.mxu2 }
 0x6d8   : > { %v5711_v10 = vadd.f32 %v5710_v38, %v5621_v3  ;;  %v5890_v25 = vpop.f32.mrf.mxu1  ;;  %v5409_v38 = vpack.c.bf16 %v5331_v1, %v5333_v21  ;;  %v18500_v3 = vld [vmem:[#allocation98_spill] sm:$0xff]  ;;  %v18504_v21 = vld [vmem:[#allocation100_spill] sm:$0xff] }
 0x6d9   : > { %v5801_v44 = vpop.f32.mrf.mxu0 }
 0x6da   : > { %v15351_v23 = vadd.f32 %v5711_v10, %v14801_v24  ;;  %v5891_v40 = vadd.f32 %v5890_v25, %v5801_v44  ;;  %v5330_v24 = vsel %vm5319_vm8, %v5305_v14, %v5307_v53 }
 0x6dc   : > { %v15357_v18 = vadd.f32 %v5891_v40, %v14807_v50  ;;  %v5332_v50 = vsel %vm5319_vm8, %v5303_v29, %v5305_v14  ;;  %v9988_v29 = vld [vmem:[%s17329_s3 + $0x2a4] sm:$0xf0] }
 0x6dd   : > { %v5408_v44 = vpack.c.bf16 %v5330_v24, %v5332_v50  ;;  %v9410_v14 = vor.u32 %v9988_v29, %v9409_v28  ;;  %v18505_v50 = vld [vmem:[#allocation33_spill] sm:$0xff]  ;;  %v9411_v29 = vld [vmem:[%s17329_s3 + $0x2a8] sm:$0xf0] }
 0x6de   : > { %v5712_v8 = vpop.f32.mrf.mxu3  ;;  %v9987_v28 = vld [vmem:[%s17329_s3 + $0x2a4] sm:$0xf] }
 0x6df   : > { %v5623_v35 = vpop.f32.mrf.mxu2  ;;  %6237 = vmatpush.bf16.msrb.mxu2 %v9410_v14 }
 0x6e0   : > { %v5713_v48 = vadd.f32 %v5712_v8, %v5623_v35  ;;  %v5893_v47 = vpop.f32.mrf.mxu1  ;;  %v18502_v8 = vld [vmem:[#allocation99_spill] sm:$0xff] }
 0x6e1   : > { %v5804_v25 = vpop.f32.mrf.mxu0 }
 0x6e2   : > { %v15369_v10 = vadd.f32 %v5713_v48, %v18500_v3  ;;  %v5894_v40 = vadd.f32 %v5893_v47, %v5804_v25  ;;  %v5310_v3 = vrot.slane %v18505_v50, 6  ;;  %v18506_v25 = vld [vmem:[#allocation51_spill] sm:$0xff] }
 0x6e3   : > { %9366 = vmatmul.msk.bf16.gmra.mxu3 %vm3567_vm7, %v5409_v38  ;;  %9382 = vmatmul.msk.bf16.gmra.mxu1 %vm3567_vm7, %v5409_v38 }
 0x6e4   : > { %18501 = vst [vmem:[#allocation81_spill] sm:$0xff] %v15369_v10  ;;  %5665 = vmatmul.bf16.gmra.mxu2 %v5408_v44  ;;  %v15374_v35 = vadd.f32 %v5894_v40, %v18502_v8  ;;  %5843 = vmatmul.bf16.gmra.mxu0 %v5408_v44  ;;  %v5312_v44 = vrot.slane %v18506_v25, 6  ;;  %v18507_v8 = vld [vmem:[#allocation40_spill] sm:$0xff]  ;;  %v18509_v10 = vld [vmem:[#allocation101_spill] sm:$0xff] }
 0x6e6   : > { %18503 = vst [vmem:[#allocation82_spill] sm:$0xff] %v15374_v35  ;;  %v5715_v57 = vpop.f32.mrf.mxu3  ;;  %v5309_v35 = vrot.slane %v18507_v8, 6  ;;  %v5327_v14 = vsel %vm5319_vm8, %v5310_v3, %v5312_v44 }
 0x6e7   : > { %v5626_v1 = vpop.f32.mrf.mxu2 }
 0x6e8   : > { %v5716_v24 = vadd.f32 %v5715_v57, %v5626_v1  ;;  %v5895_v48 = vpop.f32.mrf.mxu1  ;;  %v5329_v1 = vsel %vm5319_vm8, %v5308_v52, %v5310_v3 }
 0x6e9   : > { %v5806_v38 = vpop.f32.mrf.mxu0  ;;  %v5411_v31 = vpack.c.bf16 %v5327_v14, %v5329_v1  ;;  %v5315_v14 = vrot.slane %v18276_v26, 6  ;;  %v18511_v1 = vld [vmem:[#allocation64_spill] sm:$0xff] }
 0x6ea   : > { %v15383_v47 = vadd.f32 %v5716_v24, %v18504_v21  ;;  %v5896_v40 = vadd.f32 %v5895_v48, %v5806_v38  ;;  %v9414_v24 = vor.u32 %v9987_v28, %v9411_v29  ;;  %v5328_v21 = vsel %vm5319_vm8, %v5307_v53, %v5309_v35 }
 0x6ec   : > { %v15390_v54 = vadd.f32 %v5896_v40, %v18509_v10  ;;  %v5326_v10 = vsel %vm5319_vm8, %v5309_v35, %v5311_v43  ;;  %6415 = vmatpush.bf16.msrb.mxu0 %v9414_v24 }
 0x6ed   : > { %v5410_v50 = vpack.c.bf16 %v5326_v10, %v5328_v21 }
 0x6ee   : > { %18510 = vst [vmem:[#allocation83_spill] sm:$0xff] %v15390_v54  ;;  %v5717_v57 = vpop.f32.mrf.mxu3 }
 0x6ef   : > { %v5628_v48 = vpop.f32.mrf.mxu2 }
 0x6f0   : > { %v5718_v38 = vadd.f32 %v5717_v57, %v5628_v48  ;;  %v5898_v40 = vpop.f32.mrf.mxu1  ;;  %v5316_v57 = vrot.slane %v13929_v2, 6 }
 0x6f1   : > { %v5809_v25 = vpop.f32.mrf.mxu0 }
 0x6f2   : > { %v15407_v8 = vadd.f32 %v5718_v38, %v14857_v32  ;;  %v5899_v54 = vadd.f32 %v5898_v40, %v5809_v25 }
 0x6f3   : > { %9367 = vmatmul.msk.bf16.gmra.mxu3 %vm3567_vm7, %v5411_v31  ;;  %9383 = vmatmul.msk.bf16.gmra.mxu1 %vm3567_vm7, %v5411_v31  ;;  %v5314_v31 = vrot.slane %v13918_v42, 6 }
 0x6f4   : > { %5670 = vmatmul.bf16.gmra.mxu2 %v5410_v50  ;;  %v15412_v52 = vadd.f32 %v5899_v54, %v14862_v56  ;;  %5848 = vmatmul.bf16.gmra.mxu0 %v5410_v50  ;;  %v18512_v54 = vld [vmem:[#allocation23_spill] sm:$0xff] }
 0x6f5   : > { %v5313_v56 = vrot.slane %v18512_v54, 6  ;;  %v5323_v48 = vsel %vm5319_vm8, %v5314_v31, %v5316_v57  ;;  %v5325_v38 = vsel %vm5319_vm8, %v5312_v44, %v5314_v31 }
 0x6f6   : > { %v5720_v53 = vpop.f32.mrf.mxu3 }
 0x6f7   : > { %v5631_v35 = vpop.f32.mrf.mxu2 }
 0x6f8   : > { %v5721_v3 = vadd.f32 %v5720_v53, %v5631_v35  ;;  %v5900_v28 = vpop.f32.mrf.mxu1  ;;  %v5413_v53 = vpack.c.bf16 %v5323_v48, %v5325_v38  ;;  %v5324_v35 = vsel %vm5319_vm8, %v5311_v43, %v5313_v56  ;;  %v18516_v43 = vld [vmem:[#allocation103_spill] sm:$0xff] }
 0x6f9   : > { %v5811_v32 = vpop.f32.mrf.mxu0 }
 0x6fa   : > { %v15415_v29 = vadd.f32 %v5721_v3, %v14865_v7  ;;  %v5901_v25 = vadd.f32 %v5900_v28, %v5811_v32  ;;  %v5322_v7 = vsel %vm5319_vm8, %v5313_v56, %v5315_v14  ;;  %v18513_v3 = vld [vmem:[#allocation102_spill] sm:$0xff] }
 0x6fc   : > { %v15421_v24 = vadd.f32 %v5901_v25, %v18511_v1  ;;  %v5412_v25 = vpack.c.bf16 %v5322_v7, %v5324_v35  ;;  %v18518_v35 = vld [vmem:[#allocation24_spill] sm:$0xff] }
 0x6fe   : > { %v5722_v50 = vpop.f32.mrf.mxu3 }
 0x6ff   : > { %v5633_v10 = vpop.f32.mrf.mxu2 }
 0x700   : > { %v5723_v21 = vadd.f32 %v5722_v50, %v5633_v10  ;;  %v5903_v40 = vpop.f32.mrf.mxu1  ;;  %v18515_v50 = vld [vmem:[#allocation68_spill] sm:$0xff] }
 0x701   : > { %v5814_v32 = vpop.f32.mrf.mxu0 }
 0x702   : > { %v15433_v28 = vadd.f32 %v5723_v21, %v18513_v3  ;;  %v5904_v1 = vadd.f32 %v5903_v40, %v5814_v32  ;;  %v18517_v3 = vld [vmem:[#allocation48_spill] sm:$0xff]  ;;  %v5317_v32 = vrot.slane %v18518_v35, 6 }
 0x703   : > { %9368 = vmatmul.msk.bf16.gmra.mxu3 %vm3567_vm7, %v5413_v53  ;;  %9384 = vmatmul.msk.bf16.gmra.mxu1 %vm3567_vm7, %v5413_v53  ;;  %v5318_v7 = vrot.slane %v18517_v3, 6 }
 0x704   : > { %18514 = vst [vmem:[#allocation84_spill] sm:$0xff] %v15433_v28  ;;  %5675 = vmatmul.bf16.gmra.mxu2 %v5412_v25  ;;  %v15438_v10 = vadd.f32 %v5904_v1, %v18515_v50  ;;  %5853 = vmatmul.bf16.gmra.mxu0 %v5412_v25  ;;  %v18519_v28 = vld [vmem:[#allocation104_spill] sm:$0xff]  ;;  %v18520_v1 = vrot.slane %v18283_v60, 6 }
 0x705   : > { %v5321_v25 = vsel %vm5319_vm8, %v5316_v57, %v5318_v7 }
 0x706   : > { %v5725_v44 = vpop.f32.mrf.mxu3  ;;  %v5383_v50 = vsel %vm5319_vm8, %v5318_v7, %v18520_v1 }
 0x707   : > { %v5636_v31 = vpop.f32.mrf.mxu2 }
 0x708   : > { %v5726_v48 = vadd.f32 %v5725_v44, %v5636_v31  ;;  %v5905_v38 = vpop.f32.mrf.mxu1  ;;  %v5320_v31 = vsel %vm5319_vm8, %v5315_v14, %v5317_v32  ;;  %v18523_v14 = vld [vmem:[#allocation106_spill] sm:$0xff] }
 0x709   : > { %v5816_v21 = vpop.f32.mrf.mxu0 }
 0x70a   : > { %v15441_v56 = vadd.f32 %v5726_v48, %v18516_v43  ;;  %v5906_v40 = vadd.f32 %v5905_v38, %v5816_v21  ;;  %v18521_v48 = vrot.slane %v18399_v11, 6  ;;  %v5415_v21 = vpack.c.bf16 %v5383_v50, %v5321_v25  ;;  %v18525_v25 = vld [vmem:[#allocation107_spill] sm:$0xff]  ;;  %v18533_v11 = vld [vmem:[#allocation26_spill] sm:$0xff] }
 0x70c   : > { %v15446_v53 = vadd.f32 %v5906_v40, %v18519_v28  ;;  %v5382_v38 = vsel %vm5319_vm8, %v5317_v32, %v18521_v48  ;;  %v18522_v40 = vld [vmem:[#allocation105_spill] sm:$0xff] }
 0x70d   : > { %v5414_v60 = vpack.c.bf16 %v5382_v38, %v5320_v31  ;;  %v18526_v31 = vld [vmem:[#allocation17_spill] sm:$0xff] }
 0x70e   : > { %v5727_v26 = vpop.f32.mrf.mxu3 }
 0x70f   : > { %v5638_v44 = vpop.f32.mrf.mxu2 }
 0x710   : > { %v5728_v28 = vadd.f32 %v5727_v26, %v5638_v44  ;;  %v5908_v43 = vpop.f32.mrf.mxu1 }
 0x711   : > { %v5819_v57 = vpop.f32.mrf.mxu0 }
 0x712   : > { %v15461_v35 = vadd.f32 %v5728_v28, %v18522_v40  ;;  %v5909_v3 = vadd.f32 %v5908_v43, %v5819_v57 }
 0x713   : > { %9369 = vmatmul.msk.bf16.gmra.mxu3 %vm3567_vm7, %v5415_v21  ;;  %9385 = vmatmul.msk.bf16.gmra.mxu1 %vm3567_vm7, %v5415_v21 }
 0x714   : > { %5680 = vmatmul.bf16.gmra.mxu2 %v5414_v60  ;;  %v15466_v7 = vadd.f32 %v5909_v3, %v18523_v14  ;;  %5858 = vmatmul.bf16.gmra.mxu0 %v5414_v60  ;;  %v18529_v3 = vld [vmem:[#allocation39_spill] sm:$0xff] }
 0x715   : > { %v6018_v14 = vpack.c.bf16 %v18529_v3, %v18528_v49  ;;  %v18530_v60 = vld [vmem:[#allocation71_spill] sm:$0xff] }
 0x716   : > { %18524 = vst [vmem:[#allocation85_spill] sm:$0xff] %v15466_v7  ;;  %v5730_v1 = vpop.f32.mrf.mxu3 }
 0x717   : > { %v5641_v32 = vpop.f32.mrf.mxu2 }
 0x718   : > { %v5731_v26 = vadd.f32 %v5730_v1, %v5641_v32  ;;  %v5910_v44 = vpop.f32.mrf.mxu1  ;;  %v18532_v32 = vld [vmem:[#allocation37_spill] sm:$0xff] }
 0x719   : > { %v5821_v48 = vpop.f32.mrf.mxu0 }
 0x71a   : > { %v15469_v50 = vadd.f32 %v5731_v26, %v18525_v25  ;;  %v5911_v28 = vadd.f32 %v5910_v44, %v5821_v48  ;;  %v6017_v26 = vpack.c.bf16 %v18533_v11, %v18532_v32  ;;  %v18534_v44 = vld [vmem:[#allocation70_spill] sm:$0xff] }
 0x71b   : > { %v18537_v11 = vld [vmem:[#allocation18_spill] sm:$0xff] }
 0x71c   : > { %v15472_v38 = vadd.f32 %v5911_v28, %v18526_v31 }
 0x71e   : > { %18527 = vst [vmem:[#allocation86_spill] sm:$0xff] %v15472_v38  ;;  %v5732_v43 = vpop.f32.mrf.mxu3  ;;  %v18539_v38 = vld [vmem:[#allocation27_spill] sm:$0xff] }
 0x71f   : > { %v5643_v40 = vpop.f32.mrf.mxu2 }
 0x720   : > { %v5733_v21 = vadd.f32 %v5732_v43, %v5643_v40  ;;  %v5913_v57 = vpop.f32.mrf.mxu1  ;;  %v18536_v40 = vld [vmem:[#allocation69_spill] sm:$0xff] }
 0x721   : > { %v5824_v1 = vpop.f32.mrf.mxu0 }
 0x722   : > { %v15477_v7 = vadd.f32 %v5733_v21, %v18530_v60  ;;  %v5914_v25 = vadd.f32 %v5913_v57, %v5824_v1 }
 0x723   : > { %9487 = vmatmul.msk.bf16.vlgmr.msrb.gmra.mxu3 %vm3567_vm7, %v6018_v14  ;;  %9503 = vmatmul.msk.bf16.vlgmr.msrb.gmra.mxu1 %vm3567_vm7, %v6018_v14 }
 0x724   : > { %18531 = vst [vmem:[#allocation87_spill] sm:$0xff] %v15477_v7  ;;  %6238 = vmatmul.bf16.vlgmr.msrb.gmra.mxu2 %v6017_v26  ;;  %v15484_v48 = vadd.f32 %v5914_v25, %v18534_v44  ;;  %6416 = vmatmul.bf16.vlgmr.msrb.gmra.mxu0 %v6017_v26  ;;  %v18540_v25 = vld [vmem:[#allocation42_spill] sm:$0xff] }
 0x725   : > { %v6020_v44 = vpack.c.bf16 %v18540_v25, %v18539_v38 }
 0x726   : > { %18535 = vst [vmem:[#allocation88_spill] sm:$0xff] %v15484_v48  ;;  %v5735_v28 = vpop.f32.mrf.mxu3  ;;  %v18543_v48 = vld [vmem:[#allocation43_spill] sm:$0xff] }
 0x727   : > { %v5646_v31 = vpop.f32.mrf.mxu2 }
 0x728   : > { %v5736_v49 = vadd.f32 %v5735_v28, %v5646_v31  ;;  %v5915_v43 = vpop.f32.mrf.mxu1  ;;  %v18542_v31 = vld [vmem:[#allocation57_spill] sm:$0xff] }
 0x729   : > { %v5826_v3 = vpop.f32.mrf.mxu0 }
 0x72a   : > { %v15487_v21 = vadd.f32 %v5736_v49, %v18536_v40  ;;  %v5916_v60 = vadd.f32 %v5915_v43, %v5826_v3  ;;  %v6019_v49 = vpack.c.bf16 %v18543_v48, %v18542_v31  ;;  %v18546_v48 = vld [vmem:[#allocation32_spill] sm:$0xff] }
 0x72c   : > { %v15490_v57 = vadd.f32 %v5916_v60, %v18537_v11 }
 0x72e   : > { %18538 = vst [vmem:[#allocation89_spill] sm:$0xff] %v15490_v57  ;;  %v5737_v1 = vpop.f32.mrf.mxu3  ;;  %v18553_v57 = vld [vmem:[#allocation28_spill] sm:$0xff] }
 0x72f   : > { %v5648_v32 = vpop.f32.mrf.mxu2 }
 0x730   : > { %v5738_v14 = vadd.f32 %v5737_v1, %v5648_v32  ;;  %v5918_v7 = vpop.f32.mrf.mxu1 }
 0x731   : > { %v5829_v28 = vpop.f32.mrf.mxu0 }
 0x732   : > { %v15495_v26 = vadd.f32 %v5738_v14, %v14999_v0  ;;  %v5919_v40 = vadd.f32 %v5918_v7, %v5829_v28  ;;  %v18545_v0 = vld [vmem:[#allocation21_spill] sm:$0xff] }
 0x733   : > { %9488 = vmatmul.msk.bf16.gmra.mxu3 %vm3567_vm7, %v6020_v44  ;;  %9504 = vmatmul.msk.bf16.gmra.mxu1 %vm3567_vm7, %v6020_v44 }
 0x734   : > { %18541 = vst [vmem:[#allocation90_spill] sm:$0xff] %v15495_v26  ;;  %6243 = vmatmul.bf16.gmra.mxu2 %v6019_v49  ;;  %v15502_v43 = vadd.f32 %v5919_v40, %v15004_v41  ;;  %6421 = vmatmul.bf16.gmra.mxu0 %v6019_v49  ;;  %v18548_v26 = vld [vmem:[#allocation12_spill] sm:$0xff]  ;;  %v18549_v41 = vld [vmem:[#allocation45_spill] sm:$0xff]  ;;  %v18550_v49 = vld [vmem:[#allocation22_spill] sm:$0xff] }
 0x735   : > { %v6022_v40 = vpack.c.bf16 %v18549_v41, %v18548_v26 }
 0x736   : > { %18544 = vst [vmem:[#allocation91_spill] sm:$0xff] %v15502_v43  ;;  %v5740_v3 = vpop.f32.mrf.mxu3 }
 0x737   : > { %v5651_v60 = vpop.f32.mrf.mxu2 }
 0x738   : > { %v5741_v38 = vadd.f32 %v5740_v3, %v5651_v60  ;;  %v5920_v11 = vpop.f32.mrf.mxu1  ;;  %v18552_v60 = vld [vmem:[#allocation44_spill] sm:$0xff] }
 0x739   : > { %v5831_v32 = vpop.f32.mrf.mxu0 }
 0x73a   : > { %v15505_v1 = vadd.f32 %v5741_v38, %v18545_v0  ;;  %v5921_v14 = vadd.f32 %v5920_v11, %v5831_v32  ;;  %v6021_v38 = vpack.c.bf16 %v18553_v57, %v18552_v60  ;;  %v18554_v11 = vld [vmem:[#allocation108_spill] sm:$0xff]  ;;  %v18556_v57 = vld [vmem:[#allocation109_spill] sm:$0xff] }
 0x73c   : > { %v15508_v7 = vadd.f32 %v5921_v14, %v18546_v48 }
 0x73e   : > { %18547 = vst [vmem:[#allocation92_spill] sm:$0xff] %v15508_v7  ;;  %v5742_v25 = vpop.f32.mrf.mxu3  ;;  %v18562_v7 = vld [vmem:[#allocation50_spill] sm:$0xff] }
 0x73f   : > { %v5653_v28 = vpop.f32.mrf.mxu2 }
 0x740   : > { %v5743_v44 = vadd.f32 %v5742_v25, %v5653_v28  ;;  %v5923_v31 = vpop.f32.mrf.mxu1 }
 0x741   : > { %v5834_v3 = vpop.f32.mrf.mxu0 }
 0x742   : > { %v15513_v43 = vadd.f32 %v5743_v44, %v18550_v49  ;;  %v5924_v0 = vadd.f32 %v5923_v31, %v5834_v3 }
 0x743   : > { %9489 = vmatmul.msk.bf16.gmra.mxu3 %vm3567_vm7, %v6022_v40  ;;  %9505 = vmatmul.msk.bf16.gmra.mxu1 %vm3567_vm7, %v6022_v40 }
 0x744   : > { %18551 = vst [vmem:[#allocation8_spill] sm:$0xff] %v15513_v43  ;;  %6248 = vmatmul.bf16.gmra.mxu2 %v6021_v38  ;;  %v15520_v32 = vadd.f32 %v5924_v0, %v18554_v11  ;;  %6426 = vmatmul.bf16.gmra.mxu0 %v6021_v38  ;;  %v18557_v43 = vld [vmem:[#allocation29_spill] sm:$0xff]  ;;  %v18558_v0 = vld [vmem:[#allocation31_spill] sm:$0xff]  ;;  %v18559_v38 = vld [vmem:[#allocation110_spill] sm:$0xff] }
 0x745   : > { %v6024_v11 = vpack.c.bf16 %v18558_v0, %v18557_v43 }
 0x746   : > { %18555 = vst [vmem:[#allocation93_spill] sm:$0xff] %v15520_v32  ;;  %v5745_v14 = vpop.f32.mrf.mxu3 }
 0x747   : > { %v5656_v48 = vpop.f32.mrf.mxu2 }
 0x748   : > { %v5746_v26 = vadd.f32 %v5745_v14, %v5656_v48  ;;  %v5925_v25 = vpop.f32.mrf.mxu1  ;;  %v18561_v48 = vld [vmem:[#allocation30_spill] sm:$0xff] }
 0x749   : > { %v5836_v44 = vpop.f32.mrf.mxu0 }
 0x74a   : > { %v15523_v28 = vadd.f32 %v5746_v26, %v15039_v19  ;;  %v5926_v41 = vadd.f32 %v5925_v25, %v5836_v44  ;;  %v6023_v19 = vpack.c.bf16 %v18562_v7, %v18561_v48  ;;  %v18565_v7 = vld [vmem:[#allocation112_spill] sm:$0xff] }
 0x74c   : > { %v15526_v31 = vadd.f32 %v5926_v41, %v18556_v57 }
 0x74e   : > { %v5747_v49 = vpop.f32.mrf.mxu3 }
 0x74f   : > { %v5658_v3 = vpop.f32.mrf.mxu2 }
 0x750   : > { %v5748_v40 = vadd.f32 %v5747_v49, %v5658_v3  ;;  %v5928_v60 = vpop.f32.mrf.mxu1  ;;  %v18564_v49 = vld [vmem:[#allocation111_spill] sm:$0xff] }
 0x751   : > { %v5839_v14 = vpop.f32.mrf.mxu0 }
 0x752   : > { %v15531_v32 = vadd.f32 %v5748_v40, %v18559_v38  ;;  %v5929_v26 = vadd.f32 %v5928_v60, %v5839_v14 }
 0x753   : > { %9490 = vmatmul.msk.bf16.gmra.mxu3 %vm3567_vm7, %v6024_v11  ;;  %9506 = vmatmul.msk.bf16.gmra.mxu1 %vm3567_vm7, %v6024_v11 }
 0x754   : > { %18560 = vst [vmem:[#allocation94_spill] sm:$0xff] %v15531_v32  ;;  %6253 = vmatmul.bf16.gmra.mxu2 %v6023_v19  ;;  %v15538_v25 = vadd.f32 %v5929_v26, %v15068_v30  ;;  %6431 = vmatmul.bf16.gmra.mxu0 %v6023_v19  ;;  %v18566_v32 = vld [vmem:[#allocation46_spill] sm:$0xff]  ;;  %v18567_v30 = vld [vmem:[#allocation52_spill] sm:$0xff] }
 0x755   : > { %v6026_v26 = vpack.c.bf16 %v18567_v30, %v18566_v32 }
 0x756   : > { %18563 = vst [vmem:[#allocation95_spill] sm:$0xff] %v15538_v25  ;;  %v5750_v44 = vpop.f32.mrf.mxu3  ;;  %v18570_v25 = vld [vmem:[#allocation54_spill] sm:$0xff] }
 0x757   : > { %v5661_v41 = vpop.f32.mrf.mxu2 }
 0x758   : > { %v5751_v43 = vadd.f32 %v5750_v44, %v5661_v41  ;;  %v5930_v57 = vpop.f32.mrf.mxu1  ;;  %v18569_v41 = vld [vmem:[#allocation55_spill] sm:$0xff] }
 0x759   : > { %v5841_v40 = vpop.f32.mrf.mxu0 }
 0x75a   : > { %v15541_v3 = vadd.f32 %v5751_v43, %v18564_v49  ;;  %v5931_v0 = vadd.f32 %v5930_v57, %v5841_v40  ;;  %v6025_v43 = vpack.c.bf16 %v18570_v25, %v18569_v41  ;;  %v18573_v25 = vld [vmem:[#allocation113_spill] sm:$0xff]  ;;  %v18575_v41 = vld [vmem:[#allocation11_spill] sm:$0xff] }
 0x75c   : > { %v15544_v60 = vadd.f32 %v5931_v0, %v18565_v7 }
 0x75e   : > { %v5752_v38 = vpop.f32.mrf.mxu3 }
 0x75f   : > { %v5663_v14 = vpop.f32.mrf.mxu2 }
 0x760   : > { %v5753_v11 = vadd.f32 %v5752_v38, %v5663_v14  ;;  %v5933_v48 = vpop.f32.mrf.mxu1 }
 0x761   : > { %v5844_v44 = vpop.f32.mrf.mxu0 }
 0x762   : > { %v15549_v19 = vadd.f32 %v5753_v11, %v15095_v61  ;;  %v5934_v49 = vadd.f32 %v5933_v48, %v5844_v44 }
 0x763   : > { %9491 = vmatmul.msk.bf16.gmra.mxu3 %vm3567_vm7, %v6026_v26  ;;  %9507 = vmatmul.msk.bf16.gmra.mxu1 %vm3567_vm7, %v6026_v26 }
 0x764   : > { %18568 = vst [vmem:[#allocation96_spill] sm:$0xff] %v15549_v19  ;;  %6258 = vmatmul.bf16.gmra.mxu2 %v6025_v43  ;;  %v15556_v57 = vadd.f32 %v5934_v49, %v15106_v12  ;;  %6436 = vmatmul.bf16.gmra.mxu0 %v6025_v43  ;;  %v18576_v12 = vld [vmem:[#allocation59_spill] sm:$0xff]  ;;  %v18577_v43 = vld [vmem:[#allocation114_spill] sm:$0xff] }
 0x765   : > { %v6028_v49 = vpack.c.bf16 %v18576_v12, %v18575_v41  ;;  %v18580_v19 = vld [vmem:[#allocation58_spill] sm:$0xff] }
 0x766   : > { %18571 = vst [vmem:[#allocation97_spill] sm:$0xff] %v15556_v57  ;;  %v5755_v40 = vpop.f32.mrf.mxu3 }
 0x767   : > { %v5666_v0 = vpop.f32.mrf.mxu2 }
 0x768   : > { %v5756_v32 = vadd.f32 %v5755_v40, %v5666_v0  ;;  %v5935_v7 = vpop.f32.mrf.mxu1  ;;  %v18579_v0 = vld [vmem:[#allocation56_spill] sm:$0xff] }
 0x769   : > { %v5846_v38 = vpop.f32.mrf.mxu0 }
 0x76a   : > { %v15559_v61 = vadd.f32 %v5756_v32, %v15115_v51  ;;  %v5936_v14 = vadd.f32 %v5935_v7, %v5846_v38  ;;  %v6027_v51 = vpack.c.bf16 %v18580_v19, %v18579_v0  ;;  %v18581_v7 = vld [vmem:[#allocation115_spill] sm:$0xff] }
 0x76b   : > { %v18584_v19 = vld [vmem:[#allocation35_spill] sm:$0xff] }
 0x76c   : > { %18572 = vst [vmem:[#allocation98_spill] sm:$0xff] %v15559_v61  ;;  %v15562_v11 = vadd.f32 %v5936_v14, %v18573_v25  ;;  %v18591_v61 = vld [vmem:[#allocation60_spill] sm:$0xff] }
 0x76e   : > { %18574 = vst [vmem:[#allocation99_spill] sm:$0xff] %v15562_v11  ;;  %v5757_v48 = vpop.f32.mrf.mxu3  ;;  %v18586_v11 = vld [vmem:[#allocation16_spill] sm:$0xff] }
 0x76f   : > { %v5668_v30 = vpop.f32.mrf.mxu2 }
 0x770   : > { %v5758_v26 = vadd.f32 %v5757_v48, %v5668_v30  ;;  %v5938_v44 = vpop.f32.mrf.mxu1 }
 0x771   : > { %v5849_v40 = vpop.f32.mrf.mxu0 }
 0x772   : > { %v15567_v57 = vadd.f32 %v5758_v26, %v18577_v43  ;;  %v5939_v32 = vadd.f32 %v5938_v44, %v5849_v40  ;;  %v18583_v26 = vld [vmem:[#allocation116_spill] sm:$0xff] }
 0x773   : > { %9492 = vmatmul.msk.bf16.gmra.mxu3 %vm3567_vm7, %v6028_v49  ;;  %9508 = vmatmul.msk.bf16.gmra.mxu1 %vm3567_vm7, %v6028_v49 }
 0x774   : > { %18578 = vst [vmem:[#allocation100_spill] sm:$0xff] %v15567_v57  ;;  %6263 = vmatmul.bf16.gmra.mxu2 %v6027_v51  ;;  %v15574_v38 = vadd.f32 %v5939_v32, %v18581_v7  ;;  %6441 = vmatmul.bf16.gmra.mxu0 %v6027_v51  ;;  %v18587_v32 = vld [vmem:[#allocation61_spill] sm:$0xff]  ;;  %v18588_v51 = vld [vmem:[#allocation36_spill] sm:$0xff] }
 0x775   : > { %v6030_v7 = vpack.c.bf16 %v18587_v32, %v18586_v11 }
 0x776   : > { %18582 = vst [vmem:[#allocation101_spill] sm:$0xff] %v15574_v38  ;;  %v5760_v14 = vpop.f32.mrf.mxu3 }
 0x777   : > { %v5671_v25 = vpop.f32.mrf.mxu2 }
 0x778   : > { %v5761_v48 = vadd.f32 %v5760_v14, %v5671_v25  ;;  %v5940_v30 = vpop.f32.mrf.mxu1  ;;  %v18590_v25 = vld [vmem:[#allocation15_spill] sm:$0xff] }
 0x779   : > { %v5851_v12 = vpop.f32.mrf.mxu0 }
 0x77a   : > { %v15577_v41 = vadd.f32 %v5761_v48, %v18583_v26  ;;  %v5941_v43 = vadd.f32 %v5940_v30, %v5851_v12  ;;  %v6029_v48 = vpack.c.bf16 %v18591_v61, %v18590_v25  ;;  %v18592_v30 = vld [vmem:[#allocation25_spill] sm:$0xff]  ;;  %v18593_v61 = vld [vmem:[#allocation76_spill] sm:$0xff] }
 0x77c   : > { %v15580_v44 = vadd.f32 %v5941_v43, %v18584_v19 }
 0x77e   : > { %18585 = vst [vmem:[#allocation64_spill] sm:$0xff] %v15580_v44  ;;  %v5762_v40 = vpop.f32.mrf.mxu3  ;;  %v18594_v44 = vld [vmem:[#allocation19_spill] sm:$0xff] }
 0x77f   : > { %v5673_v0 = vpop.f32.mrf.mxu2 }
 0x780   : > { %v5763_v49 = vadd.f32 %v5762_v40, %v5673_v0  ;;  %v5943_v57 = vpop.f32.mrf.mxu1 }
 0x781   : > { %v5854_v14 = vpop.f32.mrf.mxu0 }
 0x782   : > { %v15585_v38 = vadd.f32 %v5763_v49, %v18588_v51  ;;  %v5944_v26 = vadd.f32 %v5943_v57, %v5854_v14 }
 0x783   : > { %9493 = vmatmul.msk.bf16.gmra.mxu3 %vm3567_vm7, %v6030_v7  ;;  %9509 = vmatmul.msk.bf16.gmra.mxu1 %vm3567_vm7, %v6030_v7 }
 0x784   : > { %18589 = vst [vmem:[#allocation23_spill] sm:$0xff] %v15585_v38  ;;  %6268 = vmatmul.bf16.gmra.mxu2 %v6029_v48  ;;  %v15592_v12 = vadd.f32 %v5944_v26, %v18592_v30  ;;  %6446 = vmatmul.bf16.gmra.mxu0 %v6029_v48  ;;  %v18595_v26 = vld [vmem:[#allocation63_spill] sm:$0xff]  ;;  %v18597_v38 = vld [vmem:[#allocation65_spill] sm:$0xff] }
 0x785   : > { %v6032_v30 = vpack.c.bf16 %v18595_v26, %v18594_v44 }
 0x786   : > { %v5765_v43 = vpop.f32.mrf.mxu3 }
 0x787   : > { %v5676_v19 = vpop.f32.mrf.mxu2 }
 0x788   : > { %v5766_v11 = vadd.f32 %v5765_v43, %v5676_v19  ;;  %v5945_v40 = vpop.f32.mrf.mxu1  ;;  %v18596_v19 = vld [vmem:[#allocation62_spill] sm:$0xff] }
 0x789   : > { %v5856_v49 = vpop.f32.mrf.mxu0 }
 0x78a   : > { %v15595_v0 = vadd.f32 %v5766_v11, %v15179_v59  ;;  %v5946_v32 = vadd.f32 %v5945_v40, %v5856_v49  ;;  %v6031_v59 = vpack.c.bf16 %v18597_v38, %v18596_v19 }
 0x78c   : > { %v15598_v57 = vadd.f32 %v5946_v32, %v18593_v61 }
 0x78e   : > { %v5767_v51 = vpop.f32.mrf.mxu3 }
 0x78f   : > { %v5678_v14 = vpop.f32.mrf.mxu2 }
 0x790   : > { %v5768_v7 = vadd.f32 %v5767_v51, %v5678_v14  ;;  %v5948_v25 = vpop.f32.mrf.mxu1 }
 0x791   : > { %v5859_v43 = vpop.f32.mrf.mxu0 }
 0x792   : > { %v15603_v48 = vadd.f32 %v5768_v7, %v15203_v13  ;;  %v5949_v11 = vadd.f32 %v5948_v25, %v5859_v43 }
 0x793   : > { %9494 = vmatmul.msk.bf16.gmra.mxu3 %vm3567_vm7, %v6032_v30  ;;  %9510 = vmatmul.msk.bf16.gmra.mxu1 %vm3567_vm7, %v6032_v30 }
 0x794   : > { %6273 = vmatmul.bf16.gmra.mxu2 %v6031_v59  ;;  %v15610_v40 = vadd.f32 %v5949_v11, %v15208_v62  ;;  %6451 = vmatmul.bf16.gmra.mxu0 %v6031_v59  ;;  %v6034_v62 = vpack.c.bf16 %v13558_v6, %v18354_v20  ;;  %v18598_v59 = vld [vmem:[#allocation9_spill] sm:$0xff] }
 0x796   : > { %v5770_v49 = vpop.f32.mrf.mxu3 }
 0x797   : > { %v5681_v32 = vpop.f32.mrf.mxu2 }
 0x798   : > { %v5771_v44 = vadd.f32 %v5770_v49, %v5681_v32  ;;  %v5950_v61 = vpop.f32.mrf.mxu1  ;;  %v18599_v49 = vld [vmem:[#allocation77_spill] sm:$0xff] }
 0x799   : > { %v5861_v51 = vpop.f32.mrf.mxu0 }
 0x79a   : > { %v15613_v13 = vadd.f32 %v5771_v44, %v15211_v34  ;;  %v5951_v14 = vadd.f32 %v5950_v61, %v5861_v51  ;;  %v6033_v34 = vpack.c.bf16 %v18598_v59, %v18481_v4 }
 0x79c   : > { %v15616_v38 = vadd.f32 %v5951_v14, %v15217_v36  ;;  %v6650_v36 = vld [vmem:[%s17330_s4] sm:$0x3] }
 0x79d   : > { %v15631_v20 = vperm.slane %v6650_v36, 1  ;;  %v15633_v61 = vperm.slane %v6650_v36, 0 }
 0x79e   : > { %v5772_v7 = vpop.f32.mrf.mxu3 }
 0x79f   : > { %v5683_v25 = vpop.f32.mrf.mxu2 }
 0x7a0   : > { %v5773_v26 = vadd.f32 %v5772_v7, %v5683_v25  ;;  %v6506_v30 = vpop.f32.mrf.mxu1 }
 0x7a1   : > { %v6417_v19 = vpop.f32.mrf.mxu0 }
 0x7a2   : > { %v15621_v43 = vadd.f32 %v5773_v26, %v15229_v22  ;;  %v6507_v11 = vadd.f32 %v6506_v30, %v6417_v19  ;;  %v18600_v19 = vld [vmem:[#allocation78_spill] sm:$0xff] }
 0x7a3   : > { %9495 = vmatmul.msk.bf16.gmra.mxu3 %vm3567_vm7, %v6034_v62  ;;  %9511 = vmatmul.msk.bf16.gmra.mxu1 %vm3567_vm7, %v6034_v62 }
 0x7a4   : > { %6278 = vmatmul.bf16.gmra.mxu2 %v6033_v34  ;;  %6456 = vmatmul.bf16.gmra.mxu0 %v6033_v34  ;;  %v6587_v6 = vadd.f32 %v6507_v11, %v18599_v49 }
 0x7a6   : > { %v6328_v22 = vpop.f32.mrf.mxu3  ;;  %v15636_v51 = vadd.f32 %v15631_v20, %v6587_v6  ;;  %v18601_v6 = vld [vmem:[#allocation66_spill] sm:$0xff] }
 0x7a7   : > { %v6239_v32 = vpop.f32.mrf.mxu2 }
 0x7a8   : > { %v6329_v44 = vadd.f32 %v6328_v22, %v6239_v32  ;;  %v6508_v4 = vpop.f32.mrf.mxu1  ;;  %v17614_v30 = vmax.f32 %v15636_v51, 0.0  ;;  %v18602_v22 = vld [vmem:[#allocation13_spill] sm:$0xff] }
 0x7a9   : > { %v6419_v7 = vpop.f32.mrf.mxu0  ;;  %v6036_v32 = vpack.c.bf16 %v18602_v22, %v18601_v6 }
 0x7aa   : > { %v6586_v14 = vadd.f32 %v6329_v44, %v15243_v55  ;;  %v6509_v25 = vadd.f32 %v6508_v4, %v6419_v7  ;;  %v18603_v7 = vld [vmem:[#allocation67_spill] sm:$0xff] }
 0x7ac   : > { %v15640_v26 = vadd.f32 %v15633_v61, %v6586_v14  ;;  %v6589_v59 = vadd.f32 %v6509_v25, %v18600_v19  ;;  %v18604_v25 = vld [vmem:[#allocation14_spill] sm:$0xff] }
 0x7ad   : > { %v6035_v19 = vpack.c.bf16 %v18604_v25, %v18603_v7 }
 0x7ae   : > { %v17608_v62 = vmax.f32 %v15640_v26, 0.0  ;;  %v6330_v34 = vpop.f32.mrf.mxu3  ;;  %v15652_v44 = vadd.f32 %v15631_v20, %v6589_v59 }
 0x7af   : > { %v6241_v11 = vpop.f32.mrf.mxu2 }
 0x7b0   : > { %v6331_v36 = vadd.f32 %v6330_v34, %v6241_v11  ;;  %v10277_v49 = vpack.i.bf16 %v17614_v30, %v17608_v62  ;;  %v6511_v55 = vpop.f32.mrf.mxu1 }
 0x7b1   : > { %v6422_v14 = vpop.f32.mrf.mxu0 }
 0x7b2   : > { %v6588_v4 = vadd.f32 %v6331_v36, %v15267_v5  ;;  %10278 = vrot.lane.b32.xlu2 %v10277_v49, %s10505_s16  ;;  %v6512_v34 = vadd.f32 %v6511_v55, %v6422_v14  ;;  %v17615_v49 = vmax.f32 %v15652_v44, 0.0 }
 0x7b3   : > { %9496 = vmatmul.msk.bf16.gmra.mxu3 %vm3567_vm7, %v6036_v32  ;;  %9512 = vmatmul.msk.bf16.gmra.mxu1 %vm3567_vm7, %v6036_v32 }
 0x7b4   : > { %v15660_v11 = vadd.f32 %v15633_v61, %v6588_v4  ;;  %6283 = vmatmul.bf16.gmra.mxu2 %v6035_v19  ;;  %v15664_v59 = vadd.f32 %v6512_v34, %v15278_v16  ;;  %6461 = vmatmul.bf16.gmra.mxu0 %v6035_v19 }
 0x7b6   : > { %v6333_v5 = vpop.f32.mrf.mxu3  ;;  %v17609_v36 = vmax.f32 %v15660_v11, 0.0 }
 0x7b7   : > { %v6244_v6 = vpop.f32.mrf.mxu2 }
 0x7b8   : > { %v6334_v22 = vadd.f32 %v6333_v5, %v6244_v6  ;;  %v10282_v55 = vpack.i.bf16 %v17615_v49, %v17609_v36  ;;  %v6513_v4 = vpop.f32.mrf.mxu1  ;;  %v6038_v6 = vpack.c.bf16 %v13683_v9, %v18246_v15 }
 0x7b9   : > { %v6424_v14 = vpop.f32.mrf.mxu0 }
 0x7ba   : > { %v15673_v32 = vadd.f32 %v6334_v22, %v15287_v63  ;;  %10283 = vrot.lane.b32.xlu0 %v10282_v55, %s10505_s16  ;;  %v6514_v16 = vadd.f32 %v6513_v4, %v6424_v14  ;;  %v6037_v63 = vpack.c.bf16 %v13687_v17, %v18248_v46 }
 0x7bc   : > { %v15677_v7 = vadd.f32 %v6514_v16, %v15294_v33  ;;  %v18605_v33 = vld [vmem:[#allocation79_spill] sm:$0xff] }
 0x7be   : > { %v6335_v25 = vpop.f32.mrf.mxu3 }
 0x7bf   : > { %v6246_v19 = vpop.f32.mrf.mxu2 }
 0x7c0   : > { %v6336_v34 = vadd.f32 %v6335_v25, %v6246_v19  ;;  %v6516_v5 = vpop.f32.mrf.mxu1 }
 0x7c1   : > { %v6427_v36 = vpop.f32.mrf.mxu0 }
 0x7c2   : > { %v15682_v62 = vadd.f32 %v6336_v34, %v15305_v39  ;;  %v6517_v22 = vadd.f32 %v6516_v5, %v6427_v36  ;;  %v18606_v34 = vld [vmem:[#allocation80_spill] sm:$0xff] }
 0x7c3   : > { %9497 = vmatmul.msk.bf16.gmra.mxu3 %vm3567_vm7, %v6038_v6  ;;  %9513 = vmatmul.msk.bf16.gmra.mxu1 %vm3567_vm7, %v6038_v6 }
 0x7c4   : > { %6288 = vmatmul.bf16.gmra.mxu2 %v6037_v63  ;;  %6466 = vmatmul.bf16.gmra.mxu0 %v6037_v63  ;;  %v6595_v55 = vadd.f32 %v6517_v22, %v18605_v33 }
 0x7c6   : > { %v6338_v4 = vpop.f32.mrf.mxu3  ;;  %v15690_v9 = vadd.f32 %v15631_v20, %v6595_v55  ;;  %v18607_v55 = vld [vmem:[#allocation49_spill] sm:$0xff] }
 0x7c7   : > { %v6249_v14 = vpop.f32.mrf.mxu2 }
 0x7c8   : > { %v6339_v16 = vadd.f32 %v6338_v4, %v6249_v14  ;;  %v6518_v15 = vpop.f32.mrf.mxu1  ;;  %v17611_v36 = vmax.f32 %v15690_v9, 0.0  ;;  %v18608_v4 = vld [vmem:[#allocation72_spill] sm:$0xff] }
 0x7c9   : > { %v6429_v25 = vpop.f32.mrf.mxu0  ;;  %v6040_v14 = vpack.c.bf16 %v18608_v4, %v18607_v55 }
 0x7ca   : > { %v6594_v39 = vadd.f32 %v6339_v16, %v15319_v37  ;;  %v6519_v17 = vadd.f32 %v6518_v15, %v6429_v25  ;;  %v18609_v25 = vld [vmem:[#allocation73_spill] sm:$0xff] }
 0x7cc   : > { %v15694_v46 = vadd.f32 %v15633_v61, %v6594_v39  ;;  %v6597_v5 = vadd.f32 %v6519_v17, %v18606_v34  ;;  %v18610_v17 = vld [vmem:[#allocation20_spill] sm:$0xff] }
 0x7cd   : > { %v6039_v34 = vpack.c.bf16 %v18610_v17, %v18609_v25 }
 0x7ce   : > { %v17610_v19 = vmax.f32 %v15694_v46, 0.0  ;;  %v6340_v6 = vpop.f32.mrf.mxu3  ;;  %v15706_v16 = vadd.f32 %v15631_v20, %v6597_v5 }
 0x7cf   : > { %v6251_v63 = vpop.f32.mrf.mxu2 }
 0x7d0   : > { %v6341_v22 = vadd.f32 %v6340_v6, %v6251_v63  ;;  %v10287_v33 = vpack.i.bf16 %v17611_v36, %v17610_v19  ;;  %v6521_v37 = vpop.f32.mrf.mxu1  ;;  %v18613_v36 = vld [vmem:[#allocation81_spill] sm:$0xff] }
 0x7d1   : > { %v6432_v39 = vpop.f32.mrf.mxu0 }
 0x7d2   : > { %v6596_v15 = vadd.f32 %v6341_v22, %v15343_v27  ;;  %10288 = vrot.lane.b32.xlu1 %v10287_v33, %s10505_s16  ;;  %v6522_v6 = vadd.f32 %v6521_v37, %v6432_v39  ;;  %v17613_v33 = vmax.f32 %v15706_v16, 0.0 }
 0x7d3   : > { %9498 = vmatmul.msk.bf16.gmra.mxu3 %vm3567_vm7, %v6040_v14  ;;  %9514 = vmatmul.msk.bf16.gmra.mxu1 %vm3567_vm7, %v6040_v14 }
 0x7d4   : > { %v15714_v63 = vadd.f32 %v15633_v61, %v6596_v15  ;;  %6293 = vmatmul.bf16.gmra.mxu2 %v6039_v34  ;;  %v15718_v5 = vadd.f32 %v6522_v6, %v15348_v58  ;;  %6471 = vmatmul.bf16.gmra.mxu0 %v6039_v34 }
 0x7d6   : > { %18611 = vst [vmem:[#allocation102_spill] sm:$0xff] %v15714_v63  ;;  %v6343_v27 = vpop.f32.mrf.mxu3  ;;  %v17612_v22 = vmax.f32 %v15714_v63, 0.0 }
 0x7d7   : > { %v6254_v55 = vpop.f32.mrf.mxu2 }
 0x7d8   : > { %v6344_v4 = vadd.f32 %v6343_v27, %v6254_v55  ;;  %v10292_v37 = vpack.i.bf16 %v17613_v33, %v17612_v22  ;;  %v6523_v15 = vpop.f32.mrf.mxu1  ;;  %v18612_v55 = vld [vmem:[#allocation75_spill] sm:$0xff] }
 0x7d9   : > { %v6434_v39 = vpop.f32.mrf.mxu0  ;;  %v6042_v19 = vpack.c.bf16 %v18612_v55, %v13798_v45 }
 0x7da   : > { %v15727_v14 = vadd.f32 %v6344_v4, %v15351_v23  ;;  %10293 = vrot.lane.b32.xlu2 %v10292_v37, %s10505_s16  ;;  %v6524_v58 = vadd.f32 %v6523_v15, %v6434_v39  ;;  %v18614_v23 = vld [vmem:[#allocation41_spill] sm:$0xff]  ;;  %v18615_v4 = vld [vmem:[#allocation74_spill] sm:$0xff] }
 0x7db   : > { %v6041_v30 = vpack.c.bf16 %v18615_v4, %v18614_v23 }
 0x7dc   : > { %v15731_v25 = vadd.f32 %v6524_v58, %v15357_v18  ;;  %v18616_v18 = vld [vmem:[#allocation82_spill] sm:$0xff] }
 0x7de   : > { %v6345_v17 = vpop.f32.mrf.mxu3 }
 0x7df   : > { %v6256_v34 = vpop.f32.mrf.mxu2 }
 0x7e0   : > { %v6346_v6 = vadd.f32 %v6345_v17, %v6256_v34  ;;  %v6526_v27 = vpop.f32.mrf.mxu1 }
 0x7e1   : > { %v6437_v33 = vpop.f32.mrf.mxu0 }
 0x7e2   : > { %v15736_v22 = vadd.f32 %v6346_v6, %v18613_v36  ;;  %v6527_v49 = vadd.f32 %v6526_v27, %v6437_v33  ;;  %v18619_v27 = vld [vmem:[#allocation83_spill] sm:$0xff] }
 0x7e3   : > { %9499 = vmatmul.msk.bf16.gmra.mxu3 %vm3567_vm7, %v6042_v19  ;;  %9515 = vmatmul.msk.bf16.gmra.mxu1 %vm3567_vm7, %v6042_v19 }
 0x7e4   : > { %6298 = vmatmul.bf16.gmra.mxu2 %v6041_v30  ;;  %6476 = vmatmul.bf16.gmra.mxu0 %v6041_v30  ;;  %v6603_v37 = vadd.f32 %v6527_v49, %v18616_v18 }
 0x7e6   : > { %v6348_v15 = vpop.f32.mrf.mxu3  ;;  %v15744_v36 = vadd.f32 %v15631_v20, %v6603_v37  ;;  %v18620_v37 = vld [vmem:[#allocation33_spill] sm:$0xff] }
 0x7e7   : > { %v6259_v39 = vpop.f32.mrf.mxu2 }
 0x7e8   : > { %v6349_v58 = vadd.f32 %v6348_v15, %v6259_v39  ;;  %v6528_v45 = vpop.f32.mrf.mxu1  ;;  %18617 = vst [vmem:[#allocation68_spill] sm:$0xff] %v15744_v36  ;;  %v17622_v19 = vmax.f32 %v15744_v36, 0.0  ;;  %v18621_v15 = vld [vmem:[#allocation51_spill] sm:$0xff] }
 0x7e9   : > { %v6439_v34 = vpop.f32.mrf.mxu0  ;;  %v6044_v39 = vpack.c.bf16 %v18621_v15, %v18620_v37 }
 0x7ea   : > { %v6602_v17 = vadd.f32 %v6349_v58, %v15383_v47  ;;  %v6529_v6 = vadd.f32 %v6528_v45, %v6439_v34  ;;  %v18623_v34 = vld [vmem:[#allocation40_spill] sm:$0xff] }
 0x7ec   : > { %v15748_v33 = vadd.f32 %v15633_v61, %v6602_v17  ;;  %v6605_v49 = vadd.f32 %v6529_v6, %v18619_v27  ;;  %v18624_v6 = vld [vmem:[#allocation47_spill] sm:$0xff] }
 0x7ed   : > { %v6043_v27 = vpack.c.bf16 %v18624_v6, %v18623_v34 }
 0x7ee   : > { %18618 = vst [vmem:[#allocation103_spill] sm:$0xff] %v15748_v33  ;;  %v17616_v30 = vmax.f32 %v15748_v33, 0.0  ;;  %v6350_v55 = vpop.f32.mrf.mxu3  ;;  %v15760_v58 = vadd.f32 %v15631_v20, %v6605_v49 }
 0x7ef   : > { %v6261_v23 = vpop.f32.mrf.mxu2 }
 0x7f0   : > { %v6351_v4 = vadd.f32 %v6350_v55, %v6261_v23  ;;  %v10297_v18 = vpack.i.bf16 %v17622_v19, %v17616_v30  ;;  %v6531_v47 = vpop.f32.mrf.mxu1  ;;  %18622 = vst [vmem:[#allocation104_spill] sm:$0xff] %v15760_v58 }
 0x7f1   : > { %v6442_v17 = vpop.f32.mrf.mxu0 }
 0x7f2   : > { %v6604_v45 = vadd.f32 %v6351_v4, %v15407_v8  ;;  %10298 = vrot.lane.b32.xlu0 %v10297_v18, %s10505_s16  ;;  %v6532_v55 = vadd.f32 %v6531_v47, %v6442_v17  ;;  %v17623_v8 = vmax.f32 %v15760_v58, 0.0 }
 0x7f3   : > { %9500 = vmatmul.msk.bf16.gmra.mxu3 %vm3567_vm7, %v6044_v39  ;;  %9516 = vmatmul.msk.bf16.gmra.mxu1 %vm3567_vm7, %v6044_v39 }
 0x7f4   : > { %v15768_v23 = vadd.f32 %v15633_v61, %v6604_v45  ;;  %6303 = vmatmul.bf16.gmra.mxu2 %v6043_v27  ;;  %v15772_v49 = vadd.f32 %v6532_v55, %v15412_v52  ;;  %6481 = vmatmul.bf16.gmra.mxu0 %v6043_v27  ;;  %v10023_v27 = vld [vmem:[%s17331_s5 + $0x80] sm:$0xff]  ;;  %v10024_v55 = vld [vmem:[%s17331_s5 + $0x88] sm:$0xff] }
 0x7f5   : > { %7478 = vmatpush.bf16.msra.mxu2 %v10023_v27  ;;  %7498 = vmatpush.bf16.msra.mxu3 %v10024_v55 }
 0x7f6   : > { %18625 = vst [vmem:[#allocation105_spill] sm:$0xff] %v15768_v23  ;;  %v6353_v4 = vpop.f32.mrf.mxu3  ;;  %v17617_v18 = vmax.f32 %v15768_v23, 0.0  ;;  %v18656_v23 = vld [vmem:[#allocation98_spill] sm:$0xff] }
 0x7f7   : > { %v6264_v37 = vpop.f32.mrf.mxu2 }
 0x7f8   : > { %v6354_v15 = vadd.f32 %v6353_v4, %v6264_v37  ;;  %v10302_v47 = vpack.i.bf16 %v17623_v8, %v17617_v18  ;;  %v6533_v45 = vpop.f32.mrf.mxu1  ;;  %v6046_v37 = vpack.c.bf16 %v13929_v2, %v13918_v42 }
 0x7f9   : > { %v6444_v17 = vpop.f32.mrf.mxu0 }
 0x7fa   : > { %v15781_v39 = vadd.f32 %v6354_v15, %v15415_v29  ;;  %10303 = vrot.lane.b32.xlu1 %v10302_v47, %s10505_s16  ;;  %v6534_v52 = vadd.f32 %v6533_v45, %v6444_v17  ;;  %v18626_v15 = vld [vmem:[#allocation34_spill] sm:$0xff] }
 0x7fb   : > { %v6045_v47 = vpack.c.bf16 %v18626_v15, %v18512_v54 }
 0x7fc   : > { %v15785_v34 = vadd.f32 %v6534_v52, %v15421_v24 }
 0x7fe   : > { %v15787_v6 = vpop.f32.mrf.mxu3 }
 0x7ff   : > { %v15795_v4 = vpop.f32.mrf.mxu2 }
 0x800   : > { %v6536_v29 = vpop.f32.mrf.mxu1 }
 0x801   : > { %v6447_v24 = vpop.f32.mrf.mxu0 }
 0x802   : > { %v6537_v45 = vadd.f32 %v6536_v29, %v6447_v24 }
 0x803   : > { %9501 = vmatmul.msk.bf16.gmra.mxu3 %vm3567_vm7, %v6046_v37  ;;  %9517 = vmatmul.msk.bf16.gmra.mxu1 %vm3567_vm7, %v6046_v37 }
 0x804   : > { %6308 = vmatmul.bf16.gmra.mxu2 %v6045_v47  ;;  %6486 = vmatmul.bf16.gmra.mxu0 %v6045_v47  ;;  %v6611_v17 = vadd.f32 %v6537_v45, %v15438_v10 }
 0x806   : > { %v6358_v52 = vpop.f32.mrf.mxu3  ;;  %v15805_v18 = vadd.f32 %v15631_v20, %v6611_v17 }
 0x807   : > { %v6269_v27 = vpop.f32.mrf.mxu2 }
 0x808   : > { %v6359_v55 = vadd.f32 %v6358_v52, %v6269_v27  ;;  %v6538_v30 = vpop.f32.mrf.mxu1  ;;  %18627 = vst [vmem:[#allocation106_spill] sm:$0xff] %v15805_v18  ;;  %v17620_v37 = vmax.f32 %v15805_v18, 0.0  ;;  %v18629_v52 = vld [vmem:[#allocation48_spill] sm:$0xff] }
 0x809   : > { %v6449_v2 = vpop.f32.mrf.mxu0 }
 0x80a   : > { %v6610_v42 = vadd.f32 %v6359_v55, %v15441_v56  ;;  %v6539_v54 = vadd.f32 %v6538_v30, %v6449_v2  ;;  %v18630_v30 = vld [vmem:[#allocation10_spill] sm:$0xff] }
 0x80b   : > { %v6048_v27 = vpack.c.bf16 %v18630_v30, %v18629_v52  ;;  %v18635_v52 = vld [vmem:[#allocation85_spill] sm:$0xff] }
 0x80c   : > { %v15809_v29 = vadd.f32 %v15633_v61, %v6610_v42  ;;  %v6613_v10 = vadd.f32 %v6539_v54, %v15446_v53  ;;  %v18632_v53 = vld [vmem:[#allocation24_spill] sm:$0xff]  ;;  %v18633_v54 = vld [vmem:[#allocation38_spill] sm:$0xff] }
 0x80e   : > { %18628 = vst [vmem:[#allocation107_spill] sm:$0xff] %v15809_v29  ;;  %v17618_v24 = vmax.f32 %v15809_v29, 0.0  ;;  %v6360_v15 = vpop.f32.mrf.mxu3  ;;  %v15821_v55 = vadd.f32 %v15631_v20, %v6613_v10 }
 0x80f   : > { %v6271_v47 = vpop.f32.mrf.mxu2 }
 0x810   : > { %v6361_v45 = vadd.f32 %v6360_v15, %v6271_v47  ;;  %v10307_v17 = vpack.i.bf16 %v17620_v37, %v17618_v24  ;;  %v6541_v56 = vpop.f32.mrf.mxu1  ;;  %18631 = vst [vmem:[#allocation17_spill] sm:$0xff] %v15821_v55  ;;  %v6047_v15 = vpack.c.bf16 %v18633_v54, %v18632_v53 }
 0x811   : > { %v6452_v2 = vpop.f32.mrf.mxu0 }
 0x812   : > { %v6612_v42 = vadd.f32 %v6361_v45, %v15461_v35  ;;  %10308 = vrot.lane.b32.xlu2 %v10307_v17, %s10505_s16  ;;  %v6542_v47 = vadd.f32 %v6541_v56, %v6452_v2  ;;  %v17621_v35 = vmax.f32 %v15821_v55, 0.0 }
 0x813   : > { %9502 = vmatmul.msk.bf16.gmra.mxu3 %vm3567_vm7, %v6048_v27  ;;  %9518 = vmatmul.msk.bf16.gmra.mxu1 %vm3567_vm7, %v6048_v27 }
 0x814   : > { %v15829_v24 = vadd.f32 %v15633_v61, %v6612_v42  ;;  %6313 = vmatmul.bf16.gmra.mxu2 %v6047_v15  ;;  %v15833_v10 = vadd.f32 %v6542_v47, %v18635_v52  ;;  %6491 = vmatmul.bf16.gmra.mxu0 %v6047_v15  ;;  %v18636_v15 = vld [vmem:[#allocation86_spill] sm:$0xff] }
 0x816   : > { %18634 = vst [vmem:[#allocation53_spill] sm:$0xff] %v15829_v24  ;;  %v6363_v45 = vpop.f32.mrf.mxu3  ;;  %v17619_v17 = vmax.f32 %v15829_v24, 0.0 }
 0x817   : > { %v6274_v30 = vpop.f32.mrf.mxu2 }
 0x818   : > { %v6364_v53 = vadd.f32 %v6363_v45, %v6274_v30  ;;  %v10312_v56 = vpack.i.bf16 %v17621_v35, %v17619_v17  ;;  %v6543_v42 = vpop.f32.mrf.mxu1  ;;  %v10022_v45 = vld [vmem:[%s17331_s5 + $0x78] sm:$0xff] }
 0x819   : > { %v6454_v2 = vpop.f32.mrf.mxu0  ;;  %7479 = vmatpush.bf16.msra.mxu2 %v10022_v45 }
 0x81a   : > { %v15842_v27 = vadd.f32 %v6364_v53, %v15469_v50  ;;  %10313 = vrot.lane.b32.xlu0 %v10312_v56, %s10505_s16  ;;  %v6544_v54 = vadd.f32 %v6543_v42, %v6454_v2  ;;  %v18637_v53 = vld [vmem:[#allocation88_spill] sm:$0xff] }
 0x81c   : > { %v15846_v47 = vadd.f32 %v6544_v54, %v18636_v15 }
 0x81e   : > { %v15848_v52 = vpop.f32.mrf.mxu3 }
 0x81f   : > { %v15853_v30 = vpop.f32.mrf.mxu2 }
 0x820   : > { %v6546_v17 = vpop.f32.mrf.mxu1 }
 0x821   : > { %v6457_v37 = vpop.f32.mrf.mxu0 }
 0x822   : > { %v6547_v50 = vadd.f32 %v6546_v17, %v6457_v37  ;;  %v18640_v17 = vld [vmem:[#allocation89_spill] sm:$0xff] }
 0x824   : > { %v6619_v35 = vadd.f32 %v6547_v50, %v18637_v53 }
 0x826   : > { %v6368_v19 = vpop.f32.mrf.mxu3  ;;  %v15857_v54 = vadd.f32 %v15631_v20, %v6619_v35 }
 0x827   : > { %v6279_v56 = vpop.f32.mrf.mxu2 }
 0x828   : > { %v6369_v42 = vadd.f32 %v6368_v19, %v6279_v56  ;;  %v6548_v2 = vpop.f32.mrf.mxu1  ;;  %18638 = vst [vmem:[#allocation39_spill] sm:$0xff] %v15857_v54  ;;  %v17629_v45 = vmax.f32 %v15857_v54, 0.0  ;;  %v18642_v56 = vld [vmem:[#allocation90_spill] sm:$0xff] }
 0x829   : > { %v6459_v8 = vpop.f32.mrf.mxu0 }
 0x82a   : > { %v6618_v15 = vadd.f32 %v6369_v42, %v15487_v21  ;;  %v6549_v29 = vadd.f32 %v6548_v2, %v6459_v8 }
 0x82c   : > { %v15861_v24 = vadd.f32 %v15633_v61, %v6618_v15  ;;  %v6621_v50 = vadd.f32 %v6549_v29, %v18640_v17  ;;  %v18644_v17 = vld [vmem:[#allocation91_spill] sm:$0xff] }
 0x82e   : > { %18639 = vst [vmem:[#allocation71_spill] sm:$0xff] %v15861_v24  ;;  %v17628_v37 = vmax.f32 %v15861_v24, 0.0  ;;  %v6370_v53 = vpop.f32.mrf.mxu3  ;;  %v15871_v8 = vadd.f32 %v15631_v20, %v6621_v50 }
 0x82f   : > { %v6281_v18 = vpop.f32.mrf.mxu2 }
 0x830   : > { %v6371_v19 = vadd.f32 %v6370_v53, %v6281_v18  ;;  %v10317_v35 = vpack.i.bf16 %v17629_v45, %v17628_v37  ;;  %v6551_v21 = vpop.f32.mrf.mxu1  ;;  %18641 = vst [vmem:[#allocation37_spill] sm:$0xff] %v15871_v8  ;;  %v17631_v53 = vmax.f32 %v15871_v8, 0.0 }
 0x831   : > { %v6462_v2 = vpop.f32.mrf.mxu0 }
 0x832   : > { %v6620_v42 = vadd.f32 %v6371_v19, %v18642_v56  ;;  %10318 = vrot.lane.b32.xlu0 %v10317_v35, %s10505_s16  ;;  %v6552_v15 = vadd.f32 %v6551_v21, %v6462_v2  ;;  %v18645_v2 = vld [vmem:[#allocation92_spill] sm:$0xff] }
 0x834   : > { %v15876_v29 = vadd.f32 %v15633_v61, %v6620_v42  ;;  %v15879_v18 = vadd.f32 %v6552_v15, %v18644_v17 }
 0x836   : > { %18643 = vst [vmem:[#allocation26_spill] sm:$0xff] %v15876_v29  ;;  %v6373_v24 = vpop.f32.mrf.mxu3  ;;  %v17630_v37 = vmax.f32 %v15876_v29, 0.0 }
 0x837   : > { %v6284_v45 = vpop.f32.mrf.mxu2 }
 0x838   : > { %v6374_v50 = vadd.f32 %v6373_v24, %v6284_v45  ;;  %v10322_v19 = vpack.i.bf16 %v17631_v53, %v17630_v37  ;;  %v6553_v35 = vpop.f32.mrf.mxu1  ;;  %v10021_v24 = vld [vmem:[%s17331_s5 + $0x70] sm:$0xff] }
 0x839   : > { %v6464_v56 = vpop.f32.mrf.mxu0  ;;  %7480 = vmatpush.bf16.msra.mxu2 %v10021_v24 }
 0x83a   : > { %v15888_v21 = vadd.f32 %v6374_v50, %v15505_v1  ;;  %10323 = vrot.lane.b32.xlu1 %v10322_v19, %s10505_s16  ;;  %v6554_v42 = vadd.f32 %v6553_v35, %v6464_v56  ;;  %v18646_v50 = vld [vmem:[#allocation93_spill] sm:$0xff] }
 0x83c   : > { %v15892_v15 = vadd.f32 %v6554_v42, %v18645_v2 }
 0x83e   : > { %v15894_v17 = vpop.f32.mrf.mxu3 }
 0x83f   : > { %v15899_v45 = vpop.f32.mrf.mxu2 }
 0x840   : > { %v6556_v37 = vpop.f32.mrf.mxu1 }
 0x841   : > { %v6467_v53 = vpop.f32.mrf.mxu0 }
 0x842   : > { %v6557_v1 = vadd.f32 %v6556_v37, %v6467_v53 }
 0x844   : > { %v6627_v54 = vadd.f32 %v6557_v1, %v18646_v50 }
 0x846   : > { %v6378_v29 = vpop.f32.mrf.mxu3  ;;  %v15903_v42 = vadd.f32 %v15631_v20, %v6627_v54 }
 0x847   : > { %v6289_v19 = vpop.f32.mrf.mxu2 }
 0x848   : > { %v6379_v35 = vadd.f32 %v6378_v29, %v6289_v19  ;;  %v6558_v56 = vpop.f32.mrf.mxu1  ;;  %18647 = vst [vmem:[#allocation70_spill] sm:$0xff] %v15903_v42  ;;  %v17638_v24 = vmax.f32 %v15903_v42, 0.0  ;;  %v18650_v19 = vld [vmem:[#allocation94_spill] sm:$0xff] }
 0x849   : > { %v6469_v8 = vpop.f32.mrf.mxu0 }
 0x84a   : > { %v6626_v2 = vadd.f32 %v6379_v35, %v15523_v28  ;;  %v6559_v55 = vadd.f32 %v6558_v56, %v6469_v8 }
 0x84c   : > { %v15907_v33 = vadd.f32 %v15633_v61, %v6626_v2  ;;  %v6629_v53 = vadd.f32 %v6559_v55, %v15526_v31  ;;  %v18652_v55 = vld [vmem:[#allocation95_spill] sm:$0xff] }
 0x84e   : > { %18648 = vst [vmem:[#allocation69_spill] sm:$0xff] %v15907_v33  ;;  %v17637_v37 = vmax.f32 %v15907_v33, 0.0  ;;  %v6380_v1 = vpop.f32.mrf.mxu3  ;;  %v15917_v8 = vadd.f32 %v15631_v20, %v6629_v53 }
 0x84f   : > { %v6291_v50 = vpop.f32.mrf.mxu2 }
 0x850   : > { %v6381_v29 = vadd.f32 %v6380_v1, %v6291_v50  ;;  %v10327_v54 = vpack.i.bf16 %v17638_v24, %v17637_v37  ;;  %v6561_v28 = vpop.f32.mrf.mxu1  ;;  %18649 = vst [vmem:[#allocation18_spill] sm:$0xff] %v15917_v8  ;;  %v17641_v50 = vmax.f32 %v15917_v8, 0.0  ;;  %v18654_v8 = vld [vmem:[#allocation97_spill] sm:$0xff] }
 0x851   : > { %v6472_v56 = vpop.f32.mrf.mxu0 }
 0x852   : > { %v6628_v35 = vadd.f32 %v6381_v29, %v18650_v19  ;;  %10328 = vrot.lane.b32.xlu1 %v10327_v54, %s10505_s16  ;;  %v6562_v2 = vadd.f32 %v6561_v28, %v6472_v56 }
 0x854   : > { %v15922_v31 = vadd.f32 %v15633_v61, %v6628_v35  ;;  %v15925_v1 = vadd.f32 %v6562_v2, %v18652_v55 }
 0x856   : > { %18651 = vst [vmem:[#allocation27_spill] sm:$0xff] %v15922_v31  ;;  %v17640_v37 = vmax.f32 %v15922_v31, 0.0  ;;  %v6383_v24 = vpop.f32.mrf.mxu3 }
 0x857   : > { %v6294_v33 = vpop.f32.mrf.mxu2 }
 0x858   : > { %v6384_v53 = vadd.f32 %v6383_v24, %v6294_v33  ;;  %v10332_v29 = vpack.i.bf16 %v17641_v50, %v17640_v37  ;;  %v6563_v54 = vpop.f32.mrf.mxu1  ;;  %v10020_v33 = vld [vmem:[%s17331_s5 + $0x68] sm:$0xff]  ;;  %v18653_v50 = vld [vmem:[#allocation96_spill] sm:$0xff] }
 0x859   : > { %v6474_v19 = vpop.f32.mrf.mxu0  ;;  %7481 = vmatpush.bf16.msra.mxu2 %v10020_v33 }
 0x85a   : > { %v15934_v28 = vadd.f32 %v6384_v53, %v15541_v3  ;;  %10333 = vrot.lane.b32.xlu2 %v10332_v29, %s10505_s16  ;;  %v6564_v35 = vadd.f32 %v6563_v54, %v6474_v19 }
 0x85c   : > { %v15938_v56 = vadd.f32 %v6564_v35, %v15544_v60 }
 0x85e   : > { %v6385_v2 = vpop.f32.mrf.mxu3 }
 0x85f   : > { %v6296_v24 = vpop.f32.mrf.mxu2 }
 0x860   : > { %v6386_v55 = vadd.f32 %v6385_v2, %v6296_v24  ;;  %v6566_v37 = vpop.f32.mrf.mxu1  ;;  %v18658_v24 = vld [vmem:[#allocation99_spill] sm:$0xff] }
 0x861   : > { %v6477_v3 = vpop.f32.mrf.mxu0 }
 0x862   : > { %v15944_v31 = vadd.f32 %v6386_v55, %v18653_v50  ;;  %v6567_v53 = vadd.f32 %v6566_v37, %v6477_v3 }
 0x864   : > { %v6635_v29 = vadd.f32 %v6567_v53, %v18654_v8 }
 0x866   : > { %v6388_v54 = vpop.f32.mrf.mxu3  ;;  %v15948_v42 = vadd.f32 %v15631_v20, %v6635_v29 }
 0x867   : > { %v6299_v19 = vpop.f32.mrf.mxu2 }
 0x868   : > { %v6389_v60 = vadd.f32 %v6388_v54, %v6299_v19  ;;  %v6568_v35 = vpop.f32.mrf.mxu1  ;;  %18655 = vst [vmem:[#allocation42_spill] sm:$0xff] %v15948_v42  ;;  %v17649_v50 = vmax.f32 %v15948_v42, 0.0  ;;  %v16007_v42 = vadd.f32 %v15631_v20, %v15833_v10  ;;  %v6356_v10 = vadd.f32 %v15787_v6, %v15795_v4  ;;  %v18665_v4 = vld [vmem:[#allocation84_spill] sm:$0xff] }
 0x869   : > { %v6479_v58 = vpop.f32.mrf.mxu0 }
 0x86a   : > { %v6634_v36 = vadd.f32 %v6389_v60, %v18656_v23  ;;  %v6569_v2 = vadd.f32 %v6568_v35, %v6479_v58 }
 0x86c   : > { %v15952_v33 = vadd.f32 %v15633_v61, %v6634_v36  ;;  %v6637_v8 = vadd.f32 %v6569_v2, %v18658_v24  ;;  %v18660_v36 = vld [vmem:[#allocation100_spill] sm:$0xff] }
 0x86e   : > { %18657 = vst [vmem:[#allocation57_spill] sm:$0xff] %v15952_v33  ;;  %v17648_v37 = vmax.f32 %v15952_v33, 0.0  ;;  %v6390_v55 = vpop.f32.mrf.mxu3  ;;  %v15962_v58 = vadd.f32 %v15631_v20, %v6637_v8 }
 0x86f   : > { %v6301_v3 = vpop.f32.mrf.mxu2 }
 0x870   : > { %v6391_v53 = vadd.f32 %v6390_v55, %v6301_v3  ;;  %v10337_v29 = vpack.i.bf16 %v17649_v50, %v17648_v37  ;;  %v6571_v23 = vpop.f32.mrf.mxu1  ;;  %18659 = vst [vmem:[#allocation43_spill] sm:$0xff] %v15962_v58  ;;  %v17651_v35 = vmax.f32 %v15962_v58, 0.0  ;;  %v15973_v3 = vadd.f32 %v15633_v61, %v15727_v14  ;;  %v10019_v50 = vld [vmem:[%s17331_s5 + $0x60] sm:$0xff] }
 0x871   : > { %v6482_v19 = vpop.f32.mrf.mxu0  ;;  %7482 = vmatpush.bf16.msra.mxu2 %v10019_v50 }
 0x872   : > { %v6636_v54 = vadd.f32 %v6391_v53, %v18660_v36  ;;  %10338 = vrot.lane.b32.xlu2 %v10337_v29, %s10505_s16  ;;  %18662 = vst [vmem:[#allocation32_spill] sm:$0xff] %v15973_v3  ;;  %v15983_v29 = vadd.f32 %v15631_v20, %v15718_v5  ;;  %v15999_v5 = vadd.f32 %v15633_v61, %v15842_v27 }
 0x874   : > { %v15967_v60 = vadd.f32 %v15633_v61, %v6636_v54  ;;  %18663 = vst [vmem:[#allocation12_spill] sm:$0xff] %v15983_v29  ;;  %v17659_v54 = vmax.f32 %v15973_v3, 0.0  ;;  %v17660_v14 = vmax.f32 %v15983_v29, 0.0  ;;  %v17669_v27 = vmax.f32 %v15999_v5, 0.0  ;;  %v18664_v3 = vld [vmem:[#allocation101_spill] sm:$0xff] }
 0x876   : > { %18661 = vst [vmem:[#allocation21_spill] sm:$0xff] %v15967_v60  ;;  %v17650_v2 = vmax.f32 %v15967_v60, 0.0  ;;  %v6393_v24 = vpop.f32.mrf.mxu3  ;;  %v6572_v60 = vadd.f32 %v6571_v23, %v6482_v19 }
 0x877   : > { %v6304_v55 = vpop.f32.mrf.mxu2 }
 0x878   : > { %v10342_v8 = vpack.i.bf16 %v17651_v35, %v17650_v2  ;;  %v15979_v53 = vpop.f32.mrf.mxu1  ;;  %v6394_v35 = vadd.f32 %v6393_v24, %v6304_v55  ;;  %v17670_v55 = vmax.f32 %v16007_v42, 0.0  ;;  %v6639_v29 = vadd.f32 %v6572_v60, %v18664_v3 }
 0x879   : > { %v15985_v36 = vpop.f32.mrf.mxu0 }
 0x87a   : > { %10343 = vrot.lane.b32.xlu0 %v10342_v8, %s10505_s16  ;;  %v10357_v8 = vpack.i.bf16 %v17660_v14, %v17659_v54  ;;  %v6638_v24 = vadd.f32 %v6394_v35, %v15577_v41  ;;  %v10372_v41 = vpack.i.bf16 %v17670_v55, %v17669_v27  ;;  %v6608_v35 = vadd.f32 %v6356_v10, %v18665_v4 }
 0x87b   : > { %v6376_v10 = vadd.f32 %v15894_v17, %v15899_v45  ;;  %v16064_v45 = vadd.f32 %v15631_v20, %v15785_v34 }
 0x87c   : > { %v16018_v23 = vadd.f32 %v15633_v61, %v6638_v24 }
 0x87e   : > { %v15990_v37 = vpop.f32.mrf.mxu3  ;;  %v17661_v3 = vmax.f32 %v16018_v23, 0.0 }
 0x87f   : > { %v15995_v2 = vpop.f32.mrf.mxu2 }
 0x880   : > { %v6576_v33 = vpop.f32.mrf.mxu1 }
 0x881   : > { %v6487_v58 = vpop.f32.mrf.mxu0 }
 0x882   : > { %10358 = vrot.lane.b32.xlu0 %v10357_v8, %s10505_s16  ;;  %v6577_v63 = vadd.f32 %v6576_v33, %v6487_v58  ;;  %v16025_v58 = vadd.f32 %v15631_v20, %v6639_v29 }
 0x884   : > { %v6643_v50 = vadd.f32 %v6577_v63, %v15592_v12 }
 0x886   : > { %v6398_v54 = vpop.f32.mrf.mxu3  ;;  %v16028_v12 = vadd.f32 %v15631_v20, %v6643_v50  ;;  %v16043_v50 = vadd.f32 %v15633_v61, %v15781_v39  ;;  %v16060_v39 = vadd.f32 %v15631_v20, %v15772_v49 }
 0x887   : > { %v6309_v14 = vpop.f32.mrf.mxu2 }
 0x888   : > { %v6399_v19 = vadd.f32 %v6398_v54, %v6309_v14  ;;  %v6578_v33 = vpop.f32.mrf.mxu1  ;;  %v17663_v14 = vmax.f32 %v16025_v58, 0.0  ;;  %v17695_v29 = vmax.f32 %v16028_v12, 0.0  ;;  %v17664_v49 = vmax.f32 %v16043_v50, 0.0 }
 0x889   : > { %v6489_v60 = vpop.f32.mrf.mxu0 }
 0x88a   : > { %v6642_v63 = vadd.f32 %v6399_v19, %v15595_v0  ;;  %10373 = vrot.lane.b32.xlu0 %v10372_v41, %s10505_s16  ;;  %v6579_v6 = vadd.f32 %v6578_v33, %v6489_v60  ;;  %v16048_v41 = vadd.f32 %v15633_v61, %v6608_v35  ;;  %v18667_v35 = vld [vmem:[#allocation8_spill] sm:$0xff] }
 0x88c   : > { %v16035_v54 = vadd.f32 %v15633_v61, %v6642_v63  ;;  %v6645_v24 = vadd.f32 %v6579_v6, %v15598_v57  ;;  %18666 = vst [vmem:[#allocation45_spill] sm:$0xff] %v16048_v41  ;;  %v10387_v57 = vpack.i.bf16 %v17663_v14, %v17661_v3  ;;  %v17666_v34 = vmax.f32 %v16048_v41, 0.0 }
 0x88d   : > { %v17665_v3 = vmax.f32 %v16060_v39, 0.0 }
 0x88e   : > { %v17662_v8 = vmax.f32 %v16035_v54, 0.0  ;;  %v6400_v0 = vpop.f32.mrf.mxu3  ;;  %v16067_v60 = vadd.f32 %v15631_v20, %v6645_v24  ;;  %v17667_v24 = vmax.f32 %v16064_v45, 0.0 }
 0x88f   : > { %v6311_v19 = vpop.f32.mrf.mxu2 }
 0x890   : > { %v6401_v33 = vadd.f32 %v6400_v0, %v6311_v19  ;;  %v10347_v63 = vpack.i.bf16 %v17695_v29, %v17662_v8  ;;  %v6581_v17 = vpop.f32.mrf.mxu1  ;;  %v6624_v0 = vadd.f32 %v6376_v10, %v18667_v35  ;;  %v10362_v8 = vpack.i.bf16 %v17665_v3, %v17664_v49 }
 0x891   : > { %v6492_v4 = vpop.f32.mrf.mxu0  ;;  %v10402_v14 = vpack.i.bf16 %v17667_v24, %v17666_v34  ;;  %v16111_v49 = vadd.f32 %v15631_v20, %v15892_v15  ;;  %v16117_v24 = vadd.f32 %v15631_v20, %v15664_v59 }
 0x892   : > { %v6644_v6 = vadd.f32 %v6401_v33, %v15603_v48  ;;  %10348 = vrot.lane.b32.xlu1 %v10347_v63, %s10505_s16  ;;  %10388 = vrot.lane.b32.xlu0 %v10387_v57, %s10505_s16  ;;  %v17694_v48 = vmax.f32 %v16067_v60, 0.0  ;;  %v16084_v57 = vadd.f32 %v15633_v61, %v15888_v21  ;;  %v16087_v10 = vadd.f32 %v15633_v61, %v6624_v0 }
 0x893   : > { %v16103_v0 = vadd.f32 %v15633_v61, %v15673_v32  ;;  %18670 = vst [vmem:[#allocation28_spill] sm:$0xff] %v16111_v49  ;;  %v6582_v3 = vadd.f32 %v6581_v17, %v6492_v4  ;;  %v17671_v59 = vmax.f32 %v16111_v49, 0.0 }
 0x894   : > { %v16075_v19 = vadd.f32 %v15633_v61, %v6644_v6  ;;  %18668 = vst [vmem:[#allocation22_spill] sm:$0xff] %v16087_v10  ;;  %v17688_v15 = vmax.f32 %v16084_v57, 0.0  ;;  %v17672_v4 = vmax.f32 %v16087_v10, 0.0 }
 0x896   : > { %v17668_v33 = vmax.f32 %v16075_v19, 0.0  ;;  %v6403_v63 = vpop.f32.mrf.mxu3 }
 0x897   : > { %v6314_v6 = vpop.f32.mrf.mxu2 }
 0x898   : > { %v6404_v35 = vadd.f32 %v6403_v63, %v6314_v6  ;;  %v10352_v21 = vpack.i.bf16 %v17694_v48, %v17668_v33  ;;  %v6583_v63 = vpop.f32.mrf.mxu1  ;;  %v16107_v6 = vadd.f32 %v15631_v20, %v15879_v18  ;;  %v10018_v18 = vld [vmem:[%s17331_s5 + $0x58] sm:$0xff]  ;;  %v17692_v33 = vmax.f32 %v16117_v24, 0.0 }
 0x899   : > { %v6494_v34 = vpop.f32.mrf.mxu0  ;;  %7483 = vmatpush.bf16.msra.mxu2 %v10018_v18 }
 0x89a   : > { %18669 = vst [vmem:[#allocation44_spill] sm:$0xff] %v16107_v6  ;;  %10363 = vrot.lane.b32.xlu1 %v10362_v8, %s10505_s16  ;;  %10403 = vrot.lane.b32.xlu0 %v10402_v14, %s10505_s16  ;;  %v6584_v32 = vadd.f32 %v6583_v63, %v6494_v34  ;;  %v6646_v17 = vadd.f32 %v6404_v35, %v15613_v13  ;;  %v17691_v8 = vmax.f32 %v16103_v0, 0.0  ;;  %v17685_v14 = vmax.f32 %v16107_v6, 0.0 }
 0x89b   : > { %10353 = vrot.lane.b32.xlu2 %v10352_v21, %s10505_s16  ;;  %v6647_v34 = vadd.f32 %v6582_v3, %v15610_v40  ;;  %v10417_v40 = vpack.i.bf16 %v17671_v59, %v17672_v4  ;;  %v6366_v59 = vadd.f32 %v15848_v52, %v15853_v30  ;;  %v16198_v4 = vadd.f32 %v15631_v20, %v15677_v7  ;;  %v18679_v30 = vld [vmem:[#allocation87_spill] sm:$0xff] }
 0x89c   : > { %v6649_v21 = vadd.f32 %v6584_v32, %v15616_v38  ;;  %v16133_v55 = vadd.f32 %v15633_v61, %v6646_v17  ;;  %v10377_v35 = vpack.i.bf16 %v17685_v14, %v17688_v15  ;;  %v16145_v38 = vadd.f32 %v15633_v61, %v15934_v28 }
 0x89d   : > { %v10367_v3 = vpack.i.bf16 %v17692_v33, %v17691_v8  ;;  %v16162_v28 = vadd.f32 %v15631_v20, %v15925_v1  ;;  %v16176_v1 = vadd.f32 %v15633_v61, %v15682_v62  ;;  %18677 = vst [vmem:[#allocation50_spill] sm:$0xff] %v16198_v4 }
 0x89e   : > { %v6405_v63 = vpop.f32.mrf.mxu3  ;;  %18671 = vst [vmem:[#allocation108_spill] sm:$0xff] %v16133_v55  ;;  %v16155_v32 = vadd.f32 %v15631_v20, %v6649_v21  ;;  %v17679_v17 = vmax.f32 %v16133_v55, 0.0  ;;  %v17689_v21 = vmax.f32 %v16145_v38, 0.0 }
 0x89f   : > { %v6316_v27 = vpop.f32.mrf.mxu2  ;;  %18675 = vst [vmem:[#allocation110_spill] sm:$0xff] %v16176_v1  ;;  %v17677_v52 = vmax.f32 %v16176_v1, 0.0 }
 0x8a0   : > { %v6406_v13 = vadd.f32 %v6405_v63, %v6316_v27  ;;  %v16152_v27 = vadd.f32 %v15631_v20, %v6647_v34  ;;  %18673 = vst [vmem:[#allocation29_spill] sm:$0xff] %v16155_v32 }
 0x8a2   : > { %18672 = vst [vmem:[#allocation109_spill] sm:$0xff] %v16152_v27  ;;  %v6648_v18 = vadd.f32 %v6406_v13, %v15621_v43  ;;  %10378 = vrot.lane.b32.xlu1 %v10377_v35, %s10505_s16  ;;  %10418 = vrot.lane.b32.xlu0 %v10417_v40, %s10505_s16  ;;  %v17675_v63 = vmax.f32 %v16152_v27, 0.0  ;;  %v17673_v43 = vmax.f32 %v16155_v32, 0.0  ;;  %v17690_v35 = vmax.f32 %v16162_v28, 0.0  ;;  %v18723_v27 = vld [vmem:[#allocation71_spill] sm:$0xff] }
 0x8a3   : > { %10368 = vrot.lane.b32.xlu2 %v10367_v3, %s10505_s16 }
 0x8a4   : > { %v16167_v34 = vadd.f32 %v15633_v61, %v6648_v18  ;;  %v10392_v40 = vpack.i.bf16 %v17675_v63, %v17679_v17  ;;  %v16188_v18 = vadd.f32 %v15633_v61, %v15736_v22  ;;  %v10382_v62 = vpack.i.bf16 %v17690_v35, %v17689_v21 }
 0x8a5   : > { %v16204_v22 = vadd.f32 %v15631_v20, %v15731_v25  ;;  %v17676_v63 = vmax.f32 %v16198_v4, 0.0  ;;  %v18690_v35 = vmax.f32 %v15660_v11, 0.0  ;;  %v18694_v11 = vmax.f32 %v15694_v46, 0.0 }
 0x8a6   : > { %18674 = vst [vmem:[#allocation31_spill] sm:$0xff] %v16167_v34  ;;  %v17674_v13 = vmax.f32 %v16167_v34, 0.0  ;;  %v18704_v34 = vld [vmem:[#allocation103_spill] sm:$0xff] }
 0x8a7   : > { %18676 = vst [vmem:[#allocation30_spill] sm:$0xff] %v16188_v18  ;;  %v17684_v7 = vmax.f32 %v16204_v22, 0.0  ;;  %v10407_v25 = vpack.i.bf16 %v17676_v63, %v17677_v52  ;;  %v18684_v63 = vld [vmem:[#allocation23_spill] sm:$0xff] }
 0x8a8   : > { %v10432_v3 = vpack.i.bf16 %v17673_v43, %v17674_v13  ;;  %18678 = vst [vmem:[#allocation111_spill] sm:$0xff] %v16204_v22  ;;  %v6616_v43 = vadd.f32 %v6366_v59, %v18679_v30  ;;  %v17678_v13 = vmax.f32 %v16188_v18, 0.0  ;;  %v6396_v59 = vadd.f32 %v15990_v37, %v15995_v2  ;;  %v10017_v2 = vld [vmem:[%s17331_s5 + $0x50] sm:$0xff] }
 0x8a9   : > { %v16236_v30 = vadd.f32 %v15631_v20, %v15846_v47  ;;  %7484 = vmatpush.bf16.msra.mxu2 %v10017_v2  ;;  %v10284_v2 = vpop.permute.xlu0 %10283 }
 0x8aa   : > { %10393 = vrot.lane.b32.xlu1 %v10392_v40, %s10505_s16  ;;  %10433 = vrot.lane.b32.xlu0 %v10432_v3, %s10505_s16  ;;  %v16214_v40 = vadd.f32 %v15633_v61, %v15944_v31  ;;  %v16221_v3 = vadd.f32 %v15633_v61, %v6616_v43  ;;  %v16231_v31 = vadd.f32 %v15631_v20, %v15938_v56 }
 0x8ab   : > { %10383 = vrot.lane.b32.xlu2 %v10382_v62, %s10505_s16  ;;  %v10397_v62 = vpack.i.bf16 %v17684_v7, %v17678_v13  ;;  %18683 = vst [vmem:[#allocation55_spill] sm:$0xff] %v16236_v30  ;;  %v6574_v43 = vadd.f32 %v15979_v53, %v15985_v36  ;;  %v6640_v56 = vadd.f32 %v6396_v59, %v18684_v63  ;;  %v17681_v47 = vmax.f32 %v16236_v30, 0.0  ;;  %v18685_v13 = vld [vmem:[#allocation64_spill] sm:$0xff] }
 0x8ac   : > { %18680 = vst [vmem:[#allocation112_spill] sm:$0xff] %v16214_v40  ;;  %v17682_v37 = vmax.f32 %v16214_v40, 0.0  ;;  %v17683_v52 = vmax.f32 %v16221_v3, 0.0  ;;  %v18717_v40 = vld [vmem:[#allocation26_spill] sm:$0xff] }
 0x8ad   : > { %18681 = vst [vmem:[#allocation46_spill] sm:$0xff] %v16221_v3  ;;  %v6641_v17 = vadd.f32 %v6574_v43, %v18685_v13  ;;  %v16255_v36 = vadd.f32 %v15633_v61, %v6640_v56  ;;  %v10279_v43 = vpop.permute.xlu2 %10278  ;;  %v10286_v56 = vunpack.i.h.bf16 %v10284_v2 }
 0x8ae   : > { %18682 = vst [vmem:[#allocation52_spill] sm:$0xff] %v16231_v31  ;;  %v10412_v63 = vpack.i.bf16 %v17681_v47, %v17683_v52 }
 0x8af   : > { %18686 = vst [vmem:[#allocation54_spill] sm:$0xff] %v16255_v36  ;;  %v16263_v59 = vadd.f32 %v15631_v20, %v6641_v17  ;;  %v17687_v13 = vmax.f32 %v16255_v36, 0.0  ;;  %v10281_v20 = vunpack.i.h.bf16 %v10279_v43  ;;  %v10280_v17 = vunpack.i.l.bf16 %v10279_v43 }
 0x8b1   : > { %18687 = vst [vmem:[#allocation113_spill] sm:$0xff] %v16263_v59 }
 0x8b2   : > { %10408 = vrot.lane.b32.xlu1 %v10407_v25, %s10505_s16  ;;  %v17680_v25 = vmax.f32 %v16231_v31, 0.0 }
 0x8b3   : > { %10398 = vrot.lane.b32.xlu2 %v10397_v62, %s10505_s16  ;;  %v17686_v62 = vmax.f32 %v16263_v59, 0.0  ;;  %v18702_v59 = vld [vmem:[#allocation105_spill] sm:$0xff] }
 0x8b4   : > { %v10422_v53 = vpack.i.bf16 %v17680_v25, %v17682_v37  ;;  %v10285_v25 = vunpack.i.l.bf16 %v10284_v2  ;;  %v6977_v2 = vsel %vm6976_vm9, %v10280_v17, %v10281_v20 }
 0x8b5   : > { %v10427_v61 = vpack.i.bf16 %v17686_v62, %v17687_v13  ;;  %v10294_v47 = vpop.permute.xlu2 %10293  ;;  %v10299_v62 = vpop.permute.xlu0 %10298 }
 0x8b6   : > { %v6978_v14 = vsel %vm6976_vm9, %v10285_v25, %v10286_v56  ;;  %v10296_v15 = vunpack.i.h.bf16 %v10294_v47  ;;  %v10295_v21 = vunpack.i.l.bf16 %v10294_v47 }
 0x8b7   : > { %v16284_v8 = vmax.f32 %v18690_v35, %v6978_v14 }
 0x8b8   : > { %v6982_v47 = vsel %vm6976_vm9, %v10295_v21, %v10296_v15 }
 0x8ba   : > { %10423 = vrot.lane.b32.xlu1 %v10422_v53, %s10505_s16  ;;  %v10289_v53 = vpop.permute.xlu1 %10288 }
 0x8bb   : > { %10413 = vrot.lane.b32.xlu2 %v10412_v63, %s10505_s16  ;;  %v18688_v63 = vmax.f32 %v15652_v44, 0.0  ;;  %v10291_v52 = vunpack.i.h.bf16 %v10289_v53  ;;  %v10290_v7 = vunpack.i.l.bf16 %v10289_v53  ;;  %v18691_v53 = vmax.f32 %v15690_v9, 0.0 }
 0x8bd   : > { %v16275_v37 = vmax.f32 %v18688_v63, %v10286_v56  ;;  %v6981_v44 = vsel %vm6976_vm9, %v10290_v7, %v10291_v52  ;;  %v7082_v25 = vmax.f32 %v18691_v53, %v10291_v52  ;;  %v17698_v52 = vrot.slane %v16284_v8, 2  ;;  %v10044_v7 = vld [vmem:[%s17331_s5 + $0x128] sm:$0xff] }
 0x8be   : > { %v7081_v14 = vmax.f32 %v18694_v11, %v6981_v44 }
 0x8bf   : > { %v17693_v43 = vrot.slane %v16275_v37, 2  ;;  %v7146_v21 = vrot.slane %v7082_v25, 2 }
 0x8c0   : > { %v7145_v44 = vrot.slane %v7081_v14, 2 }
 0x8c2   : > { %v10304_v63 = vpop.permute.xlu1 %10303 }
 0x8c3   : > { %10428 = vrot.lane.b32.xlu2 %v10427_v61, %s10505_s16  ;;  %v18689_v61 = vmax.f32 %v15636_v51, 0.0  ;;  %v18692_v51 = vmax.f32 %v15640_v26, 0.0  ;;  %v10306_v35 = vunpack.i.h.bf16 %v10304_v63  ;;  %v10305_v33 = vunpack.i.l.bf16 %v10304_v63  ;;  %v18696_v26 = vld [vmem:[#allocation102_spill] sm:$0xff] }
 0x8c5   : > { %v7074_v13 = vmax.f32 %v18689_v61, %v10281_v20  ;;  %v7073_v61 = vmax.f32 %v18692_v51, %v6977_v2  ;;  %v18693_v20 = vmax.f32 %v15706_v16, 0.0  ;;  %v18697_v2 = vmax.f32 %v18696_v26, 0.0  ;;  %v10314_v51 = vpop.permute.xlu0 %10313  ;;  %v18698_v26 = vld [vmem:[#allocation104_spill] sm:$0xff] }
 0x8c6   : > { %v10301_v16 = vunpack.i.h.bf16 %v10299_v62  ;;  %v6986_v63 = vsel %vm6976_vm9, %v10305_v33, %v10306_v35 }
 0x8c7   : > { %v7138_v56 = vrot.slane %v7074_v13, 2  ;;  %v16294_v17 = vmax.f32 %v18693_v20, %v10296_v15  ;;  %v16305_v53 = vmax.f32 %v18697_v2, %v6982_v47  ;;  %v10300_v15 = vunpack.i.l.bf16 %v10299_v62 }
 0x8c8   : > { %v7137_v20 = vrot.slane %v7073_v61, 2  ;;  %v18699_v2 = vmax.f32 %v18698_v26, 0.0  ;;  %v10315_v26 = vunpack.i.l.bf16 %v10314_v51 }
 0x8c9   : > { %v7248_v9 = vsel %vm1248_vm2, %v7138_v56, %v17693_v43  ;;  %v17701_v46 = vrot.slane %v16294_v17, 2  ;;  %v10016_v56 = vld [vmem:[%s17331_s5 + $0x48] sm:$0xff]  ;;  %v10309_v43 = vpop.permute.xlu2 %10308  ;;  %v17703_v48 = vrot.slane %v16305_v53, 2  ;;  %v6985_v29 = vsel %vm6976_vm9, %v10300_v15, %v10301_v16 }
 0x8ca   : > { %v7250_v11 = vmax.f32 %v7074_v13, %v7248_v9  ;;  %v7247_v47 = vsel %vm1248_vm2, %v7137_v20, %v17698_v52  ;;  %v16318_v62 = vmax.f32 %v18699_v2, %v10306_v35  ;;  %7485 = vmatpush.bf16.msra.mxu2 %v10016_v56  ;;  %v18700_v13 = vld [vmem:[#allocation68_spill] sm:$0xff]  ;;  %v18703_v20 = vmax.f32 %v18702_v59, 0.0 }
 0x8cb   : > { %v7242_v33 = vsel %vm1248_vm2, %v7146_v21, %v17701_v46  ;;  %v18701_v9 = vmax.f32 %v18700_v13, 0.0  ;;  %v10316_v35 = vunpack.i.h.bf16 %v10314_v51  ;;  %v7249_v2 = vmax.f32 %v7073_v61, %v7247_v47  ;;  %v10324_v46 = vpop.permute.xlu1 %10323 }
 0x8cc   : > { %v16330_v52 = vmax.f32 %v18703_v20, %v6986_v63  ;;  %v7241_v31 = vsel %vm1248_vm2, %v7145_v44, %v17703_v48  ;;  %v10311_v49 = vunpack.i.h.bf16 %v10309_v43  ;;  %v10310_v21 = vunpack.i.l.bf16 %v10309_v43  ;;  %v18706_v48 = vld [vmem:[#allocation17_spill] sm:$0xff] }
 0x8cd   : > { %v7090_v32 = vmax.f32 %v18701_v9, %v10301_v16  ;;  %v7298_v15 = vpack.c.bf16 %v7250_v11, %v7250_v11  ;;  %v7256_v56 = vmax.f32 %v7082_v25, %v7242_v33  ;;  %v18705_v13 = vmax.f32 %v18704_v34, 0.0  ;;  %v10319_v63 = vpop.permute.xlu0 %10318 }
 0x8ce   : > { %v17707_v59 = vrot.slane %v16318_v62, 2  ;;  %v7255_v9 = vmax.f32 %v7081_v14, %v7241_v31  ;;  %v17709_v61 = vrot.slane %v16330_v52, 2  ;;  %v6990_v51 = vsel %vm6976_vm9, %v10315_v26, %v10316_v35  ;;  %v18708_v14 = vld [vmem:[#allocation106_spill] sm:$0xff]  ;;  %v18710_v26 = vld [vmem:[#allocation53_spill] sm:$0xff] }
 0x8cf   : > { %v7089_v16 = vmax.f32 %v18705_v13, %v6985_v29  ;;  %v7154_v20 = vrot.slane %v7090_v32, 2  ;;  %v7297_v47 = vpack.c.bf16 %v7249_v2, %v7249_v2  ;;  %v6989_v44 = vsel %vm6976_vm9, %v10310_v21, %v10311_v49 }
 0x8d0   : > { %v18707_v43 = vmax.f32 %v18706_v48, 0.0  ;;  %v16346_v25 = vunpack.c.l.b16 %v7298_v15  ;;  %v7300_v34 = vpack.c.bf16 %v7256_v56, %v7256_v56  ;;  %v18709_v11 = vmax.f32 %v18708_v14, 0.0  ;;  %v18712_v56 = vld [vmem:[#allocation107_spill] sm:$0xff] }
 0x8d1   : > { %v7153_v29 = vrot.slane %v7089_v16, 2  ;;  %v7236_v31 = vsel %vm1248_vm2, %v7154_v20, %v17707_v59  ;;  %v18711_v2 = vmax.f32 %v18710_v26, 0.0  ;;  %v10326_v21 = vunpack.i.h.bf16 %v10324_v46 }
 0x8d2   : > { %v16344_v36 = vmax.f32 %v18707_v43, %v10316_v35  ;;  %v7098_v33 = vmax.f32 %v18709_v11, %v10311_v49  ;;  %v10325_v48 = vunpack.i.l.bf16 %v10324_v46  ;;  %v10334_v35 = vpop.permute.xlu2 %10333  ;;  %v7299_v43 = vpack.c.bf16 %v7255_v9, %v7255_v9 }
 0x8d3   : > { %v16356_v13 = vmax.f32 %v18711_v2, %v6990_v51  ;;  %v7235_v15 = vsel %vm1248_vm2, %v7153_v29, %v17709_v61  ;;  %v18713_v30 = vmax.f32 %v18712_v56, 0.0  ;;  %v7262_v20 = vmax.f32 %v7090_v32, %v7236_v31  ;;  %v10329_v26 = vpop.permute.xlu1 %10328 }
 0x8d4   : > { %v17714_v14 = vrot.slane %v16344_v36, 2  ;;  %v10321_v49 = vunpack.i.h.bf16 %v10319_v63  ;;  %v10320_v11 = vunpack.i.l.bf16 %v10319_v63  ;;  %v7403_v51 = vrot.slane %v16346_v25, 4 }
 0x8d5   : > { %v7097_v4 = vmax.f32 %v18713_v30, %v6989_v44  ;;  %v16366_v2 = vunpack.c.l.b16 %v7297_v47  ;;  %v7369_v46 = vunpack.c.l.b16 %v7300_v34  ;;  %v7261_v9 = vmax.f32 %v7089_v16, %v7235_v15  ;;  %v18714_v34 = vld [vmem:[#allocation37_spill] sm:$0xff] }
 0x8d6   : > { %v7162_v59 = vrot.slane %v7098_v33, 2  ;;  %v6994_v29 = vsel %vm6976_vm9, %v10325_v48, %v10326_v21  ;;  %v16372_v32 = vunpack.c.l.b16 %v7299_v43  ;;  %v10331_v44 = vunpack.i.h.bf16 %v10329_v26 }
 0x8d7   : > { %v7161_v30 = vrot.slane %v7097_v4, 2  ;;  %v10330_v63 = vunpack.i.l.bf16 %v10329_v26  ;;  %v7302_v31 = vpack.c.bf16 %v7262_v20, %v7262_v20  ;;  %v6993_v16 = vsel %vm6976_vm9, %v10320_v11, %v10321_v49  ;;  %v18721_v11 = vld [vmem:[#allocation39_spill] sm:$0xff] }
 0x8d8   : > { %v7230_v47 = vsel %vm1248_vm2, %v7162_v59, %v17714_v14  ;;  %v18715_v15 = vmax.f32 %v18714_v34, 0.0  ;;  %v7382_v48 = vrot.slane %v16366_v2, 4  ;;  %v18718_v43 = vmax.f32 %v18717_v40, 0.0 }
 0x8d9   : > { %v10336_v10 = vunpack.i.h.bf16 %v10334_v35  ;;  %v10335_v26 = vunpack.i.l.bf16 %v10334_v35  ;;  %v7404_v20 = vrot.slane %v7369_v46, 3  ;;  %v7301_v1 = vpack.c.bf16 %v7261_v9, %v7261_v9 }
 0x8da   : > { %v16381_v61 = vmax.f32 %v18715_v15, %v10326_v21  ;;  %v16386_v3 = vmax.f32 %v18718_v43, %v6994_v29  ;;  %v18720_v18 = vrot.slane %v16356_v13, 2  ;;  %v18722_v34 = vmax.f32 %v18721_v11, 0.0  ;;  %v16394_v15 = vpop.permute.xlu2 %10338  ;;  %v18725_v43 = vld [vmem:[#allocation70_spill] sm:$0xff] }
 0x8db   : > { %v7268_v14 = vmax.f32 %v7098_v33, %v7230_v47  ;;  %v18724_v40 = vmax.f32 %v18723_v27, 0.0  ;;  %v18726_v55 = vmax.f32 %v18725_v43, 0.0  ;;  %v6997_v22 = vsel %vm6976_vm9, %v10330_v63, %v10331_v44  ;;  %v18727_v11 = vld [vmem:[#allocation18_spill] sm:$0xff] }
 0x8dc   : > { %18716 = vst [vmem:[#allocation11_spill] sm:$0xff] %v16381_v61  ;;  %v7229_v59 = vsel %vm1248_vm2, %v7161_v30, %v18720_v18  ;;  %v7106_v21 = vmax.f32 %v18722_v34, %v10321_v49  ;;  %v7383_v9 = vrot.slane %v16372_v32, 3  ;;  %v7518_v6 = vrot.slane %v7369_v46, 7 }
 0x8dd   : > { %18719 = vst [vmem:[#allocation59_spill] sm:$0xff] %v16386_v3  ;;  %v7105_v29 = vmax.f32 %v18724_v40, %v6993_v16  ;;  %v7114_v35 = vmax.f32 %v18726_v55, %v10331_v44  ;;  %v7371_v41 = vunpack.c.l.b16 %v7302_v31  ;;  %v17720_v18 = vrot.slane %v16381_v61, 2  ;;  %v18729_v44 = vld [vmem:[#allocation69_spill] sm:$0xff] }
 0x8de   : > { %v7267_v30 = vmax.f32 %v7097_v4, %v7229_v59  ;;  %v17721_v49 = vrot.slane %v16386_v3, 2  ;;  %v18728_v34 = vmax.f32 %v18727_v11, 0.0  ;;  %v6998_v27 = vsel %vm6976_vm9, %v10335_v26, %v10336_v10  ;;  %v18746_v3 = vld [vmem:[#allocation32_spill] sm:$0xff] }
 0x8df   : > { %v7504_v47 = vrot.slane %v16372_v32, 7  ;;  %v7370_v55 = vunpack.c.l.b16 %v7301_v1  ;;  %v7170_v16 = vrot.slane %v7106_v21, 2  ;;  %v18730_v63 = vmax.f32 %v18729_v44, 0.0  ;;  %v18731_v32 = vld [vmem:[#allocation27_spill] sm:$0xff] }
 0x8e0   : > { %v16406_v33 = vmax.f32 %v18728_v34, %v10336_v10  ;;  %v7405_v46 = vsel %vm7384_vm10, %v7404_v20, %v7403_v51  ;;  %v7304_v31 = vpack.c.bf16 %v7268_v14, %v7268_v14  ;;  %v7169_v43 = vrot.slane %v7105_v29, 2 }
 0x8e1   : > { %v7113_v40 = vmax.f32 %v18730_v63, %v6997_v22  ;;  %v7178_v4 = vrot.slane %v7114_v35, 2  ;;  %v7519_v59 = vsel %vm7384_vm10, %v7518_v6, %v16346_v25  ;;  %v7406_v11 = vrot.slane %v7371_v41, 2 }
 0x8e2   : > { %v7224_v10 = vsel %vm1248_vm2, %v7170_v16, %v17720_v18  ;;  %v18732_v1 = vmax.f32 %v18731_v32, 0.0  ;;  %v7520_v22 = vrot.slane %v7371_v41, 6  ;;  %v7303_v51 = vpack.c.bf16 %v7267_v30, %v7267_v30  ;;  %v10014_v30 = vld [vmem:[%s17331_s5 + $0x38] sm:$0xff] }
 0x8e3   : > { %v7223_v14 = vsel %vm1248_vm2, %v7169_v43, %v17721_v49  ;;  %v17723_v6 = vrot.slane %v16406_v33, 2  ;;  %v7386_v25 = vrot.slane %v7370_v55, 2  ;;  %v7177_v20 = vrot.slane %v7113_v40, 2  ;;  %7592 = vmatpush.bf16.msrb.mxu2 %v10014_v30 }
 0x8e4   : > { %v16421_v26 = vmax.f32 %v18732_v1, %v6998_v27  ;;  %v7506_v27 = vrot.slane %v7370_v55, 6  ;;  %v7373_v32 = vunpack.c.l.b16 %v7304_v31  ;;  %v7274_v1 = vmax.f32 %v7106_v21, %v7224_v10 }
 0x8e5   : > { %v7218_v41 = vsel %vm1248_vm2, %v7178_v4, %v17723_v6  ;;  %v7273_v43 = vmax.f32 %v7105_v29, %v7223_v14  ;;  %v10341_v49 = vunpack.i.h.bf16 %v16394_v15  ;;  %v7385_v55 = vsel %vm7384_vm10, %v7383_v9, %v7382_v48 }
 0x8e6   : > { %v17722_v18 = vrot.slane %v16421_v26, 2  ;;  %v7505_v21 = vsel %vm7384_vm10, %v7504_v47, %v16366_v2  ;;  %v7407_v31 = vsel %vm7387_vm11, %v7406_v11, %v7405_v46  ;;  %v16448_v10 = vunpack.c.l.b16 %v7303_v51 }
 0x8e7   : > { %v7521_v4 = vsel %vm7387_vm11, %v7520_v22, %v7519_v59  ;;  %v7280_v14 = vmax.f32 %v7114_v35, %v7218_v41  ;;  %v16457_v48 = vsel %vm7387_vm11, %v7386_v25, %v7385_v55  ;;  %v16460_v2 = vsel %vm7387_vm11, %v7506_v27, %v7505_v21  ;;  %v18733_v22 = vld [vmem:[#allocation43_spill] sm:$0xff] }
 0x8e8   : > { %v7217_v29 = vsel %vm1248_vm2, %v7177_v20, %v17722_v18  ;;  %v7408_v9 = vrot.slane %v7373_v32, 1  ;;  %v7522_v47 = vrot.slane %v7373_v32, 5  ;;  %v7306_v46 = vpack.c.bf16 %v7274_v1, %v7274_v1  ;;  %v18737_v32 = vld [vmem:[#allocation42_spill] sm:$0xff] }
 0x8e9   : > { %v7305_v11 = vpack.c.bf16 %v7273_v43, %v7273_v43  ;;  %v18734_v51 = vmax.f32 %v18733_v22, 0.0  ;;  %v7279_v20 = vmax.f32 %v7113_v40, %v7217_v29  ;;  %v7308_v55 = vpack.c.bf16 %v7280_v14, %v7280_v14 }
 0x8ea   : > { %v18738_v1 = vmax.f32 %v18737_v32, 0.0  ;;  %v7409_v14 = vsel %vm7390_vm12, %v7408_v9, %v7407_v31  ;;  %v18741_v31 = vmax.f32 %v16028_v12, 0.0  ;;  %v18747_v12 = vmax.f32 %v18746_v3, 0.0 }
 0x8eb   : > { %v7307_v22 = vpack.c.bf16 %v7279_v20, %v7279_v20 }
 0x8ec   : > { %v16370_v56 = vpop.permute.xlu0 %10343  ;;  %v7122_v43 = vmax.f32 %v18738_v1, %v10341_v49 }
 0x8ed   : > { %v10346_v44 = vunpack.i.h.bf16 %v16370_v56  ;;  %v10345_v16 = vunpack.i.l.bf16 %v16370_v56  ;;  %v10340_v56 = vunpack.i.l.bf16 %v16394_v15 }
 0x8ef   : > { %v7002_v15 = vsel %vm6976_vm9, %v10345_v16, %v10346_v44  ;;  %v7001_v59 = vsel %vm6976_vm9, %v10340_v56, %v10341_v49  ;;  %v16465_v30 = vmax.f32 %v18734_v51, %v10346_v44  ;;  %v18735_v16 = vld [vmem:[#allocation21_spill] sm:$0xff] }
 0x8f0   : > { %v18736_v25 = vmax.f32 %v18735_v16, 0.0  ;;  %v18739_v51 = vld [vmem:[#allocation57_spill] sm:$0xff]  ;;  %v7375_v16 = vunpack.c.l.b16 %v7306_v46 }
 0x8f1   : > { %v18740_v40 = vmax.f32 %v18739_v51, 0.0  ;;  %v7377_v51 = vunpack.c.l.b16 %v7308_v55  ;;  %v18742_v1 = vrot.slane %v16465_v30, 2  ;;  %v18743_v55 = vld [vmem:[#allocation12_spill] sm:$0xff] }
 0x8f2   : > { %v16470_v41 = vmax.f32 %v18736_v25, %v7002_v15  ;;  %v16482_v25 = vunpack.c.l.b16 %v7305_v11  ;;  %v7524_v49 = vrot.slane %v7375_v16, 4 }
 0x8f3   : > { %v7121_v29 = vmax.f32 %v18740_v40, %v7001_v59  ;;  %v7186_v59 = vrot.slane %v7122_v43, 2  ;;  %v7411_v3 = vrot.slane %v7377_v51, 7 }
 0x8f4   : > { %v16423_v34 = vpop.permute.xlu0 %10358 }
 0x8f5   : > { %v16432_v63 = vpop.permute.xlu2 %10353  ;;  %v10361_v56 = vunpack.i.h.bf16 %v16423_v34  ;;  %v10360_v21 = vunpack.i.l.bf16 %v16423_v34  ;;  %v7185_v46 = vrot.slane %v7121_v29, 2  ;;  %v7523_v34 = vsel %vm7390_vm12, %v7522_v47, %v7521_v4 }
 0x8f6   : > { %v7212_v20 = vsel %vm1248_vm2, %v7186_v59, %v18742_v1  ;;  %v18748_v4 = vunpack.i.h.bf16 %v16432_v63  ;;  %v18749_v47 = vmax.f32 %v16067_v60, 0.0  ;;  %v7410_v59 = vsel %vm7392_vm13, %v7375_v16, %v7409_v14  ;;  %v10013_v60 = vld [vmem:[%s17331_s5 + $0x30] sm:$0xff] }
 0x8f7   : > { %v6983_v40 = vsel %vm6976_vm9, %v10360_v21, %v10361_v56  ;;  %v18745_v21 = vrot.slane %v16470_v41, 2  ;;  %7593 = vmatpush.bf16.msrb.mxu2 %v10013_v60 }
 0x8fc   : > { %v10374_v44 = vpop.permute.xlu0 %10373 }
 0x8fd   : > { %v10369_v32 = vpop.permute.xlu2 %10368  ;;  %v10376_v18 = vunpack.i.h.bf16 %v10374_v44  ;;  %v10375_v6 = vunpack.i.l.bf16 %v10374_v44  ;;  %v18744_v44 = vmax.f32 %v18743_v55, 0.0  ;;  %v16519_v55 = vunpack.c.l.b16 %v7307_v22 }
 0x8fe   : > { %v10371_v11 = vunpack.i.h.bf16 %v10369_v32  ;;  %v10370_v35 = vunpack.i.l.bf16 %v10369_v32  ;;  %v7211_v32 = vsel %vm1248_vm2, %v7185_v46, %v18745_v21  ;;  %v18750_v46 = vmax.f32 %v16007_v42, 0.0 }
 0x8ff   : > { %v16500_v61 = vmax.f32 %v18744_v44, %v10361_v56  ;;  %v6991_v1 = vsel %vm6976_vm9, %v10375_v6, %v10376_v18  ;;  %v7525_v6 = vsel %vm7392_vm13, %v7524_v49, %v7523_v34  ;;  %v18751_v22 = vmax.f32 %v15999_v5, 0.0 }
 0x900   : > { %v16523_v44 = vmax.f32 %v18750_v46, %v10376_v18  ;;  %v6979_v21 = vsel %vm6976_vm9, %v10370_v35, %v10371_v11  ;;  %v7526_v42 = vrot.slane %v7377_v51, 3  ;;  %v18752_v35 = vmax.f32 %v16117_v24, 0.0 }
 0x901   : > { %v17731_v16 = vrot.slane %v16500_v61, 2  ;;  %v16533_v14 = vmax.f32 %v18751_v22, %v6991_v1  ;;  %v7394_v49 = vrot.slane %v16519_v55, 7  ;;  %v18753_v51 = vmax.f32 %v16103_v0, 0.0 }
 0x902   : > { %v17732_v34 = vrot.slane %v16523_v44, 2  ;;  %v16552_v24 = vsel %vm7395_vm14, %v7411_v3, %v7410_v59  ;;  %v18754_v22 = vrot.slane %v16294_v17, 2  ;;  %v7527_v3 = vsel %vm7395_vm14, %v7526_v42, %v7525_v6 }
 0x903   : > { %v17735_v59 = vrot.slane %v16533_v14, 2 }
 0x904   : > { %v16472_v27 = vpop.permute.xlu1 %10348  ;;  %v7240_v0 = vsel %vm1248_vm2, %v18754_v22, %v17731_v16 }
 0x905   : > { %v17728_v15 = vunpack.i.h.bf16 %v16472_v27  ;;  %v10350_v1 = vunpack.i.l.bf16 %v16472_v27  ;;  %v7258_v56 = vmax.f32 %v16294_v17, %v7240_v0  ;;  %v18760_v17 = vrot.slane %v16356_v13, 2 }
 0x907   : > { %v7130_v9 = vmax.f32 %v18741_v31, %v17728_v15  ;;  %v16508_v31 = vmax.f32 %v18747_v12, %v6983_v40  ;;  %v16514_v15 = vmax.f32 %v18749_v47, %v18748_v4  ;;  %v7286_v40 = vmax.f32 %v7122_v43, %v7212_v20  ;;  %v10389_v47 = vpop.permute.xlu0 %10388 }
 0x908   : > { %v7285_v4 = vmax.f32 %v7121_v29, %v7211_v32  ;;  %v16539_v20 = vmax.f32 %v18752_v35, %v10371_v11  ;;  %v10012_v29 = vld [vmem:[%s17331_s5 + $0x28] sm:$0xff]  ;;  %v16549_v32 = vmax.f32 %v18753_v51, %v6979_v21  ;;  %v10355_v21 = vunpack.i.l.bf16 %v16432_v63 }
 0x909   : > { %v7194_v12 = vrot.slane %v7130_v9, 2  ;;  %v17729_v18 = vrot.slane %v16508_v31, 2  ;;  %v17730_v43 = vrot.slane %v16514_v15, 2  ;;  %v7310_v11 = vpack.c.bf16 %v7286_v40, %v7286_v40  ;;  %7594 = vmatpush.bf16.msrb.mxu2 %v10012_v29 }
 0x90a   : > { %v7309_v60 = vpack.c.bf16 %v7285_v4, %v7285_v4  ;;  %v18755_v40 = vrot.slane %v16305_v53, 2  ;;  %v17734_v4 = vrot.slane %v16539_v20, 2  ;;  %v10391_v35 = vunpack.i.h.bf16 %v10389_v47 }
 0x90b   : > { %v7206_v46 = vsel %vm1248_vm2, %v7194_v12, %v17730_v43  ;;  %v18756_v51 = vrot.slane %v16344_v36, 2  ;;  %v17736_v6 = vrot.slane %v16549_v32, 2  ;;  %v7379_v5 = vunpack.c.l.b16 %v7310_v11 }
 0x90c   : > { %v7239_v12 = vsel %vm1248_vm2, %v18755_v40, %v17729_v18  ;;  %v7292_v42 = vmax.f32 %v7130_v9, %v7206_v46  ;;  %v18757_v40 = vunpack.i.h.bf16 %v16472_v27  ;;  %v18758_v29 = vrot.slane %v16448_v10, 1 }
 0x90d   : > { %v7228_v22 = vsel %vm1248_vm2, %v18756_v51, %v17732_v34  ;;  %v16592_v16 = vunpack.c.l.b16 %v7309_v60  ;;  %v7257_v51 = vmax.f32 %v16305_v53, %v7239_v12  ;;  %v18759_v34 = vunpack.i.h.bf16 %v16432_v63 }
 0x90e   : > { %v7005_v18 = vsel %vm6976_vm9, %v10350_v1, %v18757_v40  ;;  %v16590_v43 = vsel %vm7390_vm12, %v18758_v29, %v16457_v48  ;;  %v7227_v27 = vsel %vm1248_vm2, %v18760_v17, %v17735_v59  ;;  %v7270_v11 = vmax.f32 %v16344_v36, %v7228_v22 }
 0x90f   : > { %v7006_v9 = vsel %vm6976_vm9, %v10355_v21, %v18759_v34  ;;  %v18761_v48 = vrot.slane %v16275_v37, 2  ;;  %v18762_v63 = vmax.f32 %v16025_v58, 0.0  ;;  %v10390_v34 = vunpack.i.l.bf16 %v10389_v47 }
 0x910   : > { %v18763_v46 = vrot.slane %v16284_v8, 2  ;;  %v18764_v36 = vmax.f32 %v16035_v54, 0.0  ;;  %v7312_v21 = vpack.c.bf16 %v7292_v42, %v7292_v42  ;;  %v18765_v12 = vrot.slane %v16448_v10, 5 }
 0x911   : > { %v7246_v53 = vsel %vm1248_vm2, %v18761_v48, %v17734_v4  ;;  %v16613_v1 = vmax.f32 %v18762_v63, %v10391_v35  ;;  %v7413_v58 = vrot.slane %v7379_v5, 6  ;;  %v7621_v40 = vpack.c.bf16 %v7258_v56, %v7258_v56  ;;  %v10384_v48 = vpop.permute.xlu2 %10383  ;;  %v10364_v63 = vpop.permute.xlu1 %10363 }
 0x912   : > { %v7245_v60 = vsel %vm1248_vm2, %v18763_v46, %v17736_v6  ;;  %v7129_v0 = vmax.f32 %v18764_v36, %v7005_v18  ;;  %v16627_v22 = vsel %vm7390_vm12, %v18765_v12, %v16460_v2  ;;  %v18766_v47 = vmax.f32 %v16075_v19, 0.0  ;;  %v10011_v2 = vld [vmem:[%s17331_s5 + $0x20] sm:$0xff] }
 0x913   : > { %v7269_v17 = vmax.f32 %v16356_v13, %v7227_v27  ;;  %v7397_v54 = vrot.slane %v16592_v16, 6  ;;  %v7528_v18 = vrot.slane %v7379_v5, 2  ;;  %v7620_v42 = vpack.c.bf16 %v7257_v51, %v7257_v51  ;;  %v10015_v19 = vld [vmem:[%s17331_s5 + $0x40] sm:$0xff]  ;;  %7595 = vmatpush.bf16.msrb.mxu2 %v10011_v2 }
 0x914   : > { %v16631_v29 = vmax.f32 %v18766_v47, %v7006_v9  ;;  %v7252_v10 = vmax.f32 %v16275_v37, %v7246_v53  ;;  %v7625_v56 = vpack.c.bf16 %v7270_v11, %v7270_v11  ;;  %v7251_v13 = vmax.f32 %v16284_v8, %v7245_v60  ;;  %7612 = vmatpush.bf16.msrb.mxu3 %v10015_v19  ;;  %v10010_v53 = vld [vmem:[%s17331_s5 + $0x18] sm:$0xff] }
 0x915   : > { %v17733_v9 = vrot.slane %v16613_v1, 2  ;;  %v7003_v27 = vsel %vm6976_vm9, %v10390_v34, %v10391_v35  ;;  %v7193_v46 = vrot.slane %v7129_v0, 2  ;;  %v16645_v5 = vunpack.c.l.b16 %v7312_v21 }
 0x916   : > { %v10386_v51 = vunpack.i.h.bf16 %v10384_v48  ;;  %v10385_v37 = vunpack.i.l.bf16 %v10384_v48  ;;  %v7514_v36 = vrot.slane %v16592_v16, 2  ;;  %v16651_v11 = vunpack.c.l.b16 %v7621_v40 }
 0x917   : > { %v7195_v8 = vrot.slane %v16631_v29, 2  ;;  %v7624_v60 = vpack.c.bf16 %v7269_v17, %v7269_v17  ;;  %v16654_v12 = vunpack.c.l.b16 %v7620_v42  ;;  %v7414_v35 = vsel %vm7398_vm15, %v7413_v58, %v16552_v24  ;;  %7596 = vmatpush.bf16.msrb.mxu2 %v10010_v53 }
 0x918   : > { %v16659_v34 = vsel %vm7398_vm15, %v7528_v18, %v7527_v3  ;;  %v18767_v21 = vmax.f32 %v16018_v23, 0.0  ;;  %v16665_v48 = vunpack.c.l.b16 %v7625_v56  ;;  %v7619_v2 = vpack.c.bf16 %v7252_v10, %v7252_v10 }
 0x919   : > { %v18768_v40 = vrot.slane %v16465_v30, 2  ;;  %v10366_v42 = vunpack.i.h.bf16 %v10364_v63  ;;  %v7618_v19 = vpack.c.bf16 %v7251_v13, %v7251_v13  ;;  %v7205_v24 = vsel %vm1248_vm2, %v7193_v46, %v7195_v8 }
 0x91a   : > { %v16663_v47 = vmax.f32 %v18767_v21, %v7003_v27  ;;  %v7415_v23 = vrot.slane %v16645_v5, 5  ;;  %v6999_v3 = vsel %vm6976_vm9, %v10385_v37, %v10386_v51  ;;  %v7699_v58 = vrot.slane %v16651_v11, 7 }
 0x91b   : > { %v7210_v17 = vsel %vm1248_vm2, %v18768_v40, %v17733_v9  ;;  %v16680_v18 = vunpack.c.l.b16 %v7624_v60  ;;  %v18769_v10 = vmax.f32 %v16162_v28, 0.0  ;;  %v10365_v27 = vunpack.i.l.bf16 %v10364_v63  ;;  %v16699_v63 = vpop.permute.xlu1 %10378 }
 0x91c   : > { %v7834_v13 = vrot.slane %v16651_v11, 3  ;;  %v7685_v21 = vrot.slane %v16654_v12, 7  ;;  %v17737_v46 = vrot.slane %v16663_v47, 2  ;;  %v7288_v40 = vmax.f32 %v16465_v30, %v7210_v17 }
 0x91d   : > { %v16684_v56 = vmax.f32 %v18769_v10, %v10386_v51  ;;  %v7820_v37 = vrot.slane %v16654_v12, 3  ;;  %v7291_v53 = vmax.f32 %v7129_v0, %v7205_v24  ;;  %v18770_v9 = vmax.f32 %v16145_v38, 0.0 }
 0x91e   : > { %v18771_v28 = vmax.f32 %v16060_v39, 0.0  ;;  %v7670_v10 = vunpack.c.l.b16 %v7619_v2  ;;  %v7669_v4 = vunpack.c.l.b16 %v7618_v19  ;;  %v7416_v59 = vsel %vm7401_vm0, %v7415_v23, %v7414_v35  ;;  %v10404_v2 = vpop.permute.xlu0 %10403 }
 0x91f   : > { %v16693_v60 = vmax.f32 %v18770_v9, %v6999_v3  ;;  %v17738_v38 = vrot.slane %v16684_v56, 2  ;;  %v6987_v9 = vsel %vm6976_vm9, %v10365_v27, %v10366_v42  ;;  %v18772_v39 = vrot.slane %v16470_v41, 2 }
 0x920   : > { %v16697_v51 = vmax.f32 %v18771_v28, %v10366_v42  ;;  %v7631_v17 = vpack.c.bf16 %v7288_v40, %v7288_v40  ;;  %v10381_v19 = vunpack.i.h.bf16 %v16699_v63  ;;  %v10380_v35 = vunpack.i.l.bf16 %v16699_v63  ;;  %v10032_v40 = vld [vmem:[%s17331_s5 + $0xc8] sm:$0xff] }
 0x921   : > { %v7209_v12 = vsel %vm1248_vm2, %v18772_v39, %v17737_v46  ;;  %v7311_v24 = vpack.c.bf16 %v7291_v53, %v7291_v53  ;;  %v7418_v23 = vpack.c.b16 %v7416_v59, %v7416_v59  ;;  %v17739_v3 = vrot.slane %v16693_v60, 2 }
 0x922   : > { %v7158_v28 = vrot.slane %v16697_v51, 2  ;;  %v7833_v27 = vrot.slane %v7670_v10, 4  ;;  %v7819_v30 = vrot.slane %v7669_v4, 4  ;;  %v18773_v6 = vmax.f32 %v16043_v50, 0.0  ;;  %v10009_v50 = vld [vmem:[%s17331_s5 + $0x10] sm:$0xff] }
 0x923   : > { %v7287_v63 = vmax.f32 %v16470_v41, %v7209_v12  ;;  %v18774_v59 = vrot.slane %v16406_v33, 2  ;;  %v10406_v39 = vunpack.i.h.bf16 %v10404_v2  ;;  %v10405_v42 = vunpack.i.l.bf16 %v10404_v2  ;;  %9573 = vmatmul.msk.bf16.vlgmr.msra.gmra.mxu3 %vm7474_vm1, %v7418_v23  ;;  %7597 = vmatpush.bf16.msrb.mxu2 %v10009_v50 }
 0x924   : > { %v16720_v11 = vmax.f32 %v18773_v6, %v6987_v9  ;;  %v16736_v6 = vsel %vm7384_vm10, %v7699_v58, %v7670_v10  ;;  %v16738_v9 = vunpack.c.l.b16 %v7631_v17  ;;  %v6995_v41 = vsel %vm6976_vm9, %v10380_v35, %v10381_v19  ;;  %v16758_v17 = vpop.permute.xlu2 %10398  ;;  %7773 = vmatpush.bf16.msra.mxu3 %v10032_v40 }
 0x925   : > { %v7216_v53 = vsel %vm1248_vm2, %v18774_v59, %v17738_v38  ;;  %v16742_v12 = vsel %vm7384_vm10, %v7685_v21, %v7669_v4  ;;  %v16744_v46 = vunpack.c.l.b16 %v7311_v24  ;;  %v18775_v2 = vrot.slane %v16421_v26, 2  ;;  %v10008_v4 = vld [vmem:[%s17331_s5 + $0x8] sm:$0xff] }
 0x926   : > { %v18776_v58 = vrot.slane %v16318_v62, 2  ;;  %v16765_v21 = vsel %vm7384_vm10, %v7834_v13, %v7833_v27  ;;  %v7530_v35 = vrot.slane %v16645_v5, 1  ;;  %v7282_v24 = vmax.f32 %v16406_v33, %v7216_v53 }
 0x927   : > { %v7215_v59 = vsel %vm1248_vm2, %v18775_v2, %v17739_v3  ;;  %v7157_v2 = vrot.slane %v16720_v11, 2  ;;  %v16774_v23 = vsel %vm7384_vm10, %v7820_v37, %v7819_v30  ;;  %v7630_v50 = vpack.c.bf16 %v7287_v63, %v7287_v63  ;;  %7598 = vmatpush.bf16.msrb.mxu2 %v10008_v4  ;;  %v10030_v4 = vld [vmem:[%s17331_s5 + $0xb8] sm:$0xff] }
 0x928   : > { %v7234_v10 = vsel %vm1248_vm2, %v18776_v58, %v7158_v28  ;;  %v10031_v58 = vld [vmem:[%s17331_s5 + $0xc0] sm:$0xff]  ;;  %v6988_v38 = vsel %vm6976_vm9, %v10405_v42, %v10406_v39  ;;  %v18777_v13 = vmax.f32 %v16084_v57, 0.0  ;;  %v7281_v33 = vmax.f32 %v16421_v26, %v7215_v59  ;;  %v10394_v57 = vpop.permute.xlu1 %10393  ;;  %v18782_v30 = vld [vmem:[#allocation44_spill] sm:$0xff] }
 0x929   : > { %v7264_v40 = vmax.f32 %v16318_v62, %v7234_v10  ;;  %v10401_v53 = vunpack.i.h.bf16 %v16758_v17  ;;  %v7400_v3 = vrot.slane %v16744_v46, 5  ;;  %v18778_v42 = vmax.f32 %v16064_v45, 0.0  ;;  %7774 = vmatpush.bf16.msra.mxu3 %v10031_v58 }
 0x92a   : > { %v16779_v27 = vmax.f32 %v18777_v13, %v6995_v41  ;;  %v10007_v41 = vld [vmem:[%s17331_s5] sm:$0xff]  ;;  %v7531_v62 = vsel %vm7401_vm0, %v7530_v35, %v16659_v34  ;;  %v7629_v26 = vpack.c.bf16 %v7282_v24, %v7282_v24  ;;  %v18779_v59 = vrot.slane %v16330_v52, 2 }
 0x92b   : > { %v7096_v63 = vmax.f32 %v18778_v42, %v10406_v39  ;;  %v18780_v13 = vld [vmem:[#allocation45_spill] sm:$0xff]  ;;  %v16806_v42 = vunpack.c.l.b16 %v7630_v50  ;;  %v18783_v34 = vmax.f32 %v18782_v30, 0.0  ;;  %v7628_v5 = vpack.c.bf16 %v7281_v33, %v7281_v33  ;;  %7599 = vmatpush.bf16.msrb.mxu2 %v10007_v41 }
 0x92c   : > { %v7233_v10 = vsel %vm1248_vm2, %v18779_v59, %v7157_v2  ;;  %v18781_v45 = vmax.f32 %v18780_v13, 0.0  ;;  %v17741_v24 = vrot.slane %v16779_v27, 2  ;;  %v7393_v59 = vsel %vm7392_vm13, %v16482_v25, %v16590_v43 }
 0x92d   : > { %v16810_v35 = vmax.f32 %v18783_v34, %v10381_v19  ;;  %v7623_v13 = vpack.c.bf16 %v7264_v40, %v7264_v40  ;;  %v7396_v50 = vsel %vm7395_vm14, %v7394_v49, %v7393_v59  ;;  %v7263_v0 = vmax.f32 %v16330_v52, %v7233_v10  ;;  %7775 = vmatpush.bf16.msra.mxu3 %v10030_v4  ;;  %v10029_v49 = vld [vmem:[%s17331_s5 + $0xb0] sm:$0xff] }
 0x92e   : > { %v7095_v39 = vmax.f32 %v18781_v45, %v6988_v38  ;;  %v18784_v38 = vld [vmem:[#allocation111_spill] sm:$0xff]  ;;  %v7160_v30 = vrot.slane %v7096_v63, 2  ;;  %v7399_v19 = vsel %vm7398_vm15, %v7397_v54, %v7396_v50  ;;  %v10396_v34 = vunpack.i.h.bf16 %v10394_v57 }
 0x92f   : > { %v18785_v58 = vmax.f32 %v18784_v38, 0.0  ;;  %v16825_v37 = vunpack.c.l.b16 %v7629_v26  ;;  %v10400_v33 = vunpack.i.l.bf16 %v16758_v17  ;;  %v7402_v40 = vsel %vm7401_vm0, %v7400_v3, %v7399_v19  ;;  %v10033_v52 = vld [vmem:[%s17331_s5 + $0xd0] sm:$0xff] }
 0x930   : > { %v7159_v43 = vrot.slane %v7095_v39, 2  ;;  %v17740_v54 = vrot.slane %v16810_v35, 2  ;;  %v18786_v63 = vld [vmem:[#allocation59_spill] sm:$0xff]  ;;  %v7417_v26 = vpack.c.b16 %v7402_v40, %v7402_v40  ;;  %v10395_v3 = vunpack.i.l.bf16 %v10394_v57  ;;  %v16853_v40 = vpop.permute.xlu2 %10413 }
 0x931   : > { %v7088_v45 = vmax.f32 %v18785_v58, %v10401_v53  ;;  %v18787_v41 = vrot.slane %v18786_v63, 2  ;;  %v7533_v10 = vpack.c.b16 %v7531_v62, %v7531_v62  ;;  %v16843_v4 = vunpack.c.l.b16 %v7628_v5  ;;  %v18788_v5 = vld [vmem:[#allocation108_spill] sm:$0xff]  ;;  %7776 = vmatpush.bf16.msra.mxu3 %v10029_v49  ;;  %v18792_v49 = vld [vmem:[#allocation109_spill] sm:$0xff] }
 0x932   : > { %v7674_v59 = vunpack.c.l.b16 %v7623_v13  ;;  %v7622_v38 = vpack.c.bf16 %v7263_v0, %v7263_v0  ;;  %v7232_v58 = vsel %vm1248_vm2, %v7158_v28, %v7160_v30  ;;  %7486 = vmatmul.bf16.vlgmr.msra.gmra.mxu2 %v7417_v26  ;;  %v7007_v19 = vsel %vm6976_vm9, %v10395_v3, %v10396_v34  ;;  %v10028_v28 = vld [vmem:[%s17331_s5 + $0xa8] sm:$0xff]  ;;  %v18790_v30 = vld [vmem:[#allocation11_spill] sm:$0xff]  ;;  %v16877_v3 = vpop.permute.xlu1 %10408 }
 0x933   : > { %v7221_v17 = vsel %vm1248_vm2, %v18787_v41, %v17741_v24  ;;  %v7152_v50 = vrot.slane %v7088_v45, 2  ;;  %v6984_v57 = vsel %vm6976_vm9, %v10400_v33, %v10401_v53  ;;  %v18789_v13 = vmax.f32 %v18788_v5, 0.0  ;;  %7793 = vmatpush.bf16.msra.mxu2 %v10033_v52  ;;  %9610 = vmatmul.msk.bf16.vlgmr.msrb.gmra.mxu3 %vm7474_vm1, %v7533_v10 }
 0x934   : > { %v7275_v62 = vmax.f32 %v18786_v63, %v7221_v17  ;;  %v7231_v53 = vsel %vm1248_vm2, %v7157_v2, %v7159_v43  ;;  %v18791_v33 = vrot.slane %v18790_v30, 2  ;;  %v18793_v17 = vmax.f32 %v18792_v49, 0.0  ;;  %v18795_v49 = vld [vmem:[#allocation30_spill] sm:$0xff] }
 0x935   : > { %v16857_v0 = vmax.f32 %v18789_v13, %v7007_v19  ;;  %v7693_v52 = vrot.slane %v16843_v4, 3  ;;  %v7701_v19 = vrot.slane %v7674_v59, 6  ;;  %v7836_v5 = vrot.slane %v7674_v59, 2  ;;  %v16880_v13 = vpop.permute.xlu0 %10418  ;;  %7777 = vmatpush.bf16.msra.mxu3 %v10028_v28 }
 0x936   : > { %v7222_v63 = vsel %vm1248_vm2, %v18791_v33, %v17740_v54  ;;  %v16875_v26 = vmax.f32 %v18793_v17, %v10396_v34  ;;  %v16883_v43 = vunpack.c.l.b16 %v7622_v38  ;;  %v16886_v45 = vmax.f32 %v16697_v51, %v7232_v58  ;;  %v10027_v58 = vld [vmem:[%s17331_s5 + $0xa0] sm:$0xff] }
 0x937   : > { %v17742_v2 = vrot.slane %v16857_v0, 2  ;;  %v18794_v33 = vrot.slane %v16500_v61, 2  ;;  %v18796_v17 = vmax.f32 %v18795_v49, 0.0  ;;  %v16896_v59 = vmax.f32 %v16720_v11, %v7231_v53 }
 0x938   : > { %v7276_v24 = vmax.f32 %v18790_v30, %v7222_v63  ;;  %v7626_v38 = vpack.c.bf16 %v7275_v62, %v7275_v62  ;;  %v17744_v10 = vunpack.i.h.bf16 %v16880_v13  ;;  %v17743_v11 = vrot.slane %v16875_v26, 2 }
 0x939   : > { %v7238_v34 = vsel %vm1248_vm2, %v18794_v33, %v7152_v50  ;;  %v7087_v54 = vmax.f32 %v18796_v17, %v6984_v57  ;;  %v7203_v51 = vsel %vm1248_vm2, %v7195_v8, %v17742_v2  ;;  %v10411_v50 = vunpack.i.h.bf16 %v16877_v3  ;;  %7778 = vmatpush.bf16.msra.mxu3 %v10027_v58 }
 0x93a   : > { %v10410_v57 = vunpack.i.l.bf16 %v16877_v3  ;;  %v10420_v62 = vunpack.i.l.bf16 %v16880_v13  ;;  %v17745_v53 = vunpack.i.h.bf16 %v16853_v40  ;;  %v10415_v30 = vunpack.i.l.bf16 %v16853_v40 }
 0x93b   : > { %v7293_v8 = vmax.f32 %v16631_v29, %v7203_v51  ;;  %v7687_v63 = vrot.slane %v16883_v43, 6  ;;  %v7702_v33 = vsel %vm7387_vm11, %v7701_v19, %v16736_v6  ;;  %v7151_v49 = vrot.slane %v7087_v54, 2  ;;  %v10026_v29 = vld [vmem:[%s17331_s5 + $0x98] sm:$0xff] }
 0x93c   : > { %v16922_v17 = vsel %vm7387_vm11, %v7836_v5, %v16765_v21  ;;  %v7627_v41 = vpack.c.bf16 %v7276_v24, %v7276_v24  ;;  %v16926_v39 = vunpack.c.l.b16 %v7626_v38  ;;  %v16933_v6 = vmax.f32 %v16500_v61, %v7238_v34  ;;  %v16952_v38 = vpop.permute.xlu2 %10428 }
 0x93d   : > { %v18797_v21 = vrot.slane %v16514_v15, 2  ;;  %v6980_v24 = vsel %vm6976_vm9, %v10410_v57, %v10411_v50  ;;  %v6996_v5 = vsel %vm6976_vm9, %v10420_v62, %v17744_v10  ;;  %v6992_v61 = vsel %vm6976_vm9, %v10415_v30, %v17745_v53  ;;  %v16966_v30 = vpop.permute.xlu1 %10423  ;;  %7779 = vmatpush.bf16.msra.mxu3 %v10026_v29  ;;  %v16991_v29 = vpop.permute.xlu0 %10433 }
 0x93e   : > { %v7632_v34 = vpack.c.bf16 %v7293_v8, %v7293_v8  ;;  %v7688_v58 = vsel %vm7387_vm11, %v7687_v63, %v16742_v12  ;;  %v18801_v62 = vrot.slane %v16482_v25, 4  ;;  %v16968_v8 = vunpack.c.l.b16 %v7627_v41  ;;  %v18803_v25 = vld [vmem:[#allocation22_spill] sm:$0xff] }
 0x93f   : > { %v7204_v54 = vsel %vm1248_vm2, %v18797_v21, %v17743_v11  ;;  %v18798_v21 = vrot.slane %v16508_v31, 2  ;;  %v18799_v11 = vld [vmem:[#allocation110_spill] sm:$0xff]  ;;  %v7691_v19 = vrot.slane %v16926_v39, 4  ;;  %v18802_v63 = vrot.slane %v16519_v55, 3  ;;  %v10042_v55 = vld [vmem:[%s17331_s5 + $0x118] sm:$0xff] }
 0x940   : > { %v18800_v2 = vmax.f32 %v18799_v11, 0.0  ;;  %v7511_v10 = vsel %vm7392_vm13, %v18801_v62, %v16627_v22  ;;  %v7294_v12 = vmax.f32 %v16514_v15, %v7204_v54  ;;  %v18804_v11 = vmax.f32 %v18803_v25, 0.0 }
 0x941   : > { %v7237_v57 = vsel %vm1248_vm2, %v18798_v21, %v7151_v49  ;;  %v7513_v49 = vsel %vm7395_vm14, %v18802_v63, %v7511_v10  ;;  %v10431_v62 = vunpack.i.h.bf16 %v16952_v38  ;;  %v16989_v10 = vunpack.c.l.b16 %v7632_v34 }
 0x942   : > { %v7079_v28 = vmax.f32 %v18800_v2, %v6980_v24  ;;  %v10025_v2 = vld [vmem:[%s17331_s5 + $0x90] sm:$0xff]  ;;  %v7111_v22 = vmax.f32 %v18804_v11, %v6996_v5  ;;  %v18805_v24 = vld [vmem:[#allocation46_spill] sm:$0xff]  ;;  %v7515_v15 = vsel %vm7398_vm15, %v7514_v36, %v7513_v49  ;;  %v18807_v54 = vrot.slane %v16744_v46, 1 }
 0x943   : > { %v18806_v21 = vmax.f32 %v18805_v24, 0.0  ;;  %v10426_v16 = vunpack.i.h.bf16 %v16966_v30  ;;  %v10425_v36 = vunpack.i.l.bf16 %v16966_v30  ;;  %v10430_v63 = vunpack.i.l.bf16 %v16952_v38  ;;  %7780 = vmatpush.bf16.msra.mxu3 %v10025_v2  ;;  %v10047_v38 = vld [vmem:[%s17331_s5 + $0x140] sm:$0xff] }
 0x944   : > { %v7517_v5 = vsel %vm7401_vm0, %v18807_v54, %v7515_v15  ;;  %v7143_v49 = vrot.slane %v7079_v28, 2  ;;  %v18808_v34 = vrot.slane %v16680_v18, 5  ;;  %v7705_v46 = vrot.slane %v16968_v8, 4  ;;  %v18809_v28 = vld [vmem:[#allocation112_spill] sm:$0xff] }
 0x945   : > { %v7103_v41 = vmax.f32 %v18806_v21, %v6992_v61  ;;  %v10041_v61 = vld [vmem:[%s17331_s5 + $0x110] sm:$0xff]  ;;  %v7532_v25 = vpack.c.b16 %v7517_v5, %v7517_v5  ;;  %v7633_v24 = vpack.c.bf16 %v7294_v12, %v7294_v12  ;;  %v7000_v21 = vsel %vm6976_vm9, %v10425_v36, %v10426_v16 }
 0x946   : > { %v7690_v11 = vsel %vm7390_vm12, %v18808_v34, %v7688_v58  ;;  %v10436_v54 = vunpack.i.h.bf16 %v16991_v29  ;;  %v10435_v51 = vunpack.i.l.bf16 %v16991_v29  ;;  %v18810_v5 = vmax.f32 %v18809_v28, 0.0  ;;  %v10050_v28 = vld [vmem:[%s17331_s5 + $0x158] sm:$0xff] }
 0x947   : > { %v7692_v15 = vsel %vm7392_vm13, %v7691_v19, %v7690_v11  ;;  %7600 = vmatmul.bf16.vlgmr.msrb.gmra.mxu2 %v7532_v25  ;;  %7927 = vmatpush.bf16.msrb.mxu3 %v10042_v55  ;;  %v7259_v12 = vmax.f32 %v16508_v31, %v7237_v57  ;;  %v18811_v36 = vrot.slane %v16665_v48, 5  ;;  %v7175_v19 = vrot.slane %v7111_v22, 2  ;;  %v10040_v25 = vld [vmem:[%s17331_s5 + $0x108] sm:$0xff] }
 0x948   : > { %v7119_v53 = vmax.f32 %v18810_v5, %v7000_v21  ;;  %v7694_v58 = vsel %vm7395_vm14, %v7693_v52, %v7692_v15  ;;  %7907 = vmatpush.bf16.msrb.mxu2 %v10041_v61  ;;  %v7697_v34 = vrot.slane %v16989_v10, 1  ;;  %v7167_v11 = vrot.slane %v7103_v41, 2  ;;  %v18814_v41 = vld [vmem:[#allocation50_spill] sm:$0xff]  ;;  %v18817_v5 = vld [vmem:[#allocation55_spill] sm:$0xff] }
 0x949   : > { %v7704_v2 = vsel %vm7390_vm12, %v18811_v36, %v7702_v33  ;;  %v7004_v52 = vsel %vm6976_vm9, %v10430_v63, %v10431_v62  ;;  %v18812_v55 = vrot.slane %v16549_v32, 2  ;;  %v18813_v33 = vrot.slane %v16806_v42, 2 }
 0x94a   : > { %v7706_v22 = vsel %vm7392_vm13, %v7705_v46, %v7704_v2  ;;  %v17036_v61 = vunpack.c.l.b16 %v7633_v24  ;;  %v18815_v21 = vmax.f32 %v18814_v41, 0.0  ;;  %v18818_v36 = vmax.f32 %v18817_v5, 0.0 }
 0x94b   : > { %v7243_v31 = vsel %vm1248_vm2, %v18812_v55, %v7143_v49  ;;  %v7696_v57 = vsel %vm7398_vm15, %v18813_v33, %v7694_v58  ;;  %v18816_v49 = vunpack.i.h.bf16 %v16853_v40  ;;  %v7008_v46 = vsel %vm6976_vm9, %v10435_v51, %v10436_v54  ;;  %v18820_v55 = vld [vmem:[#allocation54_spill] sm:$0xff] }
 0x94c   : > { %v7080_v15 = vmax.f32 %v18815_v21, %v10411_v50  ;;  %v7698_v63 = vsel %vm7401_vm0, %v7697_v34, %v7696_v57  ;;  %v7183_v24 = vrot.slane %v7119_v53, 2  ;;  %v18819_v50 = vrot.slane %v16883_v43, 2  ;;  %7908 = vmatpush.bf16.msrb.mxu2 %v10040_v25  ;;  %v10039_v53 = vld [vmem:[%s17331_s5 + $0x100] sm:$0xff] }
 0x94d   : > { %v7104_v58 = vmax.f32 %v18818_v36, %v18816_v49  ;;  %v7713_v3 = vpack.c.b16 %v7698_v63, %v7698_v63  ;;  %v7937_v34 = vpack.c.bf16 %v16933_v6, %v16933_v6  ;;  %v18821_v40 = vmax.f32 %v18820_v55, 0.0 }
 0x94e   : > { %v17057_v2 = vsel %vm7387_vm11, %v18819_v50, %v16774_v23  ;;  %v7253_v57 = vmax.f32 %v16549_v32, %v7243_v31  ;;  %v18822_v51 = vpack.c.bf16 %v16896_v59, %v16896_v59  ;;  %v7936_v23 = vpack.c.bf16 %v7259_v12, %v7259_v12  ;;  %v18826_v31 = vld [vmem:[#allocation31_spill] sm:$0xff]  ;;  %v18830_v50 = vld [vmem:[#allocation28_spill] sm:$0xff] }
 0x94f   : > { %v7127_v33 = vmax.f32 %v18821_v40, %v7004_v52  ;;  %v18823_v41 = vrot.slane %v16825_v37, 3  ;;  %v18824_v63 = vrot.slane %v16533_v14, 2  ;;  %7781 = vmatmul.bf16.vlgmr.msra.gmra.mxu3 %v7713_v3  ;;  %v18825_v25 = vrot.slane %v16779_v27, 2 }
 0x950   : > { %v17070_v43 = vunpack.c.l.b16 %v18822_v51  ;;  %v7711_v59 = vrot.slane %v17036_v61, 1  ;;  %v18827_v49 = vmax.f32 %v18826_v31, 0.0  ;;  %v7144_v5 = vrot.slane %v7080_v15, 2  ;;  %8089 = vmatpush.bf16.msra.mxu3 %v10050_v28  ;;  %7909 = vmatpush.bf16.msrb.mxu2 %v10039_v53 }
 0x951   : > { %v7708_v21 = vsel %vm7395_vm14, %v18823_v41, %v7706_v22  ;;  %v7225_v32 = vsel %vm1248_vm2, %v18824_v63, %v7167_v11  ;;  %v7219_v52 = vsel %vm1248_vm2, %v18825_v25, %v7175_v19  ;;  %v10049_v22 = vld [vmem:[%s17331_s5 + $0x150] sm:$0xff]  ;;  %v18828_v11 = vrot.slane %v16665_v48, 1  ;;  %v18833_v63 = vld [vmem:[#allocation52_spill] sm:$0xff] }
 0x952   : > { %v7135_v12 = vmax.f32 %v18827_v49, %v7008_v46  ;;  %v18829_v3 = vunpack.i.h.bf16 %v16880_v13  ;;  %v18831_v19 = vmax.f32 %v18830_v50, 0.0  ;;  %v7168_v40 = vrot.slane %v7104_v58, 2  ;;  %v10038_v13 = vld [vmem:[%s17331_s5 + $0xf8] sm:$0xff] }
 0x953   : > { %v7839_v36 = vsel %vm7390_vm12, %v18828_v11, %v16922_v17  ;;  %v18832_v51 = vrot.slane %v16693_v60, 2  ;;  %v7271_v46 = vmax.f32 %v16533_v14, %v7225_v32  ;;  %v7191_v41 = vrot.slane %v7127_v33, 2 }
 0x954   : > { %v7112_v55 = vmax.f32 %v18831_v19, %v18829_v3  ;;  %v7840_v28 = vsel %vm7392_vm13, %v16968_v8, %v7839_v36  ;;  %v7934_v48 = vpack.c.bf16 %v7253_v57, %v7253_v57  ;;  %v7987_v17 = vunpack.c.l.b16 %v7936_v23  ;;  %8090 = vmatpush.bf16.msra.mxu3 %v10049_v22  ;;  %7910 = vmatpush.bf16.msrb.mxu2 %v10038_v13 }
 0x955   : > { %v7213_v15 = vsel %vm1248_vm2, %v18832_v51, %v7183_v24  ;;  %v7277_v58 = vmax.f32 %v16779_v27, %v7219_v52  ;;  %v18834_v25 = vmax.f32 %v18833_v63, 0.0  ;;  %v18835_v31 = vrot.slane %v16738_v9, 2  ;;  %v10048_v27 = vld [vmem:[%s17331_s5 + $0x148] sm:$0xff] }
 0x956   : > { %v7199_v14 = vrot.slane %v7135_v12, 2  ;;  %v18836_v33 = vrot.slane %v16539_v20, 2  ;;  %v7283_v53 = vmax.f32 %v16693_v60, %v7213_v15  ;;  %v8003_v30 = vrot.slane %v17070_v43, 6  ;;  %v18840_v43 = vld [vmem:[#allocation113_spill] sm:$0xff] }
 0x957   : > { %v7120_v24 = vmax.f32 %v18834_v25, %v10426_v16  ;;  %v7710_v8 = vsel %vm7398_vm15, %v18835_v31, %v7708_v21  ;;  %v18837_v16 = vrot.slane %v16825_v37, 7  ;;  %v7176_v32 = vrot.slane %v7112_v55, 2  ;;  %v10037_v37 = vld [vmem:[%s17331_s5 + $0xf0] sm:$0xff] }
 0x958   : > { %v7244_v57 = vsel %vm1248_vm2, %v18836_v33, %v7144_v5  ;;  %v7712_v23 = vsel %vm7401_vm0, %v7711_v59, %v7710_v8  ;;  %v18838_v52 = vrot.slane %v16523_v44, 2  ;;  %v7940_v60 = vpack.c.bf16 %v7271_v46, %v7271_v46  ;;  %8091 = vmatpush.bf16.msra.mxu3 %v10048_v27  ;;  %7911 = vmatpush.bf16.msrb.mxu2 %v10037_v37 }
 0x959   : > { %v7842_v21 = vsel %vm7395_vm14, %v18837_v16, %v7840_v28  ;;  %v7845_v59 = vrot.slane %v17036_v61, 5  ;;  %v18839_v12 = vrot.slane %v16663_v47, 2  ;;  %v7985_v22 = vunpack.c.l.b16 %v7934_v48 }
 0x95a   : > { %v7226_v49 = vsel %vm1248_vm2, %v18838_v52, %v7168_v40  ;;  %v18841_v11 = vmax.f32 %v18840_v43, 0.0  ;;  %v7254_v3 = vmax.f32 %v16539_v20, %v7244_v57  ;;  %v7184_v50 = vrot.slane %v7120_v24, 2 }
 0x95b   : > { %v7207_v5 = vsel %vm1248_vm2, %v18839_v12, %v7191_v41  ;;  %v7714_v61 = vpack.c.b16 %v7712_v23, %v7712_v23  ;;  %v8001_v19 = vrot.slane %v7987_v17, 7  ;;  %v7942_v55 = vpack.c.bf16 %v7277_v58, %v7277_v58  ;;  %v18845_v17 = vld [vmem:[#allocation29_spill] sm:$0xff] }
 0x95c   : > { %v7128_v36 = vmax.f32 %v18841_v11, %v10431_v62  ;;  %v18842_v40 = vrot.slane %v16857_v0, 2  ;;  %v7944_v15 = vpack.c.bf16 %v7283_v53, %v7283_v53  ;;  %v18843_v28 = vrot.slane %v16810_v35, 2  ;;  %8092 = vmatpush.bf16.msra.mxu3 %v10047_v38 }
 0x95d   : > { %v7272_v62 = vmax.f32 %v16523_v44, %v7226_v49  ;;  %v7289_v46 = vmax.f32 %v16663_v47, %v7207_v5  ;;  %9665 = vmatmul.msk.bf16.vlgmr.msra.gmra.mxu2 %vm7474_vm1, %v7714_v61  ;;  %v18844_v41 = vrot.slane %v16738_v9, 6  ;;  %v7991_v13 = vunpack.c.l.b16 %v7940_v60  ;;  %v10036_v44 = vld [vmem:[%s17331_s5 + $0xe8] sm:$0xff]  ;;  %v10045_v5 = vld [vmem:[%s17331_s5 + $0x130] sm:$0xff] }
 0x95e   : > { %v7201_v51 = vsel %vm1248_vm2, %v18842_v40, %v7199_v14  ;;  %v7220_v20 = vsel %vm1248_vm2, %v18843_v28, %v7176_v32  ;;  %v18846_v58 = vmax.f32 %v18845_v17, 0.0  ;;  %v8002_v25 = vsel %vm7384_vm10, %v8001_v19, %v7985_v22  ;;  %7912 = vmatpush.bf16.msrb.mxu2 %v10036_v44 }
 0x95f   : > { %v7844_v48 = vsel %vm7398_vm15, %v18844_v41, %v7842_v21  ;;  %v7295_v24 = vmax.f32 %v16857_v0, %v7201_v51  ;;  %v7192_v9 = vrot.slane %v7128_v36, 2  ;;  %v7935_v31 = vpack.c.bf16 %v7254_v3, %v7254_v3  ;;  %v10046_v0 = vld [vmem:[%s17331_s5 + $0x138] sm:$0xff]  ;;  %v10051_v51 = vld [vmem:[%s17331_s5 + $0x160] sm:$0xff] }
 0x960   : > { %v7136_v63 = vmax.f32 %v18846_v58, %v10436_v54  ;;  %v7846_v47 = vsel %vm7401_vm0, %v7845_v59, %v7844_v48  ;;  %v18847_v8 = vrot.slane %v16684_v56, 2  ;;  %v7988_v54 = vunpack.c.l.b16 %v7937_v34  ;;  %8093 = vmatpush.bf16.msra.mxu3 %v10046_v0 }
 0x961   : > { %v7993_v14 = vunpack.c.l.b16 %v7942_v55  ;;  %v7995_v33 = vunpack.c.l.b16 %v7944_v15  ;;  %v18848_v57 = vrot.slane %v16680_v18, 1  ;;  %v7946_v23 = vpack.c.bf16 %v7289_v46, %v7289_v46  ;;  %v10035_v18 = vld [vmem:[%s17331_s5 + $0xe0] sm:$0xff] }
 0x962   : > { %v7214_v29 = vsel %vm1248_vm2, %v18847_v8, %v7184_v50  ;;  %v8004_v27 = vsel %vm7387_vm11, %v8003_v30, %v8002_v25  ;;  %v7848_v16 = vpack.c.b16 %v7846_v47, %v7846_v47  ;;  %v7278_v34 = vmax.f32 %v16810_v35, %v7220_v20  ;;  %7913 = vmatpush.bf16.msrb.mxu2 %v10035_v18 }
 0x963   : > { %v7825_v53 = vsel %vm7390_vm12, %v18848_v57, %v17057_v2  ;;  %v7941_v21 = vpack.c.bf16 %v7272_v62, %v7272_v62  ;;  %v8005_v32 = vrot.slane %v7991_v13, 5  ;;  %v7284_v52 = vmax.f32 %v16684_v56, %v7214_v29 }
 0x964   : > { %v7826_v6 = vsel %vm7392_vm13, %v16926_v39, %v7825_v53  ;;  %v7200_v2 = vrot.slane %v7136_v63, 2  ;;  %v7948_v49 = vpack.c.bf16 %v7295_v24, %v7295_v24  ;;  %v18849_v60 = vrot.slane %v16613_v1, 2  ;;  %9720 = vmatmul.msk.bf16.vlgmr.msrb.gmra.mxu3 %vm7474_vm1, %v7848_v16  ;;  %v10043_v24 = vld [vmem:[%s17331_s5 + $0x120] sm:$0xff] }
 0x965   : > { %v7986_v59 = vunpack.c.l.b16 %v7935_v31  ;;  %v8009_v35 = vrot.slane %v7995_v33, 3  ;;  %v18850_v39 = vrot.slane %v16843_v4, 7  ;;  %v7831_v12 = vrot.slane %v16989_v10, 5  ;;  %v10034_v10 = vld [vmem:[%s17331_s5 + $0xd8] sm:$0xff]  ;;  %8094 = vmatpush.bf16.msra.mxu3 %v10045_v5 }
 0x966   : > { %v7208_v30 = vsel %vm1248_vm2, %v18849_v60, %v7192_v9  ;;  %v8006_v22 = vsel %vm7390_vm12, %v8005_v32, %v8004_v27  ;;  %v7829_v37 = vrot.slane %v16806_v42, 6  ;;  %v18851_v43 = vpack.c.bf16 %v16886_v45, %v16886_v45  ;;  %7914 = vmatpush.bf16.msrb.mxu2 %v10034_v10 }
 0x967   : > { %v7828_v56 = vsel %vm7395_vm14, %v18850_v39, %v7826_v6  ;;  %v8007_v36 = vrot.slane %v7993_v14, 4  ;;  %v7997_v3 = vunpack.c.l.b16 %v7946_v23  ;;  %v8015_v4 = vrot.slane %v7988_v54, 7  ;;  %v10058_v39 = vld [vmem:[%s17333_s7 + $0x30] sm:$0xff] }
 0x968   : > { %v7990_v11 = vunpack.c.l.b16 %v18851_v43  ;;  %v7943_v50 = vpack.c.bf16 %v7278_v34, %v7278_v34  ;;  %v7992_v61 = vunpack.c.l.b16 %v7941_v21  ;;  %v7945_v19 = vpack.c.bf16 %v7284_v52, %v7284_v52 }
 0x969   : > { %v18852_v55 = vrot.slane %v16875_v26, 2  ;;  %v7290_v40 = vmax.f32 %v16613_v1, %v7208_v30  ;;  %v7830_v45 = vsel %vm7398_vm15, %v7829_v37, %v7828_v56  ;;  %v8008_v15 = vsel %vm7392_vm13, %v8007_v36, %v8006_v22  ;;  %8095 = vmatpush.bf16.msra.mxu3 %v10044_v7  ;;  %v10057_v56 = vld [vmem:[%s17333_s7 + $0x28] sm:$0xff]  ;;  %v10056_v22 = vld [vmem:[%s17333_s7 + $0x20] sm:$0xff]  ;;  %v10055_v37 = vld [vmem:[%s17333_s7 + $0x18] sm:$0xff] }
 0x96a   : > { %v7999_v38 = vunpack.c.l.b16 %v7948_v49  ;;  %v8016_v28 = vsel %vm7384_vm10, %v8015_v4, %v7986_v59  ;;  %v7832_v20 = vsel %vm7401_vm0, %v7831_v12, %v7830_v45  ;;  %v8010_v1 = vsel %vm7395_vm14, %v8009_v35, %v8008_v15  ;;  %8109 = vmatpush.bf16.msra.mxu2 %v10051_v51  ;;  %v10054_v4 = vld [vmem:[%s17333_s7 + $0x10] sm:$0xff]  ;;  %v10063_v51 = vld [vmem:[%s17335_s9 + $0x20] sm:$0xff]  ;;  %v10062_v15 = vld [vmem:[%s17335_s9 + $0x18] sm:$0xff] }
 0x96b   : > { %v7202_v42 = vsel %vm1248_vm2, %v18852_v55, %v7200_v2  ;;  %v8017_v62 = vrot.slane %v7990_v11, 6  ;;  %v8011_v46 = vrot.slane %v7997_v3, 2  ;;  %v7994_v41 = vunpack.c.l.b16 %v7943_v50  ;;  %v8137_v2 = vld [vmem:[%s17333_s7 + $0x38] sm:$0xf]  ;;  %v10053_v50 = vld [vmem:[%s17333_s7 + $0x8] sm:$0xff] }
 0x96c   : > { %v7296_v48 = vmax.f32 %v16875_v26, %v7202_v42  ;;  %v7996_v13 = vunpack.c.l.b16 %v7945_v19  ;;  %v7947_v17 = vpack.c.bf16 %v7290_v40, %v7290_v40  ;;  %v7847_v63 = vpack.c.b16 %v7832_v20, %v7832_v20  ;;  %v10052_v42 = vld [vmem:[%s17333_s7] sm:$0xff] }
 0x96d   : > { %v8018_v58 = vsel %vm7387_vm11, %v8017_v62, %v8016_v28  ;;  %v8012_v25 = vsel %vm7398_vm15, %v8011_v46, %v8010_v1  ;;  %v8019_v44 = vrot.slane %v7992_v61, 5  ;;  %v8013_v47 = vrot.slane %v7999_v38, 1  ;;  %8096 = vmatpush.bf16.msra.mxu3 %v10043_v24  ;;  %v8220_v61 = vld [vmem:[%s17335_s9 + $0x28] sm:$0x3]  ;;  %v10061_v1 = vld [vmem:[%s17335_s9 + $0x10] sm:$0xff] }
 0x96e   : > { %7915 = vmatmul.bf16.vlgmr.msrb.gmra.mxu2 %v7847_v63  ;;  %v7949_v9 = vpack.c.bf16 %v7296_v48, %v7296_v48  ;;  %v8023_v31 = vrot.slane %v7996_v13, 3  ;;  %v8021_v29 = vrot.slane %v7994_v41, 4  ;;  %v7998_v54 = vunpack.c.l.b16 %v7947_v17 }
 0x96f   : > { %v8020_v26 = vsel %vm7390_vm12, %v8019_v44, %v8018_v58  ;;  %v8014_v8 = vsel %vm7401_vm0, %v8013_v47, %v8012_v25  ;;  %v8171_v49 = vunpack.c.l.b16 %v8137_v2  ;;  %vm8191_vm2 = vcmask 1043456   ;;  %v10437_v25 = vld [vmem:[%s17332_s6] ss:$0 sm:$0xff] }
 0x970   : > { %v8022_v14 = vsel %vm7392_vm13, %v8021_v29, %v8020_v26  ;;  %v8029_v33 = vpack.c.b16 %v8014_v8, %v8014_v8  ;;  %v8000_v57 = vunpack.c.l.b16 %v7949_v9  ;;  %v8025_v0 = vrot.slane %v7998_v54, 2  ;;  %v10059_v8 = vld [vmem:[%s17335_s9] sm:$0xff] }
 0x971   : > { %v8024_v53 = vsel %vm7395_vm14, %v8023_v31, %v8022_v14  ;;  %v8179_v30 = vpack.c.b16 %v8171_v49, %v8171_v49  ;;  %v8246_v19 = vunpack.c.l.b16 %v8220_v61  ;;  %v10060_v31 = vld [vmem:[%s17335_s9 + $0x8] sm:$0xff]  ;;  %v10438_v29 = vld [vmem:[%s17334_s8] ss:$0 sm:$0xff] }
 0x972   : > { %v8026_v23 = vsel %vm7398_vm15, %v8025_v0, %v8024_v53  ;;  %v8027_v27 = vrot.slane %v8000_v57, 1  ;;  %v10439_v0 = vld [vmem:[%s17336_s10] ss:$0 sm:$0xff] }
 0x973   : > { %v8193_v59 = vsel %vm8191_vm2, %v8179_v30, 0  ;;  %v8252_v55 = vpack.c.b16 %v8246_v19, %v8246_v19 }
 0x974   : > { %8097 = vmatmul.bf16.vlgmr.msra.gmra.mxu3 %v8029_v33  ;;  %v8028_v16 = vsel %vm7401_vm0, %v8027_v27, %v8026_v23  ;;  %8195 = vmatpush.bf16.msrb.mxu2 %v8193_v59 }
 0x975   : > { %v8030_v6 = vpack.c.b16 %v8028_v16, %v8028_v16  ;;  %v8264_v45 = vsel %vm8262_vm3, %v8252_v55, 0 }
 0x976   : > { %8268 = vmatpush.bf16.msrb.mxu3 %v8264_v45 }
 0x978   : > { %8196 = vmatpush.bf16.msrb.mxu2 %v10058_v39 }
 0x97a   : > { %8269 = vmatpush.bf16.msrb.mxu3 %v10063_v51 }
 0x97c   : > { %8197 = vmatpush.bf16.msrb.mxu2 %v10057_v56 }
 0x97e   : > { %9775 = vmatmul.msk.bf16.vlgmr.msra.gmra.mxu2 %vm7474_vm1, %v8030_v6  ;;  %8270 = vmatpush.bf16.msrb.mxu3 %v10062_v15 }
 0x980   : > { %8198 = vmatpush.bf16.msrb.mxu2 %v10056_v22 }
 0x982   : > { %8271 = vmatpush.bf16.msrb.mxu3 %v10061_v1 }
 0x984   : > { %8199 = vmatpush.bf16.msrb.mxu2 %v10055_v37 }
 0x986   : > { %8272 = vmatpush.bf16.msrb.mxu3 %v10060_v31 }
 0x988   : > { %8200 = vmatpush.bf16.msrb.mxu2 %v10054_v4 }
 0x98a   : > { %8273 = vmatpush.bf16.msrb.mxu3 %v10059_v8 }
 0x98c   : > { %8201 = vmatpush.bf16.msrb.mxu2 %v10053_v50 }
 0x990   : > { %8202 = vmatpush.bf16.msrb.mxu2 %v10052_v42 }
 0x9a6   : > { %v7500_v34 = vpop.f32.mrf.mxu3 }
 0x9ae   : > { %v7502_v21 = vpop.f32.mrf.mxu3 }
 0x9b5   : > { %v7487_v32 = vpop.f32.mrf.mxu2 }
 0x9b6   : > { %v7614_v52 = vpop.f32.mrf.mxu3  ;;  %v7501_v28 = vadd.f32 %v7500_v34, %v7487_v32 }
 0x9bd   : > { %v7489_v18 = vpop.f32.mrf.mxu2 }
 0x9be   : > { %v7616_v60 = vpop.f32.mrf.mxu3 }
 0x9ca   : > { %v7601_v35 = vpop.f32.mrf.mxu2 }
 0x9cb   : > { %v7602_v7 = vadd.f32 %v7601_v35, %v7501_v28 }
 0x9cd   : > { %v7615_v46 = vadd.f32 %v7614_v52, %v7602_v7 }
 0x9d2   : > { %v7782_v12 = vpop.f32.mrf.mxu3  ;;  %v7603_v5 = vpop.f32.mrf.mxu2 }
 0x9da   : > { %v7784_v43 = vpop.f32.mrf.mxu3 }
 0x9e0   : > { %v7795_v11 = vpop.f32.mrf.mxu2 }
 0x9e1   : > { %v7796_v62 = vadd.f32 %v7795_v11, %v7782_v12 }
 0x9e3   : > { %v7799_v13 = vadd.f32 %v7796_v62, %v7615_v46 }
 0x9e7   : > { %v7929_v36 = vpop.f32.mrf.mxu3 }
 0x9e8   : > { %v7797_v3 = vpop.f32.mrf.mxu2 }
 0x9ef   : > { %v7931_v10 = vpop.f32.mrf.mxu3 }
 0x9f1   : > { %v7916_v40 = vpop.f32.mrf.mxu2 }
 0x9f2   : > { %v7930_v41 = vadd.f32 %v7929_v36, %v7916_v40 }
 0x9f4   : > { %v7933_v58 = vadd.f32 %v7930_v41, %v7799_v13 }
 0x9f7   : > { %v8098_v38 = vpop.f32.mrf.mxu3 }
 0x9f9   : > { %v7918_v20 = vpop.f32.mrf.mxu2 }
 0x9ff   : > { %v8100_v48 = vpop.f32.mrf.mxu3 }
 0xa01   : > { %v8111_v17 = vpop.f32.mrf.mxu2 }
 0xa02   : > { %v8112_v63 = vadd.f32 %v8111_v17, %v8098_v38 }
 0xa04   : > { %v8115_v44 = vadd.f32 %v8112_v63, %v7933_v58 }
 0xa06   : > { %v8120_v47 = vadd.f32 %v10437_v25, %v8115_v44 }
 0xa08   : > { %v8121_v24 = vmax.f32 %v8120_v47, 0.0 }
 0xa09   : > { %v8113_v9 = vpop.f32.mrf.mxu2 }
 0xa0a   : > { %v8122_v26 = vpack.c.bf16 %v8121_v24, %v8121_v24 }
 0xa0c   : > { %9804 = vmatmul.msk.bf16.vlgmr.msrb.gmra.mxu2 %vm8187_vm4, %v8122_v26 }
 0xa8f   : > { %v8204_v54 = vpop.f32.mrf.mxu2 }
 0xa90   : > { %v8205_v14 = vadd.f32 %v10438_v29, %v8204_v54 }
 0xa92   : > { %v8208_v33 = vmax.f32 %v8205_v14, 0.0 }
 0xa94   : > { %v8209_v57 = vpack.c.bf16 %v8208_v33, %v8208_v33 }
 0xa96   : > { %9825 = vmatmul.msk.bf16.vlgmr.msrb.gmra.mxu3 %vm8258_vm5, %v8209_v57 }
 0xa97   : > { %v8206_v53 = vpop.f32.mrf.mxu2 }
 0xb19   : > { %v8275_v23 = vpop.f32.mrf.mxu3 }
 0xb1a   : > { %v8276_v27 = vadd.f32 %v10439_v0, %v8275_v23 }
 0xb1c   : > { %8279 = vst [vmem:[%s382_s29] sm:$0xff] %v8276_v27 }
 0xb1d   : > { %10467 = shalt.err (!%p10464_p3)
}
 0xb1e   : > { %10076 = dma.vmem_to_hbm [thread:$0]  (%p10603_p5), %s8294_s30, 128, %s8296_s12, %s8281_s14  }
 0xb21   : > { %v8277_v16 = vpop.f32.mrf.mxu3 }
 0xb22 PF: > { %p10082_p4 = scmp.ge.s32.totalorder %s10502_s20, 2  ;;  %s8307_s13 = sand.u32 1, %s10490_s17  }
 0xb23   : > { %s8308_s26 = scalar_lea.sflag [#allocation3], %s8307_s13 }
 0xb24   : > { %p10079_p7 = pnand %p10082_p4, %p10607_p6 }
 0xb26   : > { %p10080_p8 = pneg %p10079_p7 }
 0xb28   : > { %10485 = dma.done.wait (%p10080_p8), %s8308_s26, 128  }
 0xb29   : > { %10487 = vsyncadd (%p10080_p8), %s8308_s26, 4294967168  ;;  %s18853_s0 = sld [smem:[#allocation5_spill]]  ;;  %p21_p9 = scmp.ge.s32.totalorder %s10589_s23, 4  }
 0xb2a   : > { %s18854_s19 = sld [smem:[#allocation6_spill]]  ;;  %s18855_s17 = smov %s10494_s18 }
 0xb2b   : > { %s18857_s20 = smov %s10589_s23  ;;  %23 = sbr.rel (!%p21_p9) target bundleno = 5 (0x5), region = 111 }
 0xb2f   : > { %s18856_s18 = smov %s18853_s0 }
 0xb30   :  { %8314 = vsyncpa [#allocation3], 1 }
 0xb31   :  { %8316 = vsyncpa [#allocation3 + $0x1], 1 }

</bundles_post_ra>
